<compile_context>
chip_gen: v5e
topology: v5e:2x2
jax: 0.10.0
libtpu: 0.0.40
codegen_flags: <defaults>
</compile_context>

<pallas_src>
import jax
import jax.numpy as jnp
from jax import lax
from jax.experimental import pallas as pl
from jax.experimental.pallas import tpu as pltpu


# ----------------------------- Pallas kernel -------------------------------- #

def lstm_kernel(x2_ref,                        # (T*Bp, I)       f32
                wcomb_ref, bcomb_ref,          # (I, 8Hp), (1, 8Hp)   [fwd|bwd] gates
                whf_hbm,                       # (Hp, 4Hp)  HBM (pl.ANY) -> manual DMA
                wfcf_ref, wfcb_ref, bfc_ref,   # fc: (1,Hp), (1,Hp), (1,1)
                out_ref,                       # (Bp, 128)
                gx_scr,                        # scratch: (T*Bp, 8Hp)
                whf_vmem,                      # scratch: (Hp, 4Hp)
                dma_sem):                      # scratch: DMA semaphore
    TB, G8 = gx_scr.shape
    Hp = G8 // 8
    Bp = out_ref.shape[0]
    T = TB // Bp

    # Kick off the 1 MB W_hh DMA immediately; it overlaps with the hoisted
    # input-projection matmul below and is only waited on before the recurrence.
    whf_cp = pltpu.make_async_copy(whf_hbm, whf_vmem, dma_sem)
    whf_cp.start()

    # Hoisted input projection + bias for BOTH directions and all T steps:
    # a single (T*Bp, I) x (I, 8Hp) MXU matmul into VMEM scratch.
    gx_scr[...] = (jnp.dot(x2_ref[...], wcomb_ref[...],
                           preferred_element_type=jnp.float32)
                   + bcomb_ref[...])

    whf_cp.wait()   # W_hh must be resident before the recurrence starts.

    # ---- forward direction: unrolled T-step recurrence, h/c carried as values.
    def body(t, carry):
        h, c = carry
        start = pl.multiple_of(t * Bp, Bp)
        gx = gx_scr[pl.ds(start, Bp), pl.ds(0, 4 * Hp)]          # (Bp, 4Hp)
        # Four independent per-gate chains [i, f, o, g]: EUP activations can
        # start as soon as the corresponding MXU tile is available.
        g_i = gx[:, 0 * Hp:1 * Hp] + jnp.dot(
            h, whf_vmem[:, 0 * Hp:1 * Hp], preferred_element_type=jnp.float32)
        g_f = gx[:, 1 * Hp:2 * Hp] + jnp.dot(
            h, whf_vmem[:, 1 * Hp:2 * Hp], preferred_element_type=jnp.float32)
        g_o = gx[:, 2 * Hp:3 * Hp] + jnp.dot(
            h, whf_vmem[:, 2 * Hp:3 * Hp], preferred_element_type=jnp.float32)
        g_g = gx[:, 3 * Hp:4 * Hp] + jnp.dot(
            h, whf_vmem[:, 3 * Hp:4 * Hp], preferred_element_type=jnp.float32)
        i = jax.nn.sigmoid(g_i)
        f = jax.nn.sigmoid(g_f)
        o = jax.nn.sigmoid(g_o)
        g = jnp.tanh(g_g)
        c_new = f * c + i * g
        h_new = o * jnp.tanh(c_new)
        return h_new, c_new

    h0 = jnp.zeros((Bp, Hp), jnp.float32)
    c0 = jnp.zeros((Bp, Hp), jnp.float32)
    h_fwd, _ = lax.fori_loop(0, T, body, (h0, c0), unroll=True)

    # ---- backward direction at output position T-1: one step from zero state.
    # Its input projection lives in columns [4Hp:8Hp] of the fused matmul; the
    # h @ W_hh_b term is identically zero (zero initial state), so W_hh_b is
    # never even transferred.
    gx_b = gx_scr[pl.ds((T - 1) * Bp, Bp), pl.ds(4 * Hp, 4 * Hp)]  # (Bp, 4Hp)
    i_b = jax.nn.sigmoid(gx_b[:, 0 * Hp:1 * Hp])
    o_b = jax.nn.sigmoid(gx_b[:, 2 * Hp:3 * Hp])
    g_b = jnp.tanh(gx_b[:, 3 * Hp:4 * Hp])
    c_b = i_b * g_b                      # f * 0 == 0
    h_bwd = o_b * jnp.tanh(c_b)

    # ---- fc head (output_size = 1): VPU multiply + lane reduction, no MXU ----
    y = (jnp.sum(h_fwd * wfcf_ref[...], axis=-1, keepdims=True)
         + jnp.sum(h_bwd * wfcb_ref[...], axis=-1, keepdims=True)
         + bfc_ref[...])                                  # (Bp, 1)
    out_ref[...] = jnp.broadcast_to(y, out_ref.shape)     # lane-dense store


# --------------------------- one-time weight packing -------------------------- #

_GATE_ORDER = (0, 1, 3, 2)   # PyTorch [i, f, g, o] -> kernel [i, f, o, g]


def _pack_gate_cols(w_t, H, Hp):
    """(rows, 4H) in PyTorch gate order -> (rows, 4Hp) in kernel order [i,f,o,g].

    Padded gate columns are zero (required: keeps padded lanes inert)."""
    rows = w_t.shape[0]
    out = jnp.zeros((rows, 4 * Hp), dtype=jnp.float32)
    for new_g, old_g in enumerate(_GATE_ORDER):
        out = out.at[:, new_g * Hp:new_g * Hp + H].set(
            w_t[:, old_g * H:(old_g + 1) * H])
    return out


def pack_lstm_params(params, hidden_size):
    """Repack PyTorch-layout LSTM + fc weights ONCE (out of the per-call path)."""
    H = hidden_size
    Hp = ((H + 127) // 128) * 128            # 200 -> 256 (lane multiple)

    wif = _pack_gate_cols(params["w_ih_f"].T.astype(jnp.float32), H, Hp)   # (I, 4Hp)
    bf = _pack_gate_cols(
        (params["b_ih_f"] + params["b_hh_f"])[None, :].astype(jnp.float32), H, Hp)
    whf = _pack_gate_cols(params["w_hh_f"].T.astype(jnp.float32), H, Hp)
    whf = jnp.pad(whf, ((0, Hp - H), (0, 0)))                              # (Hp, 4Hp)

    wib = _pack_gate_cols(params["w_ih_b"].T.astype(jnp.float32), H, Hp)   # (I, 4Hp)
    bb = _pack_gate_cols(
        (params["b_ih_b"] + params["b_hh_b"])[None, :].astype(jnp.float32), H, Hp)
    # W_hh_b intentionally dropped (reverse state is zero; see kernel comment).

    w_comb = jnp.concatenate([wif, wib], axis=1)   # (I, 8Hp)  [fwd gates | bwd gates]
    b_comb = jnp.concatenate([bf, bb], axis=1)     # (1, 8Hp)

    fc_w = params["fc_w"].astype(jnp.float32)
    wfcf = jnp.zeros((1, Hp), jnp.float32).at[0, :H].set(fc_w[0, :H])
    wfcb = jnp.zeros((1, Hp), jnp.float32).at[0, :H].set(fc_w[0, H:2 * H])
    bfc = params["fc_b"].reshape(1, 1).astype(jnp.float32)

    packed = dict(w_comb=w_comb, b_comb=b_comb, whf=whf,
                  wfcf=wfcf, wfcb=wfcb, bfc=bfc)
    # Materialize so none of this repacking runs per call.
    return jax.tree_util.tree_map(jax.block_until_ready, packed)


# ------------------------------ jitted forward -------------------------------- #

@jax.jit
def lstm_model_forward(x, packed):
    """x: (B, T, I) float32; packed: output of pack_lstm_params. Returns (B, 1)."""
    B, T, I = x.shape
    Hp = packed["whf"].shape[0]
    Bp = max(8, ((B + 7) // 8) * 8)          # explicit sublane padding of batch

    # Only per-call data prep: (B,T,I) -> (T*Bp, I) time-major 2-D slab.
    x_tbi = jnp.transpose(x, (1, 0, 2)).astype(jnp.float32)       # (T, B, I)
    x_tbi = jnp.pad(x_tbi, ((0, 0), (0, Bp - B), (0, 0)))         # (T, Bp, I)
    x2d = x_tbi.reshape(T * Bp, I)                                # (T*Bp, I)

    full2 = lambda i: (0, 0)
    in_specs = [
        pl.BlockSpec(x2d.shape, full2),
        pl.BlockSpec(packed["w_comb"].shape, full2),
        pl.BlockSpec(packed["b_comb"].shape, full2),
        pl.BlockSpec(memory_space=pl.ANY),     # whf stays in HBM; DMA'd in-kernel
        pl.BlockSpec(packed["wfcf"].shape, full2),
        pl.BlockSpec(packed["wfcb"].shape, full2),
        pl.BlockSpec(packed["bfc"].shape, full2),
    ]

    y_full = pl.pallas_call(
        lstm_kernel,
        out_shape=jax.ShapeDtypeStruct((Bp, 128), jnp.float32),
        grid_spec=pltpu.PrefetchScalarGridSpec(
            num_scalar_prefetch=0,
            grid=(1,),
            in_specs=in_specs,
            out_specs=pl.BlockSpec((Bp, 128), full2),
            scratch_shapes=[
                pltpu.VMEM((T * Bp, 8 * Hp), jnp.float32),   # fused gate projections
                pltpu.VMEM((Hp, 4 * Hp), jnp.float32),       # W_hh_f landing buffer
                pltpu.SemaphoreType.DMA,                     # W_hh_f copy semaphore
            ],
        ),
        compiler_params=pltpu.CompilerParams(
            dimension_semantics=("arbitrary",)),
    )(x2d, packed["w_comb"], packed["b_comb"], packed["whf"],
      packed["wfcf"], packed["wfcb"], packed["bfc"])

    return y_full[:B, :1]


# --------------------------- pure-JAX reference ------------------------------ #

def lstm_ref(x, p, H):
    B, T, I = x.shape

    def cell(x_t, h, c, w_ih, w_hh, b_ih, b_hh):
        gates = x_t @ w_ih.T + h @ w_hh.T + b_ih + b_hh
        i = jax.nn.sigmoid(gates[:, 0:H])
        f = jax.nn.sigmoid(gates[:, H:2 * H])
        g = jnp.tanh(gates[:, 2 * H:3 * H])
        o = jax.nn.sigmoid(gates[:, 3 * H:4 * H])
        c = f * c + i * g
        h = o * jnp.tanh(c)
        return h, c

    h = jnp.zeros((B, H), jnp.float32)
    c = jnp.zeros((B, H), jnp.float32)
    for t in range(T):
        h, c = cell(x[:, t], h, c, p["w_ih_f"], p["w_hh_f"],
                    p["b_ih_f"], p["b_hh_f"])
    hz = jnp.zeros((B, H), jnp.float32)
    h_b, _ = cell(x[:, T - 1], hz, hz, p["w_ih_b"], p["w_hh_b"],
                  p["b_ih_b"], p["b_hh_b"])
    feat = jnp.concatenate([h, h_b], axis=1)
    return feat @ p["fc_w"].T + p["fc_b"]


# ---------------------------------- main ------------------------------------- #

def init_params(key, input_size, hidden_size):
    """Deterministic uniform(-k, k) init, mirroring PyTorch shapes."""
    H, I = hidden_size, input_size
    k_lstm = 1.0 / jnp.sqrt(H)
    k_fc = 1.0 / jnp.sqrt(2.0 * H)
    names_shapes = [
        ("w_ih_f", (4 * H, I)), ("w_hh_f", (4 * H, H)),
        ("b_ih_f", (4 * H,)), ("b_hh_f", (4 * H,)),
        ("w_ih_b", (4 * H, I)), ("w_hh_b", (4 * H, H)),
        ("b_ih_b", (4 * H,)), ("b_hh_b", (4 * H,)),
    ]
    params = {}
    keys = jax.random.split(key, len(names_shapes) + 2)
    for (name, shape), k in zip(names_shapes, keys[:-2]):
        params[name] = jax.random.uniform(k, shape, jnp.float32,
                                          -k_lstm, k_lstm)
    params["fc_w"] = jax.random.uniform(keys[-2], (1, 2 * H), jnp.float32,
                                        -k_fc, k_fc)
    params["fc_b"] = jax.random.uniform(keys[-1], (1,), jnp.float32,
                                        -k_fc, k_fc)
    return params


if __name__ == "__main__":
    INPUT_SIZE = 30
    HIDDEN_SIZE = 200
    BATCH = 2
    SEQ = 8

    root = jax.random.PRNGKey(0)
    kx, kp = jax.random.split(root)
    x = jax.random.normal(kx, (BATCH, SEQ, INPUT_SIZE), jnp.float32)
    params = init_params(kp, INPUT_SIZE, HIDDEN_SIZE)

    # One-time packing (outside the per-call hot path).
    packed = pack_lstm_params(params, HIDDEN_SIZE)

    y = lstm_model_forward(x, packed)
    y = jax.block_until_ready(y)

    y_ref = lstm_ref(x, params, HIDDEN_SIZE)
    assert y.shape == (BATCH, 1)
    assert jnp.allclose(y, y_ref, atol=1e-4, rtol=1e-4), (y, y_ref)

    print("KERNEL_OK")
</pallas_src>

<mosaic_0001>
module attributes {stable_mosaic.version = 11 : i64} {
  func.func @lstm_kernel(%arg0: i32, %arg1: memref<64x30xf32, #tpu.memory_space<vmem>>, %arg2: memref<30x2048xf32, #tpu.memory_space<vmem>>, %arg3: memref<1x2048xf32, #tpu.memory_space<vmem>>, %arg4: memref<256x1024xf32, #tpu.memory_space<any>>, %arg5: memref<1x256xf32, #tpu.memory_space<vmem>>, %arg6: memref<1x256xf32, #tpu.memory_space<vmem>>, %arg7: memref<1x1xf32, #tpu.memory_space<vmem>>, %arg8: memref<8x128xf32, #tpu.memory_space<vmem>>, %arg9: memref<64x2048xf32, #tpu.memory_space<vmem>>, %arg10: memref<256x1024xf32, #tpu.memory_space<vmem>>, %arg11: memref<!tpu.dma_semaphore, #tpu.memory_space<semaphore_mem>>) attributes {dimension_semantics = [#tpu.dimension_semantics<arbitrary>], iteration_bounds = array<i64: 1>, scalar_prefetch = 0 : i64, scratch_operands = 3 : i64, tpu.core_type = #tpu.core_type<tc>, window_params = [{pipeline_mode = #tpu.pipeline_mode<synchronous>, transform_indices = @transform_0, window_bounds = array<i64: 64, 30>}, {pipeline_mode = #tpu.pipeline_mode<synchronous>, transform_indices = @transform_1, window_bounds = array<i64: 30, 2048>}, {pipeline_mode = #tpu.pipeline_mode<synchronous>, transform_indices = @transform_2, window_bounds = array<i64: 1, 2048>}, {}, {pipeline_mode = #tpu.pipeline_mode<synchronous>, transform_indices = @transform_4, window_bounds = array<i64: 1, 256>}, {pipeline_mode = #tpu.pipeline_mode<synchronous>, transform_indices = @transform_5, window_bounds = array<i64: 1, 256>}, {pipeline_mode = #tpu.pipeline_mode<synchronous>, transform_indices = @transform_6, window_bounds = array<i64: 1, 1>}, {pipeline_mode = #tpu.pipeline_mode<synchronous>, transform_indices = @transform_7, window_bounds = array<i64: 8, 128>}]} {
    tpu.enqueue_dma source(%arg4 : memref<256x1024xf32, #tpu.memory_space<any>>) target(%arg10 : memref<256x1024xf32, #tpu.memory_space<vmem>>) target_semaphore(%arg11 : memref<!tpu.dma_semaphore, #tpu.memory_space<semaphore_mem>>)
    %c0 = arith.constant 0 : index
    %c0_0 = arith.constant 0 : index
    %0 = vector.load %arg1[%c0, %c0_0] : memref<64x30xf32, #tpu.memory_space<vmem>>, vector<64x30xf32>
    %c0_1 = arith.constant 0 : index
    %c0_2 = arith.constant 0 : index
    %1 = vector.load %arg2[%c0_1, %c0_2] : memref<30x2048xf32, #tpu.memory_space<vmem>>, vector<30x2048xf32>
    %cst = arith.constant dense<0.000000e+00> : vector<64x2048xf32>
    %2 = tpu.matmul %0, %1, %cst {dimension_numbers = #tpu.dot_dimension_numbers<[1], [0], [0], [1], [0, 0, 1, 1], [], []>} : vector<64x30xf32>, vector<30x2048xf32>, vector<64x2048xf32> -> vector<64x2048xf32>
    %c0_3 = arith.constant 0 : index
    %c0_4 = arith.constant 0 : index
    %3 = vector.load %arg3[%c0_3, %c0_4] : memref<1x2048xf32, #tpu.memory_space<vmem>>, vector<1x2048xf32>
    %4 = vector.broadcast %3 : vector<1x2048xf32> to vector<64x2048xf32>
    %5 = arith.addf %2, %4 : vector<64x2048xf32>
    %c0_5 = arith.constant 0 : index
    %c0_6 = arith.constant 0 : index
    %6 = vector.load %arg9[%c0_5, %c0_6] : memref<64x2048xf32, #tpu.memory_space<vmem>>, vector<64x2048xf32>
    tpu.vector_store %arg9[%c0_5, %c0_6], %5 {strides = array<i32>} : memref<64x2048xf32, #tpu.memory_space<vmem>>, vector<64x2048xf32>,
    tpu.wait_dma2 semaphore(%arg11 : memref<!tpu.dma_semaphore, #tpu.memory_space<semaphore_mem>>) src(%arg4 : memref<256x1024xf32, #tpu.memory_space<any>>) dst(%arg10 : memref<256x1024xf32, #tpu.memory_space<vmem>>)
    %cst_7 = arith.constant 0.000000e+00 : f32
    %7 = vector.broadcast %cst_7 : f32 to vector<8x256xf32>
    %cst_8 = arith.constant 0.000000e+00 : f32
    %8 = vector.broadcast %cst_8 : f32 to vector<8x256xf32>
    %c0_i32 = arith.constant 0 : i32
    %c8_i32 = arith.constant 8 : i32
    %9 = arith.muli %c0_i32, %c8_i32 : i32
    %10 = tpu.assume_multiple %9, 8 : i32
    %11 = arith.index_cast %10 : i32 to index
    %c0_9 = arith.constant 0 : index
    %12 = vector.load %arg9[%11, %c0_9] : memref<64x2048xf32, #tpu.memory_space<vmem>>, vector<8x1024xf32>
    %13 = vector.extract_strided_slice %12 {offsets = [0, 0], sizes = [8, 256], strides = [1, 1]} : vector<8x1024xf32> to vector<8x256xf32>
    %c0_10 = arith.constant 0 : index
    %c0_11 = arith.constant 0 : index
    %14 = vector.load %arg10[%c0_10, %c0_11] : memref<256x1024xf32, #tpu.memory_space<vmem>>, vector<256x256xf32>
    %cst_12 = arith.constant dense<0.000000e+00> : vector<8x256xf32>
    %15 = tpu.matmul %7, %14, %cst_12 {dimension_numbers = #tpu.dot_dimension_numbers<[1], [0], [0], [1], [0, 0, 1, 1], [], []>} : vector<8x256xf32>, vector<256x256xf32>, vector<8x256xf32> -> vector<8x256xf32>
    %16 = arith.addf %13, %15 : vector<8x256xf32>
    %17 = vector.extract_strided_slice %12 {offsets = [0, 256], sizes = [8, 256], strides = [1, 1]} : vector<8x1024xf32> to vector<8x256xf32>
    %c0_13 = arith.constant 0 : index
    %c256 = arith.constant 256 : index
    %18 = vector.load %arg10[%c0_13, %c256] : memref<256x1024xf32, #tpu.memory_space<vmem>>, vector<256x256xf32>
    %cst_14 = arith.constant dense<0.000000e+00> : vector<8x256xf32>
    %19 = tpu.matmul %7, %18, %cst_14 {dimension_numbers = #tpu.dot_dimension_numbers<[1], [0], [0], [1], [0, 0, 1, 1], [], []>} : vector<8x256xf32>, vector<256x256xf32>, vector<8x256xf32> -> vector<8x256xf32>
    %20 = arith.addf %17, %19 : vector<8x256xf32>
    %21 = vector.extract_strided_slice %12 {offsets = [0, 512], sizes = [8, 256], strides = [1, 1]} : vector<8x1024xf32> to vector<8x256xf32>
    %c0_15 = arith.constant 0 : index
    %c512 = arith.constant 512 : index
    %22 = vector.load %arg10[%c0_15, %c512] : memref<256x1024xf32, #tpu.memory_space<vmem>>, vector<256x256xf32>
    %cst_16 = arith.constant dense<0.000000e+00> : vector<8x256xf32>
    %23 = tpu.matmul %7, %22, %cst_16 {dimension_numbers = #tpu.dot_dimension_numbers<[1], [0], [0], [1], [0, 0, 1, 1], [], []>} : vector<8x256xf32>, vector<256x256xf32>, vector<8x256xf32> -> vector<8x256xf32>
    %24 = arith.addf %21, %23 : vector<8x256xf32>
    %25 = vector.extract_strided_slice %12 {offsets = [0, 768], sizes = [8, 256], strides = [1, 1]} : vector<8x1024xf32> to vector<8x256xf32>
    %c0_17 = arith.constant 0 : index
    %c768 = arith.constant 768 : index
    %26 = vector.load %arg10[%c0_17, %c768] : memref<256x1024xf32, #tpu.memory_space<vmem>>, vector<256x256xf32>
    %cst_18 = arith.constant dense<0.000000e+00> : vector<8x256xf32>
    %27 = tpu.matmul %7, %26, %cst_18 {dimension_numbers = #tpu.dot_dimension_numbers<[1], [0], [0], [1], [0, 0, 1, 1], [], []>} : vector<8x256xf32>, vector<256x256xf32>, vector<8x256xf32> -> vector<8x256xf32>
    %28 = arith.addf %25, %27 : vector<8x256xf32>
    %29 = arith.negf %16 : vector<8x256xf32>
    %30 = math.exp %29 : vector<8x256xf32>
    %cst_19 = arith.constant 1.000000e+00 : f32
    %31 = vector.broadcast %cst_19 : f32 to vector<8x256xf32>
    %32 = arith.addf %31, %30 : vector<8x256xf32>
    %33 = arith.divf %31, %32 : vector<8x256xf32>
    %34 = arith.negf %20 : vector<8x256xf32>
    %35 = math.exp %34 : vector<8x256xf32>
    %cst_20 = arith.constant 1.000000e+00 : f32
    %36 = vector.broadcast %cst_20 : f32 to vector<8x256xf32>
    %37 = arith.addf %36, %35 : vector<8x256xf32>
    %38 = arith.divf %36, %37 : vector<8x256xf32>
    %39 = arith.negf %24 : vector<8x256xf32>
    %40 = math.exp %39 : vector<8x256xf32>
    %cst_21 = arith.constant 1.000000e+00 : f32
    %41 = vector.broadcast %cst_21 : f32 to vector<8x256xf32>
    %42 = arith.addf %41, %40 : vector<8x256xf32>
    %43 = arith.divf %41, %42 : vector<8x256xf32>
    %44 = math.tanh %28 : vector<8x256xf32>
    %45 = arith.mulf %38, %8 : vector<8x256xf32>
    %46 = arith.mulf %33, %44 : vector<8x256xf32>
    %47 = arith.addf %45, %46 : vector<8x256xf32>
    %48 = math.tanh %47 : vector<8x256xf32>
    %49 = arith.mulf %43, %48 : vector<8x256xf32>
    %c1_i32 = arith.constant 1 : i32
    %c8_i32_22 = arith.constant 8 : i32
    %50 = arith.muli %c1_i32, %c8_i32_22 : i32
    %51 = tpu.assume_multiple %50, 8 : i32
    %52 = arith.index_cast %51 : i32 to index
    %c0_23 = arith.constant 0 : index
    %53 = vector.load %arg9[%52, %c0_23] : memref<64x2048xf32, #tpu.memory_space<vmem>>, vector<8x1024xf32>
    %54 = vector.extract_strided_slice %53 {offsets = [0, 0], sizes = [8, 256], strides = [1, 1]} : vector<8x1024xf32> to vector<8x256xf32>
    %c0_24 = arith.constant 0 : index
    %c0_25 = arith.constant 0 : index
    %55 = vector.load %arg10[%c0_24, %c0_25] : memref<256x1024xf32, #tpu.memory_space<vmem>>, vector<256x256xf32>
    %cst_26 = arith.constant dense<0.000000e+00> : vector<8x256xf32>
    %56 = tpu.matmul %49, %55, %cst_26 {dimension_numbers = #tpu.dot_dimension_numbers<[1], [0], [0], [1], [0, 0, 1, 1], [], []>} : vector<8x256xf32>, vector<256x256xf32>, vector<8x256xf32> -> vector<8x256xf32>
    %57 = arith.addf %54, %56 : vector<8x256xf32>
    %58 = vector.extract_strided_slice %53 {offsets = [0, 256], sizes = [8, 256], strides = [1, 1]} : vector<8x1024xf32> to vector<8x256xf32>
    %c0_27 = arith.constant 0 : index
    %c256_28 = arith.constant 256 : index
    %59 = vector.load %arg10[%c0_27, %c256_28] : memref<256x1024xf32, #tpu.memory_space<vmem>>, vector<256x256xf32>
    %cst_29 = arith.constant dense<0.000000e+00> : vector<8x256xf32>
    %60 = tpu.matmul %49, %59, %cst_29 {dimension_numbers = #tpu.dot_dimension_numbers<[1], [0], [0], [1], [0, 0, 1, 1], [], []>} : vector<8x256xf32>, vector<256x256xf32>, vector<8x256xf32> -> vector<8x256xf32>
    %61 = arith.addf %58, %60 : vector<8x256xf32>
    %62 = vector.extract_strided_slice %53 {offsets = [0, 512], sizes = [8, 256], strides = [1, 1]} : vector<8x1024xf32> to vector<8x256xf32>
    %c0_30 = arith.constant 0 : index
    %c512_31 = arith.constant 512 : index
    %63 = vector.load %arg10[%c0_30, %c512_31] : memref<256x1024xf32, #tpu.memory_space<vmem>>, vector<256x256xf32>
    %cst_32 = arith.constant dense<0.000000e+00> : vector<8x256xf32>
    %64 = tpu.matmul %49, %63, %cst_32 {dimension_numbers = #tpu.dot_dimension_numbers<[1], [0], [0], [1], [0, 0, 1, 1], [], []>} : vector<8x256xf32>, vector<256x256xf32>, vector<8x256xf32> -> vector<8x256xf32>
    %65 = arith.addf %62, %64 : vector<8x256xf32>
    %66 = vector.extract_strided_slice %53 {offsets = [0, 768], sizes = [8, 256], strides = [1, 1]} : vector<8x1024xf32> to vector<8x256xf32>
    %c0_33 = arith.constant 0 : index
    %c768_34 = arith.constant 768 : index
    %67 = vector.load %arg10[%c0_33, %c768_34] : memref<256x1024xf32, #tpu.memory_space<vmem>>, vector<256x256xf32>
    %cst_35 = arith.constant dense<0.000000e+00> : vector<8x256xf32>
    %68 = tpu.matmul %49, %67, %cst_35 {dimension_numbers = #tpu.dot_dimension_numbers<[1], [0], [0], [1], [0, 0, 1, 1], [], []>} : vector<8x256xf32>, vector<256x256xf32>, vector<8x256xf32> -> vector<8x256xf32>
    %69 = arith.addf %66, %68 : vector<8x256xf32>
    %70 = arith.negf %57 : vector<8x256xf32>
    %71 = math.exp %70 : vector<8x256xf32>
    %cst_36 = arith.constant 1.000000e+00 : f32
    %72 = vector.broadcast %cst_36 : f32 to vector<8x256xf32>
    %73 = arith.addf %72, %71 : vector<8x256xf32>
    %74 = arith.divf %72, %73 : vector<8x256xf32>
    %75 = arith.negf %61 : vector<8x256xf32>
    %76 = math.exp %75 : vector<8x256xf32>
    %cst_37 = arith.constant 1.000000e+00 : f32
    %77 = vector.broadcast %cst_37 : f32 to vector<8x256xf32>
    %78 = arith.addf %77, %76 : vector<8x256xf32>
    %79 = arith.divf %77, %78 : vector<8x256xf32>
    %80 = arith.negf %65 : vector<8x256xf32>
    %81 = math.exp %80 : vector<8x256xf32>
    %cst_38 = arith.constant 1.000000e+00 : f32
    %82 = vector.broadcast %cst_38 : f32 to vector<8x256xf32>
    %83 = arith.addf %82, %81 : vector<8x256xf32>
    %84 = arith.divf %82, %83 : vector<8x256xf32>
    %85 = math.tanh %69 : vector<8x256xf32>
    %86 = arith.mulf %79, %47 : vector<8x256xf32>
    %87 = arith.mulf %74, %85 : vector<8x256xf32>
    %88 = arith.addf %86, %87 : vector<8x256xf32>
    %89 = math.tanh %88 : vector<8x256xf32>
    %90 = arith.mulf %84, %89 : vector<8x256xf32>
    %c2_i32 = arith.constant 2 : i32
    %c8_i32_39 = arith.constant 8 : i32
    %91 = arith.muli %c2_i32, %c8_i32_39 : i32
    %92 = tpu.assume_multiple %91, 8 : i32
    %93 = arith.index_cast %92 : i32 to index
    %c0_40 = arith.constant 0 : index
    %94 = vector.load %arg9[%93, %c0_40] : memref<64x2048xf32, #tpu.memory_space<vmem>>, vector<8x1024xf32>
    %95 = vector.extract_strided_slice %94 {offsets = [0, 0], sizes = [8, 256], strides = [1, 1]} : vector<8x1024xf32> to vector<8x256xf32>
    %c0_41 = arith.constant 0 : index
    %c0_42 = arith.constant 0 : index
    %96 = vector.load %arg10[%c0_41, %c0_42] : memref<256x1024xf32, #tpu.memory_space<vmem>>, vector<256x256xf32>
    %cst_43 = arith.constant dense<0.000000e+00> : vector<8x256xf32>
    %97 = tpu.matmul %90, %96, %cst_43 {dimension_numbers = #tpu.dot_dimension_numbers<[1], [0], [0], [1], [0, 0, 1, 1], [], []>} : vector<8x256xf32>, vector<256x256xf32>, vector<8x256xf32> -> vector<8x256xf32>
    %98 = arith.addf %95, %97 : vector<8x256xf32>
    %99 = vector.extract_strided_slice %94 {offsets = [0, 256], sizes = [8, 256], strides = [1, 1]} : vector<8x1024xf32> to vector<8x256xf32>
    %c0_44 = arith.constant 0 : index
    %c256_45 = arith.constant 256 : index
    %100 = vector.load %arg10[%c0_44, %c256_45] : memref<256x1024xf32, #tpu.memory_space<vmem>>, vector<256x256xf32>
    %cst_46 = arith.constant dense<0.000000e+00> : vector<8x256xf32>
    %101 = tpu.matmul %90, %100, %cst_46 {dimension_numbers = #tpu.dot_dimension_numbers<[1], [0], [0], [1], [0, 0, 1, 1], [], []>} : vector<8x256xf32>, vector<256x256xf32>, vector<8x256xf32> -> vector<8x256xf32>
    %102 = arith.addf %99, %101 : vector<8x256xf32>
    %103 = vector.extract_strided_slice %94 {offsets = [0, 512], sizes = [8, 256], strides = [1, 1]} : vector<8x1024xf32> to vector<8x256xf32>
    %c0_47 = arith.constant 0 : index
    %c512_48 = arith.constant 512 : index
    %104 = vector.load %arg10[%c0_47, %c512_48] : memref<256x1024xf32, #tpu.memory_space<vmem>>, vector<256x256xf32>
    %cst_49 = arith.constant dense<0.000000e+00> : vector<8x256xf32>
    %105 = tpu.matmul %90, %104, %cst_49 {dimension_numbers = #tpu.dot_dimension_numbers<[1], [0], [0], [1], [0, 0, 1, 1], [], []>} : vector<8x256xf32>, vector<256x256xf32>, vector<8x256xf32> -> vector<8x256xf32>
    %106 = arith.addf %103, %105 : vector<8x256xf32>
    %107 = vector.extract_strided_slice %94 {offsets = [0, 768], sizes = [8, 256], strides = [1, 1]} : vector<8x1024xf32> to vector<8x256xf32>
    %c0_50 = arith.constant 0 : index
    %c768_51 = arith.constant 768 : index
    %108 = vector.load %arg10[%c0_50, %c768_51] : memref<256x1024xf32, #tpu.memory_space<vmem>>, vector<256x256xf32>
    %cst_52 = arith.constant dense<0.000000e+00> : vector<8x256xf32>
    %109 = tpu.matmul %90, %108, %cst_52 {dimension_numbers = #tpu.dot_dimension_numbers<[1], [0], [0], [1], [0, 0, 1, 1], [], []>} : vector<8x256xf32>, vector<256x256xf32>, vector<8x256xf32> -> vector<8x256xf32>
    %110 = arith.addf %107, %109 : vector<8x256xf32>
    %111 = arith.negf %98 : vector<8x256xf32>
    %112 = math.exp %111 : vector<8x256xf32>
    %cst_53 = arith.constant 1.000000e+00 : f32
    %113 = vector.broadcast %cst_53 : f32 to vector<8x256xf32>
    %114 = arith.addf %113, %112 : vector<8x256xf32>
    %115 = arith.divf %113, %114 : vector<8x256xf32>
    %116 = arith.negf %102 : vector<8x256xf32>
    %117 = math.exp %116 : vector<8x256xf32>
    %cst_54 = arith.constant 1.000000e+00 : f32
    %118 = vector.broadcast %cst_54 : f32 to vector<8x256xf32>
    %119 = arith.addf %118, %117 : vector<8x256xf32>
    %120 = arith.divf %118, %119 : vector<8x256xf32>
    %121 = arith.negf %106 : vector<8x256xf32>
    %122 = math.exp %121 : vector<8x256xf32>
    %cst_55 = arith.constant 1.000000e+00 : f32
    %123 = vector.broadcast %cst_55 : f32 to vector<8x256xf32>
    %124 = arith.addf %123, %122 : vector<8x256xf32>
    %125 = arith.divf %123, %124 : vector<8x256xf32>
    %126 = math.tanh %110 : vector<8x256xf32>
    %127 = arith.mulf %120, %88 : vector<8x256xf32>
    %128 = arith.mulf %115, %126 : vector<8x256xf32>
    %129 = arith.addf %127, %128 : vector<8x256xf32>
    %130 = math.tanh %129 : vector<8x256xf32>
    %131 = arith.mulf %125, %130 : vector<8x256xf32>
    %c3_i32 = arith.constant 3 : i32
    %c8_i32_56 = arith.constant 8 : i32
    %132 = arith.muli %c3_i32, %c8_i32_56 : i32
    %133 = tpu.assume_multiple %132, 8 : i32
    %134 = arith.index_cast %133 : i32 to index
    %c0_57 = arith.constant 0 : index
    %135 = vector.load %arg9[%134, %c0_57] : memref<64x2048xf32, #tpu.memory_space<vmem>>, vector<8x1024xf32>
    %136 = vector.extract_strided_slice %135 {offsets = [0, 0], sizes = [8, 256], strides = [1, 1]} : vector<8x1024xf32> to vector<8x256xf32>
    %c0_58 = arith.constant 0 : index
    %c0_59 = arith.constant 0 : index
    %137 = vector.load %arg10[%c0_58, %c0_59] : memref<256x1024xf32, #tpu.memory_space<vmem>>, vector<256x256xf32>
    %cst_60 = arith.constant dense<0.000000e+00> : vector<8x256xf32>
    %138 = tpu.matmul %131, %137, %cst_60 {dimension_numbers = #tpu.dot_dimension_numbers<[1], [0], [0], [1], [0, 0, 1, 1], [], []>} : vector<8x256xf32>, vector<256x256xf32>, vector<8x256xf32> -> vector<8x256xf32>
    %139 = arith.addf %136, %138 : vector<8x256xf32>
    %140 = vector.extract_strided_slice %135 {offsets = [0, 256], sizes = [8, 256], strides = [1, 1]} : vector<8x1024xf32> to vector<8x256xf32>
    %c0_61 = arith.constant 0 : index
    %c256_62 = arith.constant 256 : index
    %141 = vector.load %arg10[%c0_61, %c256_62] : memref<256x1024xf32, #tpu.memory_space<vmem>>, vector<256x256xf32>
    %cst_63 = arith.constant dense<0.000000e+00> : vector<8x256xf32>
    %142 = tpu.matmul %131, %141, %cst_63 {dimension_numbers = #tpu.dot_dimension_numbers<[1], [0], [0], [1], [0, 0, 1, 1], [], []>} : vector<8x256xf32>, vector<256x256xf32>, vector<8x256xf32> -> vector<8x256xf32>
    %143 = arith.addf %140, %142 : vector<8x256xf32>
    %144 = vector.extract_strided_slice %135 {offsets = [0, 512], sizes = [8, 256], strides = [1, 1]} : vector<8x1024xf32> to vector<8x256xf32>
    %c0_64 = arith.constant 0 : index
    %c512_65 = arith.constant 512 : index
    %145 = vector.load %arg10[%c0_64, %c512_65] : memref<256x1024xf32, #tpu.memory_space<vmem>>, vector<256x256xf32>
    %cst_66 = arith.constant dense<0.000000e+00> : vector<8x256xf32>
    %146 = tpu.matmul %131, %145, %cst_66 {dimension_numbers = #tpu.dot_dimension_numbers<[1], [0], [0], [1], [0, 0, 1, 1], [], []>} : vector<8x256xf32>, vector<256x256xf32>, vector<8x256xf32> -> vector<8x256xf32>
    %147 = arith.addf %144, %146 : vector<8x256xf32>
    %148 = vector.extract_strided_slice %135 {offsets = [0, 768], sizes = [8, 256], strides = [1, 1]} : vector<8x1024xf32> to vector<8x256xf32>
    %c0_67 = arith.constant 0 : index
    %c768_68 = arith.constant 768 : index
    %149 = vector.load %arg10[%c0_67, %c768_68] : memref<256x1024xf32, #tpu.memory_space<vmem>>, vector<256x256xf32>
    %cst_69 = arith.constant dense<0.000000e+00> : vector<8x256xf32>
    %150 = tpu.matmul %131, %149, %cst_69 {dimension_numbers = #tpu.dot_dimension_numbers<[1], [0], [0], [1], [0, 0, 1, 1], [], []>} : vector<8x256xf32>, vector<256x256xf32>, vector<8x256xf32> -> vector<8x256xf32>
    %151 = arith.addf %148, %150 : vector<8x256xf32>
    %152 = arith.negf %139 : vector<8x256xf32>
    %153 = math.exp %152 : vector<8x256xf32>
    %cst_70 = arith.constant 1.000000e+00 : f32
    %154 = vector.broadcast %cst_70 : f32 to vector<8x256xf32>
    %155 = arith.addf %154, %153 : vector<8x256xf32>
    %156 = arith.divf %154, %155 : vector<8x256xf32>
    %157 = arith.negf %143 : vector<8x256xf32>
    %158 = math.exp %157 : vector<8x256xf32>
    %cst_71 = arith.constant 1.000000e+00 : f32
    %159 = vector.broadcast %cst_71 : f32 to vector<8x256xf32>
    %160 = arith.addf %159, %158 : vector<8x256xf32>
    %161 = arith.divf %159, %160 : vector<8x256xf32>
    %162 = arith.negf %147 : vector<8x256xf32>
    %163 = math.exp %162 : vector<8x256xf32>
    %cst_72 = arith.constant 1.000000e+00 : f32
    %164 = vector.broadcast %cst_72 : f32 to vector<8x256xf32>
    %165 = arith.addf %164, %163 : vector<8x256xf32>
    %166 = arith.divf %164, %165 : vector<8x256xf32>
    %167 = math.tanh %151 : vector<8x256xf32>
    %168 = arith.mulf %161, %129 : vector<8x256xf32>
    %169 = arith.mulf %156, %167 : vector<8x256xf32>
    %170 = arith.addf %168, %169 : vector<8x256xf32>
    %171 = math.tanh %170 : vector<8x256xf32>
    %172 = arith.mulf %166, %171 : vector<8x256xf32>
    %c4_i32 = arith.constant 4 : i32
    %c8_i32_73 = arith.constant 8 : i32
    %173 = arith.muli %c4_i32, %c8_i32_73 : i32
    %174 = tpu.assume_multiple %173, 8 : i32
    %175 = arith.index_cast %174 : i32 to index
    %c0_74 = arith.constant 0 : index
    %176 = vector.load %arg9[%175, %c0_74] : memref<64x2048xf32, #tpu.memory_space<vmem>>, vector<8x1024xf32>
    %177 = vector.extract_strided_slice %176 {offsets = [0, 0], sizes = [8, 256], strides = [1, 1]} : vector<8x1024xf32> to vector<8x256xf32>
    %c0_75 = arith.constant 0 : index
    %c0_76 = arith.constant 0 : index
    %178 = vector.load %arg10[%c0_75, %c0_76] : memref<256x1024xf32, #tpu.memory_space<vmem>>, vector<256x256xf32>
    %cst_77 = arith.constant dense<0.000000e+00> : vector<8x256xf32>
    %179 = tpu.matmul %172, %178, %cst_77 {dimension_numbers = #tpu.dot_dimension_numbers<[1], [0], [0], [1], [0, 0, 1, 1], [], []>} : vector<8x256xf32>, vector<256x256xf32>, vector<8x256xf32> -> vector<8x256xf32>
    %180 = arith.addf %177, %179 : vector<8x256xf32>
    %181 = vector.extract_strided_slice %176 {offsets = [0, 256], sizes = [8, 256], strides = [1, 1]} : vector<8x1024xf32> to vector<8x256xf32>
    %c0_78 = arith.constant 0 : index
    %c256_79 = arith.constant 256 : index
    %182 = vector.load %arg10[%c0_78, %c256_79] : memref<256x1024xf32, #tpu.memory_space<vmem>>, vector<256x256xf32>
    %cst_80 = arith.constant dense<0.000000e+00> : vector<8x256xf32>
    %183 = tpu.matmul %172, %182, %cst_80 {dimension_numbers = #tpu.dot_dimension_numbers<[1], [0], [0], [1], [0, 0, 1, 1], [], []>} : vector<8x256xf32>, vector<256x256xf32>, vector<8x256xf32> -> vector<8x256xf32>
    %184 = arith.addf %181, %183 : vector<8x256xf32>
    %185 = vector.extract_strided_slice %176 {offsets = [0, 512], sizes = [8, 256], strides = [1, 1]} : vector<8x1024xf32> to vector<8x256xf32>
    %c0_81 = arith.constant 0 : index
    %c512_82 = arith.constant 512 : index
    %186 = vector.load %arg10[%c0_81, %c512_82] : memref<256x1024xf32, #tpu.memory_space<vmem>>, vector<256x256xf32>
    %cst_83 = arith.constant dense<0.000000e+00> : vector<8x256xf32>
    %187 = tpu.matmul %172, %186, %cst_83 {dimension_numbers = #tpu.dot_dimension_numbers<[1], [0], [0], [1], [0, 0, 1, 1], [], []>} : vector<8x256xf32>, vector<256x256xf32>, vector<8x256xf32> -> vector<8x256xf32>
    %188 = arith.addf %185, %187 : vector<8x256xf32>
    %189 = vector.extract_strided_slice %176 {offsets = [0, 768], sizes = [8, 256], strides = [1, 1]} : vector<8x1024xf32> to vector<8x256xf32>
    %c0_84 = arith.constant 0 : index
    %c768_85 = arith.constant 768 : index
    %190 = vector.load %arg10[%c0_84, %c768_85] : memref<256x1024xf32, #tpu.memory_space<vmem>>, vector<256x256xf32>
    %cst_86 = arith.constant dense<0.000000e+00> : vector<8x256xf32>
    %191 = tpu.matmul %172, %190, %cst_86 {dimension_numbers = #tpu.dot_dimension_numbers<[1], [0], [0], [1], [0, 0, 1, 1], [], []>} : vector<8x256xf32>, vector<256x256xf32>, vector<8x256xf32> -> vector<8x256xf32>
    %192 = arith.addf %189, %191 : vector<8x256xf32>
    %193 = arith.negf %180 : vector<8x256xf32>
    %194 = math.exp %193 : vector<8x256xf32>
    %cst_87 = arith.constant 1.000000e+00 : f32
    %195 = vector.broadcast %cst_87 : f32 to vector<8x256xf32>
    %196 = arith.addf %195, %194 : vector<8x256xf32>
    %197 = arith.divf %195, %196 : vector<8x256xf32>
    %198 = arith.negf %184 : vector<8x256xf32>
    %199 = math.exp %198 : vector<8x256xf32>
    %cst_88 = arith.constant 1.000000e+00 : f32
    %200 = vector.broadcast %cst_88 : f32 to vector<8x256xf32>
    %201 = arith.addf %200, %199 : vector<8x256xf32>
    %202 = arith.divf %200, %201 : vector<8x256xf32>
    %203 = arith.negf %188 : vector<8x256xf32>
    %204 = math.exp %203 : vector<8x256xf32>
    %cst_89 = arith.constant 1.000000e+00 : f32
    %205 = vector.broadcast %cst_89 : f32 to vector<8x256xf32>
    %206 = arith.addf %205, %204 : vector<8x256xf32>
    %207 = arith.divf %205, %206 : vector<8x256xf32>
    %208 = math.tanh %192 : vector<8x256xf32>
    %209 = arith.mulf %202, %170 : vector<8x256xf32>
    %210 = arith.mulf %197, %208 : vector<8x256xf32>
    %211 = arith.addf %209, %210 : vector<8x256xf32>
    %212 = math.tanh %211 : vector<8x256xf32>
    %213 = arith.mulf %207, %212 : vector<8x256xf32>
    %c5_i32 = arith.constant 5 : i32
    %c8_i32_90 = arith.constant 8 : i32
    %214 = arith.muli %c5_i32, %c8_i32_90 : i32
    %215 = tpu.assume_multiple %214, 8 : i32
    %216 = arith.index_cast %215 : i32 to index
    %c0_91 = arith.constant 0 : index
    %217 = vector.load %arg9[%216, %c0_91] : memref<64x2048xf32, #tpu.memory_space<vmem>>, vector<8x1024xf32>
    %218 = vector.extract_strided_slice %217 {offsets = [0, 0], sizes = [8, 256], strides = [1, 1]} : vector<8x1024xf32> to vector<8x256xf32>
    %c0_92 = arith.constant 0 : index
    %c0_93 = arith.constant 0 : index
    %219 = vector.load %arg10[%c0_92, %c0_93] : memref<256x1024xf32, #tpu.memory_space<vmem>>, vector<256x256xf32>
    %cst_94 = arith.constant dense<0.000000e+00> : vector<8x256xf32>
    %220 = tpu.matmul %213, %219, %cst_94 {dimension_numbers = #tpu.dot_dimension_numbers<[1], [0], [0], [1], [0, 0, 1, 1], [], []>} : vector<8x256xf32>, vector<256x256xf32>, vector<8x256xf32> -> vector<8x256xf32>
    %221 = arith.addf %218, %220 : vector<8x256xf32>
    %222 = vector.extract_strided_slice %217 {offsets = [0, 256], sizes = [8, 256], strides = [1, 1]} : vector<8x1024xf32> to vector<8x256xf32>
    %c0_95 = arith.constant 0 : index
    %c256_96 = arith.constant 256 : index
    %223 = vector.load %arg10[%c0_95, %c256_96] : memref<256x1024xf32, #tpu.memory_space<vmem>>, vector<256x256xf32>
    %cst_97 = arith.constant dense<0.000000e+00> : vector<8x256xf32>
    %224 = tpu.matmul %213, %223, %cst_97 {dimension_numbers = #tpu.dot_dimension_numbers<[1], [0], [0], [1], [0, 0, 1, 1], [], []>} : vector<8x256xf32>, vector<256x256xf32>, vector<8x256xf32> -> vector<8x256xf32>
    %225 = arith.addf %222, %224 : vector<8x256xf32>
    %226 = vector.extract_strided_slice %217 {offsets = [0, 512], sizes = [8, 256], strides = [1, 1]} : vector<8x1024xf32> to vector<8x256xf32>
    %c0_98 = arith.constant 0 : index
    %c512_99 = arith.constant 512 : index
    %227 = vector.load %arg10[%c0_98, %c512_99] : memref<256x1024xf32, #tpu.memory_space<vmem>>, vector<256x256xf32>
    %cst_100 = arith.constant dense<0.000000e+00> : vector<8x256xf32>
    %228 = tpu.matmul %213, %227, %cst_100 {dimension_numbers = #tpu.dot_dimension_numbers<[1], [0], [0], [1], [0, 0, 1, 1], [], []>} : vector<8x256xf32>, vector<256x256xf32>, vector<8x256xf32> -> vector<8x256xf32>
    %229 = arith.addf %226, %228 : vector<8x256xf32>
    %230 = vector.extract_strided_slice %217 {offsets = [0, 768], sizes = [8, 256], strides = [1, 1]} : vector<8x1024xf32> to vector<8x256xf32>
    %c0_101 = arith.constant 0 : index
    %c768_102 = arith.constant 768 : index
    %231 = vector.load %arg10[%c0_101, %c768_102] : memref<256x1024xf32, #tpu.memory_space<vmem>>, vector<256x256xf32>
    %cst_103 = arith.constant dense<0.000000e+00> : vector<8x256xf32>
    %232 = tpu.matmul %213, %231, %cst_103 {dimension_numbers = #tpu.dot_dimension_numbers<[1], [0], [0], [1], [0, 0, 1, 1], [], []>} : vector<8x256xf32>, vector<256x256xf32>, vector<8x256xf32> -> vector<8x256xf32>
    %233 = arith.addf %230, %232 : vector<8x256xf32>
    %234 = arith.negf %221 : vector<8x256xf32>
    %235 = math.exp %234 : vector<8x256xf32>
    %cst_104 = arith.constant 1.000000e+00 : f32
    %236 = vector.broadcast %cst_104 : f32 to vector<8x256xf32>
    %237 = arith.addf %236, %235 : vector<8x256xf32>
    %238 = arith.divf %236, %237 : vector<8x256xf32>
    %239 = arith.negf %225 : vector<8x256xf32>
    %240 = math.exp %239 : vector<8x256xf32>
    %cst_105 = arith.constant 1.000000e+00 : f32
    %241 = vector.broadcast %cst_105 : f32 to vector<8x256xf32>
    %242 = arith.addf %241, %240 : vector<8x256xf32>
    %243 = arith.divf %241, %242 : vector<8x256xf32>
    %244 = arith.negf %229 : vector<8x256xf32>
    %245 = math.exp %244 : vector<8x256xf32>
    %cst_106 = arith.constant 1.000000e+00 : f32
    %246 = vector.broadcast %cst_106 : f32 to vector<8x256xf32>
    %247 = arith.addf %246, %245 : vector<8x256xf32>
    %248 = arith.divf %246, %247 : vector<8x256xf32>
    %249 = math.tanh %233 : vector<8x256xf32>
    %250 = arith.mulf %243, %211 : vector<8x256xf32>
    %251 = arith.mulf %238, %249 : vector<8x256xf32>
    %252 = arith.addf %250, %251 : vector<8x256xf32>
    %253 = math.tanh %252 : vector<8x256xf32>
    %254 = arith.mulf %248, %253 : vector<8x256xf32>
    %c6_i32 = arith.constant 6 : i32
    %c8_i32_107 = arith.constant 8 : i32
    %255 = arith.muli %c6_i32, %c8_i32_107 : i32
    %256 = tpu.assume_multiple %255, 8 : i32
    %257 = arith.index_cast %256 : i32 to index
    %c0_108 = arith.constant 0 : index
    %258 = vector.load %arg9[%257, %c0_108] : memref<64x2048xf32, #tpu.memory_space<vmem>>, vector<8x1024xf32>
    %259 = vector.extract_strided_slice %258 {offsets = [0, 0], sizes = [8, 256], strides = [1, 1]} : vector<8x1024xf32> to vector<8x256xf32>
    %c0_109 = arith.constant 0 : index
    %c0_110 = arith.constant 0 : index
    %260 = vector.load %arg10[%c0_109, %c0_110] : memref<256x1024xf32, #tpu.memory_space<vmem>>, vector<256x256xf32>
    %cst_111 = arith.constant dense<0.000000e+00> : vector<8x256xf32>
    %261 = tpu.matmul %254, %260, %cst_111 {dimension_numbers = #tpu.dot_dimension_numbers<[1], [0], [0], [1], [0, 0, 1, 1], [], []>} : vector<8x256xf32>, vector<256x256xf32>, vector<8x256xf32> -> vector<8x256xf32>
    %262 = arith.addf %259, %261 : vector<8x256xf32>
    %263 = vector.extract_strided_slice %258 {offsets = [0, 256], sizes = [8, 256], strides = [1, 1]} : vector<8x1024xf32> to vector<8x256xf32>
    %c0_112 = arith.constant 0 : index
    %c256_113 = arith.constant 256 : index
    %264 = vector.load %arg10[%c0_112, %c256_113] : memref<256x1024xf32, #tpu.memory_space<vmem>>, vector<256x256xf32>
    %cst_114 = arith.constant dense<0.000000e+00> : vector<8x256xf32>
    %265 = tpu.matmul %254, %264, %cst_114 {dimension_numbers = #tpu.dot_dimension_numbers<[1], [0], [0], [1], [0, 0, 1, 1], [], []>} : vector<8x256xf32>, vector<256x256xf32>, vector<8x256xf32> -> vector<8x256xf32>
    %266 = arith.addf %263, %265 : vector<8x256xf32>
    %267 = vector.extract_strided_slice %258 {offsets = [0, 512], sizes = [8, 256], strides = [1, 1]} : vector<8x1024xf32> to vector<8x256xf32>
    %c0_115 = arith.constant 0 : index
    %c512_116 = arith.constant 512 : index
    %268 = vector.load %arg10[%c0_115, %c512_116] : memref<256x1024xf32, #tpu.memory_space<vmem>>, vector<256x256xf32>
    %cst_117 = arith.constant dense<0.000000e+00> : vector<8x256xf32>
    %269 = tpu.matmul %254, %268, %cst_117 {dimension_numbers = #tpu.dot_dimension_numbers<[1], [0], [0], [1], [0, 0, 1, 1], [], []>} : vector<8x256xf32>, vector<256x256xf32>, vector<8x256xf32> -> vector<8x256xf32>
    %270 = arith.addf %267, %269 : vector<8x256xf32>
    %271 = vector.extract_strided_slice %258 {offsets = [0, 768], sizes = [8, 256], strides = [1, 1]} : vector<8x1024xf32> to vector<8x256xf32>
    %c0_118 = arith.constant 0 : index
    %c768_119 = arith.constant 768 : index
    %272 = vector.load %arg10[%c0_118, %c768_119] : memref<256x1024xf32, #tpu.memory_space<vmem>>, vector<256x256xf32>
    %cst_120 = arith.constant dense<0.000000e+00> : vector<8x256xf32>
    %273 = tpu.matmul %254, %272, %cst_120 {dimension_numbers = #tpu.dot_dimension_numbers<[1], [0], [0], [1], [0, 0, 1, 1], [], []>} : vector<8x256xf32>, vector<256x256xf32>, vector<8x256xf32> -> vector<8x256xf32>
    %274 = arith.addf %271, %273 : vector<8x256xf32>
    %275 = arith.negf %262 : vector<8x256xf32>
    %276 = math.exp %275 : vector<8x256xf32>
    %cst_121 = arith.constant 1.000000e+00 : f32
    %277 = vector.broadcast %cst_121 : f32 to vector<8x256xf32>
    %278 = arith.addf %277, %276 : vector<8x256xf32>
    %279 = arith.divf %277, %278 : vector<8x256xf32>
    %280 = arith.negf %266 : vector<8x256xf32>
    %281 = math.exp %280 : vector<8x256xf32>
    %cst_122 = arith.constant 1.000000e+00 : f32
    %282 = vector.broadcast %cst_122 : f32 to vector<8x256xf32>
    %283 = arith.addf %282, %281 : vector<8x256xf32>
    %284 = arith.divf %282, %283 : vector<8x256xf32>
    %285 = arith.negf %270 : vector<8x256xf32>
    %286 = math.exp %285 : vector<8x256xf32>
    %cst_123 = arith.constant 1.000000e+00 : f32
    %287 = vector.broadcast %cst_123 : f32 to vector<8x256xf32>
    %288 = arith.addf %287, %286 : vector<8x256xf32>
    %289 = arith.divf %287, %288 : vector<8x256xf32>
    %290 = math.tanh %274 : vector<8x256xf32>
    %291 = arith.mulf %284, %252 : vector<8x256xf32>
    %292 = arith.mulf %279, %290 : vector<8x256xf32>
    %293 = arith.addf %291, %292 : vector<8x256xf32>
    %294 = math.tanh %293 : vector<8x256xf32>
    %295 = arith.mulf %289, %294 : vector<8x256xf32>
    %c7_i32 = arith.constant 7 : i32
    %c8_i32_124 = arith.constant 8 : i32
    %296 = arith.muli %c7_i32, %c8_i32_124 : i32
    %297 = tpu.assume_multiple %296, 8 : i32
    %298 = arith.index_cast %297 : i32 to index
    %c0_125 = arith.constant 0 : index
    %299 = vector.load %arg9[%298, %c0_125] : memref<64x2048xf32, #tpu.memory_space<vmem>>, vector<8x1024xf32>
    %300 = vector.extract_strided_slice %299 {offsets = [0, 0], sizes = [8, 256], strides = [1, 1]} : vector<8x1024xf32> to vector<8x256xf32>
    %c0_126 = arith.constant 0 : index
    %c0_127 = arith.constant 0 : index
    %301 = vector.load %arg10[%c0_126, %c0_127] : memref<256x1024xf32, #tpu.memory_space<vmem>>, vector<256x256xf32>
    %cst_128 = arith.constant dense<0.000000e+00> : vector<8x256xf32>
    %302 = tpu.matmul %295, %301, %cst_128 {dimension_numbers = #tpu.dot_dimension_numbers<[1], [0], [0], [1], [0, 0, 1, 1], [], []>} : vector<8x256xf32>, vector<256x256xf32>, vector<8x256xf32> -> vector<8x256xf32>
    %303 = arith.addf %300, %302 : vector<8x256xf32>
    %304 = vector.extract_strided_slice %299 {offsets = [0, 256], sizes = [8, 256], strides = [1, 1]} : vector<8x1024xf32> to vector<8x256xf32>
    %c0_129 = arith.constant 0 : index
    %c256_130 = arith.constant 256 : index
    %305 = vector.load %arg10[%c0_129, %c256_130] : memref<256x1024xf32, #tpu.memory_space<vmem>>, vector<256x256xf32>
    %cst_131 = arith.constant dense<0.000000e+00> : vector<8x256xf32>
    %306 = tpu.matmul %295, %305, %cst_131 {dimension_numbers = #tpu.dot_dimension_numbers<[1], [0], [0], [1], [0, 0, 1, 1], [], []>} : vector<8x256xf32>, vector<256x256xf32>, vector<8x256xf32> -> vector<8x256xf32>
    %307 = arith.addf %304, %306 : vector<8x256xf32>
    %308 = vector.extract_strided_slice %299 {offsets = [0, 512], sizes = [8, 256], strides = [1, 1]} : vector<8x1024xf32> to vector<8x256xf32>
    %c0_132 = arith.constant 0 : index
    %c512_133 = arith.constant 512 : index
    %309 = vector.load %arg10[%c0_132, %c512_133] : memref<256x1024xf32, #tpu.memory_space<vmem>>, vector<256x256xf32>
    %cst_134 = arith.constant dense<0.000000e+00> : vector<8x256xf32>
    %310 = tpu.matmul %295, %309, %cst_134 {dimension_numbers = #tpu.dot_dimension_numbers<[1], [0], [0], [1], [0, 0, 1, 1], [], []>} : vector<8x256xf32>, vector<256x256xf32>, vector<8x256xf32> -> vector<8x256xf32>
    %311 = arith.addf %308, %310 : vector<8x256xf32>
    %312 = vector.extract_strided_slice %299 {offsets = [0, 768], sizes = [8, 256], strides = [1, 1]} : vector<8x1024xf32> to vector<8x256xf32>
    %c0_135 = arith.constant 0 : index
    %c768_136 = arith.constant 768 : index
    %313 = vector.load %arg10[%c0_135, %c768_136] : memref<256x1024xf32, #tpu.memory_space<vmem>>, vector<256x256xf32>
    %cst_137 = arith.constant dense<0.000000e+00> : vector<8x256xf32>
    %314 = tpu.matmul %295, %313, %cst_137 {dimension_numbers = #tpu.dot_dimension_numbers<[1], [0], [0], [1], [0, 0, 1, 1], [], []>} : vector<8x256xf32>, vector<256x256xf32>, vector<8x256xf32> -> vector<8x256xf32>
    %315 = arith.addf %312, %314 : vector<8x256xf32>
    %316 = arith.negf %303 : vector<8x256xf32>
    %317 = math.exp %316 : vector<8x256xf32>
    %cst_138 = arith.constant 1.000000e+00 : f32
    %318 = vector.broadcast %cst_138 : f32 to vector<8x256xf32>
    %319 = arith.addf %318, %317 : vector<8x256xf32>
    %320 = arith.divf %318, %319 : vector<8x256xf32>
    %321 = arith.negf %307 : vector<8x256xf32>
    %322 = math.exp %321 : vector<8x256xf32>
    %cst_139 = arith.constant 1.000000e+00 : f32
    %323 = vector.broadcast %cst_139 : f32 to vector<8x256xf32>
    %324 = arith.addf %323, %322 : vector<8x256xf32>
    %325 = arith.divf %323, %324 : vector<8x256xf32>
    %326 = arith.negf %311 : vector<8x256xf32>
    %327 = math.exp %326 : vector<8x256xf32>
    %cst_140 = arith.constant 1.000000e+00 : f32
    %328 = vector.broadcast %cst_140 : f32 to vector<8x256xf32>
    %329 = arith.addf %328, %327 : vector<8x256xf32>
    %330 = arith.divf %328, %329 : vector<8x256xf32>
    %331 = math.tanh %315 : vector<8x256xf32>
    %332 = arith.mulf %325, %293 : vector<8x256xf32>
    %333 = arith.mulf %320, %331 : vector<8x256xf32>
    %334 = arith.addf %332, %333 : vector<8x256xf32>
    %335 = math.tanh %334 : vector<8x256xf32>
    %336 = arith.mulf %330, %335 : vector<8x256xf32>
    %c8_i32_141 = arith.constant 8 : i32
    %c56 = arith.constant 56 : index
    %c1024 = arith.constant 1024 : index
    %337 = vector.load %arg9[%c56, %c1024] : memref<64x2048xf32, #tpu.memory_space<vmem>>, vector<8x1024xf32>
    %338 = vector.extract_strided_slice %337 {offsets = [0, 0], sizes = [8, 256], strides = [1, 1]} : vector<8x1024xf32> to vector<8x256xf32>
    %339 = arith.negf %338 : vector<8x256xf32>
    %340 = math.exp %339 : vector<8x256xf32>
    %cst_142 = arith.constant 1.000000e+00 : f32
    %341 = vector.broadcast %cst_142 : f32 to vector<8x256xf32>
    %342 = arith.addf %341, %340 : vector<8x256xf32>
    %343 = arith.divf %341, %342 : vector<8x256xf32>
    %344 = vector.extract_strided_slice %337 {offsets = [0, 512], sizes = [8, 256], strides = [1, 1]} : vector<8x1024xf32> to vector<8x256xf32>
    %345 = arith.negf %344 : vector<8x256xf32>
    %346 = math.exp %345 : vector<8x256xf32>
    %cst_143 = arith.constant 1.000000e+00 : f32
    %347 = vector.broadcast %cst_143 : f32 to vector<8x256xf32>
    %348 = arith.addf %347, %346 : vector<8x256xf32>
    %349 = arith.divf %347, %348 : vector<8x256xf32>
    %350 = vector.extract_strided_slice %337 {offsets = [0, 768], sizes = [8, 256], strides = [1, 1]} : vector<8x1024xf32> to vector<8x256xf32>
    %351 = math.tanh %350 : vector<8x256xf32>
    %352 = arith.mulf %343, %351 : vector<8x256xf32>
    %353 = math.tanh %352 : vector<8x256xf32>
    %354 = arith.mulf %349, %353 : vector<8x256xf32>
    %c0_144 = arith.constant 0 : index
    %c0_145 = arith.constant 0 : index
    %355 = vector.load %arg5[%c0_144, %c0_145] : memref<1x256xf32, #tpu.memory_space<vmem>>, vector<1x256xf32>
    %356 = vector.broadcast %355 : vector<1x256xf32> to vector<8x256xf32>
    %357 = arith.mulf %336, %356 : vector<8x256xf32>
    %cst_146 = arith.constant dense<0.000000e+00> : vector<8xf32>
    %358 = vector.multi_reduction <add>, %357, %cst_146 [1] : vector<8x256xf32> to vector<8xf32>
    %359 = vector.shape_cast %358 : vector<8xf32> to vector<8x1xf32>
    %c0_147 = arith.constant 0 : index
    %c0_148 = arith.constant 0 : index
    %360 = vector.load %arg6[%c0_147, %c0_148] : memref<1x256xf32, #tpu.memory_space<vmem>>, vector<1x256xf32>
    %361 = vector.broadcast %360 : vector<1x256xf32> to vector<8x256xf32>
    %362 = arith.mulf %354, %361 : vector<8x256xf32>
    %cst_149 = arith.constant dense<0.000000e+00> : vector<8xf32>
    %363 = vector.multi_reduction <add>, %362, %cst_149 [1] : vector<8x256xf32> to vector<8xf32>
    %364 = vector.shape_cast %363 : vector<8xf32> to vector<8x1xf32>
    %365 = arith.addf %359, %364 : vector<8x1xf32>
    %c0_150 = arith.constant 0 : index
    %c0_151 = arith.constant 0 : index
    %366 = vector.load %arg7[%c0_150, %c0_151] : memref<1x1xf32, #tpu.memory_space<vmem>>, vector<1x1xf32>
    %367 = vector.broadcast %366 : vector<1x1xf32> to vector<8x1xf32>
    %368 = arith.addf %365, %367 : vector<8x1xf32>
    %369 = vector.shape_cast %368 : vector<8x1xf32> to vector<8x1xf32>
    %370 = vector.broadcast %369 : vector<8x1xf32> to vector<8x128xf32>
    %c0_152 = arith.constant 0 : index
    %c0_153 = arith.constant 0 : index
    %371 = vector.load %arg8[%c0_152, %c0_153] : memref<8x128xf32, #tpu.memory_space<vmem>>, vector<8x128xf32>
    tpu.vector_store %arg8[%c0_152, %c0_153], %370 {strides = array<i32>} : memref<8x128xf32, #tpu.memory_space<vmem>>, vector<8x128xf32>,
    return
  }
  func.func @transform_0(%arg0: i32) -> (i32, i32) {
    %c0_i32 = arith.constant 0 : i32
    %c0_i32_0 = arith.constant 0 : i32
    %c0_i32_1 = arith.constant 0 : i32
    return %c0_i32, %c0_i32_0 : i32, i32
  }
  func.func @transform_1(%arg0: i32) -> (i32, i32) {
    %c0_i32 = arith.constant 0 : i32
    %c0_i32_0 = arith.constant 0 : i32
    %c0_i32_1 = arith.constant 0 : i32
    return %c0_i32, %c0_i32_0 : i32, i32
  }
  func.func @transform_2(%arg0: i32) -> (i32, i32) {
    %c0_i32 = arith.constant 0 : i32
    %c0_i32_0 = arith.constant 0 : i32
    %c0_i32_1 = arith.constant 0 : i32
    return %c0_i32, %c0_i32_0 : i32, i32
  }
  func.func @transform_4(%arg0: i32) -> (i32, i32) {
    %c0_i32 = arith.constant 0 : i32
    %c0_i32_0 = arith.constant 0 : i32
    %c0_i32_1 = arith.constant 0 : i32
    return %c0_i32, %c0_i32_0 : i32, i32
  }
  func.func @transform_5(%arg0: i32) -> (i32, i32) {
    %c0_i32 = arith.constant 0 : i32
    %c0_i32_0 = arith.constant 0 : i32
    %c0_i32_1 = arith.constant 0 : i32
    return %c0_i32, %c0_i32_0 : i32, i32
  }
  func.func @transform_6(%arg0: i32) -> (i32, i32) {
    %c0_i32 = arith.constant 0 : i32
    %c0_i32_0 = arith.constant 0 : i32
    %c0_i32_1 = arith.constant 0 : i32
    return %c0_i32, %c0_i32_0 : i32, i32
  }
  func.func @transform_7(%arg0: i32) -> (i32, i32) {
    %c0_i32 = arith.constant 0 : i32
    %c0_i32_0 = arith.constant 0 : i32
    %c0_i32_1 = arith.constant 0 : i32
    return %c0_i32, %c0_i32_0 : i32, i32
  }
}

</mosaic_0001>

<bundles_post_ra>
// kernel: lstm_model_forward.1
= control target key start
LH: loop header
LB: loop body
LE: loop exit
PB: predicated region body
PF: predicated region fallthrough
CT: control target
= control target key end

     0   :  { %s12198_s0 = inlined_call_operand.vmem [shape: f32[64,30], index: 0, kind: input, shape index: {}]   ;;  %s12199_s1 = inlined_call_operand.hbm [shape: f32[30,2048], index: 1, kind: input, shape index: {}]   ;;  %s12200_s2 = inlined_call_operand.vmem [shape: f32[1,2048], index: 2, kind: input, shape index: {}]   ;;  %s12201_s3 = inlined_call_operand.hbm [shape: f32[256,1024], index: 3, kind: input, shape index: {}]   ;;  %s12202_s4 = inlined_call_operand.vmem [shape: f32[1,256], index: 4, kind: input, shape index: {}]   ;;  %s12203_s5 = inlined_call_operand.vmem [shape: f32[1,256], index: 5, kind: input, shape index: {}]   ;;  %s12204_s6 = inlined_call_operand.<no memory space> [shape: f32[1,1], index: 6, kind: input, shape index: {}]   ;;  %s12205_s7 = inlined_call_operand.vmem [shape: f32[8,128], index: 7, kind: output, shape index: {}]  }
   0x1   :  { %v12_v0 = vstv %s12204_s6 }
   0x2   :  { %13 = vst [vmem:[#allocation5] sm:$0x1] %v12_v0 }
   0x3   :  { %14 = vsyncpa [#allocation7], 0  ;;  %s21_s28 = sshll.u32 %s12199_s1, 4  ;;  %s6530_s29 = smov [#allocation6]   ;;  %s22_s28 = int_to_ptr.hbm [resolvable:$true] %s21_s28 }
   0x4   :  { %s23_s30 = sshll.u32 %s6530_s29, 4  ;;  %s6531_s8 = smov 2048   ;;  %s24_s30 = int_to_ptr.vmem [resolvable:$true] %s23_s30 }
   0x5   :  { %s6532_s9 = smov 128  }
   0x6   :  { %29 = dma.hbm_to_vmem [thread:$0]  %s22_s28, 8192, %s24_s30, [#allocation7], %s6531_s8, %s6531_s8, %s6532_s9  }
   0x7   :  { %6526 = dma.done.wait [#allocation7], 8192  }
   0x8   :  { %6527 = vsyncadd [#allocation7], 4294959104  ;;  %vm188_vm0 = vcmask 1045504   ;;  %v113_v1 = vld [vmem:[#allocation6 + $0x190] sm:$0x3f]  ;;  %v98_v4 = vld [vmem:[#allocation6 + $0x118] sm:$0xff] }
   0x9   :  { %v114_v2 = vld [vmem:[#allocation6 + $0x198] sm:$0x3f]  ;;  %v97_v3 = vld [vmem:[#allocation6 + $0x110] sm:$0xff]  ;;  %5161 = vmatpush.msk.msra.mxu2 %vm188_vm0, %v113_v1  ;;  %v111_v7 = vld [vmem:[#allocation6 + $0x180] sm:$0x3f]  ;;  %vm163_vm1 = vcmask 244736  }
   0xa   :  { %5170 = vmatpush.msk.msra.mxu3 %vm188_vm0, %v114_v2  ;;  %v81_v5 = vld [vmem:[#allocation6 + $0x90] sm:$0xff]  ;;  %v82_v6 = vld [vmem:[#allocation6 + $0x98] sm:$0xff]  ;;  %v112_v8 = vld [vmem:[#allocation6 + $0x188] sm:$0x3f]  ;;  %5143 = vmatpush.msk.msra.mxu0 %vm188_vm0, %v111_v7  ;;  %s49_s27 = sshll.u32 %s12201_s3, 4  ;;  %s6533_s28 = smov [#allocation3]   ;;  %s50_s27 = int_to_ptr.hbm [resolvable:$true] %s49_s27 }
   0xb   :  { %332 = vmatpush.msra.mxu2 %v97_v3  ;;  %v65_v9 = vld [vmem:[#allocation6 + $0x10] sm:$0xff]  ;;  %5152 = vmatpush.msk.msra.mxu1 %vm188_vm0, %v112_v8  ;;  %v66_v10 = vld [vmem:[#allocation6 + $0x18] sm:$0xff]  ;;  %v95_v11 = vld [vmem:[#allocation6 + $0x100] sm:$0xff]  ;;  %s51_s29 = sshll.u32 %s6533_s28, 4  ;;  %s52_s29 = int_to_ptr.vmem [resolvable:$true] %s51_s29 }
   0xc   :  { %373 = vmatpush.msra.mxu3 %v98_v4  ;;  %v96_v12 = vld [vmem:[#allocation6 + $0x108] sm:$0xff]  ;;  %v6589_v13 = vld [vmem:[%s12198_s0] sm:$0xff]  ;;  %v117_v14 = vld [vmem:[#allocation6 + $0x1b0] sm:$0x3f]  ;;  %250 = vmatpush.msra.mxu0 %v95_v11  ;;  %54 = dma.hbm_to_vmem [thread:$0]  %s50_s27, 32768, %s52_s29, [#allocation4] }
   0xd   :  { %333 = vmatpush.msra.mxu2 %v81_v5  ;;  %v118_v15 = vld [vmem:[#allocation6 + $0x1b8] sm:$0x3f]  ;;  %291 = vmatpush.msra.mxu1 %v96_v12  ;;  %v79_v16 = vld [vmem:[#allocation6 + $0x80] sm:$0xff]  ;;  %v80_v17 = vld [vmem:[#allocation6 + $0x88] sm:$0xff] }
   0xe   :  { %374 = vmatpush.msra.mxu3 %v82_v6  ;;  %v101_v18 = vld [vmem:[#allocation6 + $0x130] sm:$0xff]  ;;  %v102_v19 = vld [vmem:[#allocation6 + $0x138] sm:$0xff]  ;;  %v63_v20 = vld [vmem:[#allocation6] sm:$0xff]  ;;  %251 = vmatpush.msra.mxu0 %v79_v16 }
   0xf   :  { %334 = vmatpush.msra.mxu2 %v65_v9  ;;  %v64_v21 = vld [vmem:[#allocation6 + $0x8] sm:$0xff]  ;;  %292 = vmatpush.msra.mxu1 %v80_v17  ;;  %v115_v22 = vld [vmem:[#allocation6 + $0x1a0] sm:$0x3f]  ;;  %v85_v24 = vld [vmem:[#allocation6 + $0xb0] sm:$0xff] }
  0x10   :  { %375 = vmatpush.msra.mxu3 %v66_v10  ;;  %5162 = vmatmul.msk.f32.vlgmr.msra.gmra.mxu2 %vm163_vm1, %v6589_v13  ;;  %v116_v23 = vld [vmem:[#allocation6 + $0x1a8] sm:$0x3f]  ;;  %v86_v25 = vld [vmem:[#allocation6 + $0xb8] sm:$0xff]  ;;  %v99_v27 = vld [vmem:[#allocation6 + $0x120] sm:$0xff] }
  0x11   :  { %5171 = vmatmul.msk.f32.vlgmr.msra.gmra.mxu3 %vm163_vm1, %v6589_v13  ;;  %5197 = vmatpush.msk.msrb.mxu2 %vm188_vm0, %v117_v14  ;;  %v6604_v26 = vld [vmem:[%s12198_s0 + $0x8] sm:$0xff]  ;;  %v6619_v31 = vld [vmem:[%s12198_s0 + $0x10] sm:$0xff]  ;;  %v70_v33 = vld [vmem:[#allocation6 + $0x38] sm:$0xff] }
  0x12   :  { %5206 = vmatpush.msk.msrb.mxu3 %vm188_vm0, %v118_v15  ;;  %252 = vmatpush.msra.mxu0 %v63_v20  ;;  %v100_v28 = vld [vmem:[#allocation6 + $0x128] sm:$0xff]  ;;  %v83_v29 = vld [vmem:[#allocation6 + $0xa0] sm:$0xff]  ;;  %v69_v32 = vld [vmem:[#allocation6 + $0x30] sm:$0xff] }
  0x13   :  { %496 = vmatpush.msrb.mxu2 %v101_v18  ;;  %293 = vmatpush.msra.mxu1 %v64_v21  ;;  %v84_v30 = vld [vmem:[#allocation6 + $0xa8] sm:$0xff]  ;;  %v6632_v34 = vld [vmem:[%s12198_s0 + $0x18] sm:$0xff]  ;;  %v67_v35 = vld [vmem:[#allocation6 + $0x20] sm:$0xff] }
  0x14   :  { %537 = vmatpush.msrb.mxu3 %v102_v19  ;;  %5144 = vmatmul.msk.f32.vlgmr.msra.gmra.mxu0 %vm163_vm1, %v6589_v13  ;;  %v68_v36 = vld [vmem:[#allocation6 + $0x28] sm:$0xff]  ;;  %v6645_v37 = vld [vmem:[%s12198_s0 + $0x20] sm:$0xff]  ;;  %v121_v38 = vld [vmem:[#allocation6 + $0x1d0] sm:$0x3f] }
  0x15   :  { %5153 = vmatmul.msk.f32.vlgmr.msra.gmra.mxu1 %vm163_vm1, %v6589_v13  ;;  %5179 = vmatpush.msk.msrb.mxu0 %vm188_vm0, %v115_v22  ;;  %v122_v39 = vld [vmem:[#allocation6 + $0x1d8] sm:$0x3f]  ;;  %v6660_v40 = vld [vmem:[%s12198_s0 + $0x28] sm:$0xff]  ;;  %v119_v41 = vld [vmem:[#allocation6 + $0x1c0] sm:$0x3f] }
  0x16   :  { %5188 = vmatpush.msk.msrb.mxu1 %vm188_vm0, %v116_v23  ;;  %497 = vmatpush.msrb.mxu2 %v85_v24  ;;  %v120_v42 = vld [vmem:[#allocation6 + $0x1c8] sm:$0x3f]  ;;  %v6675_v43 = vld [vmem:[%s12198_s0 + $0x30] sm:$0xff]  ;;  %v106_v45 = vld [vmem:[#allocation6 + $0x158] sm:$0xff] }
  0x17   :  { %538 = vmatpush.msrb.mxu3 %v86_v25  ;;  %414 = vmatpush.msrb.mxu0 %v99_v27  ;;  %v105_v44 = vld [vmem:[#allocation6 + $0x150] sm:$0xff]  ;;  %v103_v47 = vld [vmem:[#allocation6 + $0x140] sm:$0xff]  ;;  %v104_v48 = vld [vmem:[#allocation6 + $0x148] sm:$0xff] }
  0x18   :  { %5163 = vmatmul.msk.f32.gmra.mxu2 %vm163_vm1, %v6604_v26  ;;  %455 = vmatpush.msrb.mxu1 %v100_v28  ;;  %v6688_v46 = vld [vmem:[%s12198_s0 + $0x38] sm:$0xff]  ;;  %v87_v51 = vld [vmem:[#allocation6 + $0xc0] sm:$0xff]  ;;  %v88_v52 = vld [vmem:[#allocation6 + $0xc8] sm:$0xff] }
  0x19   :  { %5172 = vmatmul.msk.f32.gmra.mxu3 %vm163_vm1, %v6604_v26  ;;  %415 = vmatpush.msrb.mxu0 %v83_v29  ;;  %v89_v49 = vld [vmem:[#allocation6 + $0xd0] sm:$0xff]  ;;  %v90_v50 = vld [vmem:[#allocation6 + $0xd8] sm:$0xff]  ;;  %v71_v55 = vld [vmem:[#allocation6 + $0x40] sm:$0xff] }
  0x1a   :  { %456 = vmatpush.msrb.mxu1 %v84_v30  ;;  %498 = vmatpush.msrb.mxu2 %v69_v32  ;;  %v73_v53 = vld [vmem:[#allocation6 + $0x50] sm:$0xff]  ;;  %v74_v54 = vld [vmem:[#allocation6 + $0x58] sm:$0xff]  ;;  %v72_v56 = vld [vmem:[#allocation6 + $0x48] sm:$0xff] }
  0x1b   :  { %539 = vmatpush.msrb.mxu3 %v70_v33  ;;  %416 = vmatpush.msrb.mxu0 %v67_v35  ;;  %v125_v57 = vld [vmem:[#allocation6 + $0x1f0] sm:$0x3f]  ;;  %v126_v58 = vld [vmem:[#allocation6 + $0x1f8] sm:$0x3f]  ;;  %v123_v59 = vld [vmem:[#allocation6 + $0x1e0] sm:$0x3f] }
  0x1c   :  { %5145 = vmatmul.msk.f32.gmra.mxu0 %vm163_vm1, %v6604_v26  ;;  %457 = vmatpush.msrb.mxu1 %v68_v36  ;;  %v124_v60 = vld [vmem:[#allocation6 + $0x1e8] sm:$0x3f]  ;;  %v109_v61 = vld [vmem:[#allocation6 + $0x170] sm:$0xff]  ;;  %v110_v62 = vld [vmem:[#allocation6 + $0x178] sm:$0xff] }
  0x1d   :  { %5154 = vmatmul.msk.f32.gmra.mxu1 %vm163_vm1, %v6604_v26  ;;  %5233 = vmatpush.msk.msra.mxu2 %vm188_vm0, %v121_v38  ;;  %v107_v63 = vld [vmem:[#allocation6 + $0x160] sm:$0xff]  ;;  %v108_v0 = vld [vmem:[#allocation6 + $0x168] sm:$0xff]  ;;  %v93_v6 = vld [vmem:[#allocation6 + $0xf0] sm:$0xff] }
  0x1e   :  { %5242 = vmatpush.msk.msra.mxu3 %vm188_vm0, %v122_v39  ;;  %5215 = vmatpush.msk.msra.mxu0 %vm188_vm0, %v119_v41  ;;  %v6765_v1 = vld [vmem:[%s12200_s2] sm:$0xff]  ;;  %v92_v18 = vld [vmem:[#allocation6 + $0xe8] sm:$0xff]  ;;  %v77_v28 = vld [vmem:[#allocation6 + $0x70] sm:$0xff] }
  0x1f   :  { %5224 = vmatpush.msk.msra.mxu1 %vm188_vm0, %v120_v42  ;;  %660 = vmatpush.msra.mxu2 %v105_v44  ;;  %v6772_v2 = vperm.slane %v6765_v1, 0  ;;  %v6775_v3 = vperm.slane %v6765_v1, 1  ;;  %v6782_v4 = vperm.slane %v6765_v1, 2  ;;  %v6785_v5 = vperm.slane %v6765_v1, 3  ;;  %v94_v7 = vld [vmem:[#allocation6 + $0xf8] sm:$0xff]  ;;  %v91_v17 = vld [vmem:[#allocation6 + $0xe0] sm:$0xff] }
  0x20   :  { %5164 = vmatmul.msk.f32.gmra.mxu2 %vm163_vm1, %v6619_v31  ;;  %701 = vmatpush.msra.mxu3 %v106_v45  ;;  %v78_v29 = vld [vmem:[#allocation6 + $0x78] sm:$0xff]  ;;  %v75_v42 = vld [vmem:[#allocation6 + $0x60] sm:$0xff]  ;;  %v76_v44 = vld [vmem:[#allocation6 + $0x68] sm:$0xff] }
  0x21   :  { %5173 = vmatmul.msk.f32.gmra.mxu3 %vm163_vm1, %v6619_v31  ;;  %578 = vmatpush.msra.mxu0 %v103_v47 }
  0x22   :  { %619 = vmatpush.msra.mxu1 %v104_v48  ;;  %661 = vmatpush.msra.mxu2 %v89_v49 }
  0x23   :  { %702 = vmatpush.msra.mxu3 %v90_v50  ;;  %579 = vmatpush.msra.mxu0 %v87_v51 }
  0x24   :  { %5146 = vmatmul.msk.f32.gmra.mxu0 %vm163_vm1, %v6619_v31  ;;  %620 = vmatpush.msra.mxu1 %v88_v52 }
  0x25   :  { %5155 = vmatmul.msk.f32.gmra.mxu1 %vm163_vm1, %v6619_v31  ;;  %662 = vmatpush.msra.mxu2 %v73_v53 }
  0x26   :  { %703 = vmatpush.msra.mxu3 %v74_v54  ;;  %580 = vmatpush.msra.mxu0 %v71_v55 }
  0x27   :  { %621 = vmatpush.msra.mxu1 %v72_v56 }
  0x28   :  { %5165 = vmatmul.msk.f32.gmra.mxu2 %vm163_vm1, %v6632_v34 }
  0x29   :  { %5174 = vmatmul.msk.f32.gmra.mxu3 %vm163_vm1, %v6632_v34 }
  0x2c   :  { %5147 = vmatmul.msk.f32.gmra.mxu0 %vm163_vm1, %v6632_v34 }
  0x2d   :  { %5156 = vmatmul.msk.f32.gmra.mxu1 %vm163_vm1, %v6632_v34 }
  0x30   :  { %5166 = vmatmul.msk.f32.gmra.mxu2 %vm163_vm1, %v6645_v37 }
  0x31   :  { %5175 = vmatmul.msk.f32.gmra.mxu3 %vm163_vm1, %v6645_v37 }
  0x34   :  { %5148 = vmatmul.msk.f32.gmra.mxu0 %vm163_vm1, %v6645_v37 }
  0x35   :  { %5157 = vmatmul.msk.f32.gmra.mxu1 %vm163_vm1, %v6645_v37 }
  0x38   :  { %5167 = vmatmul.msk.f32.gmra.mxu2 %vm163_vm1, %v6660_v40 }
  0x39   :  { %5176 = vmatmul.msk.f32.gmra.mxu3 %vm163_vm1, %v6660_v40 }
  0x3c   :  { %5149 = vmatmul.msk.f32.gmra.mxu0 %vm163_vm1, %v6660_v40 }
  0x3d   :  { %5158 = vmatmul.msk.f32.gmra.mxu1 %vm163_vm1, %v6660_v40 }
  0x40   :  { %5168 = vmatmul.msk.f32.gmra.mxu2 %vm163_vm1, %v6675_v43 }
  0x41   :  { %5177 = vmatmul.msk.f32.gmra.mxu3 %vm163_vm1, %v6675_v43 }
  0x44   :  { %5150 = vmatmul.msk.f32.gmra.mxu0 %vm163_vm1, %v6675_v43 }
  0x45   :  { %5159 = vmatmul.msk.f32.gmra.mxu1 %vm163_vm1, %v6675_v43 }
  0x48   :  { %5169 = vmatmul.msk.f32.gmra.mxu2 %vm163_vm1, %v6688_v46 }
  0x49   :  { %5178 = vmatmul.msk.f32.gmra.mxu3 %vm163_vm1, %v6688_v46 }
  0x4c   :  { %5151 = vmatmul.msk.f32.gmra.mxu0 %vm163_vm1, %v6688_v46 }
  0x4d   :  { %5160 = vmatmul.msk.f32.gmra.mxu1 %vm163_vm1, %v6688_v46 }
  0x50   :  { %5198 = vmatmul.msk.f32.vlgmr.msrb.gmra.mxu2 %vm163_vm1, %v6589_v13 }
  0x51   :  { %5207 = vmatmul.msk.f32.vlgmr.msrb.gmra.mxu3 %vm163_vm1, %v6589_v13  ;;  %5269 = vmatpush.msk.msrb.mxu2 %vm188_vm0, %v125_v57 }
  0x52   :  { %5278 = vmatpush.msk.msrb.mxu3 %vm188_vm0, %v126_v58 }
  0x53   :  { %824 = vmatpush.msrb.mxu2 %v109_v61 }
  0x54   :  { %5180 = vmatmul.msk.f32.vlgmr.msrb.gmra.mxu0 %vm163_vm1, %v6589_v13  ;;  %865 = vmatpush.msrb.mxu3 %v110_v62 }
  0x55   :  { %5189 = vmatmul.msk.f32.vlgmr.msrb.gmra.mxu1 %vm163_vm1, %v6589_v13  ;;  %5251 = vmatpush.msk.msrb.mxu0 %vm188_vm0, %v123_v59 }
  0x56   :  { %5260 = vmatpush.msk.msrb.mxu1 %vm188_vm0, %v124_v60  ;;  %825 = vmatpush.msrb.mxu2 %v93_v6 }
  0x57   :  { %742 = vmatpush.msrb.mxu0 %v107_v63  ;;  %866 = vmatpush.msrb.mxu3 %v94_v7 }
  0x58   :  { %5199 = vmatmul.msk.f32.gmra.mxu2 %vm163_vm1, %v6604_v26  ;;  %783 = vmatpush.msrb.mxu1 %v108_v0 }
  0x59   :  { %5208 = vmatmul.msk.f32.gmra.mxu3 %vm163_vm1, %v6604_v26  ;;  %743 = vmatpush.msrb.mxu0 %v91_v17 }
  0x5a   :  { %784 = vmatpush.msrb.mxu1 %v92_v18  ;;  %826 = vmatpush.msrb.mxu2 %v77_v28 }
  0x5b   :  { %867 = vmatpush.msrb.mxu3 %v78_v29  ;;  %744 = vmatpush.msrb.mxu0 %v75_v42 }
  0x5c   :  { %5181 = vmatmul.msk.f32.gmra.mxu0 %vm163_vm1, %v6604_v26  ;;  %785 = vmatpush.msrb.mxu1 %v76_v44 }
  0x5d   :  { %5190 = vmatmul.msk.f32.gmra.mxu1 %vm163_vm1, %v6604_v26 }
  0x60   :  { %5200 = vmatmul.msk.f32.gmra.mxu2 %vm163_vm1, %v6619_v31 }
  0x61   :  { %5209 = vmatmul.msk.f32.gmra.mxu3 %vm163_vm1, %v6619_v31 }
  0x64   :  { %5182 = vmatmul.msk.f32.gmra.mxu0 %vm163_vm1, %v6619_v31 }
  0x65   :  { %5191 = vmatmul.msk.f32.gmra.mxu1 %vm163_vm1, %v6619_v31 }
  0x68   :  { %5201 = vmatmul.msk.f32.gmra.mxu2 %vm163_vm1, %v6632_v34 }
  0x69   :  { %5210 = vmatmul.msk.f32.gmra.mxu3 %vm163_vm1, %v6632_v34 }
  0x6c   :  { %5183 = vmatmul.msk.f32.gmra.mxu0 %vm163_vm1, %v6632_v34 }
  0x6d   :  { %5192 = vmatmul.msk.f32.gmra.mxu1 %vm163_vm1, %v6632_v34 }
  0x70   :  { %5202 = vmatmul.msk.f32.gmra.mxu2 %vm163_vm1, %v6645_v37 }
  0x71   :  { %5211 = vmatmul.msk.f32.gmra.mxu3 %vm163_vm1, %v6645_v37 }
  0x74   :  { %5184 = vmatmul.msk.f32.gmra.mxu0 %vm163_vm1, %v6645_v37 }
  0x75   :  { %5193 = vmatmul.msk.f32.gmra.mxu1 %vm163_vm1, %v6645_v37 }
  0x78   :  { %5203 = vmatmul.msk.f32.gmra.mxu2 %vm163_vm1, %v6660_v40 }
  0x79   :  { %5212 = vmatmul.msk.f32.gmra.mxu3 %vm163_vm1, %v6660_v40 }
  0x7c   :  { %5185 = vmatmul.msk.f32.gmra.mxu0 %vm163_vm1, %v6660_v40 }
  0x7d   :  { %5194 = vmatmul.msk.f32.gmra.mxu1 %vm163_vm1, %v6660_v40 }
  0x80   :  { %5204 = vmatmul.msk.f32.gmra.mxu2 %vm163_vm1, %v6675_v43 }
  0x81   :  { %5213 = vmatmul.msk.f32.gmra.mxu3 %vm163_vm1, %v6675_v43 }
  0x84   :  { %5186 = vmatmul.msk.f32.gmra.mxu0 %vm163_vm1, %v6675_v43 }
  0x85   :  { %5195 = vmatmul.msk.f32.gmra.mxu1 %vm163_vm1, %v6675_v43 }
  0x88   :  { %5205 = vmatmul.msk.f32.gmra.mxu2 %vm163_vm1, %v6688_v46 }
  0x89   :  { %5214 = vmatmul.msk.f32.gmra.mxu3 %vm163_vm1, %v6688_v46 }
  0x8c   :  { %5187 = vmatmul.msk.f32.gmra.mxu0 %vm163_vm1, %v6688_v46 }
  0x8d   :  { %5196 = vmatmul.msk.f32.gmra.mxu1 %vm163_vm1, %v6688_v46 }
  0x90   :  { %5234 = vmatmul.msk.f32.vlgmr.msra.gmra.mxu2 %vm163_vm1, %v6589_v13 }
  0x91   :  { %5243 = vmatmul.msk.f32.vlgmr.msra.gmra.mxu3 %vm163_vm1, %v6589_v13  ;;  %v254_v8 = vpop.f32.mrf.mxu0 }
  0x92   :  { %v295_v9 = vpop.f32.mrf.mxu1  ;;  %v6788_v10 = vadd.f32 %v254_v8, %v6772_v2 }
  0x93   :  { %v6791_v11 = vadd.f32 %v295_v9, %v6775_v3  ;;  %v336_v12 = vpop.f32.mrf.mxu2 }
  0x94   :  { %12895 = vst [vmem:[#allocation14_spill] sm:$0xff] %v6788_v10  ;;  %v377_v14 = vpop.f32.mrf.mxu3  ;;  %v6794_v15 = vadd.f32 %v336_v12, %v6782_v4  ;;  %5216 = vmatmul.msk.f32.vlgmr.msra.gmra.mxu0 %vm163_vm1, %v6589_v13 }
  0x95   :  { %12896 = vst [vmem:[#allocation15_spill] sm:$0xff] %v6791_v11  ;;  %v6797_v16 = vadd.f32 %v377_v14, %v6785_v5  ;;  %5225 = vmatmul.msk.f32.vlgmr.msra.gmra.mxu1 %vm163_vm1, %v6589_v13 }
  0x96   :  { %12897 = vst [vmem:[#allocation16_spill] sm:$0xff] %v6794_v15 }
  0x97   :  { %12898 = vst [vmem:[#allocation17_spill] sm:$0xff] %v6797_v16 }
  0x98   :  { %5235 = vmatmul.msk.f32.gmra.mxu2 %vm163_vm1, %v6604_v26 }
  0x99   :  { %5244 = vmatmul.msk.f32.gmra.mxu3 %vm163_vm1, %v6604_v26  ;;  %v257_v19 = vpop.f32.mrf.mxu0 }
  0x9a   :  { %v298_v20 = vpop.f32.mrf.mxu1  ;;  %v6808_v21 = vadd.f32 %v257_v19, %v6772_v2 }
  0x9b   :  { %v6811_v22 = vadd.f32 %v298_v20, %v6775_v3  ;;  %v339_v23 = vpop.f32.mrf.mxu2 }
  0x9c   :  { %12899 = vst [vmem:[#allocation18_spill] sm:$0xff] %v6808_v21  ;;  %v380_v24 = vpop.f32.mrf.mxu3  ;;  %v6814_v25 = vadd.f32 %v339_v23, %v6782_v4  ;;  %5217 = vmatmul.msk.f32.gmra.mxu0 %vm163_vm1, %v6604_v26 }
  0x9d   :  { %12900 = vst [vmem:[#allocation19_spill] sm:$0xff] %v6811_v22  ;;  %v6817_v27 = vadd.f32 %v380_v24, %v6785_v5  ;;  %5226 = vmatmul.msk.f32.gmra.mxu1 %vm163_vm1, %v6604_v26 }
  0x9e   :  { %12901 = vst [vmem:[#allocation20_spill] sm:$0xff] %v6814_v25 }
  0x9f   :  { %12902 = vst [vmem:[#allocation21_spill] sm:$0xff] %v6817_v27 }
  0xa0   :  { %5236 = vmatmul.msk.f32.gmra.mxu2 %vm163_vm1, %v6619_v31 }
  0xa1   :  { %5245 = vmatmul.msk.f32.gmra.mxu3 %vm163_vm1, %v6619_v31  ;;  %v260_v30 = vpop.f32.mrf.mxu0 }
  0xa2   :  { %v301_v32 = vpop.f32.mrf.mxu1  ;;  %v6828_v33 = vadd.f32 %v260_v30, %v6772_v2 }
  0xa3   :  { %v6831_v35 = vadd.f32 %v301_v32, %v6775_v3  ;;  %v342_v36 = vpop.f32.mrf.mxu2 }
  0xa4   :  { %12903 = vst [vmem:[#allocation22_spill] sm:$0xff] %v6828_v33  ;;  %v383_v38 = vpop.f32.mrf.mxu3  ;;  %v6834_v39 = vadd.f32 %v342_v36, %v6782_v4  ;;  %5218 = vmatmul.msk.f32.gmra.mxu0 %vm163_vm1, %v6619_v31 }
  0xa5   :  { %12904 = vst [vmem:[#allocation23_spill] sm:$0xff] %v6831_v35  ;;  %v6837_v41 = vadd.f32 %v383_v38, %v6785_v5  ;;  %5227 = vmatmul.msk.f32.gmra.mxu1 %vm163_vm1, %v6619_v31 }
  0xa6   :  { %12905 = vst [vmem:[#allocation24_spill] sm:$0xff] %v6834_v39 }
  0xa7   :  { %12906 = vst [vmem:[#allocation25_spill] sm:$0xff] %v6837_v41 }
  0xa8   :  { %5237 = vmatmul.msk.f32.gmra.mxu2 %vm163_vm1, %v6632_v34 }
  0xa9   :  { %5246 = vmatmul.msk.f32.gmra.mxu3 %vm163_vm1, %v6632_v34  ;;  %v263_v45 = vpop.f32.mrf.mxu0 }
  0xaa   :  { %v304_v47 = vpop.f32.mrf.mxu1  ;;  %v6848_v48 = vadd.f32 %v263_v45, %v6772_v2 }
  0xab   :  { %v6851_v49 = vadd.f32 %v304_v47, %v6775_v3  ;;  %v345_v50 = vpop.f32.mrf.mxu2 }
  0xac   :  { %12907 = vst [vmem:[#allocation26_spill] sm:$0xff] %v6848_v48  ;;  %v386_v51 = vpop.f32.mrf.mxu3  ;;  %v6854_v52 = vadd.f32 %v345_v50, %v6782_v4  ;;  %5219 = vmatmul.msk.f32.gmra.mxu0 %vm163_vm1, %v6632_v34 }
  0xad   :  { %12908 = vst [vmem:[#allocation27_spill] sm:$0xff] %v6851_v49  ;;  %v6857_v53 = vadd.f32 %v386_v51, %v6785_v5  ;;  %5228 = vmatmul.msk.f32.gmra.mxu1 %vm163_vm1, %v6632_v34 }
  0xae   :  { %12909 = vst [vmem:[#allocation28_spill] sm:$0xff] %v6854_v52 }
  0xaf   :  { %12910 = vst [vmem:[#allocation29_spill] sm:$0xff] %v6857_v53 }
  0xb0   :  { %5238 = vmatmul.msk.f32.gmra.mxu2 %vm163_vm1, %v6645_v37 }
  0xb1   :  { %5247 = vmatmul.msk.f32.gmra.mxu3 %vm163_vm1, %v6645_v37  ;;  %v266_v54 = vpop.f32.mrf.mxu0 }
  0xb2   :  { %v307_v55 = vpop.f32.mrf.mxu1  ;;  %v6868_v56 = vadd.f32 %v266_v54, %v6772_v2 }
  0xb3   :  { %v6871_v57 = vadd.f32 %v307_v55, %v6775_v3  ;;  %v348_v58 = vpop.f32.mrf.mxu2 }
  0xb4   :  { %12911 = vst [vmem:[#allocation30_spill] sm:$0xff] %v6868_v56  ;;  %v389_v59 = vpop.f32.mrf.mxu3  ;;  %v6874_v60 = vadd.f32 %v348_v58, %v6782_v4  ;;  %5220 = vmatmul.msk.f32.gmra.mxu0 %vm163_vm1, %v6645_v37 }
  0xb5   :  { %12912 = vst [vmem:[#allocation31_spill] sm:$0xff] %v6871_v57  ;;  %v6877_v61 = vadd.f32 %v389_v59, %v6785_v5  ;;  %5229 = vmatmul.msk.f32.gmra.mxu1 %vm163_vm1, %v6645_v37 }
  0xb6   :  { %12913 = vst [vmem:[#allocation32_spill] sm:$0xff] %v6874_v60 }
  0xb7   :  { %12914 = vst [vmem:[#allocation33_spill] sm:$0xff] %v6877_v61 }
  0xb8   :  { %5239 = vmatmul.msk.f32.gmra.mxu2 %vm163_vm1, %v6660_v40 }
  0xb9   :  { %5248 = vmatmul.msk.f32.gmra.mxu3 %vm163_vm1, %v6660_v40  ;;  %v269_v62 = vpop.f32.mrf.mxu0 }
  0xba   :  { %v310_v63 = vpop.f32.mrf.mxu1  ;;  %v6888_v0 = vadd.f32 %v269_v62, %v6772_v2 }
  0xbb   :  { %v6891_v6 = vadd.f32 %v310_v63, %v6775_v3  ;;  %v351_v7 = vpop.f32.mrf.mxu2 }
  0xbc   :  { %12915 = vst [vmem:[#allocation34_spill] sm:$0xff] %v6888_v0  ;;  %v392_v8 = vpop.f32.mrf.mxu3  ;;  %v6894_v9 = vadd.f32 %v351_v7, %v6782_v4  ;;  %5221 = vmatmul.msk.f32.gmra.mxu0 %vm163_vm1, %v6660_v40 }
  0xbd   :  { %12916 = vst [vmem:[#allocation35_spill] sm:$0xff] %v6891_v6  ;;  %v6897_v12 = vadd.f32 %v392_v8, %v6785_v5  ;;  %5230 = vmatmul.msk.f32.gmra.mxu1 %vm163_vm1, %v6660_v40 }
  0xbe   :  { %12917 = vst [vmem:[#allocation36_spill] sm:$0xff] %v6894_v9 }
  0xbf   :  { %12918 = vst [vmem:[#allocation37_spill] sm:$0xff] %v6897_v12 }
  0xc0   :  { %5240 = vmatmul.msk.f32.gmra.mxu2 %vm163_vm1, %v6675_v43 }
  0xc1   :  { %5249 = vmatmul.msk.f32.gmra.mxu3 %vm163_vm1, %v6675_v43  ;;  %v272_v14 = vpop.f32.mrf.mxu0 }
  0xc2   :  { %v313_v17 = vpop.f32.mrf.mxu1  ;;  %v6908_v18 = vadd.f32 %v272_v14, %v6772_v2 }
  0xc3   :  { %v6911_v19 = vadd.f32 %v313_v17, %v6775_v3  ;;  %v354_v20 = vpop.f32.mrf.mxu2 }
  0xc4   :  { %12919 = vst [vmem:[#allocation38_spill] sm:$0xff] %v6908_v18  ;;  %v395_v23 = vpop.f32.mrf.mxu3  ;;  %v6914_v24 = vadd.f32 %v354_v20, %v6782_v4  ;;  %5222 = vmatmul.msk.f32.gmra.mxu0 %vm163_vm1, %v6675_v43 }
  0xc5   :  { %12920 = vst [vmem:[#allocation39_spill] sm:$0xff] %v6911_v19  ;;  %v6917_v28 = vadd.f32 %v395_v23, %v6785_v5  ;;  %5231 = vmatmul.msk.f32.gmra.mxu1 %vm163_vm1, %v6675_v43 }
  0xc6   :  { %12921 = vst [vmem:[#allocation40_spill] sm:$0xff] %v6914_v24 }
  0xc7   :  { %12922 = vst [vmem:[#allocation41_spill] sm:$0xff] %v6917_v28 }
  0xc8   :  { %5241 = vmatmul.msk.f32.gmra.mxu2 %vm163_vm1, %v6688_v46 }
  0xc9   :  { %5250 = vmatmul.msk.f32.gmra.mxu3 %vm163_vm1, %v6688_v46  ;;  %v275_v29 = vpop.f32.mrf.mxu0 }
  0xca   :  { %v316_v30 = vpop.f32.mrf.mxu1  ;;  %v6928_v32 = vadd.f32 %v275_v29, %v6772_v2  ;;  %v6944_v2 = vperm.slane %v6765_v1, 4 }
  0xcb   :  { %v6931_v36 = vadd.f32 %v316_v30, %v6775_v3  ;;  %v357_v38 = vpop.f32.mrf.mxu2  ;;  %v6947_v3 = vperm.slane %v6765_v1, 5 }
  0xcc   :  { %12923 = vst [vmem:[#allocation42_spill] sm:$0xff] %v6928_v32  ;;  %v398_v42 = vpop.f32.mrf.mxu3  ;;  %v6934_v44 = vadd.f32 %v357_v38, %v6782_v4  ;;  %5223 = vmatmul.msk.f32.gmra.mxu0 %vm163_vm1, %v6688_v46  ;;  %v6954_v4 = vperm.slane %v6765_v1, 6 }
  0xcd   :  { %12924 = vst [vmem:[#allocation43_spill] sm:$0xff] %v6931_v36  ;;  %v6937_v45 = vadd.f32 %v398_v42, %v6785_v5  ;;  %5232 = vmatmul.msk.f32.gmra.mxu1 %vm163_vm1, %v6688_v46  ;;  %v6957_v5 = vperm.slane %v6765_v1, 7 }
  0xce   :  { %12925 = vst [vmem:[#allocation44_spill] sm:$0xff] %v6934_v44 }
  0xcf   :  { %12926 = vst [vmem:[#allocation45_spill] sm:$0xff] %v6937_v45 }
  0xd0   :  { %5270 = vmatmul.msk.f32.vlgmr.msrb.gmra.mxu2 %vm163_vm1, %v6589_v13 }
  0xd1   :  { %5279 = vmatmul.msk.f32.vlgmr.msrb.gmra.mxu3 %vm163_vm1, %v6589_v13  ;;  %v418_v47 = vpop.f32.mrf.mxu0 }
  0xd2   :  { %v459_v50 = vpop.f32.mrf.mxu1  ;;  %v6960_v51 = vadd.f32 %v418_v47, %v6944_v2 }
  0xd3   :  { %v6963_v54 = vadd.f32 %v459_v50, %v6947_v3  ;;  %v500_v55 = vpop.f32.mrf.mxu2 }
  0xd4   :  { %12927 = vst [vmem:[#allocation46_spill] sm:$0xff] %v6960_v51  ;;  %v541_v58 = vpop.f32.mrf.mxu3  ;;  %v6966_v59 = vadd.f32 %v500_v55, %v6954_v4  ;;  %5252 = vmatmul.msk.f32.vlgmr.msrb.gmra.mxu0 %vm163_vm1, %v6589_v13 }
  0xd5   :  { %12928 = vst [vmem:[#allocation47_spill] sm:$0xff] %v6963_v54  ;;  %v6969_v62 = vadd.f32 %v541_v58, %v6957_v5  ;;  %5261 = vmatmul.msk.f32.vlgmr.msrb.gmra.mxu1 %vm163_vm1, %v6589_v13 }
  0xd6   :  { %12929 = vst [vmem:[#allocation48_spill] sm:$0xff] %v6966_v59 }
  0xd7   :  { %12930 = vst [vmem:[#allocation49_spill] sm:$0xff] %v6969_v62 }
  0xd8   :  { %5271 = vmatmul.msk.f32.gmra.mxu2 %vm163_vm1, %v6604_v26 }
  0xd9   :  { %5280 = vmatmul.msk.f32.gmra.mxu3 %vm163_vm1, %v6604_v26  ;;  %v421_v1 = vpop.f32.mrf.mxu0 }
  0xda   :  { %v462_v63 = vpop.f32.mrf.mxu1  ;;  %v6980_v7 = vadd.f32 %v421_v1, %v6944_v2 }
  0xdb   :  { %v6983_v8 = vadd.f32 %v462_v63, %v6947_v3  ;;  %v503_v14 = vpop.f32.mrf.mxu2 }
  0xdc   :  { %12931 = vst [vmem:[#allocation50_spill] sm:$0xff] %v6980_v7  ;;  %v544_v17 = vpop.f32.mrf.mxu3  ;;  %v6986_v20 = vadd.f32 %v503_v14, %v6954_v4  ;;  %5253 = vmatmul.msk.f32.gmra.mxu0 %vm163_vm1, %v6604_v26 }
  0xdd   :  { %12932 = vst [vmem:[#allocation51_spill] sm:$0xff] %v6983_v8  ;;  %v6989_v13 = vadd.f32 %v544_v17, %v6957_v5  ;;  %5262 = vmatmul.msk.f32.gmra.mxu1 %vm163_vm1, %v6604_v26 }
  0xde   :  { %12933 = vst [vmem:[#allocation52_spill] sm:$0xff] %v6986_v20 }
  0xdf   :  { %12934 = vst [vmem:[#allocation53_spill] sm:$0xff] %v6989_v13 }
  0xe0   :  { %5272 = vmatmul.msk.f32.gmra.mxu2 %vm163_vm1, %v6619_v31 }
  0xe1   :  { %5281 = vmatmul.msk.f32.gmra.mxu3 %vm163_vm1, %v6619_v31  ;;  %v424_v23 = vpop.f32.mrf.mxu0 }
  0xe2   :  { %v465_v29 = vpop.f32.mrf.mxu1  ;;  %v7000_v30 = vadd.f32 %v424_v23, %v6944_v2 }
  0xe3   :  { %v7003_v38 = vadd.f32 %v465_v29, %v6947_v3  ;;  %v506_v42 = vpop.f32.mrf.mxu2 }
  0xe4   :  { %12935 = vst [vmem:[#allocation54_spill] sm:$0xff] %v7000_v30  ;;  %v547_v47 = vpop.f32.mrf.mxu3  ;;  %v7006_v50 = vadd.f32 %v506_v42, %v6954_v4  ;;  %5254 = vmatmul.msk.f32.gmra.mxu0 %vm163_vm1, %v6619_v31 }
  0xe5   :  { %12936 = vst [vmem:[#allocation55_spill] sm:$0xff] %v7003_v38  ;;  %v7009_v26 = vadd.f32 %v547_v47, %v6957_v5  ;;  %5263 = vmatmul.msk.f32.gmra.mxu1 %vm163_vm1, %v6619_v31 }
  0xe6   :  { %12937 = vst [vmem:[#allocation56_spill] sm:$0xff] %v7006_v50 }
  0xe7   :  { %12938 = vst [vmem:[#allocation57_spill] sm:$0xff] %v7009_v26 }
  0xe8   :  { %5273 = vmatmul.msk.f32.gmra.mxu2 %vm163_vm1, %v6632_v34 }
  0xe9   :  { %5282 = vmatmul.msk.f32.gmra.mxu3 %vm163_vm1, %v6632_v34  ;;  %v427_v55 = vpop.f32.mrf.mxu0 }
  0xea   :  { %v468_v58 = vpop.f32.mrf.mxu1  ;;  %v7020_v1 = vadd.f32 %v427_v55, %v6944_v2 }
  0xeb   :  { %v7023_v63 = vadd.f32 %v468_v58, %v6947_v3  ;;  %v509_v14 = vpop.f32.mrf.mxu2 }
  0xec   :  { %12939 = vst [vmem:[#allocation58_spill] sm:$0xff] %v7020_v1  ;;  %v550_v17 = vpop.f32.mrf.mxu3  ;;  %v7026_v23 = vadd.f32 %v509_v14, %v6954_v4  ;;  %5255 = vmatmul.msk.f32.gmra.mxu0 %vm163_vm1, %v6632_v34 }
  0xed   :  { %12940 = vst [vmem:[#allocation59_spill] sm:$0xff] %v7023_v63  ;;  %v7029_v31 = vadd.f32 %v550_v17, %v6957_v5  ;;  %5264 = vmatmul.msk.f32.gmra.mxu1 %vm163_vm1, %v6632_v34 }
  0xee   :  { %12941 = vst [vmem:[#allocation60_spill] sm:$0xff] %v7026_v23 }
  0xef   :  { %12942 = vst [vmem:[#allocation61_spill] sm:$0xff] %v7029_v31 }
  0xf0   :  { %5274 = vmatmul.msk.f32.gmra.mxu2 %vm163_vm1, %v6645_v37 }
  0xf1   :  { %5283 = vmatmul.msk.f32.gmra.mxu3 %vm163_vm1, %v6645_v37  ;;  %v430_v29 = vpop.f32.mrf.mxu0 }
  0xf2   :  { %v471_v42 = vpop.f32.mrf.mxu1  ;;  %v7040_v47 = vadd.f32 %v430_v29, %v6944_v2 }
  0xf3   :  { %v7043_v55 = vadd.f32 %v471_v42, %v6947_v3  ;;  %v512_v58 = vpop.f32.mrf.mxu2 }
  0xf4   :  { %12943 = vst [vmem:[#allocation62_spill] sm:$0xff] %v7040_v47  ;;  %v553_v14 = vpop.f32.mrf.mxu3  ;;  %v7046_v17 = vadd.f32 %v512_v58, %v6954_v4  ;;  %5256 = vmatmul.msk.f32.gmra.mxu0 %vm163_vm1, %v6645_v37 }
  0xf5   :  { %12944 = vst [vmem:[#allocation63_spill] sm:$0xff] %v7043_v55  ;;  %v7049_v34 = vadd.f32 %v553_v14, %v6957_v5  ;;  %5265 = vmatmul.msk.f32.gmra.mxu1 %vm163_vm1, %v6645_v37 }
  0xf6   :  { %12945 = vst [vmem:[#allocation64_spill] sm:$0xff] %v7046_v17 }
  0xf7   :  { %12946 = vst [vmem:[#allocation65_spill] sm:$0xff] %v7049_v34 }
  0xf8   :  { %5275 = vmatmul.msk.f32.gmra.mxu2 %vm163_vm1, %v6660_v40 }
  0xf9   :  { %5284 = vmatmul.msk.f32.gmra.mxu3 %vm163_vm1, %v6660_v40  ;;  %v433_v29 = vpop.f32.mrf.mxu0 }
  0xfa   :  { %v474_v42 = vpop.f32.mrf.mxu1  ;;  %v7060_v58 = vadd.f32 %v433_v29, %v6944_v2 }
  0xfb   :  { %v7063_v14 = vadd.f32 %v474_v42, %v6947_v3  ;;  %v515_v45 = vpop.f32.mrf.mxu2 }
  0xfc   :  { %12947 = vst [vmem:[#allocation66_spill] sm:$0xff] %v7060_v58  ;;  %v556_v36 = vpop.f32.mrf.mxu3  ;;  %v7066_v44 = vadd.f32 %v515_v45, %v6954_v4  ;;  %5257 = vmatmul.msk.f32.gmra.mxu0 %vm163_vm1, %v6660_v40 }
  0xfd   :  { %12948 = vst [vmem:[#allocation67_spill] sm:$0xff] %v7063_v14  ;;  %v7069_v37 = vadd.f32 %v556_v36, %v6957_v5  ;;  %5266 = vmatmul.msk.f32.gmra.mxu1 %vm163_vm1, %v6660_v40 }
  0xfe   :  { %12949 = vst [vmem:[#allocation68_spill] sm:$0xff] %v7066_v44 }
  0xff   :  { %12950 = vst [vmem:[#allocation69_spill] sm:$0xff] %v7069_v37 }
 0x100   :  { %5276 = vmatmul.msk.f32.gmra.mxu2 %vm163_vm1, %v6675_v43 }
 0x101   :  { %5285 = vmatmul.msk.f32.gmra.mxu3 %vm163_vm1, %v6675_v43  ;;  %v436_v29 = vpop.f32.mrf.mxu0 }
 0x102   :  { %v477_v42 = vpop.f32.mrf.mxu1  ;;  %v7080_v45 = vadd.f32 %v436_v29, %v6944_v2 }
 0x103   :  { %v7083_v36 = vadd.f32 %v477_v42, %v6947_v3  ;;  %v518_v32 = vpop.f32.mrf.mxu2 }
 0x104   :  { %12951 = vst [vmem:[#allocation70_spill] sm:$0xff] %v7080_v45  ;;  %v559_v19 = vpop.f32.mrf.mxu3  ;;  %v7086_v28 = vadd.f32 %v518_v32, %v6954_v4  ;;  %5258 = vmatmul.msk.f32.gmra.mxu0 %vm163_vm1, %v6675_v43 }
 0x105   :  { %12952 = vst [vmem:[#allocation71_spill] sm:$0xff] %v7083_v36  ;;  %v7089_v40 = vadd.f32 %v559_v19, %v6957_v5  ;;  %5267 = vmatmul.msk.f32.gmra.mxu1 %vm163_vm1, %v6675_v43 }
 0x106   :  { %12953 = vst [vmem:[#allocation72_spill] sm:$0xff] %v7086_v28 }
 0x107   :  { %12954 = vst [vmem:[#allocation73_spill] sm:$0xff] %v7089_v40 }
 0x108   :  { %5277 = vmatmul.msk.f32.gmra.mxu2 %vm163_vm1, %v6688_v46 }
 0x109   :  { %5286 = vmatmul.msk.f32.gmra.mxu3 %vm163_vm1, %v6688_v46  ;;  %v439_v29 = vpop.f32.mrf.mxu0 }
 0x10a   :  { %v480_v42 = vpop.f32.mrf.mxu1  ;;  %v7103_v19 = vadd.f32 %v439_v29, %v6944_v2 }
 0x10b   :  { %v7106_v32 = vadd.f32 %v480_v42, %v6947_v3  ;;  %v521_v43 = vpop.f32.mrf.mxu2 }
 0x10c   :  { %12955 = vst [vmem:[#allocation74_spill] sm:$0xff] %v7103_v19  ;;  %v562_v40 = vpop.f32.mrf.mxu3  ;;  %v7109_v28 = vadd.f32 %v521_v43, %v6954_v4  ;;  %5259 = vmatmul.msk.f32.gmra.mxu0 %vm163_vm1, %v6688_v46 }
 0x10d   :  { %12956 = vst [vmem:[#allocation75_spill] sm:$0xff] %v7106_v32  ;;  %v7112_v36 = vadd.f32 %v562_v40, %v6957_v5  ;;  %5268 = vmatmul.msk.f32.gmra.mxu1 %vm163_vm1, %v6688_v46 }
 0x10e   :  { %12957 = vst [vmem:[#allocation76_spill] sm:$0xff] %v7109_v28 }
 0x10f   :  { %12958 = vst [vmem:[#allocation77_spill] sm:$0xff] %v7112_v36 }
 0x111   :  { %v582_v2 = vpop.f32.mrf.mxu0 }
 0x112   :  { %v623_v3 = vpop.f32.mrf.mxu1 }
 0x113   :  { %v664_v29 = vpop.f32.mrf.mxu2 }
 0x114   :  { %v705_v42 = vpop.f32.mrf.mxu3 }
 0x119   :  { %v585_v32 = vpop.f32.mrf.mxu0 }
 0x11a   :  { %v626_v19 = vpop.f32.mrf.mxu1 }
 0x11b   :  { %v667_v45 = vpop.f32.mrf.mxu2 }
 0x11c   :  { %v708_v18 = vpop.f32.mrf.mxu3 }
 0x121   :  { %v588_v4 = vpop.f32.mrf.mxu0 }
 0x122   :  { %v629_v43 = vpop.f32.mrf.mxu1 }
 0x123   :  { %v670_v28 = vpop.f32.mrf.mxu2 }
 0x124   :  { %v711_v5 = vpop.f32.mrf.mxu3  ;;  %v128_v28 = vld [vmem:[%s12200_s2 + $0x8] sm:$0xff] }
 0x125   :  { %v139_v4 = vperm.slane %v128_v28, 0 }
 0x129   :  { %v591_v40 = vpop.f32.mrf.mxu0 }
 0x12a   :  { %v632_v36 = vpop.f32.mrf.mxu1 }
 0x12b   :  { %v673_v24 = vpop.f32.mrf.mxu2  ;;  %v140_v36 = vperm.slane %v128_v28, 1 }
 0x12c   :  { %v714_v37 = vpop.f32.mrf.mxu3 }
 0x131   :  { %v594_v44 = vpop.f32.mrf.mxu0 }
 0x132   :  { %v635_v14 = vpop.f32.mrf.mxu1 }
 0x133   :  { %v676_v58 = vpop.f32.mrf.mxu2 }
 0x134   :  { %v717_v46 = vpop.f32.mrf.mxu3 }
 0x139   :  { %v597_v2 = vpop.f32.mrf.mxu0 }
 0x13a   :  { %v638_v3 = vpop.f32.mrf.mxu1 }
 0x13b   :  { %v679_v29 = vpop.f32.mrf.mxu2 }
 0x13c   :  { %v720_v42 = vpop.f32.mrf.mxu3 }
 0x141   :  { %v600_v32 = vpop.f32.mrf.mxu0 }
 0x142   :  { %v641_v19 = vpop.f32.mrf.mxu1 }
 0x143   :  { %v682_v45 = vpop.f32.mrf.mxu2 }
 0x144   :  { %v723_v18 = vpop.f32.mrf.mxu3 }
 0x149   :  { %v603_v24 = vpop.f32.mrf.mxu0 }
 0x14a   :  { %v644_v37 = vpop.f32.mrf.mxu1  ;;  %v7121_v44 = vadd.f32 %v603_v24, %v139_v4 }
 0x14b   :  { %v7123_v58 = vadd.f32 %v644_v37, %v140_v36  ;;  %v685_v14 = vpop.f32.mrf.mxu2 }
 0x14c   :  { %12959 = vst [vmem:[#allocation78_spill] sm:$0xff] %v7121_v44  ;;  %v726_v43 = vpop.f32.mrf.mxu3 }
 0x14d   :  { %12960 = vst [vmem:[#allocation79_spill] sm:$0xff] %v7123_v58 }
 0x151   :  { %v746_v5 = vpop.f32.mrf.mxu0 }
 0x152   :  { %v787_v40 = vpop.f32.mrf.mxu1 }
 0x153   :  { %v828_v46 = vpop.f32.mrf.mxu2 }
 0x154   :  { %v869_v2 = vpop.f32.mrf.mxu3 }
 0x159   :  { %v749_v3 = vpop.f32.mrf.mxu0 }
 0x15a   :  { %v790_v29 = vpop.f32.mrf.mxu1 }
 0x15b   :  { %v831_v42 = vpop.f32.mrf.mxu2 }
 0x15c   :  { %v872_v32 = vpop.f32.mrf.mxu3 }
 0x161   :  { %v752_v19 = vpop.f32.mrf.mxu0 }
 0x162   :  { %v793_v45 = vpop.f32.mrf.mxu1  ;;  %v143_v19 = vperm.slane %v128_v28, 4 }
 0x163   :  { %v834_v18 = vpop.f32.mrf.mxu2  ;;  %v144_v45 = vperm.slane %v128_v28, 5 }
 0x164   :  { %v875_v6 = vpop.f32.mrf.mxu3  ;;  %v145_v18 = vperm.slane %v128_v28, 6 }
 0x165   :  { %v146_v6 = vperm.slane %v128_v28, 7 }
 0x169   :  { %v755_v12 = vpop.f32.mrf.mxu0 }
 0x16a   :  { %v796_v0 = vpop.f32.mrf.mxu1 }
 0x16b   :  { %v837_v4 = vpop.f32.mrf.mxu2 }
 0x16c   :  { %v878_v24 = vpop.f32.mrf.mxu3 }
 0x171   :  { %v758_v36 = vpop.f32.mrf.mxu0 }
 0x172   :  { %v799_v37 = vpop.f32.mrf.mxu1 }
 0x173   :  { %v840_v14 = vpop.f32.mrf.mxu2 }
 0x174   :  { %v881_v43 = vpop.f32.mrf.mxu3 }
 0x179   :  { %v761_v5 = vpop.f32.mrf.mxu0 }
 0x17a   :  { %v802_v40 = vpop.f32.mrf.mxu1 }
 0x17b   :  { %v843_v46 = vpop.f32.mrf.mxu2 }
 0x17c   :  { %v884_v2 = vpop.f32.mrf.mxu3 }
 0x181   :  { %v764_v3 = vpop.f32.mrf.mxu0 }
 0x182   :  { %v805_v29 = vpop.f32.mrf.mxu1 }
 0x183   :  { %v846_v42 = vpop.f32.mrf.mxu2 }
 0x184   :  { %v887_v32 = vpop.f32.mrf.mxu3 }
 0x189   :  { %v767_v12 = vpop.f32.mrf.mxu0 }
 0x18a   :  { %v808_v0 = vpop.f32.mrf.mxu1  ;;  %v7125_v4 = vadd.f32 %v767_v12, %v143_v19 }
 0x18b   :  { %v7127_v24 = vadd.f32 %v808_v0, %v144_v45  ;;  %v849_v36 = vpop.f32.mrf.mxu2 }
 0x18c   :  { %12961 = vst [vmem:[#allocation80_spill] sm:$0xff] %v7125_v4  ;;  %v890_v37 = vpop.f32.mrf.mxu3  ;;  %v7129_v14 = vadd.f32 %v849_v36, %v145_v18 }
 0x18d   :  { %12962 = vst [vmem:[#allocation81_spill] sm:$0xff] %v7127_v24  ;;  %v7131_v43 = vadd.f32 %v890_v37, %v146_v6 }
 0x18e   :  { %12963 = vst [vmem:[#allocation82_spill] sm:$0xff] %v7129_v14 }
 0x18f   :  { %12964 = vst [vmem:[#allocation83_spill] sm:$0xff] %v7131_v43 }
 0x190   :  { %6528 = dma.done.wait [#allocation4], 32768 }
 0x191   :  { %6529 = vsyncadd [#allocation4], 4294934528  ;;  %v1066_v5 = vld [vmem:[#allocation3 + $0x3c0] sm:$0xff]  ;;  %v1067_v46 = vld [vmem:[#allocation3 + $0x3c8] sm:$0xff] }
 0x192   :  { %v1098_v40 = vld [vmem:[#allocation3 + $0x7c0] sm:$0xff]  ;;  %1100 = vmatpush.msra.mxu0 %v1066_v5  ;;  %v1099_v28 = vld [vmem:[#allocation3 + $0x7c8] sm:$0xff]  ;;  %1140 = vmatpush.msra.mxu2 %v1067_v46  ;;  %v7252_v50 = vld [vmem:[#allocation3 + $0x3d0] sm:$0xff] }
 0x193   :  { %1120 = vmatpush.msra.mxu1 %v1098_v40  ;;  %v1064_v2 = vld [vmem:[#allocation3 + $0x380] sm:$0xff]  ;;  %1160 = vmatpush.msra.mxu3 %v1099_v28  ;;  %v1065_v29 = vld [vmem:[#allocation3 + $0x388] sm:$0xff]  ;;  %v7254_v38 = vld [vmem:[#allocation3 + $0x7d0] sm:$0xff] }
 0x194   :  { %v1096_v3 = vld [vmem:[#allocation3 + $0x780] sm:$0xff]  ;;  %v1097_v42 = vld [vmem:[#allocation3 + $0x788] sm:$0xff]  ;;  %1101 = vmatpush.msra.mxu0 %v1064_v2  ;;  %1141 = vmatpush.msra.mxu2 %v1065_v29  ;;  %v7258_v30 = vld [vmem:[#allocation3 + $0x3d8] sm:$0xff] }
 0x195   :  { %v1062_v32 = vld [vmem:[#allocation3 + $0x340] sm:$0xff]  ;;  %1121 = vmatpush.msra.mxu1 %v1096_v3  ;;  %v1063_v45 = vld [vmem:[#allocation3 + $0x348] sm:$0xff]  ;;  %1161 = vmatpush.msra.mxu3 %v1097_v42  ;;  %v7260_v35 = vld [vmem:[#allocation3 + $0x7d8] sm:$0xff] }
 0x196   :  { %v1094_v19 = vld [vmem:[#allocation3 + $0x740] sm:$0xff]  ;;  %v1095_v18 = vld [vmem:[#allocation3 + $0x748] sm:$0xff]  ;;  %1102 = vmatpush.msra.mxu0 %v1062_v32  ;;  %1142 = vmatpush.msra.mxu2 %v1063_v45  ;;  %v7264_v41 = vld [vmem:[#allocation3 + $0x390] sm:$0xff] }
 0x197   :  { %v1060_v6 = vld [vmem:[#allocation3 + $0x300] sm:$0xff]  ;;  %1122 = vmatpush.msra.mxu1 %v1094_v19  ;;  %v1061_v0 = vld [vmem:[#allocation3 + $0x308] sm:$0xff]  ;;  %1162 = vmatpush.msra.mxu3 %v1095_v18  ;;  %v7266_v33 = vld [vmem:[#allocation3 + $0x790] sm:$0xff] }
 0x198   :  { %v1092_v12 = vld [vmem:[#allocation3 + $0x700] sm:$0xff]  ;;  %v1093_v36 = vld [vmem:[#allocation3 + $0x708] sm:$0xff]  ;;  %1103 = vmatpush.msra.mxu0 %v1060_v6  ;;  %1143 = vmatpush.msra.mxu2 %v1061_v0  ;;  %12965 = vst [vmem:[#allocation84_spill] sm:$0xff] %v7266_v33  ;;  %v7270_v39 = vld [vmem:[#allocation3 + $0x398] sm:$0xff] }
 0x199   :  { %v1058_v37 = vld [vmem:[#allocation3 + $0x2c0] sm:$0xff]  ;;  %1123 = vmatpush.msra.mxu1 %v1092_v12  ;;  %v1059_v40 = vld [vmem:[#allocation3 + $0x2c8] sm:$0xff]  ;;  %1163 = vmatpush.msra.mxu3 %v1093_v36  ;;  %v7272_v13 = vld [vmem:[#allocation3 + $0x798] sm:$0xff] }
 0x19a   :  { %v1090_v5 = vld [vmem:[#allocation3 + $0x6c0] sm:$0xff]  ;;  %v1091_v46 = vld [vmem:[#allocation3 + $0x6c8] sm:$0xff]  ;;  %1104 = vmatpush.msra.mxu0 %v1058_v37  ;;  %1144 = vmatpush.msra.mxu2 %v1059_v40  ;;  %12966 = vst [vmem:[#allocation85_spill] sm:$0xff] %v7272_v13  ;;  %v7276_v20 = vld [vmem:[#allocation3 + $0x350] sm:$0xff] }
 0x19b   :  { %v1056_v28 = vld [vmem:[#allocation3 + $0x280] sm:$0xff]  ;;  %1124 = vmatpush.msra.mxu1 %v1090_v5  ;;  %v7133_v3 = vld [vmem:[#allocation3 + $0x288] sm:$0xff]  ;;  %1164 = vmatpush.msra.mxu3 %v1091_v46  ;;  %12967 = vst [vmem:[#allocation86_spill] sm:$0xff] %v7276_v20  ;;  %v7278_v8 = vld [vmem:[#allocation3 + $0x750] sm:$0xff] }
 0x19c   :  { %v1088_v2 = vld [vmem:[#allocation3 + $0x680] sm:$0xff]  ;;  %v1089_v29 = vld [vmem:[#allocation3 + $0x688] sm:$0xff]  ;;  %1105 = vmatpush.msra.mxu0 %v1056_v28  ;;  %1145 = vmatpush.msra.mxu2 %v7133_v3  ;;  %12968 = vst [vmem:[#allocation87_spill] sm:$0xff] %v7278_v8  ;;  %v7282_v7 = vld [vmem:[#allocation3 + $0x358] sm:$0xff] }
 0x19d   :  { %v7135_v42 = vld [vmem:[#allocation3 + $0x240] sm:$0xff]  ;;  %1125 = vmatpush.msra.mxu1 %v1088_v2  ;;  %v7139_v19 = vld [vmem:[#allocation3 + $0x248] sm:$0xff]  ;;  %1165 = vmatpush.msra.mxu3 %v1089_v29  ;;  %12969 = vst [vmem:[#allocation88_spill] sm:$0xff] %v7282_v7  ;;  %v7284_v22 = vld [vmem:[#allocation3 + $0x758] sm:$0xff] }
 0x19e   :  { %v7137_v32 = vld [vmem:[#allocation3 + $0x640] sm:$0xff]  ;;  %v7141_v45 = vld [vmem:[#allocation3 + $0x648] sm:$0xff]  ;;  %1106 = vmatpush.msra.mxu0 %v7135_v42  ;;  %1146 = vmatpush.msra.mxu2 %v7139_v19  ;;  %12970 = vst [vmem:[#allocation89_spill] sm:$0xff] %v7284_v22  ;;  %v7288_v27 = vld [vmem:[#allocation3 + $0x310] sm:$0xff] }
 0x19f   :  { %v7144_v18 = vld [vmem:[#allocation3 + $0x200] sm:$0xff]  ;;  %1126 = vmatpush.msra.mxu1 %v7137_v32  ;;  %v7150_v12 = vld [vmem:[#allocation3 + $0x208] sm:$0xff]  ;;  %1166 = vmatpush.msra.mxu3 %v7141_v45  ;;  %12971 = vst [vmem:[#allocation90_spill] sm:$0xff] %v7288_v27  ;;  %v7290_v21 = vld [vmem:[#allocation3 + $0x710] sm:$0xff] }
 0x1a0   :  { %v7146_v6 = vld [vmem:[#allocation3 + $0x600] sm:$0xff]  ;;  %v7152_v0 = vld [vmem:[#allocation3 + $0x608] sm:$0xff]  ;;  %1107 = vmatpush.msra.mxu0 %v7144_v18  ;;  %1147 = vmatpush.msra.mxu2 %v7150_v12  ;;  %12972 = vst [vmem:[#allocation91_spill] sm:$0xff] %v7290_v21  ;;  %v7294_v25 = vld [vmem:[#allocation3 + $0x318] sm:$0xff] }
 0x1a1   :  { %v7156_v36 = vld [vmem:[#allocation3 + $0x1c0] sm:$0xff]  ;;  %1127 = vmatpush.msra.mxu1 %v7146_v6  ;;  %v7162_v5 = vld [vmem:[#allocation3 + $0x1c8] sm:$0xff]  ;;  %1167 = vmatpush.msra.mxu3 %v7152_v0  ;;  %12973 = vst [vmem:[#allocation92_spill] sm:$0xff] %v7294_v25  ;;  %v7296_v62 = vld [vmem:[#allocation3 + $0x718] sm:$0xff] }
 0x1a2   :  { %v7158_v37 = vld [vmem:[#allocation3 + $0x5c0] sm:$0xff]  ;;  %v7164_v40 = vld [vmem:[#allocation3 + $0x5c8] sm:$0xff]  ;;  %1108 = vmatpush.msra.mxu0 %v7156_v36  ;;  %1148 = vmatpush.msra.mxu2 %v7162_v5  ;;  %12974 = vst [vmem:[#allocation93_spill] sm:$0xff] %v7296_v62  ;;  %v7300_v59 = vld [vmem:[#allocation3 + $0x2d0] sm:$0xff] }
 0x1a3   :  { %v7168_v46 = vld [vmem:[#allocation3 + $0x180] sm:$0xff]  ;;  %1128 = vmatpush.msra.mxu1 %v7158_v37  ;;  %v7174_v2 = vld [vmem:[#allocation3 + $0x188] sm:$0xff]  ;;  %1168 = vmatpush.msra.mxu3 %v7164_v40  ;;  %12975 = vst [vmem:[#allocation94_spill] sm:$0xff] %v7300_v59  ;;  %v7302_v51 = vld [vmem:[#allocation3 + $0x6d0] sm:$0xff] }
 0x1a4   :  { %v7170_v28 = vld [vmem:[#allocation3 + $0x580] sm:$0xff]  ;;  %v7176_v29 = vld [vmem:[#allocation3 + $0x588] sm:$0xff]  ;;  %1109 = vmatpush.msra.mxu0 %v7168_v46  ;;  %1149 = vmatpush.msra.mxu2 %v7174_v2  ;;  %12976 = vst [vmem:[#allocation95_spill] sm:$0xff] %v7302_v51  ;;  %v7306_v54 = vld [vmem:[#allocation3 + $0x2d8] sm:$0xff] }
 0x1a5   :  { %v7180_v43 = vld [vmem:[#allocation3 + $0x140] sm:$0xff]  ;;  %1129 = vmatpush.msra.mxu1 %v7170_v28  ;;  %v7186_v24 = vld [vmem:[#allocation3 + $0x148] sm:$0xff]  ;;  %1169 = vmatpush.msra.mxu3 %v7176_v29  ;;  %12977 = vst [vmem:[#allocation96_spill] sm:$0xff] %v7306_v54  ;;  %v7308_v11 = vld [vmem:[#allocation3 + $0x6d8] sm:$0xff] }
 0x1a6   :  { %v7182_v14 = vld [vmem:[#allocation3 + $0x540] sm:$0xff]  ;;  %v7188_v4 = vld [vmem:[#allocation3 + $0x548] sm:$0xff]  ;;  %1110 = vmatpush.msra.mxu0 %v7180_v43  ;;  %1150 = vmatpush.msra.mxu2 %v7186_v24  ;;  %12978 = vst [vmem:[#allocation97_spill] sm:$0xff] %v7308_v11  ;;  %v7312_v16 = vld [vmem:[#allocation3 + $0x290] sm:$0xff] }
 0x1a7   :  { %v7192_v58 = vld [vmem:[#allocation3 + $0x100] sm:$0xff]  ;;  %1130 = vmatpush.msra.mxu1 %v7182_v14  ;;  %v7198_v9 = vld [vmem:[#allocation3 + $0x108] sm:$0xff]  ;;  %1170 = vmatpush.msra.mxu3 %v7188_v4  ;;  %12979 = vst [vmem:[#allocation98_spill] sm:$0xff] %v7312_v16  ;;  %v7314_v10 = vld [vmem:[#allocation3 + $0x690] sm:$0xff] }
 0x1a8   :  { %v7194_v44 = vld [vmem:[#allocation3 + $0x500] sm:$0xff]  ;;  %v7200_v34 = vld [vmem:[#allocation3 + $0x508] sm:$0xff]  ;;  %1111 = vmatpush.msra.mxu0 %v7192_v58  ;;  %1151 = vmatpush.msra.mxu2 %v7198_v9  ;;  %12980 = vst [vmem:[#allocation99_spill] sm:$0xff] %v7314_v10  ;;  %v7318_v15 = vld [vmem:[#allocation3 + $0x298] sm:$0xff] }
 0x1a9   :  { %v7204_v17 = vld [vmem:[#allocation3 + $0xc0] sm:$0xff]  ;;  %1131 = vmatpush.msra.mxu1 %v7194_v44  ;;  %v7210_v47 = vld [vmem:[#allocation3 + $0xc8] sm:$0xff]  ;;  %1171 = vmatpush.msra.mxu3 %v7200_v34  ;;  %12981 = vst [vmem:[#allocation100_spill] sm:$0xff] %v7318_v15 }
 0x1aa   :  { %v7206_v55 = vld [vmem:[#allocation3 + $0x4c0] sm:$0xff]  ;;  %v7212_v57 = vld [vmem:[#allocation3 + $0x4c8] sm:$0xff]  ;;  %1112 = vmatpush.msra.mxu0 %v7204_v17  ;;  %1152 = vmatpush.msra.mxu2 %v7210_v47 }
 0x1ab   :  { %v7216_v61 = vld [vmem:[#allocation3 + $0x80] sm:$0xff]  ;;  %1132 = vmatpush.msra.mxu1 %v7206_v55  ;;  %v7222_v60 = vld [vmem:[#allocation3 + $0x88] sm:$0xff]  ;;  %1172 = vmatpush.msra.mxu3 %v7212_v57 }
 0x1ac   :  { %v7218_v56 = vld [vmem:[#allocation3 + $0x480] sm:$0xff]  ;;  %v7224_v31 = vld [vmem:[#allocation3 + $0x488] sm:$0xff]  ;;  %1113 = vmatpush.msra.mxu0 %v7216_v61  ;;  %1153 = vmatpush.msra.mxu2 %v7222_v60 }
 0x1ad   :  { %v7228_v23 = vld [vmem:[#allocation3 + $0x40] sm:$0xff]  ;;  %1133 = vmatpush.msra.mxu1 %v7218_v56  ;;  %v7234_v1 = vld [vmem:[#allocation3 + $0x48] sm:$0xff]  ;;  %1173 = vmatpush.msra.mxu3 %v7224_v31 }
 0x1ae   :  { %v7230_v63 = vld [vmem:[#allocation3 + $0x440] sm:$0xff]  ;;  %v7236_v49 = vld [vmem:[#allocation3 + $0x448] sm:$0xff]  ;;  %1114 = vmatpush.msra.mxu0 %v7228_v23  ;;  %1154 = vmatpush.msra.mxu2 %v7234_v1 }
 0x1af   :  { %v7240_v53 = vld [vmem:[#allocation3] sm:$0xff]  ;;  %1134 = vmatpush.msra.mxu1 %v7230_v63  ;;  %v7246_v52 = vld [vmem:[#allocation3 + $0x8] sm:$0xff]  ;;  %1174 = vmatpush.msra.mxu3 %v7236_v49 }
 0x1b0   :  { %v7242_v48 = vld [vmem:[#allocation3 + $0x400] sm:$0xff]  ;;  %v7248_v26 = vld [vmem:[#allocation3 + $0x408] sm:$0xff]  ;;  %1115 = vmatpush.msra.mxu0 %v7240_v53  ;;  %1155 = vmatpush.msra.mxu2 %v7246_v52 }
 0x1b1   :  { %1135 = vmatpush.msra.mxu1 %v7242_v48  ;;  %1175 = vmatpush.msra.mxu3 %v7248_v26 }
 0x1b2   :  { %1246 = vmatpush.msrb.mxu0 %v7252_v50  ;;  %1286 = vmatpush.msrb.mxu2 %v7258_v30 }
 0x1b3   :  { %1266 = vmatpush.msrb.mxu1 %v7254_v38  ;;  %1306 = vmatpush.msrb.mxu3 %v7260_v35 }
 0x1b4   :  { %1247 = vmatpush.msrb.mxu0 %v7264_v41  ;;  %1287 = vmatpush.msrb.mxu2 %v7270_v39 }
 0x1b5   :  { %1267 = vmatpush.msrb.mxu1 %v7266_v33  ;;  %1307 = vmatpush.msrb.mxu3 %v7272_v13  ;;  %v1357_v13 = vld [vmem:[#allocation3 + $0x3a8] sm:$0xff]  ;;  %v1386_v33 = vld [vmem:[#allocation3 + $0x760] sm:$0xff] }
 0x1b6   :  { %1248 = vmatpush.msrb.mxu0 %v7276_v20  ;;  %1288 = vmatpush.msrb.mxu2 %v7282_v7  ;;  %v1352_v7 = vld [vmem:[#allocation3 + $0x320] sm:$0xff]  ;;  %v1385_v20 = vld [vmem:[#allocation3 + $0x728] sm:$0xff] }
 0x1b7   :  { %1268 = vmatpush.msrb.mxu1 %v7278_v8  ;;  %1308 = vmatpush.msrb.mxu3 %v7284_v22  ;;  %v7320_v22 = vld [vmem:[#allocation3 + $0x698] sm:$0xff]  ;;  %v7326_v8 = vld [vmem:[#allocation3 + $0x650] sm:$0xff] }
 0x1b8   :  { %1249 = vmatpush.msrb.mxu0 %v7288_v27  ;;  %1289 = vmatpush.msrb.mxu2 %v7294_v25  ;;  %12982 = vst [vmem:[#allocation101_spill] sm:$0xff] %v7320_v22  ;;  %v7430_v25 = vld [vmem:[#allocation3 + $0x58] sm:$0xff]  ;;  %v1391_v27 = vld [vmem:[#allocation3 + $0x7e8] sm:$0xff] }
 0x1b9   :  { %1269 = vmatpush.msrb.mxu1 %v7290_v21  ;;  %1309 = vmatpush.msrb.mxu3 %v7296_v62  ;;  %v7324_v21 = vld [vmem:[#allocation3 + $0x250] sm:$0xff]  ;;  %12984 = vst [vmem:[#allocation103_spill] sm:$0xff] %v7326_v8  ;;  %v7330_v62 = vld [vmem:[#allocation3 + $0x258] sm:$0xff] }
 0x1ba   :  { %1250 = vmatpush.msrb.mxu0 %v7300_v59  ;;  %1290 = vmatpush.msrb.mxu2 %v7306_v54  ;;  %12983 = vst [vmem:[#allocation102_spill] sm:$0xff] %v7324_v21  ;;  %v7332_v59 = vld [vmem:[#allocation3 + $0x658] sm:$0xff]  ;;  %v7338_v54 = vld [vmem:[#allocation3 + $0x610] sm:$0xff] }
 0x1bb   :  { %1270 = vmatpush.msrb.mxu1 %v7302_v51  ;;  %1310 = vmatpush.msrb.mxu3 %v7308_v11  ;;  %12985 = vst [vmem:[#allocation104_spill] sm:$0xff] %v7330_v62  ;;  %v7336_v51 = vld [vmem:[#allocation3 + $0x210] sm:$0xff]  ;;  %v7342_v11 = vld [vmem:[#allocation3 + $0x218] sm:$0xff] }
 0x1bc   :  { %1251 = vmatpush.msrb.mxu0 %v7312_v16  ;;  %12986 = vst [vmem:[#allocation105_spill] sm:$0xff] %v7332_v59  ;;  %1291 = vmatpush.msrb.mxu2 %v7318_v15  ;;  %v7344_v16 = vld [vmem:[#allocation3 + $0x618] sm:$0xff]  ;;  %v7350_v15 = vld [vmem:[#allocation3 + $0x5d0] sm:$0xff] }
 0x1bd   :  { %1271 = vmatpush.msrb.mxu1 %v7314_v10  ;;  %1311 = vmatpush.msrb.mxu3 %v7320_v22  ;;  %12987 = vst [vmem:[#allocation106_spill] sm:$0xff] %v7336_v51  ;;  %v7348_v10 = vld [vmem:[#allocation3 + $0x1d0] sm:$0xff]  ;;  %v7354_v22 = vld [vmem:[#allocation3 + $0x1d8] sm:$0xff] }
 0x1be   :  { %12988 = vst [vmem:[#allocation107_spill] sm:$0xff] %v7338_v54  ;;  %1252 = vmatpush.msrb.mxu0 %v7324_v21  ;;  %1292 = vmatpush.msrb.mxu2 %v7330_v62  ;;  %v7356_v21 = vld [vmem:[#allocation3 + $0x5d8] sm:$0xff]  ;;  %v12230_v62 = vmov 0.0  }
 0x1bf   :  { %1272 = vmatpush.msrb.mxu1 %v7326_v8  ;;  %12989 = vst [vmem:[#allocation108_spill] sm:$0xff] %v7342_v11  ;;  %1312 = vmatpush.msrb.mxu3 %v7332_v59  ;;  %v7362_v59 = vld [vmem:[#allocation3 + $0x190] sm:$0xff] }
 0x1c0   :  { %12990 = vst [vmem:[#allocation109_spill] sm:$0xff] %v7344_v16  ;;  %1253 = vmatpush.msrb.mxu0 %v7336_v51  ;;  %1293 = vmatpush.msrb.mxu2 %v7342_v11  ;;  %v7364_v8 = vld [vmem:[#allocation3 + $0x590] sm:$0xff]  ;;  %v7370_v51 = vld [vmem:[#allocation3 + $0x598] sm:$0xff] }
 0x1c1   :  { %12991 = vst [vmem:[#allocation110_spill] sm:$0xff] %v7348_v10  ;;  %1273 = vmatpush.msrb.mxu1 %v7338_v54  ;;  %1313 = vmatpush.msrb.mxu3 %v7344_v16  ;;  %v7368_v54 = vld [vmem:[#allocation3 + $0x198] sm:$0xff]  ;;  %v7374_v16 = vld [vmem:[#allocation3 + $0x150] sm:$0xff] }
 0x1c2   :  { %12992 = vst [vmem:[#allocation111_spill] sm:$0xff] %v7350_v15  ;;  %1254 = vmatpush.msrb.mxu0 %v7348_v10  ;;  %1294 = vmatpush.msrb.mxu2 %v7354_v22  ;;  %v7386_v10 = vld [vmem:[#allocation3 + $0x110] sm:$0xff] }
 0x1c3   :  { %12993 = vst [vmem:[#allocation112_spill] sm:$0xff] %v7354_v22  ;;  %1274 = vmatpush.msrb.mxu1 %v7350_v15  ;;  %1314 = vmatpush.msrb.mxu3 %v7356_v21  ;;  %v7376_v15 = vld [vmem:[#allocation3 + $0x550] sm:$0xff]  ;;  %v7380_v22 = vld [vmem:[#allocation3 + $0x158] sm:$0xff] }
 0x1c4   :  { %12994 = vst [vmem:[#allocation113_spill] sm:$0xff] %v7356_v21  ;;  %1156 = vmatmul.f32.vlgmr.msra.gmra.mxu2 %v12230_v62  ;;  %1176 = vmatmul.f32.vlgmr.msra.gmra.mxu3 %v12230_v62  ;;  %v7382_v21 = vld [vmem:[#allocation3 + $0x558] sm:$0xff]  ;;  %v7388_v11 = vld [vmem:[#allocation3 + $0x510] sm:$0xff] }
 0x1c5   :  { %12995 = vst [vmem:[#allocation114_spill] sm:$0xff] %v7362_v59  ;;  %1255 = vmatpush.msrb.mxu0 %v7362_v59  ;;  %1275 = vmatpush.msrb.mxu1 %v7364_v8  ;;  %v7392_v62 = vld [vmem:[#allocation3 + $0x118] sm:$0xff] }
 0x1c6   :  { %12996 = vst [vmem:[#allocation115_spill] sm:$0xff] %v7364_v8  ;;  %1295 = vmatpush.msrb.mxu2 %v7368_v54  ;;  %1315 = vmatpush.msrb.mxu3 %v7370_v51  ;;  %v7394_v59 = vld [vmem:[#allocation3 + $0x518] sm:$0xff]  ;;  %v7402_v8 = vld [vmem:[#allocation3 + $0x4d0] sm:$0xff] }
 0x1c7   :  { %12997 = vst [vmem:[#allocation116_spill] sm:$0xff] %v7368_v54  ;;  %1256 = vmatpush.msrb.mxu0 %v7374_v16  ;;  %1276 = vmatpush.msrb.mxu1 %v7376_v15  ;;  %v13011_v54 = vmov 0.0  }
 0x1c8   :  { %12998 = vst [vmem:[#allocation117_spill] sm:$0xff] %v7370_v51  ;;  %1296 = vmatpush.msrb.mxu2 %v7380_v22  ;;  %1316 = vmatpush.msrb.mxu3 %v7382_v21  ;;  %v7400_v51 = vld [vmem:[#allocation3 + $0xd0] sm:$0xff] }
 0x1c9   :  { %12999 = vst [vmem:[#allocation118_spill] sm:$0xff] %v7374_v16  ;;  %1257 = vmatpush.msrb.mxu0 %v7386_v10  ;;  %1277 = vmatpush.msrb.mxu1 %v7388_v11  ;;  %v7408_v16 = vld [vmem:[#allocation3 + $0x4d8] sm:$0xff] }
 0x1ca   :  { %13000 = vst [vmem:[#allocation119_spill] sm:$0xff] %v7376_v15  ;;  %1297 = vmatpush.msrb.mxu2 %v7392_v62  ;;  %1317 = vmatpush.msrb.mxu3 %v7394_v59  ;;  %v7406_v15 = vld [vmem:[#allocation3 + $0xd8] sm:$0xff] }
 0x1cb   :  { %13001 = vst [vmem:[#allocation120_spill] sm:$0xff] %v7380_v22  ;;  %1116 = vmatmul.f32.vlgmr.msra.gmra.mxu0 %v13011_v54  ;;  %1136 = vmatmul.f32.vlgmr.msra.gmra.mxu1 %v13011_v54  ;;  %v7426_v22 = vld [vmem:[#allocation3 + $0x450] sm:$0xff] }
 0x1cc   :  { %13002 = vst [vmem:[#allocation121_spill] sm:$0xff] %v7382_v21  ;;  %v7412_v21 = vld [vmem:[#allocation3 + $0x90] sm:$0xff]  ;;  %1258 = vmatpush.msrb.mxu0 %v7400_v51  ;;  %1278 = vmatpush.msrb.mxu1 %v7402_v8 }
 0x1cd   :  { %13003 = vst [vmem:[#allocation122_spill] sm:$0xff] %v7386_v10  ;;  %v7414_v10 = vld [vmem:[#allocation3 + $0x490] sm:$0xff]  ;;  %1298 = vmatpush.msrb.mxu2 %v7406_v15  ;;  %1318 = vmatpush.msrb.mxu3 %v7408_v16 }
 0x1ce   :  { %13004 = vst [vmem:[#allocation123_spill] sm:$0xff] %v7388_v11  ;;  %v7418_v11 = vld [vmem:[#allocation3 + $0x98] sm:$0xff]  ;;  %1259 = vmatpush.msrb.mxu0 %v7412_v21  ;;  %1279 = vmatpush.msrb.mxu1 %v7414_v10 }
 0x1cf   :  { %13005 = vst [vmem:[#allocation124_spill] sm:$0xff] %v7392_v62  ;;  %v7420_v62 = vld [vmem:[#allocation3 + $0x498] sm:$0xff]  ;;  %1299 = vmatpush.msrb.mxu2 %v7418_v11 }
 0x1d0   :  { %13006 = vst [vmem:[#allocation125_spill] sm:$0xff] %v7394_v59  ;;  %v7424_v59 = vld [vmem:[#allocation3 + $0x50] sm:$0xff]  ;;  %1319 = vmatpush.msrb.mxu3 %v7420_v62  ;;  %1280 = vmatpush.msrb.mxu1 %v7426_v22 }
 0x1d1   :  { %13007 = vst [vmem:[#allocation126_spill] sm:$0xff] %v7400_v51  ;;  %v7432_v51 = vld [vmem:[#allocation3 + $0x458] sm:$0xff]  ;;  %1260 = vmatpush.msrb.mxu0 %v7424_v59  ;;  %1300 = vmatpush.msrb.mxu2 %v7430_v25 }
 0x1d2   :  { %13008 = vst [vmem:[#allocation127_spill] sm:$0xff] %v7402_v8  ;;  %v7436_v8 = vld [vmem:[#allocation3 + $0x10] sm:$0xff]  ;;  %1320 = vmatpush.msrb.mxu3 %v7432_v51 }
 0x1d3   :  { %13009 = vst [vmem:[#allocation128_spill] sm:$0xff] %v7406_v15  ;;  %v7438_v15 = vld [vmem:[#allocation3 + $0x410] sm:$0xff]  ;;  %1261 = vmatpush.msrb.mxu0 %v7436_v8 }
 0x1d4   :  { %13010 = vst [vmem:[#allocation129_spill] sm:$0xff] %v7408_v16  ;;  %v7442_v16 = vld [vmem:[#allocation3 + $0x18] sm:$0xff]  ;;  %1281 = vmatpush.msrb.mxu1 %v7438_v15  ;;  %1262 = vmatmul.f32.vlgmr.msrb.gmra.mxu0 %v13011_v54 }
 0x1d5   :  { %13012 = vst [vmem:[#allocation130_spill] sm:$0xff] %v7412_v21  ;;  %v7444_v21 = vld [vmem:[#allocation3 + $0x418] sm:$0xff]  ;;  %1301 = vmatpush.msrb.mxu2 %v7442_v16  ;;  %1282 = vmatmul.f32.vlgmr.msrb.gmra.mxu1 %v13011_v54 }
 0x1d6   :  { %13013 = vst [vmem:[#allocation131_spill] sm:$0xff] %v7414_v10  ;;  %v1358_v10 = vld [vmem:[#allocation3 + $0x3e0] sm:$0xff]  ;;  %1321 = vmatpush.msrb.mxu3 %v7444_v21  ;;  %1302 = vmatmul.f32.vlgmr.msrb.gmra.mxu2 %v13011_v54 }
 0x1d7   :  { %13014 = vst [vmem:[#allocation132_spill] sm:$0xff] %v7418_v11  ;;  %v1390_v11 = vld [vmem:[#allocation3 + $0x7e0] sm:$0xff]  ;;  %1392 = vmatpush.msra.mxu0 %v1358_v10  ;;  %1322 = vmatmul.f32.vlgmr.msrb.gmra.mxu3 %v13011_v54 }
 0x1d8   :  { %13015 = vst [vmem:[#allocation133_spill] sm:$0xff] %v7420_v62  ;;  %v1359_v62 = vld [vmem:[#allocation3 + $0x3e8] sm:$0xff]  ;;  %1412 = vmatpush.msra.mxu1 %v1390_v11  ;;  %1452 = vmatpush.msra.mxu3 %v1391_v27  ;;  %v1350_v10 = vld [vmem:[#allocation3 + $0x2e0] sm:$0xff] }
 0x1d9   :  { %13016 = vst [vmem:[#allocation134_spill] sm:$0xff] %v7424_v59  ;;  %v1388_v59 = vld [vmem:[#allocation3 + $0x7a0] sm:$0xff]  ;;  %1432 = vmatpush.msra.mxu2 %v1359_v62  ;;  %v1351_v27 = vld [vmem:[#allocation3 + $0x2e8] sm:$0xff] }
 0x1da   :  { %13017 = vst [vmem:[#allocation135_spill] sm:$0xff] %v7426_v22  ;;  %v1356_v22 = vld [vmem:[#allocation3 + $0x3a0] sm:$0xff]  ;;  %1413 = vmatpush.msra.mxu1 %v1388_v59  ;;  %v1383_v62 = vld [vmem:[#allocation3 + $0x6e8] sm:$0xff] }
 0x1db   :  { %13018 = vst [vmem:[#allocation136_spill] sm:$0xff] %v7430_v25  ;;  %v1389_v25 = vld [vmem:[#allocation3 + $0x7a8] sm:$0xff]  ;;  %1393 = vmatpush.msra.mxu0 %v1356_v22  ;;  %1433 = vmatpush.msra.mxu2 %v1357_v13  ;;  %v1382_v11 = vld [vmem:[#allocation3 + $0x6e0] sm:$0xff] }
 0x1dc   :  { %13019 = vst [vmem:[#allocation137_spill] sm:$0xff] %v7432_v51  ;;  %v1354_v51 = vld [vmem:[#allocation3 + $0x360] sm:$0xff]  ;;  %1453 = vmatpush.msra.mxu3 %v1389_v25  ;;  %1414 = vmatpush.msra.mxu1 %v1386_v33  ;;  %v1349_v25 = vld [vmem:[#allocation3 + $0x2a8] sm:$0xff] }
 0x1dd   :  { %13020 = vst [vmem:[#allocation138_spill] sm:$0xff] %v7436_v8  ;;  %v1355_v8 = vld [vmem:[#allocation3 + $0x368] sm:$0xff]  ;;  %1394 = vmatpush.msra.mxu0 %v1354_v51  ;;  %v1348_v22 = vld [vmem:[#allocation3 + $0x2a0] sm:$0xff] }
 0x1de   :  { %13021 = vst [vmem:[#allocation139_spill] sm:$0xff] %v7438_v15  ;;  %v1387_v15 = vld [vmem:[#allocation3 + $0x768] sm:$0xff]  ;;  %1434 = vmatpush.msra.mxu2 %v1355_v8  ;;  %v1380_v59 = vld [vmem:[#allocation3 + $0x6a0] sm:$0xff] }
 0x1df   :  { %13022 = vst [vmem:[#allocation140_spill] sm:$0xff] %v7442_v16  ;;  %v1384_v16 = vld [vmem:[#allocation3 + $0x720] sm:$0xff]  ;;  %1454 = vmatpush.msra.mxu3 %v1387_v15  ;;  %1395 = vmatpush.msra.mxu0 %v1352_v7  ;;  %v1381_v13 = vld [vmem:[#allocation3 + $0x6a8] sm:$0xff] }
 0x1e0   :  { %13023 = vst [vmem:[#allocation141_spill] sm:$0xff] %v7444_v21  ;;  %v1353_v21 = vld [vmem:[#allocation3 + $0x328] sm:$0xff]  ;;  %1415 = vmatpush.msra.mxu1 %v1384_v16  ;;  %v1346_v33 = vld [vmem:[#allocation3 + $0x260] sm:$0xff] }
 0x1e1   :  { %1435 = vmatpush.msra.mxu2 %v1353_v21  ;;  %1455 = vmatpush.msra.mxu3 %v1385_v20  ;;  %v1378_v51 = vld [vmem:[#allocation3 + $0x660] sm:$0xff]  ;;  %v1347_v15 = vld [vmem:[#allocation3 + $0x268] sm:$0xff] }
 0x1e2   :  { %1396 = vmatpush.msra.mxu0 %v1350_v10  ;;  %1416 = vmatpush.msra.mxu1 %v1382_v11  ;;  %v1379_v8 = vld [vmem:[#allocation3 + $0x668] sm:$0xff]  ;;  %v1344_v16 = vld [vmem:[#allocation3 + $0x220] sm:$0xff] }
 0x1e3   :  { %1436 = vmatpush.msra.mxu2 %v1351_v27  ;;  %1456 = vmatpush.msra.mxu3 %v1383_v62  ;;  %v1376_v7 = vld [vmem:[#allocation3 + $0x620] sm:$0xff]  ;;  %v1345_v21 = vld [vmem:[#allocation3 + $0x228] sm:$0xff] }
 0x1e4   :  { %1397 = vmatpush.msra.mxu0 %v1348_v22  ;;  %1417 = vmatpush.msra.mxu1 %v1380_v59  ;;  %v1377_v20 = vld [vmem:[#allocation3 + $0x628] sm:$0xff]  ;;  %v1342_v10 = vld [vmem:[#allocation3 + $0x1e0] sm:$0xff] }
 0x1e5   :  { %1437 = vmatpush.msra.mxu2 %v1349_v25  ;;  %1457 = vmatpush.msra.mxu3 %v1381_v13  ;;  %v1374_v11 = vld [vmem:[#allocation3 + $0x5e0] sm:$0xff]  ;;  %v1343_v27 = vld [vmem:[#allocation3 + $0x1e8] sm:$0xff] }
 0x1e6   :  { %1398 = vmatpush.msra.mxu0 %v1346_v33  ;;  %1418 = vmatpush.msra.mxu1 %v1378_v51  ;;  %v1375_v62 = vld [vmem:[#allocation3 + $0x5e8] sm:$0xff]  ;;  %v1340_v22 = vld [vmem:[#allocation3 + $0x1a0] sm:$0xff] }
 0x1e7   :  { %1438 = vmatpush.msra.mxu2 %v1347_v15  ;;  %1458 = vmatpush.msra.mxu3 %v1379_v8  ;;  %v1372_v59 = vld [vmem:[#allocation3 + $0x5a0] sm:$0xff]  ;;  %v1341_v25 = vld [vmem:[#allocation3 + $0x1a8] sm:$0xff] }
 0x1e8   :  { %1399 = vmatpush.msra.mxu0 %v1344_v16  ;;  %1419 = vmatpush.msra.mxu1 %v1376_v7  ;;  %v1373_v13 = vld [vmem:[#allocation3 + $0x5a8] sm:$0xff]  ;;  %v1338_v33 = vld [vmem:[#allocation3 + $0x160] sm:$0xff] }
 0x1e9   :  { %1439 = vmatpush.msra.mxu2 %v1345_v21  ;;  %1459 = vmatpush.msra.mxu3 %v1377_v20  ;;  %v1370_v51 = vld [vmem:[#allocation3 + $0x560] sm:$0xff]  ;;  %v1339_v15 = vld [vmem:[#allocation3 + $0x168] sm:$0xff] }
 0x1ea   :  { %1400 = vmatpush.msra.mxu0 %v1342_v10  ;;  %1420 = vmatpush.msra.mxu1 %v1374_v11  ;;  %v1371_v8 = vld [vmem:[#allocation3 + $0x568] sm:$0xff]  ;;  %v1336_v16 = vld [vmem:[#allocation3 + $0x120] sm:$0xff] }
 0x1eb   :  { %1440 = vmatpush.msra.mxu2 %v1343_v27  ;;  %1460 = vmatpush.msra.mxu3 %v1375_v62  ;;  %v1368_v7 = vld [vmem:[#allocation3 + $0x520] sm:$0xff]  ;;  %v1337_v21 = vld [vmem:[#allocation3 + $0x128] sm:$0xff] }
 0x1ec   :  { %1401 = vmatpush.msra.mxu0 %v1340_v22  ;;  %1421 = vmatpush.msra.mxu1 %v1372_v59  ;;  %v1369_v20 = vld [vmem:[#allocation3 + $0x528] sm:$0xff]  ;;  %v1334_v10 = vld [vmem:[#allocation3 + $0xe0] sm:$0xff] }
 0x1ed   :  { %1441 = vmatpush.msra.mxu2 %v1341_v25  ;;  %1461 = vmatpush.msra.mxu3 %v1373_v13  ;;  %v1366_v11 = vld [vmem:[#allocation3 + $0x4e0] sm:$0xff]  ;;  %v7454_v27 = vld [vmem:[#allocation3 + $0xe8] sm:$0xff] }
 0x1ee   :  { %1402 = vmatpush.msra.mxu0 %v1338_v33  ;;  %1422 = vmatpush.msra.mxu1 %v1370_v51  ;;  %v1367_v62 = vld [vmem:[#allocation3 + $0x4e8] sm:$0xff]  ;;  %v7458_v22 = vld [vmem:[#allocation3 + $0xa0] sm:$0xff] }
 0x1ef   :  { %1442 = vmatpush.msra.mxu2 %v1339_v15  ;;  %1462 = vmatpush.msra.mxu3 %v1371_v8  ;;  %v1364_v59 = vld [vmem:[#allocation3 + $0x4a0] sm:$0xff]  ;;  %v7460_v25 = vld [vmem:[#allocation3 + $0xa8] sm:$0xff] }
 0x1f0   :  { %1403 = vmatpush.msra.mxu0 %v1336_v16  ;;  %1423 = vmatpush.msra.mxu1 %v1368_v7  ;;  %v1365_v13 = vld [vmem:[#allocation3 + $0x4a8] sm:$0xff]  ;;  %v7463_v33 = vld [vmem:[#allocation3 + $0x60] sm:$0xff] }
 0x1f1   :  { %1443 = vmatpush.msra.mxu2 %v1337_v21  ;;  %1463 = vmatpush.msra.mxu3 %v1369_v20  ;;  %v1362_v51 = vld [vmem:[#allocation3 + $0x460] sm:$0xff]  ;;  %v7466_v15 = vld [vmem:[#allocation3 + $0x68] sm:$0xff] }
 0x1f2   :  { %1404 = vmatpush.msra.mxu0 %v1334_v10  ;;  %1424 = vmatpush.msra.mxu1 %v1366_v11  ;;  %13024 = vst [vmem:[#allocation142_spill] sm:$0xff] %v7466_v15  ;;  %v1363_v8 = vld [vmem:[#allocation3 + $0x468] sm:$0xff]  ;;  %v7469_v16 = vld [vmem:[#allocation3 + $0x20] sm:$0xff]  ;;  %v7475_v10 = vld [vmem:[#allocation3 + $0x3f0] sm:$0xff] }
 0x1f3   :  { %1444 = vmatpush.msra.mxu2 %v7454_v27  ;;  %1464 = vmatpush.msra.mxu3 %v1367_v62  ;;  %13025 = vst [vmem:[#allocation143_spill] sm:$0xff] %v7469_v16  ;;  %v1360_v7 = vld [vmem:[#allocation3 + $0x420] sm:$0xff]  ;;  %v7472_v21 = vld [vmem:[#allocation3 + $0x28] sm:$0xff]  ;;  %v1536_v11 = vld [vmem:[#allocation3 + $0x7f0] sm:$0xff] }
 0x1f4   :  { %1405 = vmatpush.msra.mxu0 %v7458_v22  ;;  %1425 = vmatpush.msra.mxu1 %v1364_v59  ;;  %v1361_v20 = vld [vmem:[#allocation3 + $0x428] sm:$0xff]  ;;  %13026 = vst [vmem:[#allocation144_spill] sm:$0xff] %v7475_v10  ;;  %v7478_v62 = vld [vmem:[#allocation3 + $0x3f8] sm:$0xff] }
 0x1f5   :  { %1445 = vmatpush.msra.mxu2 %v7460_v25  ;;  %1465 = vmatpush.msra.mxu3 %v1365_v13  ;;  %13027 = vst [vmem:[#allocation145_spill] sm:$0xff] %v7478_v62  ;;  %v7480_v59 = vld [vmem:[#allocation3 + $0x7f8] sm:$0xff]  ;;  %v7483_v13 = vld [vmem:[#allocation3 + $0x3b0] sm:$0xff] }
 0x1f6   :  { %1406 = vmatpush.msra.mxu0 %v7463_v33  ;;  %1426 = vmatpush.msra.mxu1 %v1362_v51  ;;  %13028 = vst [vmem:[#allocation146_spill] sm:$0xff] %v7480_v59  ;;  %v7485_v51 = vld [vmem:[#allocation3 + $0x7b0] sm:$0xff] }
 0x1f7   :  { %1446 = vmatpush.msra.mxu2 %v7466_v15  ;;  %1466 = vmatpush.msra.mxu3 %v1363_v8  ;;  %13029 = vst [vmem:[#allocation147_spill] sm:$0xff] %v7483_v13  ;;  %v7488_v8 = vld [vmem:[#allocation3 + $0x3b8] sm:$0xff] }
 0x1f8   :  { %1407 = vmatpush.msra.mxu0 %v7469_v16  ;;  %1427 = vmatpush.msra.mxu1 %v1360_v7  ;;  %13030 = vst [vmem:[#allocation148_spill] sm:$0xff] %v7485_v51  ;;  %v7490_v15 = vld [vmem:[#allocation3 + $0x7b8] sm:$0xff]  ;;  %v7494_v7 = vld [vmem:[#allocation3 + $0x370] sm:$0xff] }
 0x1f9   :  { %1447 = vmatpush.msra.mxu2 %v7472_v21  ;;  %1467 = vmatpush.msra.mxu3 %v1361_v20  ;;  %13031 = vst [vmem:[#allocation149_spill] sm:$0xff] %v7488_v8  ;;  %v7496_v16 = vld [vmem:[#allocation3 + $0x770] sm:$0xff]  ;;  %v7500_v20 = vld [vmem:[#allocation3 + $0x378] sm:$0xff] }
 0x1fa   :  { %1538 = vmatpush.msrb.mxu0 %v7475_v10  ;;  %1558 = vmatpush.msrb.mxu1 %v1536_v11  ;;  %13032 = vst [vmem:[#allocation150_spill] sm:$0xff] %v7490_v15  ;;  %v7502_v10 = vld [vmem:[#allocation3 + $0x778] sm:$0xff]  ;;  %v7506_v11 = vld [vmem:[#allocation3 + $0x330] sm:$0xff] }
 0x1fb   :  { %1578 = vmatpush.msrb.mxu2 %v7478_v62  ;;  %1598 = vmatpush.msrb.mxu3 %v7480_v59  ;;  %13033 = vst [vmem:[#allocation151_spill] sm:$0xff] %v7494_v7  ;;  %v7508_v62 = vld [vmem:[#allocation3 + $0x730] sm:$0xff]  ;;  %v7512_v59 = vld [vmem:[#allocation3 + $0x338] sm:$0xff] }
 0x1fc   :  { %13034 = vst [vmem:[#allocation152_spill] sm:$0xff] %v7496_v16  ;;  %1539 = vmatpush.msrb.mxu0 %v7483_v13  ;;  %1559 = vmatpush.msrb.mxu1 %v7485_v51  ;;  %v7514_v13 = vld [vmem:[#allocation3 + $0x738] sm:$0xff]  ;;  %v7522_v51 = vld [vmem:[#allocation3 + $0x6f0] sm:$0xff] }
 0x1fd   :  { %13035 = vst [vmem:[#allocation153_spill] sm:$0xff] %v7500_v20  ;;  %1579 = vmatpush.msrb.mxu2 %v7488_v8  ;;  %1599 = vmatpush.msrb.mxu3 %v7490_v15  ;;  %v7520_v15 = vld [vmem:[#allocation3 + $0x2f0] sm:$0xff]  ;;  %v7550_v8 = vld [vmem:[#allocation3 + $0x278] sm:$0xff] }
 0x1fe   :  { %13036 = vst [vmem:[#allocation154_spill] sm:$0xff] %v7502_v10  ;;  %1540 = vmatpush.msrb.mxu0 %v7494_v7  ;;  %1560 = vmatpush.msrb.mxu1 %v7496_v16  ;;  %v7526_v16 = vld [vmem:[#allocation3 + $0x2f8] sm:$0xff] }
 0x1ff   :  { %13037 = vst [vmem:[#allocation155_spill] sm:$0xff] %v7506_v11  ;;  %1580 = vmatpush.msrb.mxu2 %v7500_v20  ;;  %1600 = vmatpush.msrb.mxu3 %v7502_v10  ;;  %v7528_v7 = vld [vmem:[#allocation3 + $0x6f8] sm:$0xff]  ;;  %v7532_v10 = vld [vmem:[#allocation3 + $0x2b0] sm:$0xff] }
 0x200   :  { %13038 = vst [vmem:[#allocation156_spill] sm:$0xff] %v7508_v62  ;;  %1541 = vmatpush.msrb.mxu0 %v7506_v11  ;;  %1561 = vmatpush.msrb.mxu1 %v7508_v62  ;;  %v7534_v11 = vld [vmem:[#allocation3 + $0x6b0] sm:$0xff]  ;;  %v7538_v62 = vld [vmem:[#allocation3 + $0x2b8] sm:$0xff] }
 0x201   :  { %13039 = vst [vmem:[#allocation157_spill] sm:$0xff] %v7512_v59  ;;  %1581 = vmatpush.msrb.mxu2 %v7512_v59  ;;  %1601 = vmatpush.msrb.mxu3 %v7514_v13  ;;  %v7540_v59 = vld [vmem:[#allocation3 + $0x6b8] sm:$0xff]  ;;  %v7546_v20 = vld [vmem:[#allocation3 + $0x670] sm:$0xff] }
 0x202   :  { %13040 = vst [vmem:[#allocation158_spill] sm:$0xff] %v7514_v13  ;;  %1448 = vmatmul.f32.vlgmr.msra.gmra.mxu2 %v13011_v54  ;;  %1468 = vmatmul.f32.vlgmr.msra.gmra.mxu3 %v13011_v54  ;;  %v7544_v13 = vld [vmem:[#allocation3 + $0x270] sm:$0xff] }
 0x203   :  { %13041 = vst [vmem:[#allocation159_spill] sm:$0xff] %v7520_v15  ;;  %1542 = vmatpush.msrb.mxu0 %v7520_v15  ;;  %1562 = vmatpush.msrb.mxu1 %v7522_v51  ;;  %v7552_v15 = vld [vmem:[#allocation3 + $0x678] sm:$0xff] }
 0x204   :  { %13042 = vst [vmem:[#allocation160_spill] sm:$0xff] %v7522_v51  ;;  %1582 = vmatpush.msrb.mxu2 %v7526_v16  ;;  %1602 = vmatpush.msrb.mxu3 %v7528_v7  ;;  %v7560_v51 = vld [vmem:[#allocation3 + $0x630] sm:$0xff] }
 0x205   :  { %13043 = vst [vmem:[#allocation161_spill] sm:$0xff] %v7526_v16  ;;  %1543 = vmatpush.msrb.mxu0 %v7532_v10  ;;  %1563 = vmatpush.msrb.mxu1 %v7534_v11  ;;  %v7588_v16 = vld [vmem:[#allocation3 + $0x1b8] sm:$0xff] }
 0x206   :  { %13044 = vst [vmem:[#allocation162_spill] sm:$0xff] %v7528_v7  ;;  %1583 = vmatpush.msrb.mxu2 %v7538_v62  ;;  %1603 = vmatpush.msrb.mxu3 %v7540_v59  ;;  %v7558_v7 = vld [vmem:[#allocation3 + $0x230] sm:$0xff] }
 0x207   :  { %13045 = vst [vmem:[#allocation163_spill] sm:$0xff] %v7532_v10  ;;  %1544 = vmatpush.msrb.mxu0 %v7544_v13  ;;  %1564 = vmatpush.msrb.mxu1 %v7546_v20  ;;  %v7566_v10 = vld [vmem:[#allocation3 + $0x638] sm:$0xff] }
 0x208   :  { %13046 = vst [vmem:[#allocation164_spill] sm:$0xff] %v7534_v11  ;;  %1584 = vmatpush.msrb.mxu2 %v7550_v8  ;;  %1604 = vmatpush.msrb.mxu3 %v7552_v15  ;;  %v7564_v11 = vld [vmem:[#allocation3 + $0x238] sm:$0xff] }
 0x209   :  { %13047 = vst [vmem:[#allocation165_spill] sm:$0xff] %v7538_v62  ;;  %1408 = vmatmul.f32.vlgmr.msra.gmra.mxu0 %v13011_v54  ;;  %1428 = vmatmul.f32.vlgmr.msra.gmra.mxu1 %v13011_v54  ;;  %v7584_v62 = vld [vmem:[#allocation3 + $0x5b0] sm:$0xff] }
 0x20a   :  { %13048 = vst [vmem:[#allocation166_spill] sm:$0xff] %v7540_v59  ;;  %v7570_v59 = vld [vmem:[#allocation3 + $0x1f0] sm:$0xff]  ;;  %1545 = vmatpush.msrb.mxu0 %v7558_v7  ;;  %1565 = vmatpush.msrb.mxu1 %v7560_v51 }
 0x20b   :  { %13049 = vst [vmem:[#allocation167_spill] sm:$0xff] %v7544_v13  ;;  %v7572_v13 = vld [vmem:[#allocation3 + $0x5f0] sm:$0xff]  ;;  %1585 = vmatpush.msrb.mxu2 %v7564_v11  ;;  %1605 = vmatpush.msrb.mxu3 %v7566_v10 }
 0x20c   :  { %13050 = vst [vmem:[#allocation168_spill] sm:$0xff] %v7546_v20  ;;  %v7576_v20 = vld [vmem:[#allocation3 + $0x1f8] sm:$0xff]  ;;  %1546 = vmatpush.msrb.mxu0 %v7570_v59  ;;  %1566 = vmatpush.msrb.mxu1 %v7572_v13 }
 0x20d   :  { %13051 = vst [vmem:[#allocation169_spill] sm:$0xff] %v7550_v8  ;;  %v7578_v8 = vld [vmem:[#allocation3 + $0x5f8] sm:$0xff]  ;;  %1586 = vmatpush.msrb.mxu2 %v7576_v20 }
 0x20e   :  { %13052 = vst [vmem:[#allocation170_spill] sm:$0xff] %v7552_v15  ;;  %v7582_v15 = vld [vmem:[#allocation3 + $0x1b0] sm:$0xff]  ;;  %1606 = vmatpush.msrb.mxu3 %v7578_v8  ;;  %1567 = vmatpush.msrb.mxu1 %v7584_v62 }
 0x20f   :  { %13053 = vst [vmem:[#allocation171_spill] sm:$0xff] %v7558_v7  ;;  %v7590_v7 = vld [vmem:[#allocation3 + $0x5b8] sm:$0xff]  ;;  %1547 = vmatpush.msrb.mxu0 %v7582_v15  ;;  %1587 = vmatpush.msrb.mxu2 %v7588_v16 }
 0x210   :  { %13054 = vst [vmem:[#allocation172_spill] sm:$0xff] %v7560_v51  ;;  %v7594_v51 = vld [vmem:[#allocation3 + $0x170] sm:$0xff]  ;;  %1607 = vmatpush.msrb.mxu3 %v7590_v7 }
 0x211   :  { %13055 = vst [vmem:[#allocation173_spill] sm:$0xff] %v7564_v11  ;;  %v7596_v11 = vld [vmem:[#allocation3 + $0x570] sm:$0xff]  ;;  %1548 = vmatpush.msrb.mxu0 %v7594_v51 }
 0x212   :  { %13056 = vst [vmem:[#allocation174_spill] sm:$0xff] %v7566_v10  ;;  %v7600_v10 = vld [vmem:[#allocation3 + $0x178] sm:$0xff]  ;;  %1568 = vmatpush.msrb.mxu1 %v7596_v11 }
 0x213   :  { %13057 = vst [vmem:[#allocation175_spill] sm:$0xff] %v7570_v59  ;;  %v7602_v59 = vld [vmem:[#allocation3 + $0x578] sm:$0xff]  ;;  %1588 = vmatpush.msrb.mxu2 %v7600_v10 }
 0x214   :  { %13058 = vst [vmem:[#allocation176_spill] sm:$0xff] %v7572_v13  ;;  %v7606_v13 = vld [vmem:[#allocation3 + $0x130] sm:$0xff]  ;;  %1608 = vmatpush.msrb.mxu3 %v7602_v59 }
 0x215   :  { %13059 = vst [vmem:[#allocation177_spill] sm:$0xff] %v7576_v20  ;;  %v7608_v20 = vld [vmem:[#allocation3 + $0x530] sm:$0xff]  ;;  %1549 = vmatpush.msrb.mxu0 %v7606_v13 }
 0x216   :  { %13060 = vst [vmem:[#allocation178_spill] sm:$0xff] %v7578_v8  ;;  %v7612_v8 = vld [vmem:[#allocation3 + $0x138] sm:$0xff]  ;;  %1569 = vmatpush.msrb.mxu1 %v7608_v20 }
 0x217   :  { %13061 = vst [vmem:[#allocation179_spill] sm:$0xff] %v7582_v15  ;;  %v7614_v15 = vld [vmem:[#allocation3 + $0x538] sm:$0xff]  ;;  %1589 = vmatpush.msrb.mxu2 %v7612_v8 }
 0x218   :  { %13062 = vst [vmem:[#allocation180_spill] sm:$0xff] %v7584_v62  ;;  %v7618_v62 = vld [vmem:[#allocation3 + $0xf0] sm:$0xff]  ;;  %1609 = vmatpush.msrb.mxu3 %v7614_v15 }
 0x219   :  { %13063 = vst [vmem:[#allocation181_spill] sm:$0xff] %v7588_v16  ;;  %v7620_v16 = vld [vmem:[#allocation3 + $0x4f0] sm:$0xff]  ;;  %1550 = vmatpush.msrb.mxu0 %v7618_v62 }
 0x21a   :  { %13064 = vst [vmem:[#allocation182_spill] sm:$0xff] %v7590_v7  ;;  %v7624_v7 = vld [vmem:[#allocation3 + $0xf8] sm:$0xff]  ;;  %1570 = vmatpush.msrb.mxu1 %v7620_v16 }
 0x21b   :  { %13065 = vst [vmem:[#allocation183_spill] sm:$0xff] %v7594_v51  ;;  %v7626_v51 = vld [vmem:[#allocation3 + $0x4f8] sm:$0xff]  ;;  %1590 = vmatpush.msrb.mxu2 %v7624_v7 }
 0x21c   :  { %13066 = vst [vmem:[#allocation184_spill] sm:$0xff] %v7596_v11  ;;  %v7630_v11 = vld [vmem:[#allocation3 + $0xb0] sm:$0xff]  ;;  %1610 = vmatpush.msrb.mxu3 %v7626_v51 }
 0x21d   :  { %13067 = vst [vmem:[#allocation185_spill] sm:$0xff] %v7600_v10  ;;  %v7632_v10 = vld [vmem:[#allocation3 + $0x4b0] sm:$0xff]  ;;  %1551 = vmatpush.msrb.mxu0 %v7630_v11 }
 0x21e   :  { %13068 = vst [vmem:[#allocation186_spill] sm:$0xff] %v7602_v59  ;;  %v7636_v59 = vld [vmem:[#allocation3 + $0xb8] sm:$0xff]  ;;  %1571 = vmatpush.msrb.mxu1 %v7632_v10 }
 0x21f   :  { %13069 = vst [vmem:[#allocation187_spill] sm:$0xff] %v7606_v13  ;;  %v7638_v13 = vld [vmem:[#allocation3 + $0x4b8] sm:$0xff]  ;;  %1591 = vmatpush.msrb.mxu2 %v7636_v59 }
 0x220   :  { %13070 = vst [vmem:[#allocation188_spill] sm:$0xff] %v7608_v20  ;;  %v7642_v20 = vld [vmem:[#allocation3 + $0x70] sm:$0xff]  ;;  %1611 = vmatpush.msrb.mxu3 %v7638_v13 }
 0x221   :  { %13071 = vst [vmem:[#allocation189_spill] sm:$0xff] %v7612_v8  ;;  %v7644_v8 = vld [vmem:[#allocation3 + $0x470] sm:$0xff]  ;;  %1552 = vmatpush.msrb.mxu0 %v7642_v20 }
 0x222   :  { %13072 = vst [vmem:[#allocation190_spill] sm:$0xff] %v7614_v15  ;;  %v7648_v15 = vld [vmem:[#allocation3 + $0x78] sm:$0xff]  ;;  %1572 = vmatpush.msrb.mxu1 %v7644_v8 }
 0x223   :  { %13073 = vst [vmem:[#allocation191_spill] sm:$0xff] %v7618_v62  ;;  %v7650_v62 = vld [vmem:[#allocation3 + $0x478] sm:$0xff]  ;;  %1592 = vmatpush.msrb.mxu2 %v7648_v15 }
 0x224   :  { %13074 = vst [vmem:[#allocation192_spill] sm:$0xff] %v7620_v16  ;;  %v7654_v16 = vld [vmem:[#allocation3 + $0x30] sm:$0xff]  ;;  %1612 = vmatpush.msrb.mxu3 %v7650_v62 }
 0x225   :  { %13075 = vst [vmem:[#allocation193_spill] sm:$0xff] %v7624_v7  ;;  %v7656_v7 = vld [vmem:[#allocation3 + $0x430] sm:$0xff]  ;;  %1553 = vmatpush.msrb.mxu0 %v7654_v16 }
 0x226   :  { %13076 = vst [vmem:[#allocation194_spill] sm:$0xff] %v7626_v51  ;;  %v7660_v51 = vld [vmem:[#allocation3 + $0x38] sm:$0xff]  ;;  %1573 = vmatpush.msrb.mxu1 %v7656_v7  ;;  %1554 = vmatmul.f32.vlgmr.msrb.gmra.mxu0 %v13011_v54 }
 0x227   :  { %13077 = vst [vmem:[#allocation195_spill] sm:$0xff] %v7630_v11  ;;  %v7662_v11 = vld [vmem:[#allocation3 + $0x438] sm:$0xff]  ;;  %1593 = vmatpush.msrb.mxu2 %v7660_v51  ;;  %1574 = vmatmul.f32.vlgmr.msrb.gmra.mxu1 %v13011_v54 }
 0x228   :  { %13078 = vst [vmem:[#allocation196_spill] sm:$0xff] %v7638_v13  ;;  %1613 = vmatpush.msrb.mxu3 %v7662_v11  ;;  %1594 = vmatmul.f32.vlgmr.msrb.gmra.mxu2 %v13011_v54  ;;  %v7686_v13 = vld [vmem:[#allocation3 + $0x380] sm:$0xff] }
 0x229   :  { %13079 = vst [vmem:[#allocation197_spill] sm:$0xff] %v7644_v8  ;;  %1614 = vmatmul.f32.vlgmr.msrb.gmra.mxu3 %v13011_v54  ;;  %v7674_v8 = vld [vmem:[#allocation3 + $0x3c0] sm:$0xff]  ;;  %v7689_v54 = vld [vmem:[#allocation3 + $0x388] sm:$0xff] }
 0x22a   :  { %13080 = vst [vmem:[#allocation198_spill] sm:$0xff] %v7650_v62  ;;  %1757 = vmatpush.msra.mxu0 %v7674_v8  ;;  %v7677_v62 = vld [vmem:[#allocation3 + $0x3c8] sm:$0xff] }
 0x22b   :  { %13081 = vst [vmem:[#allocation199_spill] sm:$0xff] %v7656_v7  ;;  %1797 = vmatpush.msra.mxu2 %v7677_v62  ;;  %v7680_v7 = vld [vmem:[#allocation3 + $0x7c0] sm:$0xff] }
 0x22c   :  { %13082 = vst [vmem:[#allocation200_spill] sm:$0xff] %v7662_v11  ;;  %1777 = vmatpush.msra.mxu1 %v7680_v7  ;;  %v7683_v11 = vld [vmem:[#allocation3 + $0x7c8] sm:$0xff]  ;;  %1758 = vmatpush.msra.mxu0 %v7686_v13 }
 0x22d   :  { %13083 = vst [vmem:[#allocation201_spill] sm:$0xff] %v7674_v8  ;;  %1817 = vmatpush.msra.mxu3 %v7683_v11  ;;  %1798 = vmatpush.msra.mxu2 %v7689_v54  ;;  %v7692_v8 = vld [vmem:[#allocation3 + $0x780] sm:$0xff] }
 0x22e   :  { %13084 = vst [vmem:[#allocation202_spill] sm:$0xff] %v7677_v62  ;;  %1778 = vmatpush.msra.mxu1 %v7692_v8  ;;  %v7695_v62 = vld [vmem:[#allocation3 + $0x788] sm:$0xff] }
 0x22f   :  { %13085 = vst [vmem:[#allocation203_spill] sm:$0xff] %v7680_v7  ;;  %1818 = vmatpush.msra.mxu3 %v7695_v62  ;;  %v7698_v7 = vld [vmem:[#allocation3 + $0x340] sm:$0xff] }
 0x230   :  { %13086 = vst [vmem:[#allocation204_spill] sm:$0xff] %v7683_v11  ;;  %1759 = vmatpush.msra.mxu0 %v7698_v7  ;;  %v7701_v11 = vld [vmem:[#allocation3 + $0x348] sm:$0xff] }
 0x231   :  { %13087 = vst [vmem:[#allocation205_spill] sm:$0xff] %v7686_v13  ;;  %1799 = vmatpush.msra.mxu2 %v7701_v11  ;;  %v7704_v13 = vld [vmem:[#allocation3 + $0x740] sm:$0xff] }
 0x232   :  { %13088 = vst [vmem:[#allocation206_spill] sm:$0xff] %v7689_v54  ;;  %1779 = vmatpush.msra.mxu1 %v7704_v13  ;;  %v7707_v54 = vld [vmem:[#allocation3 + $0x748] sm:$0xff] }
 0x233   :  { %13089 = vst [vmem:[#allocation207_spill] sm:$0xff] %v7692_v8  ;;  %1819 = vmatpush.msra.mxu3 %v7707_v54  ;;  %v7710_v8 = vld [vmem:[#allocation3 + $0x300] sm:$0xff] }
 0x234   :  { %13090 = vst [vmem:[#allocation208_spill] sm:$0xff] %v7695_v62  ;;  %1760 = vmatpush.msra.mxu0 %v7710_v8  ;;  %v7713_v62 = vld [vmem:[#allocation3 + $0x308] sm:$0xff] }
 0x235   :  { %13091 = vst [vmem:[#allocation209_spill] sm:$0xff] %v7698_v7  ;;  %1800 = vmatpush.msra.mxu2 %v7713_v62  ;;  %v7716_v7 = vld [vmem:[#allocation3 + $0x700] sm:$0xff] }
 0x236   :  { %13092 = vst [vmem:[#allocation210_spill] sm:$0xff] %v7701_v11  ;;  %1780 = vmatpush.msra.mxu1 %v7716_v7  ;;  %v7719_v11 = vld [vmem:[#allocation3 + $0x708] sm:$0xff] }
 0x237   :  { %13093 = vst [vmem:[#allocation211_spill] sm:$0xff] %v7704_v13  ;;  %1820 = vmatpush.msra.mxu3 %v7719_v11  ;;  %v7722_v13 = vld [vmem:[#allocation3 + $0x2c0] sm:$0xff] }
 0x238   :  { %13094 = vst [vmem:[#allocation212_spill] sm:$0xff] %v7707_v54  ;;  %1761 = vmatpush.msra.mxu0 %v7722_v13  ;;  %v7725_v54 = vld [vmem:[#allocation3 + $0x2c8] sm:$0xff] }
 0x239   :  { %13095 = vst [vmem:[#allocation213_spill] sm:$0xff] %v7710_v8  ;;  %1801 = vmatpush.msra.mxu2 %v7725_v54  ;;  %v7728_v8 = vld [vmem:[#allocation3 + $0x6c0] sm:$0xff] }
 0x23a   :  { %13096 = vst [vmem:[#allocation214_spill] sm:$0xff] %v7713_v62  ;;  %1781 = vmatpush.msra.mxu1 %v7728_v8  ;;  %v7731_v62 = vld [vmem:[#allocation3 + $0x6c8] sm:$0xff] }
 0x23b   :  { %13097 = vst [vmem:[#allocation215_spill] sm:$0xff] %v7716_v7  ;;  %1821 = vmatpush.msra.mxu3 %v7731_v62  ;;  %v7734_v7 = vld [vmem:[#allocation3 + $0x280] sm:$0xff]  ;;  %1802 = vmatpush.msra.mxu2 %v7133_v3  ;;  %v13130_v3 = vld [vmem:[#allocation111_spill] sm:$0xff] }
 0x23c   :  { %13098 = vst [vmem:[#allocation216_spill] sm:$0xff] %v7719_v11  ;;  %1762 = vmatpush.msra.mxu0 %v7734_v7  ;;  %v7738_v11 = vld [vmem:[#allocation3 + $0x680] sm:$0xff] }
 0x23d   :  { %13099 = vst [vmem:[#allocation217_spill] sm:$0xff] %v7722_v13  ;;  %1782 = vmatpush.msra.mxu1 %v7738_v11  ;;  %v7741_v13 = vld [vmem:[#allocation3 + $0x688] sm:$0xff]  ;;  %1803 = vmatpush.msra.mxu2 %v7139_v19  ;;  %v13133_v19 = vld [vmem:[#allocation120_spill] sm:$0xff] }
 0x23e   :  { %1822 = vmatpush.msra.mxu3 %v7741_v13  ;;  %1763 = vmatpush.msra.mxu0 %v7135_v42  ;;  %v13131_v42 = vld [vmem:[#allocation113_spill] sm:$0xff] }
 0x23f   :  { %1783 = vmatpush.msra.mxu1 %v7137_v32  ;;  %1804 = vmatpush.msra.mxu2 %v7150_v12  ;;  %v13132_v32 = vld [vmem:[#allocation118_spill] sm:$0xff]  ;;  %v13137_v12 = vld [vmem:[#allocation124_spill] sm:$0xff] }
 0x240   :  { %1823 = vmatpush.msra.mxu3 %v7141_v45  ;;  %1764 = vmatpush.msra.mxu0 %v7144_v18  ;;  %v13134_v45 = vld [vmem:[#allocation115_spill] sm:$0xff]  ;;  %v13135_v18 = vld [vmem:[#allocation117_spill] sm:$0xff] }
 0x241   :  { %1784 = vmatpush.msra.mxu1 %v7146_v6  ;;  %1805 = vmatpush.msra.mxu2 %v7162_v5  ;;  %v13136_v6 = vld [vmem:[#allocation122_spill] sm:$0xff]  ;;  %v13141_v5 = vld [vmem:[#allocation128_spill] sm:$0xff] }
 0x242   :  { %1824 = vmatpush.msra.mxu3 %v7152_v0  ;;  %1765 = vmatpush.msra.mxu0 %v7156_v36  ;;  %v13138_v0 = vld [vmem:[#allocation119_spill] sm:$0xff]  ;;  %v13139_v36 = vld [vmem:[#allocation121_spill] sm:$0xff] }
 0x243   :  { %1785 = vmatpush.msra.mxu1 %v7158_v37  ;;  %1806 = vmatpush.msra.mxu2 %v7174_v2  ;;  %v13140_v37 = vld [vmem:[#allocation126_spill] sm:$0xff]  ;;  %v13145_v2 = vld [vmem:[#allocation132_spill] sm:$0xff] }
 0x244   :  { %1825 = vmatpush.msra.mxu3 %v7164_v40  ;;  %1766 = vmatpush.msra.mxu0 %v7168_v46  ;;  %v13142_v40 = vld [vmem:[#allocation123_spill] sm:$0xff]  ;;  %v13143_v46 = vld [vmem:[#allocation125_spill] sm:$0xff] }
 0x245   :  { %1786 = vmatpush.msra.mxu1 %v7170_v28  ;;  %1807 = vmatpush.msra.mxu2 %v7186_v24  ;;  %v13127_v24 = vld [vmem:[#allocation109_spill] sm:$0xff]  ;;  %v13144_v28 = vld [vmem:[#allocation130_spill] sm:$0xff] }
 0x246   :  { %1826 = vmatpush.msra.mxu3 %v7176_v29  ;;  %1767 = vmatpush.msra.mxu0 %v7180_v43  ;;  %v13129_v43 = vld [vmem:[#allocation116_spill] sm:$0xff]  ;;  %v13146_v29 = vld [vmem:[#allocation127_spill] sm:$0xff] }
 0x247   :  { %1787 = vmatpush.msra.mxu1 %v7182_v14  ;;  %1808 = vmatpush.msra.mxu2 %v7198_v9  ;;  %v13111_v9 = vld [vmem:[#allocation93_spill] sm:$0xff]  ;;  %v13128_v14 = vld [vmem:[#allocation114_spill] sm:$0xff] }
 0x248   :  { %1827 = vmatpush.msra.mxu3 %v7188_v4  ;;  %1768 = vmatpush.msra.mxu0 %v7192_v58  ;;  %v13125_v58 = vld [vmem:[#allocation112_spill] sm:$0xff]  ;;  %v13126_v4 = vld [vmem:[#allocation107_spill] sm:$0xff] }
 0x249   :  { %1788 = vmatpush.msra.mxu1 %v7194_v44  ;;  %1809 = vmatpush.msra.mxu2 %v7210_v47  ;;  %v13120_v47 = vld [vmem:[#allocation106_spill] sm:$0xff] }
 0x24a   :  { %1828 = vmatpush.msra.mxu3 %v7200_v34  ;;  %1769 = vmatpush.msra.mxu0 %v7204_v17  ;;  %v13122_v17 = vld [vmem:[#allocation103_spill] sm:$0xff]  ;;  %v13123_v34 = vld [vmem:[#allocation105_spill] sm:$0xff]  ;;  %v13124_v44 = vld [vmem:[#allocation110_spill] sm:$0xff] }
 0x24b   :  { %1789 = vmatpush.msra.mxu1 %v7206_v55  ;;  %1810 = vmatpush.msra.mxu2 %v7222_v60  ;;  %v13106_v60 = vld [vmem:[#allocation87_spill] sm:$0xff]  ;;  %v13121_v55 = vld [vmem:[#allocation108_spill] sm:$0xff] }
 0x24c   :  { %1829 = vmatpush.msra.mxu3 %v7212_v57  ;;  %1770 = vmatpush.msra.mxu0 %v7216_v61  ;;  %v13104_v57 = vld [vmem:[#allocation90_spill] sm:$0xff]  ;;  %v13109_v61 = vld [vmem:[#allocation96_spill] sm:$0xff] }
 0x24d   :  { %1790 = vmatpush.msra.mxu1 %v7218_v56  ;;  %1811 = vmatpush.msra.mxu2 %v7234_v1  ;;  %v13103_v56 = vld [vmem:[#allocation85_spill] sm:$0xff]  ;;  %v13116_v1 = vld [vmem:[#allocation102_spill] sm:$0xff] }
 0x24e   :  { %1830 = vmatpush.msra.mxu3 %v7224_v31  ;;  %1771 = vmatpush.msra.mxu0 %v7228_v23  ;;  %v13118_v23 = vld [vmem:[#allocation99_spill] sm:$0xff]  ;;  %v13119_v31 = vld [vmem:[#allocation101_spill] sm:$0xff] }
 0x24f   :  { %1791 = vmatpush.msra.mxu1 %v7230_v63  ;;  %1812 = vmatpush.msra.mxu2 %v7246_v52  ;;  %v13102_v52 = vld [vmem:[#allocation84_spill] sm:$0xff] }
 0x250   :  { %1831 = vmatpush.msra.mxu3 %v7236_v49  ;;  %1772 = vmatpush.msra.mxu0 %v7240_v53  ;;  %v13100_v49 = vld [vmem:[#allocation86_spill] sm:$0xff]  ;;  %v13101_v53 = vld [vmem:[#allocation88_spill] sm:$0xff] }
 0x251   :  { %1879 = vmatpush.msrb.mxu2 %v7258_v30  ;;  %1792 = vmatpush.msra.mxu1 %v7242_v48  ;;  %v13105_v48 = vld [vmem:[#allocation92_spill] sm:$0xff]  ;;  %v13112_v30 = vld [vmem:[#allocation98_spill] sm:$0xff] }
 0x252   :  { %1839 = vmatpush.msrb.mxu0 %v7252_v50  ;;  %1832 = vmatpush.msra.mxu3 %v7248_v26  ;;  %v13114_v50 = vld [vmem:[#allocation95_spill] sm:$0xff]  ;;  %v13115_v26 = vld [vmem:[#allocation97_spill] sm:$0xff]  ;;  %v13117_v63 = vld [vmem:[#allocation104_spill] sm:$0xff] }
 0x253   :  { %1880 = vmatpush.msrb.mxu2 %v7270_v39  ;;  %1859 = vmatpush.msrb.mxu1 %v7254_v38  ;;  %v13108_v39 = vld [vmem:[#allocation94_spill] sm:$0xff]  ;;  %v13113_v38 = vld [vmem:[#allocation100_spill] sm:$0xff] }
 0x254   :  { %1840 = vmatpush.msrb.mxu0 %v7264_v41  ;;  %1899 = vmatpush.msrb.mxu3 %v7260_v35  ;;  %v13107_v41 = vld [vmem:[#allocation89_spill] sm:$0xff]  ;;  %v13110_v35 = vld [vmem:[#allocation91_spill] sm:$0xff] }
 0x255   :  { %1881 = vmatpush.msrb.mxu2 %v13101_v53  ;;  %1860 = vmatpush.msrb.mxu1 %v13102_v52  ;;  %v13148_v53 = vld [vmem:[#allocation134_spill] sm:$0xff]  ;;  %v13149_v52 = vld [vmem:[#allocation136_spill] sm:$0xff] }
 0x256   :  { %1841 = vmatpush.msrb.mxu0 %v13100_v49  ;;  %1900 = vmatpush.msrb.mxu3 %v13103_v56  ;;  %v13147_v49 = vld [vmem:[#allocation129_spill] sm:$0xff]  ;;  %v13150_v56 = vld [vmem:[#allocation131_spill] sm:$0xff] }
 0x257   :  { %1882 = vmatpush.msrb.mxu2 %v13105_v48  ;;  %1861 = vmatpush.msrb.mxu1 %v13106_v60  ;;  %v13152_v48 = vld [vmem:[#allocation138_spill] sm:$0xff]  ;;  %v13153_v60 = vld [vmem:[#allocation140_spill] sm:$0xff] }
 0x258   :  { %1842 = vmatpush.msrb.mxu0 %v13104_v57  ;;  %1901 = vmatpush.msrb.mxu3 %v13107_v41  ;;  %v13151_v57 = vld [vmem:[#allocation133_spill] sm:$0xff]  ;;  %v13154_v41 = vld [vmem:[#allocation135_spill] sm:$0xff] }
 0x259   :  { %1883 = vmatpush.msrb.mxu2 %v13109_v61  ;;  %1862 = vmatpush.msrb.mxu1 %v13110_v35  ;;  %v13156_v61 = vld [vmem:[#allocation139_spill] sm:$0xff]  ;;  %v13157_v35 = vld [vmem:[#allocation141_spill] sm:$0xff] }
 0x25a   :  { %1843 = vmatpush.msrb.mxu0 %v13108_v39  ;;  %1902 = vmatpush.msrb.mxu3 %v13111_v9  ;;  %v13155_v39 = vld [vmem:[#allocation137_spill] sm:$0xff]  ;;  %v1117_v9 = vpop.f32.mrf.mxu0 }
 0x25b   :  { %1884 = vmatpush.msrb.mxu2 %v13113_v38  ;;  %1863 = vmatpush.msrb.mxu1 %v13114_v50  ;;  %v1157_v38 = vpop.f32.mrf.mxu2  ;;  %v1177_v50 = vpop.f32.mrf.mxu3 }
 0x25c   :  { %1844 = vmatpush.msrb.mxu0 %v13112_v30  ;;  %1903 = vmatpush.msrb.mxu3 %v13115_v26  ;;  %v1137_v30 = vpop.f32.mrf.mxu1 }
 0x25d   :  { %1885 = vmatpush.msrb.mxu2 %v13117_v63  ;;  %1864 = vmatpush.msrb.mxu1 %v13118_v23  ;;  %v1138_v63 = vadd.f32 %v1137_v30, %v1117_v9 }
 0x25e   :  { %1845 = vmatpush.msrb.mxu0 %v13116_v1  ;;  %1904 = vmatpush.msrb.mxu3 %v13119_v31 }
 0x25f   :  { %1886 = vmatpush.msrb.mxu2 %v13121_v55  ;;  %1865 = vmatpush.msrb.mxu1 %v13122_v17  ;;  %v13158_v55 = vld [vmem:[#allocation16_spill] sm:$0xff] }
 0x260   :  { %1846 = vmatpush.msrb.mxu0 %v13120_v47  ;;  %1905 = vmatpush.msrb.mxu3 %v13123_v34 }
 0x261   :  { %1887 = vmatpush.msrb.mxu2 %v13125_v58  ;;  %1866 = vmatpush.msrb.mxu1 %v13126_v4 }
 0x262   :  { %1847 = vmatpush.msrb.mxu0 %v13124_v44  ;;  %1906 = vmatpush.msrb.mxu3 %v13127_v24  ;;  %v1263_v26 = vpop.f32.mrf.mxu0  ;;  %v13159_v44 = vld [vmem:[#allocation14_spill] sm:$0xff]  ;;  %v1178_v24 = vadd.f32 %v1177_v50, %v1157_v38 }
 0x263   :  { %1888 = vmatpush.msrb.mxu2 %v13129_v43  ;;  %1867 = vmatpush.msrb.mxu1 %v13130_v3  ;;  %v1303_v31 = vpop.f32.mrf.mxu2  ;;  %v1323_v47 = vpop.f32.mrf.mxu3  ;;  %v1180_v58 = vadd.f32 %v1138_v63, %v13159_v44 }
 0x264   :  { %1848 = vmatpush.msrb.mxu0 %v13128_v14  ;;  %1907 = vmatpush.msrb.mxu3 %v13131_v42  ;;  %v1283_v1 = vpop.f32.mrf.mxu1  ;;  %v1324_v34 = vadd.f32 %v1323_v47, %v1303_v31  ;;  %v13160_v14 = vld [vmem:[#allocation17_spill] sm:$0xff]  ;;  %v13161_v42 = vld [vmem:[#allocation15_spill] sm:$0xff] }
 0x265   :  { %1889 = vmatpush.msrb.mxu2 %v13133_v19  ;;  %1868 = vmatpush.msrb.mxu1 %v13134_v45  ;;  %v1284_v23 = vadd.f32 %v1283_v1, %v1263_v26  ;;  %v5287_v3 = vmul.f32 -1.442695, %v1180_v58 }
 0x266   :  { %1849 = vmatpush.msrb.mxu0 %v13132_v32  ;;  %1908 = vmatpush.msrb.mxu3 %v13135_v18  ;;  %v1327_v43 = vadd.f32 %v1324_v34, %v13160_v14  ;;  %v1181_v32 = vadd.f32 %v1178_v24, %v13161_v42 }
 0x267   :  { %1890 = vmatpush.msrb.mxu2 %v13137_v12  ;;  %1869 = vmatpush.msrb.mxu1 %v13138_v0  ;;  %v1326_v17 = vadd.f32 %v1284_v23, %v13158_v55 }
 0x268   :  { %1850 = vmatpush.msrb.mxu0 %v13136_v6  ;;  %1909 = vmatpush.msrb.mxu3 %v13139_v36  ;;  %v5290_v19 = vmul.f32 -1.442695, %v1327_v43  ;;  %v5288_v45 = vmul.f32 -1.442695, %v1181_v32 }
 0x269   :  { %1891 = vmatpush.msrb.mxu2 %v13141_v5  ;;  %1870 = vmatpush.msrb.mxu1 %v13142_v40  ;;  %v5289_v4 = vmul.f32 -1.442695, %v1326_v17 }
 0x26a   :  { %1851 = vmatpush.msrb.mxu0 %v13140_v37  ;;  %1910 = vmatpush.msrb.mxu3 %v13143_v46 }
 0x26b   :  { %1892 = vmatpush.msrb.mxu2 %v13145_v2  ;;  %1871 = vmatpush.msrb.mxu1 %v13146_v29  ;;  %5349 = vpow2.f32 %v5289_v4 }
 0x26c   :  { %1852 = vmatpush.msrb.mxu0 %v13144_v28  ;;  %1911 = vmatpush.msrb.mxu3 %v13147_v49  ;;  %5351 = vpow2.f32 %v5287_v3 }
 0x26d   :  { %1893 = vmatpush.msrb.mxu2 %v13149_v52  ;;  %1872 = vmatpush.msrb.mxu1 %v13150_v56  ;;  %5353 = vpow2.f32 %v5290_v19  ;;  %v13163_v56 = vld [vmem:[#allocation46_spill] sm:$0xff] }
 0x26e   :  { %1853 = vmatpush.msrb.mxu0 %v13148_v53  ;;  %1912 = vmatpush.msrb.mxu3 %v13151_v57  ;;  %5355 = vpow2.f32 %v5288_v45  ;;  %v13162_v53 = vld [vmem:[#allocation47_spill] sm:$0xff]  ;;  %v13164_v45 = vld [vmem:[#allocation48_spill] sm:$0xff] }
 0x26f   :  { %1894 = vmatpush.msrb.mxu2 %v13153_v60  ;;  %1873 = vmatpush.msrb.mxu1 %v13154_v41 }
 0x270   :  { %1854 = vmatpush.msrb.mxu0 %v13152_v48  ;;  %1913 = vmatpush.msrb.mxu3 %v13155_v39 }
 0x271   :  { %1874 = vmatpush.msrb.mxu1 %v13156_v61  ;;  %v5350_v18 = vpop.eup %5349 }
 0x272   :  { %1914 = vmatpush.msrb.mxu3 %v13157_v35  ;;  %v5352_v6 = vpop.eup %5351  ;;  %v7852_v12 = vadd.f32 1.0, %v5350_v18 }
 0x273   :  { %v5354_v0 = vpop.eup %5353  ;;  %v7854_v36 = vadd.f32 1.0, %v5352_v6  ;;  %v8069_v6 = vld [vmem:[#allocation3 + $0x228] sm:$0xff] }
 0x274   :  { %5357 = vrcp.f32 %v7852_v12  ;;  %v7857_v2 = vadd.f32 1.0, %v5354_v0  ;;  %v5356_v49 = vpop.eup %5355  ;;  %vm1671_vm2 = vweird.f32 %v7852_v12  ;;  %v1677_v4 = vand.u32 2147483648, %v7852_v12 }
 0x275   :  { %5359 = vrcp.f32 %v7854_v36  ;;  %v7862_v60 = vadd.f32 1.0, %v5356_v49  ;;  %vm1633_vm3 = vweird.f32 %v7854_v36  ;;  %v1639_v43 = vand.u32 2147483648, %v7854_v36 }
 0x276   :  { %5361 = vrcp.f32 %v7857_v2  ;;  %v1675_v42 = vand.u32 2147483647, %v7852_v12  ;;  %vm1686_vm10 = vweird.f32 %v7857_v2 }
 0x277   :  { %vm1648_vm9 = vweird.f32 %v7862_v60 }
 0x278   :  { %vm1676_vm8 = vcmp.eq.f32.partialorder %v1675_v42, 8.507059e+37 }
 0x27a   :  { %v5358_v39 = vpop.eup %5357 }
 0x27b   :  { %v7865_v61 = vpop.eup %5359  ;;  %v1667_v35 = vmul.f32 %v5358_v39, %v7852_v12  ;;  %vm1672_vm4 = vweird.f32 %v5358_v39  ;;  %v1640_v12 = vor.u32 1.1754944e-38, %v1639_v43 }
 0x27c   :  { %v7869_v9 = vpop.eup %5361  ;;  %v1629_v30 = vmul.f32 %v7865_v61, %v7854_v36  ;;  %vm1634_vm5 = vweird.f32 %v7865_v61  ;;  %vm7897_vm6 = vmor %vm1671_vm2, %vm1672_vm4 }
 0x27d   :  { %v1668_v26 = vsub.f32 1.0, %v1667_v35  ;;  %v1682_v31 = vmul.f32 %v7869_v9, %v7857_v2  ;;  %vm7908_vm7 = vmor %vm1633_vm3, %vm1634_vm5  ;;  %vm1687_vm11 = vweird.f32 %v7869_v9 }
 0x27e   :  { %v1630_v23 = vsub.f32 1.0, %v1629_v30  ;;  %v1690_v30 = vand.u32 2147483647, %v7857_v2  ;;  %vm7933_vm14 = vmor %vm1686_vm10, %vm1687_vm11 }
 0x27f   :  { %v1669_v55 = vmul.f32 %v5358_v39, %v1668_v26  ;;  %v1683_v24 = vsub.f32 1.0, %v1682_v31 }
 0x280   :  { %v1631_v58 = vmul.f32 %v7865_v61, %v1630_v23  ;;  %v1654_v23 = vand.u32 2147483648, %v7862_v60  ;;  %vm1691_vm2 = vcmp.eq.f32.partialorder %v1690_v30, 8.507059e+37 }
 0x281   :  { %v1670_v3 = vadd.f32 %v5358_v39, %v1669_v55 }
 0x285   :  { %v1449_v37 = vpop.f32.mrf.mxu2  ;;  %v1469_v5 = vpop.f32.mrf.mxu3 }
 0x286   :  { %v1409_v40 = vpop.f32.mrf.mxu0  ;;  %v1429_v46 = vpop.f32.mrf.mxu1  ;;  %v1470_v28 = vadd.f32 %v1469_v5, %v1449_v37  ;;  %v1632_v37 = vadd.f32 %v7865_v61, %v1631_v58  ;;  %v1637_v5 = vand.u32 2147483647, %v7854_v36 }
 0x287   :  { %v1430_v29 = vadd.f32 %v1429_v46, %v1409_v40  ;;  %v1678_v40 = vor.u32 1.1754944e-38, %v1677_v4  ;;  %v1684_v46 = vmul.f32 %v7869_v9, %v1683_v24 }
 0x288   :  { %v1473_v52 = vadd.f32 %v1470_v28, %v13162_v53  ;;  %vm1638_vm12 = vcmp.eq.f32.partialorder %v1637_v5, 8.507059e+37 }
 0x289   :  { %v1472_v57 = vadd.f32 %v1430_v29, %v13163_v56  ;;  %v1674_v29 = vsel %vm7897_vm6, %v5358_v39, %v1670_v3  ;;  %v1685_v35 = vadd.f32 %v7869_v9, %v1684_v46 }
 0x28a   :  { %v5292_v48 = vmul.f32 -1.442695, %v1473_v52  ;;  %v1679_v39 = vsel %vm1676_vm8, %v1678_v40, %v1674_v29 }
 0x28b   :  { %v5291_v41 = vmul.f32 -1.442695, %v1472_v57  ;;  %v1692_v57 = vand.u32 2147483648, %v7857_v2  ;;  %v1736_v4 = vmul.f32 0.0, %v1679_v39  ;;  %v7995_v39 = vld [vmem:[#allocation3 + $0x3a0] sm:$0xff]  ;;  %v8043_v2 = vld [vmem:[#allocation3 + $0x2a8] sm:$0xff] }
 0x28c   :  { %5363 = vpow2.f32 %v5292_v48  ;;  %v1636_v48 = vsel %vm7908_vm7, %v7865_v61, %v1632_v37  ;;  %v8014_v61 = vld [vmem:[#allocation3 + $0x7e0] sm:$0xff] }
 0x28d   :  { %5365 = vpow2.f32 %v5291_v41  ;;  %v1693_v58 = vor.u32 1.1754944e-38, %v1692_v57 }
 0x28e   :  { %5367 = vrcp.f32 %v7862_v60 }
 0x292   :  { %v5364_v38 = vpop.eup %5363 }
 0x293   :  { %v5366_v50 = vpop.eup %5365  ;;  %v7880_v47 = vadd.f32 1.0, %v5364_v38 }
 0x294   :  { %v7873_v1 = vadd.f32 1.0, %v5366_v50  ;;  %v7875_v63 = vpop.eup %5367  ;;  %v13169_v50 = vld [vmem:[#allocation49_spill] sm:$0xff] }
 0x295   :  { %v1644_v17 = vmul.f32 %v7875_v63, %v7862_v60  ;;  %vm1649_vm13 = vweird.f32 %v7875_v63  ;;  %vm1724_vm6 = vweird.f32 %v7880_v47  ;;  %v1730_v28 = vand.u32 2147483648, %v7880_v47 }
 0x296   :  { %5369 = vrcp.f32 %v7873_v1  ;;  %vm7944_vm15 = vmor %vm1648_vm9, %vm1649_vm13  ;;  %vm1709_vm0 = vweird.f32 %v7873_v1  ;;  %v1715_v43 = vand.u32 2147483648, %v7873_v1 }
 0x297   :  { %5371 = vrcp.f32 %v7880_v47  ;;  %v1645_v19 = vsub.f32 1.0, %v1644_v17  ;;  %v1641_v17 = vsel %vm1638_vm12, %v1640_v12, %v1636_v48  ;;  %v1731_v57 = vor.u32 1.1754944e-38, %v1730_v28  ;;  %v8096_v28 = vld [vmem:[#allocation3 + $0x668] sm:$0xff] }
 0x298   :  { %v1716_v37 = vor.u32 1.1754944e-38, %v1715_v43  ;;  %v8049_v43 = vld [vmem:[#allocation3 + $0x260] sm:$0xff]  ;;  %13179 = vst [vmem:[#allocation88_spill] sm:$0xff] %v8096_v28 }
 0x299   :  { %v1646_v36 = vmul.f32 %v7875_v63, %v1645_v19 }
 0x29c   :  { %v7892_v32 = vpop.eup %5369 }
 0x29d   :  { %v1705_v0 = vmul.f32 %v7892_v32, %v7873_v1  ;;  %v7915_v49 = vpop.eup %5371  ;;  %vm1710_vm1 = vweird.f32 %v7892_v32 }
 0x29e   :  { %v1720_v38 = vmul.f32 %v7915_v49, %v7880_v47  ;;  %vm7961_vm4 = vmor %vm1709_vm0, %vm1710_vm1  ;;  %vm1725_vm7 = vweird.f32 %v7915_v49 }
 0x29f   :  { %v1706_v53 = vsub.f32 1.0, %v1705_v0  ;;  %vm7977_vm8 = vmor %vm1724_vm6, %vm1725_vm7 }
 0x2a0   :  { %v1721_v3 = vsub.f32 1.0, %v1720_v38 }
 0x2a1   :  { %v1707_v55 = vmul.f32 %v7892_v32, %v1706_v53 }
 0x2a2   :  { %v1722_v5 = vmul.f32 %v7915_v49, %v1721_v3  ;;  %v8052_v3 = vld [vmem:[#allocation3 + $0x720] sm:$0xff] }
 0x2a3   :  { %v1555_v34 = vpop.f32.mrf.mxu0  ;;  %v1708_v19 = vadd.f32 %v7892_v32, %v1707_v55  ;;  %v8020_v55 = vld [vmem:[#allocation3 + $0x7e8] sm:$0xff] }
 0x2a4   :  { %v1575_v44 = vpop.f32.mrf.mxu1 }
 0x2a5   :  { %v1576_v14 = vadd.f32 %v1575_v44, %v1555_v34  ;;  %v1647_v34 = vadd.f32 %v7875_v63, %v1646_v36  ;;  %v1652_v44 = vand.u32 2147483647, %v7862_v60  ;;  %v1655_v60 = vor.u32 1.1754944e-38, %v1654_v23  ;;  %v8011_v23 = vld [vmem:[#allocation3 + $0x320] sm:$0xff] }
 0x2a6   :  { %v8111_v36 = vld [vmem:[#allocation3 + $0x120] sm:$0xff] }
 0x2a7   :  { %v1618_v18 = vadd.f32 %v1576_v14, %v13164_v45  ;;  %v1689_v14 = vsel %vm7933_vm14, %v7869_v9, %v1685_v35  ;;  %v1713_v45 = vand.u32 2147483647, %v7873_v1  ;;  %vm1653_vm3 = vcmp.eq.f32.partialorder %v1652_v44, 8.507059e+37  ;;  %v7998_v35 = vld [vmem:[#allocation3 + $0x3a8] sm:$0xff]  ;;  %13184 = vst [vmem:[#allocation87_spill] sm:$0xff] %v8111_v36 }
 0x2a8   :  { %v1694_v9 = vsel %vm1691_vm2, %v1693_v58, %v1689_v14  ;;  %v1712_v1 = vsel %vm7961_vm4, %v7892_v32, %v1708_v19  ;;  %v8031_v44 = vld [vmem:[#allocation3 + $0x2e8] sm:$0xff] }
 0x2a9   :  { %5373 = vtanh.f32 %v1618_v18  ;;  %v1651_v18 = vsel %vm7944_vm15, %v7875_v63, %v1647_v34  ;;  %vm1714_vm5 = vcmp.eq.f32.partialorder %v1713_v45, 8.507059e+37  ;;  %v1737_v46 = vmul.f32 0.0, %v1694_v9  ;;  %v8028_v34 = vld [vmem:[#allocation3 + $0x7a0] sm:$0xff]  ;;  %v8034_v58 = vld [vmem:[#allocation3 + $0x7a8] sm:$0xff] }
 0x2aa   :  { %v1656_v40 = vsel %vm1653_vm3, %v1655_v60, %v1651_v18  ;;  %v1717_v53 = vsel %vm1714_vm5, %v1716_v37, %v1712_v1  ;;  %v8046_v14 = vld [vmem:[#allocation3 + $0x768] sm:$0xff]  ;;  %v8063_v45 = vld [vmem:[#allocation3 + $0x220] sm:$0xff] }
 0x2ab   :  { %v1595_v52 = vpop.f32.mrf.mxu2  ;;  %v8055_v60 = vld [vmem:[#allocation3 + $0x268] sm:$0xff]  ;;  %v8066_v18 = vld [vmem:[#allocation3 + $0x6e0] sm:$0xff] }
 0x2ac   :  { %v1615_v56 = vpop.f32.mrf.mxu3  ;;  %v8058_v19 = vld [vmem:[#allocation3 + $0x728] sm:$0xff]  ;;  %v8078_v37 = vld [vmem:[#allocation3 + $0x6a0] sm:$0xff] }
 0x2ad   :  { %v1616_v41 = vadd.f32 %v1615_v56, %v1595_v52  ;;  %v1723_v52 = vadd.f32 %v7915_v49, %v1722_v5  ;;  %v1728_v56 = vand.u32 2147483647, %v7880_v47  ;;  %v7992_v47 = vld [vmem:[#allocation3 + $0x3e8] sm:$0xff]  ;;  %v8087_v1 = vld [vmem:[#allocation3 + $0x1a0] sm:$0xff] }
 0x2ae   :  { %v8072_v9 = vld [vmem:[#allocation3 + $0x6e8] sm:$0xff] }
 0x2af   :  { %v1619_v26 = vadd.f32 %v1616_v41, %v13169_v50  ;;  %v5374_v31 = vpop.eup %5373  ;;  %v1727_v48 = vsel %vm7977_vm8, %v7915_v49, %v1723_v52  ;;  %vm1729_vm9 = vcmp.eq.f32.partialorder %v1728_v56, 8.507059e+37  ;;  %v7989_v41 = vld [vmem:[#allocation3 + $0x3e0] sm:$0xff]  ;;  %v8081_v5 = vld [vmem:[#allocation3 + $0x1e8] sm:$0xff] }
 0x2b0   :  { %v1738_v24 = vmul.f32 %v5374_v31, %v1641_v17  ;;  %v1732_v38 = vsel %vm1729_vm9, %v1731_v57, %v1727_v48  ;;  %v8003_v50 = vld [vmem:[#allocation3 + $0x360] sm:$0xff]  ;;  %v8017_v31 = vld [vmem:[#allocation3 + $0x328] sm:$0xff] }
 0x2b1   :  { %5375 = vtanh.f32 %v1619_v26  ;;  %v8006_v26 = vld [vmem:[#allocation3 + $0x368] sm:$0xff]  ;;  %v8025_v17 = vld [vmem:[#allocation3 + $0x2e0] sm:$0xff] }
 0x2b2   :  { %v7954_v42 = vadd.f32 %v1738_v24, %v1736_v4  ;;  %v8037_v4 = vld [vmem:[#allocation3 + $0x2a0] sm:$0xff]  ;;  %v8105_v52 = vld [vmem:[#allocation3 + $0x168] sm:$0xff] }
 0x2b3   :  { %v8040_v24 = vld [vmem:[#allocation3 + $0x760] sm:$0xff]  ;;  %13182 = vst [vmem:[#allocation90_spill] sm:$0xff] %v8105_v52  ;;  %v8108_v56 = vld [vmem:[#allocation3 + $0x628] sm:$0xff] }
 0x2b4   :  { %5377 = vtanh.f32 %v7954_v42  ;;  %13183 = vst [vmem:[#allocation92_spill] sm:$0xff] %v8108_v56  ;;  %v8114_v57 = vld [vmem:[#allocation3 + $0x5e0] sm:$0xff]  ;;  %v8117_v48 = vld [vmem:[#allocation3 + $0x128] sm:$0xff] }
 0x2b5   :  { %13185 = vst [vmem:[#allocation89_spill] sm:$0xff] %v8114_v57 }
 0x2b6   :  { %13186 = vst [vmem:[#allocation94_spill] sm:$0xff] %v8117_v48 }
 0x2b7   :  { %v5376_v0 = vpop.eup %5375 }
 0x2b8   :  { %v1739_v63 = vmul.f32 %v5376_v0, %v1656_v40  ;;  %v8075_v0 = vld [vmem:[#allocation3 + $0x1e0] sm:$0xff]  ;;  %v8084_v40 = vld [vmem:[#allocation3 + $0x6a8] sm:$0xff] }
 0x2ba   :  { %v7973_v12 = vadd.f32 %v1739_v63, %v1737_v46  ;;  %v5378_v29 = vpop.eup %5377  ;;  %v8090_v46 = vld [vmem:[#allocation3 + $0x660] sm:$0xff]  ;;  %v8093_v63 = vld [vmem:[#allocation3 + $0x1a8] sm:$0xff] }
 0x2bb   :  { %v7981_v32 = vmul.f32 %v5378_v29, %v1717_v53  ;;  %13178 = vst [vmem:[#allocation86_spill] sm:$0xff] %v8093_v63  ;;  %v8099_v29 = vld [vmem:[#allocation3 + $0x160] sm:$0xff] }
 0x2bc   :  { %5379 = vtanh.f32 %v7973_v12  ;;  %13180 = vst [vmem:[#allocation84_spill] sm:$0xff] %v8099_v29  ;;  %v8102_v53 = vld [vmem:[#allocation3 + $0x620] sm:$0xff] }
 0x2bd   :  { %1773 = vmatmul.f32.vlgmr.msra.gmra.mxu0 %v7981_v32  ;;  %1813 = vmatmul.f32.vlgmr.msra.gmra.mxu2 %v7981_v32  ;;  %13181 = vst [vmem:[#allocation85_spill] sm:$0xff] %v8102_v53 }
 0x2be   :  { %1921 = vmatpush.msra.mxu0 %v7989_v41  ;;  %1961 = vmatpush.msra.mxu2 %v7992_v47 }
 0x2c0   :  { %1922 = vmatpush.msra.mxu0 %v7995_v39  ;;  %1962 = vmatpush.msra.mxu2 %v7998_v35 }
 0x2c2   :  { %v5380_v30 = vpop.eup %5379  ;;  %1923 = vmatpush.msra.mxu0 %v8003_v50  ;;  %1963 = vmatpush.msra.mxu2 %v8006_v26 }
 0x2c3   :  { %v8001_v49 = vmul.f32 %v5380_v30, %v1732_v38  ;;  %v8120_v30 = vld [vmem:[#allocation3 + $0x5e8] sm:$0xff]  ;;  %v8123_v38 = vld [vmem:[#allocation3 + $0xe0] sm:$0xff] }
 0x2c4   :  { %1924 = vmatpush.msra.mxu0 %v8011_v23  ;;  %1964 = vmatpush.msra.mxu2 %v8017_v31  ;;  %13187 = vst [vmem:[#allocation96_spill] sm:$0xff] %v8120_v30 }
 0x2c5   :  { %1793 = vmatmul.f32.vlgmr.msra.gmra.mxu1 %v8001_v49  ;;  %1833 = vmatmul.f32.vlgmr.msra.gmra.mxu3 %v8001_v49  ;;  %13188 = vst [vmem:[#allocation91_spill] sm:$0xff] %v8123_v38 }
 0x2c6   :  { %1941 = vmatpush.msra.mxu1 %v8014_v61  ;;  %1981 = vmatpush.msra.mxu3 %v8020_v55 }
 0x2c7   :  { %1855 = vmatmul.f32.vlgmr.msrb.gmra.mxu0 %v7981_v32  ;;  %1895 = vmatmul.f32.vlgmr.msrb.gmra.mxu2 %v7981_v32 }
 0x2c8   :  { %1925 = vmatpush.msra.mxu0 %v8025_v17  ;;  %1942 = vmatpush.msra.mxu1 %v8028_v34 }
 0x2c9   :  { %1965 = vmatpush.msra.mxu2 %v8031_v44  ;;  %1982 = vmatpush.msra.mxu3 %v8034_v58 }
 0x2ca   :  { %1926 = vmatpush.msra.mxu0 %v8037_v4  ;;  %1943 = vmatpush.msra.mxu1 %v8040_v24 }
 0x2cb   :  { %1966 = vmatpush.msra.mxu2 %v8043_v2  ;;  %1983 = vmatpush.msra.mxu3 %v8046_v14 }
 0x2cc   :  { %1927 = vmatpush.msra.mxu0 %v8049_v43  ;;  %1944 = vmatpush.msra.mxu1 %v8052_v3 }
 0x2cd   :  { %1967 = vmatpush.msra.mxu2 %v8055_v60  ;;  %1984 = vmatpush.msra.mxu3 %v8058_v19 }
 0x2ce   :  { %1875 = vmatmul.f32.vlgmr.msrb.gmra.mxu1 %v8001_v49  ;;  %1915 = vmatmul.f32.vlgmr.msrb.gmra.mxu3 %v8001_v49 }
 0x2cf   :  { %1928 = vmatpush.msra.mxu0 %v8063_v45  ;;  %1945 = vmatpush.msra.mxu1 %v8066_v18 }
 0x2d0   :  { %1968 = vmatpush.msra.mxu2 %v8069_v6  ;;  %1985 = vmatpush.msra.mxu3 %v8072_v9 }
 0x2d1   :  { %1929 = vmatpush.msra.mxu0 %v8075_v0  ;;  %1946 = vmatpush.msra.mxu1 %v8078_v37 }
 0x2d2   :  { %1969 = vmatpush.msra.mxu2 %v8081_v5  ;;  %1986 = vmatpush.msra.mxu3 %v8084_v40 }
 0x2d3   :  { %1930 = vmatpush.msra.mxu0 %v8087_v1  ;;  %1947 = vmatpush.msra.mxu1 %v8090_v46 }
 0x2d4   :  { %1970 = vmatpush.msra.mxu2 %v8093_v63  ;;  %1987 = vmatpush.msra.mxu3 %v8096_v28 }
 0x2d5   :  { %1931 = vmatpush.msra.mxu0 %v8099_v29  ;;  %1948 = vmatpush.msra.mxu1 %v8102_v53  ;;  %v13391_v53 = vld [vmem:[#allocation52_spill] sm:$0xff] }
 0x2d6   :  { %1971 = vmatpush.msra.mxu2 %v8105_v52  ;;  %1988 = vmatpush.msra.mxu3 %v8108_v56  ;;  %v8126_v56 = vld [vmem:[#allocation3 + $0x5a0] sm:$0xff] }
 0x2d7   :  { %1932 = vmatpush.msra.mxu0 %v8111_v36  ;;  %1949 = vmatpush.msra.mxu1 %v8114_v57  ;;  %13189 = vst [vmem:[#allocation93_spill] sm:$0xff] %v8126_v56  ;;  %v8130_v36 = vld [vmem:[#allocation3 + $0x5a8] sm:$0xff] }
 0x2d8   :  { %1972 = vmatpush.msra.mxu2 %v8117_v48  ;;  %1989 = vmatpush.msra.mxu3 %v8120_v30  ;;  %13190 = vst [vmem:[#allocation98_spill] sm:$0xff] %v8130_v36  ;;  %v8134_v48 = vld [vmem:[#allocation3 + $0x560] sm:$0xff]  ;;  %v8138_v30 = vld [vmem:[#allocation3 + $0x568] sm:$0xff] }
 0x2d9   :  { %1933 = vmatpush.msra.mxu0 %v8123_v38  ;;  %1950 = vmatpush.msra.mxu1 %v8126_v56  ;;  %13191 = vst [vmem:[#allocation100_spill] sm:$0xff] %v8134_v48  ;;  %v8142_v56 = vld [vmem:[#allocation3 + $0x520] sm:$0xff]  ;;  %v13220_v38 = vld [vmem:[#allocation152_spill] sm:$0xff] }
 0x2da   :  { %1973 = vmatpush.msra.mxu2 %v7454_v27  ;;  %1990 = vmatpush.msra.mxu3 %v8130_v36  ;;  %13192 = vst [vmem:[#allocation95_spill] sm:$0xff] %v8138_v30  ;;  %v13194_v27 = vld [vmem:[#allocation142_spill] sm:$0xff] }
 0x2db   :  { %1934 = vmatpush.msra.mxu0 %v7458_v22  ;;  %1951 = vmatpush.msra.mxu1 %v8134_v48  ;;  %13193 = vst [vmem:[#allocation97_spill] sm:$0xff] %v8142_v56  ;;  %v8146_v36 = vld [vmem:[#allocation3 + $0x528] sm:$0xff]  ;;  %v8150_v48 = vld [vmem:[#allocation3 + $0x4e0] sm:$0xff] }
 0x2dc   :  { %1974 = vmatpush.msra.mxu2 %v7460_v25  ;;  %1991 = vmatpush.msra.mxu3 %v8138_v30  ;;  %13195 = vst [vmem:[#allocation102_spill] sm:$0xff] %v8146_v36  ;;  %v13196_v22 = vld [vmem:[#allocation143_spill] sm:$0xff]  ;;  %v13222_v57 = vld [vmem:[#allocation154_spill] sm:$0xff] }
 0x2dd   :  { %1935 = vmatpush.msra.mxu0 %v7463_v33  ;;  %1952 = vmatpush.msra.mxu1 %v8142_v56  ;;  %13197 = vst [vmem:[#allocation104_spill] sm:$0xff] %v8150_v48  ;;  %v8154_v25 = vld [vmem:[#allocation3 + $0x4e8] sm:$0xff]  ;;  %v13199_v33 = vld [vmem:[#allocation144_spill] sm:$0xff] }
 0x2de   :  { %1975 = vmatpush.msra.mxu2 %v13194_v27  ;;  %1992 = vmatpush.msra.mxu3 %v8146_v36  ;;  %13198 = vst [vmem:[#allocation99_spill] sm:$0xff] %v8154_v25  ;;  %v13200_v27 = vld [vmem:[#allocation145_spill] sm:$0xff]  ;;  %v8172_v56 = vld [vmem:[#allocation3 + $0x468] sm:$0xff] }
 0x2df   :  { %1936 = vmatpush.msra.mxu0 %v13196_v22  ;;  %1953 = vmatpush.msra.mxu1 %v8150_v48  ;;  %v8161_v36 = vld [vmem:[#allocation3 + $0x4a0] sm:$0xff]  ;;  %v8164_v22 = vld [vmem:[#allocation3 + $0x4a8] sm:$0xff]  ;;  %13206 = vst [vmem:[#allocation103_spill] sm:$0xff] %v8172_v56 }
 0x2e0   :  { %1976 = vmatpush.msra.mxu2 %v7472_v21  ;;  %1993 = vmatpush.msra.mxu3 %v8154_v25  ;;  %13201 = vst [vmem:[#allocation101_spill] sm:$0xff] %v8161_v36  ;;  %v13203_v21 = vld [vmem:[#allocation147_spill] sm:$0xff]  ;;  %v13204_v48 = vld [vmem:[#allocation149_spill] sm:$0xff] }
 0x2e1   :  { %1937 = vmatmul.f32.vlgmr.msra.gmra.mxu0 %v7981_v32  ;;  %1977 = vmatmul.f32.vlgmr.msra.gmra.mxu2 %v7981_v32  ;;  %13202 = vst [vmem:[#allocation106_spill] sm:$0xff] %v8164_v22  ;;  %v8169_v25 = vld [vmem:[#allocation3 + $0x460] sm:$0xff]  ;;  %v13219_v30 = vld [vmem:[#allocation163_spill] sm:$0xff] }
 0x2e2   :  { %2003 = vmatpush.msrb.mxu0 %v13199_v33  ;;  %2043 = vmatpush.msrb.mxu2 %v13200_v27  ;;  %13205 = vst [vmem:[#allocation108_spill] sm:$0xff] %v8169_v25  ;;  %v13207_v33 = vld [vmem:[#allocation151_spill] sm:$0xff]  ;;  %v13208_v27 = vld [vmem:[#allocation153_spill] sm:$0xff] }
 0x2e3   :  { %1954 = vmatpush.msra.mxu1 %v8161_v36  ;;  %1994 = vmatpush.msra.mxu3 %v8164_v22  ;;  %v8177_v36 = vld [vmem:[#allocation3 + $0x420] sm:$0xff]  ;;  %v8180_v22 = vld [vmem:[#allocation3 + $0x428] sm:$0xff] }
 0x2e4   :  { %2004 = vmatpush.msrb.mxu0 %v13203_v21  ;;  %2044 = vmatpush.msrb.mxu2 %v13204_v48  ;;  %13209 = vst [vmem:[#allocation105_spill] sm:$0xff] %v8177_v36  ;;  %v13211_v48 = vld [vmem:[#allocation155_spill] sm:$0xff] }
 0x2e5   :  { %1955 = vmatpush.msra.mxu1 %v8169_v25  ;;  %1995 = vmatpush.msra.mxu3 %v8172_v56  ;;  %13210 = vst [vmem:[#allocation110_spill] sm:$0xff] %v8180_v22  ;;  %v8186_v21 = vld [vmem:[#allocation3 + $0x7f0] sm:$0xff]  ;;  %v13217_v25 = vld [vmem:[#allocation161_spill] sm:$0xff] }
 0x2e6   :  { %2005 = vmatpush.msrb.mxu0 %v13207_v33  ;;  %2045 = vmatpush.msrb.mxu2 %v13208_v27  ;;  %13212 = vst [vmem:[#allocation112_spill] sm:$0xff] %v8186_v21  ;;  %v13213_v33 = vld [vmem:[#allocation157_spill] sm:$0xff]  ;;  %v13214_v27 = vld [vmem:[#allocation146_spill] sm:$0xff]  ;;  %v13215_v56 = vld [vmem:[#allocation159_spill] sm:$0xff] }
 0x2e7   :  { %1956 = vmatpush.msra.mxu1 %v8177_v36  ;;  %1996 = vmatpush.msra.mxu3 %v8180_v22  ;;  %v13216_v36 = vld [vmem:[#allocation148_spill] sm:$0xff]  ;;  %v13218_v22 = vld [vmem:[#allocation150_spill] sm:$0xff] }
 0x2e8   :  { %1957 = vmatmul.f32.vlgmr.msra.gmra.mxu1 %v8001_v49  ;;  %1997 = vmatmul.f32.vlgmr.msra.gmra.mxu3 %v8001_v49 }
 0x2e9   :  { %2006 = vmatpush.msrb.mxu0 %v13211_v48  ;;  %2023 = vmatpush.msrb.mxu1 %v8186_v21  ;;  %v13221_v48 = vld [vmem:[#allocation165_spill] sm:$0xff]  ;;  %v13223_v21 = vld [vmem:[#allocation167_spill] sm:$0xff] }
 0x2ea   :  { %2046 = vmatpush.msrb.mxu2 %v13213_v33  ;;  %2063 = vmatpush.msrb.mxu3 %v13214_v27  ;;  %v13224_v33 = vld [vmem:[#allocation156_spill] sm:$0xff]  ;;  %v13225_v27 = vld [vmem:[#allocation169_spill] sm:$0xff] }
 0x2eb   :  { %2007 = vmatpush.msrb.mxu0 %v13215_v56  ;;  %2024 = vmatpush.msrb.mxu1 %v13216_v36  ;;  %v13226_v56 = vld [vmem:[#allocation158_spill] sm:$0xff]  ;;  %v13227_v36 = vld [vmem:[#allocation171_spill] sm:$0xff] }
 0x2ec   :  { %2047 = vmatpush.msrb.mxu2 %v13217_v25  ;;  %2064 = vmatpush.msrb.mxu3 %v13218_v22  ;;  %v13228_v25 = vld [vmem:[#allocation160_spill] sm:$0xff]  ;;  %v13229_v22 = vld [vmem:[#allocation173_spill] sm:$0xff] }
 0x2ed   :  { %2008 = vmatpush.msrb.mxu0 %v13219_v30  ;;  %2025 = vmatpush.msrb.mxu1 %v13220_v38  ;;  %v13230_v30 = vld [vmem:[#allocation162_spill] sm:$0xff]  ;;  %v13231_v38 = vld [vmem:[#allocation175_spill] sm:$0xff] }
 0x2ee   :  { %2048 = vmatpush.msrb.mxu2 %v13221_v48  ;;  %2065 = vmatpush.msrb.mxu3 %v13222_v57  ;;  %v13232_v48 = vld [vmem:[#allocation164_spill] sm:$0xff]  ;;  %v13233_v57 = vld [vmem:[#allocation177_spill] sm:$0xff] }
 0x2ef   :  { %2009 = vmatpush.msrb.mxu0 %v13223_v21  ;;  %2026 = vmatpush.msrb.mxu1 %v13224_v33  ;;  %v13234_v21 = vld [vmem:[#allocation166_spill] sm:$0xff]  ;;  %v13235_v33 = vld [vmem:[#allocation179_spill] sm:$0xff] }
 0x2f0   :  { %2049 = vmatpush.msrb.mxu2 %v13225_v27  ;;  %2066 = vmatpush.msrb.mxu3 %v13226_v56  ;;  %v13236_v27 = vld [vmem:[#allocation168_spill] sm:$0xff]  ;;  %v13237_v56 = vld [vmem:[#allocation181_spill] sm:$0xff] }
 0x2f1   :  { %2010 = vmatpush.msrb.mxu0 %v13227_v36  ;;  %2027 = vmatpush.msrb.mxu1 %v13228_v25  ;;  %v13238_v36 = vld [vmem:[#allocation170_spill] sm:$0xff]  ;;  %v13239_v25 = vld [vmem:[#allocation183_spill] sm:$0xff] }
 0x2f2   :  { %2050 = vmatpush.msrb.mxu2 %v13229_v22  ;;  %2067 = vmatpush.msrb.mxu3 %v13230_v30  ;;  %v13240_v22 = vld [vmem:[#allocation172_spill] sm:$0xff]  ;;  %v13241_v30 = vld [vmem:[#allocation185_spill] sm:$0xff] }
 0x2f3   :  { %2011 = vmatpush.msrb.mxu0 %v13231_v38  ;;  %2028 = vmatpush.msrb.mxu1 %v13232_v48  ;;  %v13242_v38 = vld [vmem:[#allocation174_spill] sm:$0xff]  ;;  %v13243_v48 = vld [vmem:[#allocation187_spill] sm:$0xff] }
 0x2f4   :  { %2051 = vmatpush.msrb.mxu2 %v13233_v57  ;;  %2068 = vmatpush.msrb.mxu3 %v13234_v21  ;;  %v13244_v57 = vld [vmem:[#allocation176_spill] sm:$0xff]  ;;  %v13245_v21 = vld [vmem:[#allocation189_spill] sm:$0xff] }
 0x2f5   :  { %2012 = vmatpush.msrb.mxu0 %v13235_v33  ;;  %2029 = vmatpush.msrb.mxu1 %v13236_v27  ;;  %v13246_v33 = vld [vmem:[#allocation178_spill] sm:$0xff]  ;;  %v13247_v27 = vld [vmem:[#allocation191_spill] sm:$0xff] }
 0x2f6   :  { %2052 = vmatpush.msrb.mxu2 %v13237_v56  ;;  %2069 = vmatpush.msrb.mxu3 %v13238_v36  ;;  %v13248_v56 = vld [vmem:[#allocation180_spill] sm:$0xff]  ;;  %v13249_v36 = vld [vmem:[#allocation193_spill] sm:$0xff] }
 0x2f7   :  { %2013 = vmatpush.msrb.mxu0 %v13239_v25  ;;  %2030 = vmatpush.msrb.mxu1 %v13240_v22  ;;  %v13250_v25 = vld [vmem:[#allocation182_spill] sm:$0xff]  ;;  %v13251_v22 = vld [vmem:[#allocation195_spill] sm:$0xff] }
 0x2f8   :  { %2053 = vmatpush.msrb.mxu2 %v13241_v30  ;;  %2070 = vmatpush.msrb.mxu3 %v13242_v38  ;;  %v13252_v30 = vld [vmem:[#allocation184_spill] sm:$0xff]  ;;  %v13253_v38 = vld [vmem:[#allocation186_spill] sm:$0xff] }
 0x2f9   :  { %2014 = vmatpush.msrb.mxu0 %v13243_v48  ;;  %2031 = vmatpush.msrb.mxu1 %v13244_v57  ;;  %v13254_v48 = vld [vmem:[#allocation188_spill] sm:$0xff]  ;;  %v13255_v57 = vld [vmem:[#allocation190_spill] sm:$0xff] }
 0x2fa   :  { %2054 = vmatpush.msrb.mxu2 %v13245_v21  ;;  %2071 = vmatpush.msrb.mxu3 %v13246_v33  ;;  %v13256_v21 = vld [vmem:[#allocation192_spill] sm:$0xff]  ;;  %v13257_v33 = vld [vmem:[#allocation194_spill] sm:$0xff] }
 0x2fb   :  { %2015 = vmatpush.msrb.mxu0 %v13247_v27  ;;  %2032 = vmatpush.msrb.mxu1 %v13248_v56  ;;  %v13261_v27 = vld [vmem:[#allocation197_spill] sm:$0xff] }
 0x2fc   :  { %2055 = vmatpush.msrb.mxu2 %v13249_v36  ;;  %2072 = vmatpush.msrb.mxu3 %v13250_v25  ;;  %v13263_v56 = vld [vmem:[#allocation205_spill] sm:$0xff]  ;;  %v13265_v36 = vld [vmem:[#allocation199_spill] sm:$0xff]  ;;  %v13266_v25 = vld [vmem:[#allocation200_spill] sm:$0xff] }
 0x2fd   :  { %2016 = vmatpush.msrb.mxu0 %v13251_v22  ;;  %2033 = vmatpush.msrb.mxu1 %v13252_v30  ;;  %v13269_v22 = vld [vmem:[#allocation203_spill] sm:$0xff]  ;;  %v13270_v30 = vld [vmem:[#allocation204_spill] sm:$0xff] }
 0x2fe   :  { %2056 = vmatpush.msrb.mxu2 %v7636_v59  ;;  %2073 = vmatpush.msrb.mxu3 %v13253_v38  ;;  %v13258_v59 = vld [vmem:[#allocation196_spill] sm:$0xff]  ;;  %v13271_v38 = vld [vmem:[#allocation213_spill] sm:$0xff] }
 0x2ff   :  { %2017 = vmatpush.msrb.mxu0 %v7642_v20  ;;  %2034 = vmatpush.msrb.mxu1 %v13254_v48  ;;  %v13259_v20 = vld [vmem:[#allocation201_spill] sm:$0xff]  ;;  %v13272_v48 = vld [vmem:[#allocation214_spill] sm:$0xff] }
 0x300   :  { %2057 = vmatpush.msrb.mxu2 %v7648_v15  ;;  %2074 = vmatpush.msrb.mxu3 %v13255_v57  ;;  %v13260_v15 = vld [vmem:[#allocation202_spill] sm:$0xff]  ;;  %v13273_v57 = vld [vmem:[#allocation207_spill] sm:$0xff] }
 0x301   :  { %2018 = vmatpush.msrb.mxu0 %v7654_v16  ;;  %2035 = vmatpush.msrb.mxu1 %v13256_v21  ;;  %v13262_v16 = vld [vmem:[#allocation198_spill] sm:$0xff]  ;;  %v13274_v21 = vld [vmem:[#allocation208_spill] sm:$0xff] }
 0x302   :  { %2058 = vmatpush.msrb.mxu2 %v7660_v51  ;;  %2075 = vmatpush.msrb.mxu3 %v13257_v33  ;;  %v13264_v51 = vld [vmem:[#allocation206_spill] sm:$0xff]  ;;  %v13275_v33 = vld [vmem:[#allocation217_spill] sm:$0xff] }
 0x303   :  { %2019 = vmatmul.f32.vlgmr.msrb.gmra.mxu0 %v7981_v32  ;;  %2059 = vmatmul.f32.vlgmr.msrb.gmra.mxu2 %v7981_v32  ;;  %v13268_v32 = vld [vmem:[#allocation210_spill] sm:$0xff] }
 0x304   :  { %2036 = vmatpush.msrb.mxu1 %v7632_v10  ;;  %2076 = vmatpush.msrb.mxu3 %v13258_v59  ;;  %v13267_v10 = vld [vmem:[#allocation209_spill] sm:$0xff]  ;;  %v13277_v59 = vld [vmem:[#allocation212_spill] sm:$0xff] }
 0x305   :  { %2222 = vmatpush.msra.mxu0 %v13259_v20  ;;  %2262 = vmatpush.msra.mxu2 %v13260_v15  ;;  %v8266_v20 = vld [vmem:[#allocation3 + $0x288] sm:$0xff] }
 0x306   :  { %2037 = vmatpush.msrb.mxu1 %v13261_v27  ;;  %2077 = vmatpush.msrb.mxu3 %v13262_v16  ;;  %13278 = vst [vmem:[#allocation107_spill] sm:$0xff] %v8266_v20  ;;  %v13279_v15 = vld [vmem:[#allocation215_spill] sm:$0xff]  ;;  %v13280_v27 = vld [vmem:[#allocation216_spill] sm:$0xff]  ;;  %v8271_v16 = vld [vmem:[#allocation3 + $0x240] sm:$0xff] }
 0x307   :  { %2223 = vmatpush.msra.mxu0 %v13263_v56  ;;  %2263 = vmatpush.msra.mxu2 %v13264_v51  ;;  %13281 = vst [vmem:[#allocation109_spill] sm:$0xff] %v8271_v16  ;;  %v8274_v56 = vld [vmem:[#allocation3 + $0x248] sm:$0xff]  ;;  %v8287_v51 = vld [vmem:[#allocation3 + $0x1c0] sm:$0xff] }
 0x308   :  { %2038 = vmatpush.msrb.mxu1 %v13265_v36  ;;  %2078 = vmatpush.msrb.mxu3 %v13266_v25  ;;  %13282 = vst [vmem:[#allocation114_spill] sm:$0xff] %v8274_v56  ;;  %v8290_v36 = vld [vmem:[#allocation3 + $0x1c8] sm:$0xff]  ;;  %v8299_v25 = vld [vmem:[#allocation3 + $0x180] sm:$0xff] }
 0x309   :  { %2039 = vmatmul.f32.vlgmr.msrb.gmra.mxu1 %v8001_v49  ;;  %2079 = vmatmul.f32.vlgmr.msrb.gmra.mxu3 %v8001_v49  ;;  %v13276_v49 = vld [vmem:[#allocation211_spill] sm:$0xff]  ;;  %13285 = vst [vmem:[#allocation113_spill] sm:$0xff] %v8287_v51 }
 0x30a   :  { %2224 = vmatpush.msra.mxu0 %v13267_v10  ;;  %2264 = vmatpush.msra.mxu2 %v13268_v32  ;;  %13286 = vst [vmem:[#allocation118_spill] sm:$0xff] %v8290_v36  ;;  %v8308_v10 = vld [vmem:[#allocation3 + $0x608] sm:$0xff]  ;;  %v8311_v32 = vld [vmem:[#allocation3 + $0x140] sm:$0xff] }
 0x30b   :  { %2242 = vmatpush.msra.mxu1 %v13269_v22  ;;  %2282 = vmatpush.msra.mxu3 %v13270_v30  ;;  %13289 = vst [vmem:[#allocation117_spill] sm:$0xff] %v8299_v25  ;;  %v8314_v22 = vld [vmem:[#allocation3 + $0x148] sm:$0xff]  ;;  %v8317_v30 = vld [vmem:[#allocation3 + $0x5c0] sm:$0xff] }
 0x30c   :  { %2225 = vmatpush.msra.mxu0 %v13271_v38  ;;  %2265 = vmatpush.msra.mxu2 %v13272_v48  ;;  %13292 = vst [vmem:[#allocation119_spill] sm:$0xff] %v8308_v10  ;;  %v8320_v38 = vld [vmem:[#allocation3 + $0x5c8] sm:$0xff]  ;;  %v8323_v48 = vld [vmem:[#allocation3 + $0x100] sm:$0xff] }
 0x30d   :  { %2243 = vmatpush.msra.mxu1 %v13273_v57  ;;  %2283 = vmatpush.msra.mxu3 %v13274_v21  ;;  %13293 = vst [vmem:[#allocation121_spill] sm:$0xff] %v8311_v32  ;;  %v8326_v57 = vld [vmem:[#allocation3 + $0x108] sm:$0xff]  ;;  %v8329_v21 = vld [vmem:[#allocation3 + $0x580] sm:$0xff] }
 0x30e   :  { %2226 = vmatpush.msra.mxu0 %v13275_v33  ;;  %2266 = vmatpush.msra.mxu2 %v7725_v54  ;;  %v8282_v54 = vld [vmem:[#allocation3 + $0x208] sm:$0xff]  ;;  %13294 = vst [vmem:[#allocation126_spill] sm:$0xff] %v8314_v22 }
 0x30f   :  { %2244 = vmatpush.msra.mxu1 %v13276_v49  ;;  %2284 = vmatpush.msra.mxu3 %v13277_v59  ;;  %13284 = vst [vmem:[#allocation111_spill] sm:$0xff] %v8282_v54  ;;  %v8332_v33 = vld [vmem:[#allocation3 + $0x588] sm:$0xff]  ;;  %v8335_v49 = vld [vmem:[#allocation3 + $0xc0] sm:$0xff] }
 0x310   :  { %2227 = vmatpush.msra.mxu0 %v7734_v7  ;;  %2267 = vmatpush.msra.mxu2 %v8266_v20  ;;  %v8279_v7 = vld [vmem:[#allocation3 + $0x200] sm:$0xff]  ;;  %13295 = vst [vmem:[#allocation128_spill] sm:$0xff] %v8317_v30  ;;  %v8338_v59 = vld [vmem:[#allocation3 + $0xc8] sm:$0xff] }
 0x311   :  { %2245 = vmatpush.msra.mxu1 %v13279_v15  ;;  %2285 = vmatpush.msra.mxu3 %v13280_v27  ;;  %13283 = vst [vmem:[#allocation116_spill] sm:$0xff] %v8279_v7  ;;  %v8341_v15 = vld [vmem:[#allocation3 + $0x540] sm:$0xff]  ;;  %v8344_v27 = vld [vmem:[#allocation3 + $0x548] sm:$0xff] }
 0x312   :  { %2228 = vmatpush.msra.mxu0 %v8271_v16  ;;  %2268 = vmatpush.msra.mxu2 %v8274_v56  ;;  %13296 = vst [vmem:[#allocation123_spill] sm:$0xff] %v8320_v38 }
 0x313   :  { %2246 = vmatpush.msra.mxu1 %v7728_v8  ;;  %2286 = vmatpush.msra.mxu3 %v7731_v62  ;;  %v8293_v62 = vld [vmem:[#allocation3 + $0x640] sm:$0xff]  ;;  %v8296_v8 = vld [vmem:[#allocation3 + $0x648] sm:$0xff]  ;;  %13297 = vst [vmem:[#allocation125_spill] sm:$0xff] %v8323_v48 }
 0x314   :  { %2229 = vmatpush.msra.mxu0 %v8279_v7  ;;  %2269 = vmatpush.msra.mxu2 %v8282_v54  ;;  %13287 = vst [vmem:[#allocation120_spill] sm:$0xff] %v8293_v62  ;;  %v13388_v7 = vld [vmem:[#allocation19_spill] sm:$0xff] }
 0x315   :  { %2247 = vmatpush.msra.mxu1 %v7738_v11  ;;  %2287 = vmatpush.msra.mxu3 %v7741_v13  ;;  %13288 = vst [vmem:[#allocation115_spill] sm:$0xff] %v8296_v8  ;;  %v8302_v13 = vld [vmem:[#allocation3 + $0x188] sm:$0xff]  ;;  %v8305_v11 = vld [vmem:[#allocation3 + $0x600] sm:$0xff] }
 0x316   :  { %2230 = vmatpush.msra.mxu0 %v8287_v51  ;;  %2270 = vmatpush.msra.mxu2 %v8290_v36  ;;  %13290 = vst [vmem:[#allocation122_spill] sm:$0xff] %v8302_v13  ;;  %v13387_v36 = vld [vmem:[#allocation21_spill] sm:$0xff] }
 0x317   :  { %2248 = vmatpush.msra.mxu1 %v8293_v62  ;;  %2288 = vmatpush.msra.mxu3 %v8296_v8  ;;  %13291 = vst [vmem:[#allocation124_spill] sm:$0xff] %v8305_v11 }
 0x318   :  { %2231 = vmatpush.msra.mxu0 %v8299_v25  ;;  %2271 = vmatpush.msra.mxu2 %v8302_v13  ;;  %13298 = vst [vmem:[#allocation130_spill] sm:$0xff] %v8326_v57  ;;  %v13386_v25 = vld [vmem:[#allocation18_spill] sm:$0xff] }
 0x319   :  { %2249 = vmatpush.msra.mxu1 %v8305_v11  ;;  %2289 = vmatpush.msra.mxu3 %v8308_v10  ;;  %13299 = vst [vmem:[#allocation132_spill] sm:$0xff] %v8329_v21  ;;  %v13385_v10 = vld [vmem:[#allocation20_spill] sm:$0xff] }
 0x31a   :  { %2232 = vmatpush.msra.mxu0 %v8311_v32  ;;  %2272 = vmatpush.msra.mxu2 %v8314_v22  ;;  %13300 = vst [vmem:[#allocation127_spill] sm:$0xff] %v8332_v33 }
 0x31b   :  { %2250 = vmatpush.msra.mxu1 %v8317_v30  ;;  %2290 = vmatpush.msra.mxu3 %v8320_v38  ;;  %13301 = vst [vmem:[#allocation129_spill] sm:$0xff] %v8335_v49 }
 0x31c   :  { %2233 = vmatpush.msra.mxu0 %v8323_v48  ;;  %2273 = vmatpush.msra.mxu2 %v8326_v57  ;;  %13302 = vst [vmem:[#allocation134_spill] sm:$0xff] %v8338_v59 }
 0x31d   :  { %2251 = vmatpush.msra.mxu1 %v8329_v21  ;;  %2291 = vmatpush.msra.mxu3 %v8332_v33  ;;  %13303 = vst [vmem:[#allocation136_spill] sm:$0xff] %v8341_v15  ;;  %v8347_v21 = vld [vmem:[#allocation3 + $0x80] sm:$0xff]  ;;  %v8350_v33 = vld [vmem:[#allocation3 + $0x88] sm:$0xff] }
 0x31e   :  { %2234 = vmatpush.msra.mxu0 %v8335_v49  ;;  %2274 = vmatpush.msra.mxu2 %v8338_v59  ;;  %13304 = vst [vmem:[#allocation131_spill] sm:$0xff] %v8344_v27  ;;  %v8353_v49 = vld [vmem:[#allocation3 + $0x500] sm:$0xff]  ;;  %v8356_v59 = vld [vmem:[#allocation3 + $0x508] sm:$0xff] }
 0x31f   :  { %2252 = vmatpush.msra.mxu1 %v8341_v15  ;;  %2292 = vmatpush.msra.mxu3 %v8344_v27  ;;  %13305 = vst [vmem:[#allocation133_spill] sm:$0xff] %v8347_v21  ;;  %v8359_v15 = vld [vmem:[#allocation3 + $0x40] sm:$0xff]  ;;  %v8362_v27 = vld [vmem:[#allocation3 + $0x48] sm:$0xff] }
 0x320   :  { %2235 = vmatpush.msra.mxu0 %v8347_v21  ;;  %13306 = vst [vmem:[#allocation138_spill] sm:$0xff] %v8350_v33  ;;  %2275 = vmatpush.msra.mxu2 %v8350_v33  ;;  %v8365_v21 = vld [vmem:[#allocation3 + $0x4c0] sm:$0xff]  ;;  %v8368_v33 = vld [vmem:[#allocation3 + $0x4c8] sm:$0xff] }
 0x321   :  { %13307 = vst [vmem:[#allocation140_spill] sm:$0xff] %v8353_v49  ;;  %2253 = vmatpush.msra.mxu1 %v8353_v49  ;;  %2293 = vmatpush.msra.mxu3 %v8356_v59  ;;  %v8371_v49 = vld [vmem:[#allocation3] sm:$0xff] }
 0x322   :  { %13308 = vst [vmem:[#allocation135_spill] sm:$0xff] %v8356_v59  ;;  %2236 = vmatpush.msra.mxu0 %v8359_v15  ;;  %2276 = vmatpush.msra.mxu2 %v8362_v27  ;;  %v8374_v59 = vld [vmem:[#allocation3 + $0x8] sm:$0xff] }
 0x323   :  { %13309 = vst [vmem:[#allocation137_spill] sm:$0xff] %v8359_v15  ;;  %2254 = vmatpush.msra.mxu1 %v8365_v21  ;;  %2294 = vmatpush.msra.mxu3 %v8368_v33  ;;  %v8377_v15 = vld [vmem:[#allocation3 + $0x3d0] sm:$0xff] }
 0x324   :  { %13310 = vst [vmem:[#allocation139_spill] sm:$0xff] %v8362_v27  ;;  %2237 = vmatpush.msra.mxu0 %v8371_v49  ;;  %2277 = vmatpush.msra.mxu2 %v8374_v59  ;;  %v8380_v27 = vld [vmem:[#allocation3 + $0x3d8] sm:$0xff] }
 0x325   :  { %13311 = vst [vmem:[#allocation141_spill] sm:$0xff] %v8365_v21  ;;  %v8383_v21 = vld [vmem:[#allocation3 + $0x480] sm:$0xff] }
 0x326   :  { %13312 = vst [vmem:[#allocation16_spill] sm:$0xff] %v8368_v33  ;;  %2304 = vmatpush.msrb.mxu0 %v8377_v15  ;;  %2344 = vmatpush.msrb.mxu2 %v8380_v27  ;;  %v8386_v33 = vld [vmem:[#allocation3 + $0x488] sm:$0xff] }
 0x327   :  { %13313 = vst [vmem:[#allocation14_spill] sm:$0xff] %v8371_v49  ;;  %2255 = vmatpush.msra.mxu1 %v8383_v21  ;;  %2295 = vmatpush.msra.mxu3 %v8386_v33  ;;  %v8389_v49 = vld [vmem:[#allocation3 + $0x390] sm:$0xff] }
 0x328   :  { %13314 = vst [vmem:[#allocation17_spill] sm:$0xff] %v8374_v59  ;;  %2305 = vmatpush.msrb.mxu0 %v8389_v49  ;;  %v8392_v59 = vld [vmem:[#allocation3 + $0x398] sm:$0xff] }
 0x329   :  { %13315 = vst [vmem:[#allocation15_spill] sm:$0xff] %v8377_v15  ;;  %2345 = vmatpush.msrb.mxu2 %v8392_v59  ;;  %v8395_v15 = vld [vmem:[#allocation3 + $0x440] sm:$0xff] }
 0x32a   :  { %13316 = vst [vmem:[#allocation47_spill] sm:$0xff] %v8380_v27  ;;  %2256 = vmatpush.msra.mxu1 %v8395_v15  ;;  %v8398_v27 = vld [vmem:[#allocation3 + $0x448] sm:$0xff] }
 0x32b   :  { %13317 = vst [vmem:[#allocation46_spill] sm:$0xff] %v8383_v21  ;;  %2296 = vmatpush.msra.mxu3 %v8398_v27  ;;  %v8401_v21 = vld [vmem:[#allocation3 + $0x350] sm:$0xff] }
 0x32c   :  { %13318 = vst [vmem:[#allocation48_spill] sm:$0xff] %v8386_v33  ;;  %2306 = vmatpush.msrb.mxu0 %v8401_v21  ;;  %v8404_v33 = vld [vmem:[#allocation3 + $0x358] sm:$0xff] }
 0x32d   :  { %13319 = vst [vmem:[#allocation49_spill] sm:$0xff] %v8389_v49  ;;  %2346 = vmatpush.msrb.mxu2 %v8404_v33  ;;  %v8407_v49 = vld [vmem:[#allocation3 + $0x400] sm:$0xff] }
 0x32e   :  { %13320 = vst [vmem:[#allocation142_spill] sm:$0xff] %v8392_v59  ;;  %2257 = vmatpush.msra.mxu1 %v8407_v49  ;;  %v8410_v59 = vld [vmem:[#allocation3 + $0x408] sm:$0xff] }
 0x32f   :  { %13321 = vst [vmem:[#allocation143_spill] sm:$0xff] %v8395_v15  ;;  %2297 = vmatpush.msra.mxu3 %v8410_v59  ;;  %v8413_v15 = vld [vmem:[#allocation3 + $0x310] sm:$0xff] }
 0x330   :  { %13322 = vst [vmem:[#allocation144_spill] sm:$0xff] %v8398_v27  ;;  %2307 = vmatpush.msrb.mxu0 %v8413_v15  ;;  %v8416_v27 = vld [vmem:[#allocation3 + $0x7d0] sm:$0xff] }
 0x331   :  { %13323 = vst [vmem:[#allocation145_spill] sm:$0xff] %v8401_v21  ;;  %2324 = vmatpush.msrb.mxu1 %v8416_v27  ;;  %v8419_v21 = vld [vmem:[#allocation3 + $0x318] sm:$0xff] }
 0x332   :  { %13324 = vst [vmem:[#allocation147_spill] sm:$0xff] %v8404_v33  ;;  %2347 = vmatpush.msrb.mxu2 %v8419_v21  ;;  %v8422_v33 = vld [vmem:[#allocation3 + $0x7d8] sm:$0xff] }
 0x333   :  { %13325 = vst [vmem:[#allocation149_spill] sm:$0xff] %v8407_v49  ;;  %2364 = vmatpush.msrb.mxu3 %v8422_v33  ;;  %v8425_v49 = vld [vmem:[#allocation3 + $0x2d0] sm:$0xff] }
 0x334   :  { %13326 = vst [vmem:[#allocation151_spill] sm:$0xff] %v8410_v59  ;;  %2308 = vmatpush.msrb.mxu0 %v8425_v49  ;;  %v8428_v59 = vld [vmem:[#allocation3 + $0x790] sm:$0xff] }
 0x335   :  { %13327 = vst [vmem:[#allocation153_spill] sm:$0xff] %v8413_v15  ;;  %2325 = vmatpush.msrb.mxu1 %v8428_v59  ;;  %v8431_v15 = vld [vmem:[#allocation3 + $0x2d8] sm:$0xff] }
 0x336   :  { %13328 = vst [vmem:[#allocation155_spill] sm:$0xff] %v8416_v27  ;;  %2348 = vmatpush.msrb.mxu2 %v8431_v15  ;;  %v8434_v27 = vld [vmem:[#allocation3 + $0x798] sm:$0xff] }
 0x337   :  { %13329 = vst [vmem:[#allocation157_spill] sm:$0xff] %v8419_v21  ;;  %2365 = vmatpush.msrb.mxu3 %v8434_v27  ;;  %v8437_v21 = vld [vmem:[#allocation3 + $0x290] sm:$0xff] }
 0x338   :  { %13330 = vst [vmem:[#allocation146_spill] sm:$0xff] %v8422_v33  ;;  %2309 = vmatpush.msrb.mxu0 %v8437_v21  ;;  %v8440_v33 = vld [vmem:[#allocation3 + $0x750] sm:$0xff] }
 0x339   :  { %13331 = vst [vmem:[#allocation159_spill] sm:$0xff] %v8425_v49  ;;  %2326 = vmatpush.msrb.mxu1 %v8440_v33  ;;  %v8443_v49 = vld [vmem:[#allocation3 + $0x298] sm:$0xff] }
 0x33a   :  { %13332 = vst [vmem:[#allocation148_spill] sm:$0xff] %v8428_v59  ;;  %2349 = vmatpush.msrb.mxu2 %v8443_v49  ;;  %v8446_v59 = vld [vmem:[#allocation3 + $0x758] sm:$0xff]  ;;  %v1774_v57 = vpop.f32.mrf.mxu0 }
 0x33b   :  { %13333 = vst [vmem:[#allocation161_spill] sm:$0xff] %v8431_v15  ;;  %2366 = vmatpush.msrb.mxu3 %v8446_v59  ;;  %v8449_v15 = vld [vmem:[#allocation3 + $0x250] sm:$0xff] }
 0x33c   :  { %13334 = vst [vmem:[#allocation150_spill] sm:$0xff] %v8434_v27  ;;  %2310 = vmatpush.msrb.mxu0 %v8449_v15  ;;  %v8452_v27 = vld [vmem:[#allocation3 + $0x710] sm:$0xff] }
 0x33d   :  { %13335 = vst [vmem:[#allocation163_spill] sm:$0xff] %v8437_v21  ;;  %2327 = vmatpush.msrb.mxu1 %v8452_v27  ;;  %v8455_v21 = vld [vmem:[#allocation3 + $0x258] sm:$0xff] }
 0x33e   :  { %13336 = vst [vmem:[#allocation152_spill] sm:$0xff] %v8440_v33  ;;  %2350 = vmatpush.msrb.mxu2 %v8455_v21  ;;  %v8458_v33 = vld [vmem:[#allocation3 + $0x718] sm:$0xff] }
 0x33f   :  { %13337 = vst [vmem:[#allocation165_spill] sm:$0xff] %v8443_v49  ;;  %2367 = vmatpush.msrb.mxu3 %v8458_v33  ;;  %v8461_v49 = vld [vmem:[#allocation3 + $0x210] sm:$0xff] }
 0x340   :  { %13338 = vst [vmem:[#allocation154_spill] sm:$0xff] %v8446_v59  ;;  %2311 = vmatpush.msrb.mxu0 %v8461_v49  ;;  %v8464_v59 = vld [vmem:[#allocation3 + $0x6d0] sm:$0xff] }
 0x341   :  { %13339 = vst [vmem:[#allocation167_spill] sm:$0xff] %v8449_v15  ;;  %2328 = vmatpush.msrb.mxu1 %v8464_v59  ;;  %v8467_v15 = vld [vmem:[#allocation3 + $0x218] sm:$0xff] }
 0x342   :  { %13340 = vst [vmem:[#allocation156_spill] sm:$0xff] %v8452_v27  ;;  %2351 = vmatpush.msrb.mxu2 %v8467_v15  ;;  %v8470_v27 = vld [vmem:[#allocation3 + $0x6d8] sm:$0xff] }
 0x343   :  { %13341 = vst [vmem:[#allocation169_spill] sm:$0xff] %v8455_v21  ;;  %2368 = vmatpush.msrb.mxu3 %v8470_v27  ;;  %v8473_v21 = vld [vmem:[#allocation3 + $0x1d0] sm:$0xff] }
 0x344   :  { %13342 = vst [vmem:[#allocation158_spill] sm:$0xff] %v8458_v33  ;;  %2312 = vmatpush.msrb.mxu0 %v8473_v21  ;;  %v8476_v33 = vld [vmem:[#allocation3 + $0x690] sm:$0xff]  ;;  %v1856_v30 = vpop.f32.mrf.mxu0 }
 0x345   :  { %13343 = vst [vmem:[#allocation171_spill] sm:$0xff] %v8461_v49  ;;  %2329 = vmatpush.msrb.mxu1 %v8476_v33  ;;  %v8479_v49 = vld [vmem:[#allocation3 + $0x1d8] sm:$0xff] }
 0x346   :  { %13344 = vst [vmem:[#allocation160_spill] sm:$0xff] %v8464_v59  ;;  %2352 = vmatpush.msrb.mxu2 %v8479_v49  ;;  %v8482_v59 = vld [vmem:[#allocation3 + $0x698] sm:$0xff] }
 0x347   :  { %13345 = vst [vmem:[#allocation173_spill] sm:$0xff] %v8467_v15  ;;  %2369 = vmatpush.msrb.mxu3 %v8482_v59  ;;  %v8485_v15 = vld [vmem:[#allocation3 + $0x190] sm:$0xff] }
 0x348   :  { %13346 = vst [vmem:[#allocation162_spill] sm:$0xff] %v8470_v27  ;;  %2313 = vmatpush.msrb.mxu0 %v8485_v15  ;;  %v8488_v27 = vld [vmem:[#allocation3 + $0x650] sm:$0xff]  ;;  %v1834_v48 = vpop.f32.mrf.mxu3 }
 0x349   :  { %13347 = vst [vmem:[#allocation175_spill] sm:$0xff] %v8473_v21  ;;  %2330 = vmatpush.msrb.mxu1 %v8488_v27  ;;  %v8491_v21 = vld [vmem:[#allocation3 + $0x198] sm:$0xff] }
 0x34a   :  { %13348 = vst [vmem:[#allocation164_spill] sm:$0xff] %v8476_v33  ;;  %2353 = vmatpush.msrb.mxu2 %v8491_v21  ;;  %v8494_v33 = vld [vmem:[#allocation3 + $0x658] sm:$0xff] }
 0x34b   :  { %13349 = vst [vmem:[#allocation177_spill] sm:$0xff] %v8479_v49  ;;  %2370 = vmatpush.msrb.mxu3 %v8494_v33  ;;  %v8497_v49 = vld [vmem:[#allocation3 + $0x150] sm:$0xff] }
 0x34c   :  { %13350 = vst [vmem:[#allocation166_spill] sm:$0xff] %v8482_v59  ;;  %2314 = vmatpush.msrb.mxu0 %v8497_v49  ;;  %v8500_v59 = vld [vmem:[#allocation3 + $0x610] sm:$0xff] }
 0x34d   :  { %13351 = vst [vmem:[#allocation179_spill] sm:$0xff] %v8485_v15  ;;  %2331 = vmatpush.msrb.mxu1 %v8500_v59  ;;  %v8503_v15 = vld [vmem:[#allocation3 + $0x158] sm:$0xff] }
 0x34e   :  { %13352 = vst [vmem:[#allocation168_spill] sm:$0xff] %v8488_v27  ;;  %2354 = vmatpush.msrb.mxu2 %v8503_v15  ;;  %v8506_v27 = vld [vmem:[#allocation3 + $0x618] sm:$0xff] }
 0x34f   :  { %13353 = vst [vmem:[#allocation181_spill] sm:$0xff] %v8491_v21  ;;  %2371 = vmatpush.msrb.mxu3 %v8506_v27  ;;  %v8509_v21 = vld [vmem:[#allocation3 + $0x110] sm:$0xff] }
 0x350   :  { %13354 = vst [vmem:[#allocation170_spill] sm:$0xff] %v8494_v33  ;;  %2315 = vmatpush.msrb.mxu0 %v8509_v21  ;;  %v8512_v33 = vld [vmem:[#allocation3 + $0x5d0] sm:$0xff] }
 0x351   :  { %13355 = vst [vmem:[#allocation183_spill] sm:$0xff] %v8497_v49  ;;  %2332 = vmatpush.msrb.mxu1 %v8512_v33  ;;  %v8515_v49 = vld [vmem:[#allocation3 + $0x118] sm:$0xff]  ;;  %v1916_v32 = vpop.f32.mrf.mxu3 }
 0x352   :  { %13356 = vst [vmem:[#allocation172_spill] sm:$0xff] %v8500_v59  ;;  %2355 = vmatpush.msrb.mxu2 %v8515_v49  ;;  %v8518_v59 = vld [vmem:[#allocation3 + $0x5d8] sm:$0xff] }
 0x353   :  { %13357 = vst [vmem:[#allocation185_spill] sm:$0xff] %v8503_v15  ;;  %2372 = vmatpush.msrb.mxu3 %v8518_v59  ;;  %v8521_v15 = vld [vmem:[#allocation3 + $0xd0] sm:$0xff] }
 0x354   :  { %13358 = vst [vmem:[#allocation174_spill] sm:$0xff] %v8506_v27  ;;  %2316 = vmatpush.msrb.mxu0 %v8521_v15  ;;  %v8524_v27 = vld [vmem:[#allocation3 + $0x590] sm:$0xff] }
 0x355   :  { %13359 = vst [vmem:[#allocation187_spill] sm:$0xff] %v8509_v21  ;;  %2333 = vmatpush.msrb.mxu1 %v8524_v27  ;;  %v8527_v21 = vld [vmem:[#allocation3 + $0xd8] sm:$0xff] }
 0x356   :  { %13360 = vst [vmem:[#allocation176_spill] sm:$0xff] %v8512_v33  ;;  %2356 = vmatpush.msrb.mxu2 %v8527_v21  ;;  %v8530_v33 = vld [vmem:[#allocation3 + $0x598] sm:$0xff] }
 0x357   :  { %13361 = vst [vmem:[#allocation189_spill] sm:$0xff] %v8515_v49  ;;  %2373 = vmatpush.msrb.mxu3 %v8530_v33  ;;  %v8533_v49 = vld [vmem:[#allocation3 + $0x90] sm:$0xff] }
 0x358   :  { %13362 = vst [vmem:[#allocation178_spill] sm:$0xff] %v8518_v59  ;;  %2317 = vmatpush.msrb.mxu0 %v8533_v49  ;;  %v8536_v59 = vld [vmem:[#allocation3 + $0x550] sm:$0xff] }
 0x359   :  { %13363 = vst [vmem:[#allocation191_spill] sm:$0xff] %v8521_v15  ;;  %2334 = vmatpush.msrb.mxu1 %v8536_v59  ;;  %v8539_v15 = vld [vmem:[#allocation3 + $0x98] sm:$0xff] }
 0x35a   :  { %13364 = vst [vmem:[#allocation180_spill] sm:$0xff] %v8524_v27  ;;  %2357 = vmatpush.msrb.mxu2 %v8539_v15  ;;  %v8542_v27 = vld [vmem:[#allocation3 + $0x558] sm:$0xff] }
 0x35b   :  { %13365 = vst [vmem:[#allocation193_spill] sm:$0xff] %v8527_v21  ;;  %2374 = vmatpush.msrb.mxu3 %v8542_v27  ;;  %v8545_v21 = vld [vmem:[#allocation3 + $0x50] sm:$0xff] }
 0x35c   :  { %13366 = vst [vmem:[#allocation182_spill] sm:$0xff] %v8530_v33  ;;  %2318 = vmatpush.msrb.mxu0 %v8545_v21  ;;  %v8548_v33 = vld [vmem:[#allocation3 + $0x510] sm:$0xff] }
 0x35d   :  { %13367 = vst [vmem:[#allocation195_spill] sm:$0xff] %v8533_v49  ;;  %2335 = vmatpush.msrb.mxu1 %v8548_v33  ;;  %v8551_v49 = vld [vmem:[#allocation3 + $0x58] sm:$0xff] }
 0x35e   :  { %13368 = vst [vmem:[#allocation184_spill] sm:$0xff] %v8536_v59  ;;  %2358 = vmatpush.msrb.mxu2 %v8551_v49  ;;  %v8554_v59 = vld [vmem:[#allocation3 + $0x518] sm:$0xff]  ;;  %v1938_v16 = vpop.f32.mrf.mxu0 }
 0x35f   :  { %13369 = vst [vmem:[#allocation186_spill] sm:$0xff] %v8539_v15  ;;  %2375 = vmatpush.msrb.mxu3 %v8554_v59  ;;  %v8557_v15 = vld [vmem:[#allocation3 + $0x10] sm:$0xff] }
 0x360   :  { %13370 = vst [vmem:[#allocation188_spill] sm:$0xff] %v8542_v27  ;;  %2319 = vmatpush.msrb.mxu0 %v8557_v15  ;;  %v8560_v27 = vld [vmem:[#allocation3 + $0x4d0] sm:$0xff] }
 0x361   :  { %13371 = vst [vmem:[#allocation190_spill] sm:$0xff] %v8545_v21  ;;  %2336 = vmatpush.msrb.mxu1 %v8560_v27  ;;  %v8563_v21 = vld [vmem:[#allocation3 + $0x18] sm:$0xff] }
 0x362   :  { %13372 = vst [vmem:[#allocation192_spill] sm:$0xff] %v8548_v33  ;;  %2359 = vmatpush.msrb.mxu2 %v8563_v21  ;;  %v8566_v33 = vld [vmem:[#allocation3 + $0x4d8] sm:$0xff] }
 0x363   :  { %13373 = vst [vmem:[#allocation194_spill] sm:$0xff] %v8551_v49  ;;  %2376 = vmatpush.msrb.mxu3 %v8566_v33  ;;  %v8569_v49 = vld [vmem:[#allocation3 + $0x490] sm:$0xff] }
 0x364   :  { %13374 = vst [vmem:[#allocation196_spill] sm:$0xff] %v8554_v59  ;;  %2337 = vmatpush.msrb.mxu1 %v8569_v49  ;;  %v8572_v59 = vld [vmem:[#allocation3 + $0x498] sm:$0xff] }
 0x365   :  { %13375 = vst [vmem:[#allocation201_spill] sm:$0xff] %v8557_v15  ;;  %2377 = vmatpush.msrb.mxu3 %v8572_v59  ;;  %v8575_v15 = vld [vmem:[#allocation3 + $0x450] sm:$0xff] }
 0x366   :  { %13376 = vst [vmem:[#allocation202_spill] sm:$0xff] %v8560_v27  ;;  %2338 = vmatpush.msrb.mxu1 %v8575_v15  ;;  %v8578_v27 = vld [vmem:[#allocation3 + $0x458] sm:$0xff] }
 0x367   :  { %13377 = vst [vmem:[#allocation197_spill] sm:$0xff] %v8563_v21  ;;  %2378 = vmatpush.msrb.mxu3 %v8578_v27  ;;  %v8581_v21 = vld [vmem:[#allocation3 + $0x410] sm:$0xff] }
 0x368   :  { %13378 = vst [vmem:[#allocation198_spill] sm:$0xff] %v8566_v33  ;;  %2339 = vmatpush.msrb.mxu1 %v8581_v21  ;;  %v8584_v33 = vld [vmem:[#allocation3 + $0x418] sm:$0xff] }
 0x369   :  { %13379 = vst [vmem:[#allocation205_spill] sm:$0xff] %v8569_v49  ;;  %2379 = vmatpush.msrb.mxu3 %v8584_v33  ;;  %v1794_v49 = vpop.f32.mrf.mxu1 }
 0x36a   :  { %13380 = vst [vmem:[#allocation206_spill] sm:$0xff] %v8572_v59  ;;  %v1814_v59 = vpop.f32.mrf.mxu2 }
 0x36b   :  { %13381 = vst [vmem:[#allocation199_spill] sm:$0xff] %v8575_v15  ;;  %v1795_v15 = vadd.f32 %v1794_v49, %v1774_v57  ;;  %v1835_v62 = vadd.f32 %v1834_v48, %v1814_v59 }
 0x36c   :  { %13382 = vst [vmem:[#allocation200_spill] sm:$0xff] %v8578_v27 }
 0x36d   :  { %13383 = vst [vmem:[#allocation209_spill] sm:$0xff] %v8581_v21  ;;  %v1837_v8 = vadd.f32 %v1795_v15, %v13386_v25  ;;  %v1838_v56 = vadd.f32 %v1835_v62, %v13388_v7  ;;  %v13390_v7 = vld [vmem:[#allocation51_spill] sm:$0xff] }
 0x36e   :  { %13384 = vst [vmem:[#allocation210_spill] sm:$0xff] %v8584_v33 }
 0x36f   :  { %v5293_v33 = vmul.f32 -1.442695, %v1837_v8 }
 0x371   :  { %v1876_v38 = vpop.f32.mrf.mxu1 }
 0x372   :  { %v1877_v22 = vadd.f32 %v1876_v38, %v1856_v30  ;;  %v1896_v27 = vpop.f32.mrf.mxu2  ;;  %v5294_v38 = vmul.f32 -1.442695, %v1838_v56 }
 0x373   :  { %v1917_v13 = vadd.f32 %v1916_v32, %v1896_v27 }
 0x374   :  { %v1919_v11 = vadd.f32 %v1877_v22, %v13385_v10  ;;  %v13389_v10 = vld [vmem:[#allocation50_spill] sm:$0xff]  ;;  %v1998_v22 = vpop.f32.mrf.mxu3 }
 0x375   :  { %v1920_v51 = vadd.f32 %v1917_v13, %v13387_v36 }
 0x376   :  { %v5295_v21 = vmul.f32 -1.442695, %v1919_v11 }
 0x377   :  { %v5296_v20 = vmul.f32 -1.442695, %v1920_v51 }
 0x378   :  { %5381 = vpow2.f32 %v5295_v21 }
 0x379   :  { %v1958_v54 = vpop.f32.mrf.mxu1  ;;  %5383 = vpow2.f32 %v5293_v33 }
 0x37a   :  { %v1959_v30 = vadd.f32 %v1958_v54, %v1938_v16  ;;  %5385 = vpow2.f32 %v5296_v20  ;;  %v1978_v25 = vpop.f32.mrf.mxu2 }
 0x37b   :  { %v1999_v11 = vadd.f32 %v1998_v22, %v1978_v25  ;;  %5387 = vpow2.f32 %v5294_v38 }
 0x37c   :  { %v2001_v32 = vadd.f32 %v1959_v30, %v13389_v10 }
 0x37d   :  { %v2002_v62 = vadd.f32 %v1999_v11, %v13390_v7 }
 0x37e   :  { %v5382_v57 = vpop.eup %5381  ;;  %v5297_v8 = vmul.f32 -1.442695, %v2001_v32 }
 0x37f   :  { %v5384_v48 = vpop.eup %5383  ;;  %v8592_v36 = vadd.f32 1.0, %v5382_v57  ;;  %v5298_v20 = vmul.f32 -1.442695, %v2002_v62 }
 0x380   :  { %v5386_v13 = vpop.eup %5385  ;;  %v2091_v21 = vadd.f32 1.0, %v5384_v48  ;;  %v2020_v7 = vpop.f32.mrf.mxu0 }
 0x381   :  { %5389 = vrcp.f32 %v8592_v36  ;;  %v5388_v16 = vpop.eup %5387  ;;  %v8596_v56 = vadd.f32 1.0, %v5386_v13  ;;  %v2142_v52 = vand.u32 2147483648, %v8592_v36  ;;  %vm2136_vm12 = vweird.f32 %v8592_v36 }
 0x382   :  { %5391 = vpow2.f32 %v5297_v8  ;;  %v8598_v54 = vadd.f32 1.0, %v5388_v16  ;;  %vm2098_vm14 = vweird.f32 %v2091_v21 }
 0x383   :  { %5393 = vrcp.f32 %v2091_v21  ;;  %v2143_v28 = vor.u32 1.1754944e-38, %v2142_v52  ;;  %v2157_v52 = vand.u32 2147483648, %v8596_v56  ;;  %vm2151_vm4 = vweird.f32 %v8596_v56 }
 0x384   :  { %5395 = vrcp.f32 %v8596_v56  ;;  %vm2113_vm1 = vweird.f32 %v8598_v54 }
 0x385   :  { %5397 = vpow2.f32 %v5298_v20 }
 0x386   :  { %5399 = vrcp.f32 %v8598_v54  ;;  %v2040_v62 = vpop.f32.mrf.mxu1 }
 0x387   :  { %v5390_v51 = vpop.eup %5389  ;;  %v2041_v20 = vadd.f32 %v2040_v62, %v2020_v7 }
 0x388   :  { %v5392_v33 = vpop.eup %5391  ;;  %v2132_v59 = vmul.f32 %v5390_v51, %v8592_v36  ;;  %vm2137_vm10 = vweird.f32 %v5390_v51 }
 0x389   :  { %v8601_v49 = vpop.eup %5393  ;;  %v8605_v15 = vadd.f32 1.0, %v5392_v33  ;;  %v2102_v33 = vand.u32 2147483647, %v2091_v21  ;;  %v2083_v29 = vadd.f32 %v2041_v20, %v13391_v53  ;;  %vm8632_vm13 = vmor %vm2136_vm12, %vm2137_vm10  ;;  %v2060_v20 = vpop.f32.mrf.mxu2 }
 0x38a   :  { %v8607_v27 = vpop.eup %5395  ;;  %v2094_v30 = vmul.f32 %v8601_v49, %v2091_v21  ;;  %v2133_v57 = vsub.f32 1.0, %v2132_v59  ;;  %vm2099_vm11 = vweird.f32 %v8601_v49 }
 0x38b   :  { %v5398_v38 = vpop.eup %5397  ;;  %5401 = vrcp.f32 %v8605_v15  ;;  %v2147_v22 = vmul.f32 %v8607_v27, %v8596_v56  ;;  %vm8638_vm15 = vcmp.eq.f32.partialorder %v2102_v33, 8.507059e+37  ;;  %vm8647_vm0 = vmor %vm2098_vm14, %vm2099_vm11  ;;  %vm2152_vm2 = vweird.f32 %v8607_v27 }
 0x38c   :  { %v8611_v10 = vpop.eup %5399  ;;  %v2095_v32 = vsub.f32 1.0, %v2094_v30  ;;  %v8615_v25 = vadd.f32 1.0, %v5398_v38  ;;  %v2134_v48 = vmul.f32 %v5390_v51, %v2133_v57  ;;  %v2104_v30 = vand.u32 2147483648, %v2091_v21  ;;  %vm8665_vm6 = vmor %vm2151_vm4, %vm2152_vm2 }
 0x38d   :  { %v2109_v11 = vmul.f32 %v8611_v10, %v8598_v54  ;;  %v2148_v13 = vsub.f32 1.0, %v2147_v22  ;;  %vm2114_vm5 = vweird.f32 %v8611_v10  ;;  %vm2174_vm11 = vweird.f32 %v8605_v15 }
 0x38e   :  { %5403 = vrcp.f32 %v8615_v25  ;;  %v2096_v16 = vmul.f32 %v8601_v49, %v2095_v32  ;;  %v2135_v38 = vadd.f32 %v5390_v51, %v2134_v48  ;;  %v2105_v62 = vor.u32 1.1754944e-38, %v2104_v30  ;;  %vm8680_vm7 = vmor %vm2113_vm1, %vm2114_vm5 }
 0x38f   :  { %v2110_v59 = vsub.f32 1.0, %v2109_v11  ;;  %v2149_v22 = vmul.f32 %v8607_v27, %v2148_v13  ;;  %v2140_v11 = vand.u32 2147483647, %v8592_v36  ;;  %5405 = vtanh.f32 %v2083_v29 }
 0x390   :  { %v2097_v32 = vadd.f32 %v8601_v49, %v2096_v16  ;;  %v2139_v13 = vsel %vm8632_vm13, %v5390_v51, %v2135_v38  ;;  %v2080_v16 = vpop.f32.mrf.mxu3  ;;  %v13398_v38 = vld [vmem:[#allocation53_spill] sm:$0xff]  ;;  %v2158_v29 = vor.u32 1.1754944e-38, %v2157_v52  ;;  %v2178_v52 = vand.u32 2147483647, %v8605_v15 }
 0x391   :  { %v8619_v8 = vpop.eup %5401  ;;  %v2111_v36 = vmul.f32 %v8611_v10, %v2110_v59  ;;  %v2081_v21 = vadd.f32 %v2080_v16, %v2060_v20  ;;  %vm2141_vm3 = vcmp.eq.f32.partialorder %v2140_v11, 8.507059e+37  ;;  %v2150_v33 = vadd.f32 %v8607_v27, %v2149_v22 }
 0x392   :  { %v2170_v57 = vmul.f32 %v8619_v8, %v8605_v15  ;;  %v2101_v51 = vsel %vm8647_vm0, %v8601_v49, %v2097_v32  ;;  %v2144_v30 = vsel %vm2141_vm3, %v2143_v28, %v2139_v13  ;;  %v2155_v20 = vand.u32 2147483647, %v8596_v56 }
 0x393   :  { %v2112_v7 = vadd.f32 %v8611_v10, %v2111_v36  ;;  %v2106_v28 = vsel %vm8638_vm15, %v2105_v62, %v2101_v51  ;;  %v2119_v11 = vand.u32 2147483648, %v8598_v54  ;;  %v2201_v13 = vmul.f32 %v2144_v30, %v7954_v42 }
 0x394   :  { %v8636_v48 = vpop.eup %5403  ;;  %v2171_v63 = vsub.f32 1.0, %v2170_v57  ;;  %v2084_v57 = vadd.f32 %v2081_v21, %v13398_v38  ;;  %v2117_v36 = vand.u32 2147483647, %v8598_v54  ;;  %v2154_v56 = vsel %vm8665_vm6, %v8607_v27, %v2150_v33 }
 0x395   :  { %v2185_v59 = vmul.f32 %v8636_v48, %v8615_v25  ;;  %v5406_v49 = vpop.eup %5405  ;;  %v2116_v42 = vsel %vm8680_vm7, %v8611_v10, %v2112_v7  ;;  %vm2156_vm8 = vcmp.eq.f32.partialorder %v2155_v20, 8.507059e+37  ;;  %vm2175_vm9 = vweird.f32 %v8619_v8 }
 0x396   :  { %v2172_v22 = vmul.f32 %v8619_v8, %v2171_v63  ;;  %5407 = vtanh.f32 %v2084_v57  ;;  %v2203_v16 = vmul.f32 %v5406_v49, %v2106_v28  ;;  %v2120_v27 = vor.u32 1.1754944e-38, %v2119_v11  ;;  %vm2176_vm12 = vmor %vm2174_vm11, %vm2175_vm9  ;;  %v13427_v63 = vld [vmem:[#allocation110_spill] sm:$0xff] }
 0x397   :  { %v2186_v21 = vsub.f32 1.0, %v2185_v59  ;;  %v2159_v51 = vsel %vm2156_vm8, %v2158_v29, %v2154_v56  ;;  %v2180_v33 = vand.u32 2147483648, %v8605_v15  ;;  %vm2118_vm10 = vcmp.eq.f32.partialorder %v2117_v36, 8.507059e+37  ;;  %v13425_v36 = vld [vmem:[#allocation103_spill] sm:$0xff]  ;;  %v8812_v29 = vld [vmem:[#allocation3 + $0x378] sm:$0xff] }
 0x398   :  { %v8684_v53 = vadd.f32 %v2203_v16, %v2201_v13  ;;  %v2173_v62 = vadd.f32 %v8619_v8, %v2172_v22  ;;  %v2121_v10 = vsel %vm2118_vm10, %v2120_v27, %v2116_v42  ;;  %v2202_v30 = vmul.f32 %v2159_v51, %v7973_v12  ;;  %v8809_v56 = vld [vmem:[#allocation3 + $0x370] sm:$0xff]  ;;  %v8823_v27 = vld [vmem:[#allocation3 + $0x338] sm:$0xff] }
 0x399   :  { %v2187_v59 = vmul.f32 %v8636_v48, %v2186_v21  ;;  %v2181_v7 = vor.u32 1.1754944e-38, %v2180_v33  ;;  %vm2179_vm13 = vcmp.eq.f32.partialorder %v2178_v52, 8.507059e+37  ;;  %vm2190_vm14 = vweird.f32 %v8636_v48  ;;  %v13426_v21 = vld [vmem:[#allocation105_spill] sm:$0xff]  ;;  %v8819_v42 = vld [vmem:[#allocation3 + $0x330] sm:$0xff] }
 0x39a   :  { %5409 = vtanh.f32 %v8684_v53  ;;  %v2177_v57 = vsel %vm2176_vm12, %v8619_v8, %v2173_v62  ;;  %v2195_v15 = vand.u32 2147483648, %v8615_v25  ;;  %vm2189_vm15 = vweird.f32 %v8615_v25  ;;  %v13428_v62 = vld [vmem:[#allocation112_spill] sm:$0xff] }
 0x39b   :  { %v2188_v49 = vadd.f32 %v8636_v48, %v2187_v59  ;;  %v2182_v22 = vsel %vm2179_vm13, %v2181_v7, %v2177_v57  ;;  %v2193_v12 = vand.u32 2147483647, %v8615_v25  ;;  %vm2191_vm0 = vmor %vm2189_vm15, %vm2190_vm14  ;;  %v8826_v51 = vld [vmem:[#allocation3 + $0x7f8] sm:$0xff]  ;;  %v8829_v33 = vld [vmem:[#allocation3 + $0x2f0] sm:$0xff] }
 0x39c   :  { %v5408_v54 = vpop.eup %5407  ;;  %v2196_v11 = vor.u32 1.1754944e-38, %v2195_v15  ;;  %v8835_v52 = vld [vmem:[#allocation3 + $0x2f8] sm:$0xff]  ;;  %v8853_v7 = vld [vmem:[#allocation3 + $0x270] sm:$0xff] }
 0x39d   :  { %v2204_v38 = vmul.f32 %v5408_v54, %v2121_v10  ;;  %v2192_v8 = vsel %vm2191_vm0, %v8636_v48, %v2188_v49  ;;  %vm2194_vm1 = vcmp.eq.f32.partialorder %v2193_v12, 8.507059e+37  ;;  %v13424_v48 = vld [vmem:[#allocation108_spill] sm:$0xff] }
 0x39e   :  { %v2197_v16 = vsel %vm2194_vm1, %v2196_v11, %v2192_v8  ;;  %v8832_v54 = vld [vmem:[#allocation3 + $0x7b0] sm:$0xff]  ;;  %v8838_v59 = vld [vmem:[#allocation3 + $0x7b8] sm:$0xff] }
 0x39f   :  { %v8698_v20 = vadd.f32 %v2204_v38, %v2202_v30  ;;  %v8841_v10 = vld [vmem:[#allocation3 + $0x2b0] sm:$0xff]  ;;  %v8847_v38 = vld [vmem:[#allocation3 + $0x2b8] sm:$0xff] }
 0x3a0   :  { %v5410_v32 = vpop.eup %5409  ;;  %v8844_v30 = vld [vmem:[#allocation3 + $0x770] sm:$0xff]  ;;  %v8850_v57 = vld [vmem:[#allocation3 + $0x778] sm:$0xff] }
 0x3a1   :  { %5411 = vtanh.f32 %v8698_v20  ;;  %v8706_v28 = vmul.f32 %v5410_v32, %v2182_v22  ;;  %v8856_v49 = vld [vmem:[#allocation3 + $0x730] sm:$0xff]  ;;  %v8859_v32 = vld [vmem:[#allocation3 + $0x278] sm:$0xff] }
 0x3a2   :  { %v8862_v22 = vld [vmem:[#allocation3 + $0x738] sm:$0xff]  ;;  %v8865_v15 = vld [vmem:[#allocation3 + $0x230] sm:$0xff] }
 0x3a3   :  { %2238 = vmatmul.f32.vlgmr.msra.gmra.mxu0 %v8706_v28  ;;  %2278 = vmatmul.f32.vlgmr.msra.gmra.mxu2 %v8706_v28  ;;  %v8868_v12 = vld [vmem:[#allocation3 + $0x6f0] sm:$0xff]  ;;  %v8871_v8 = vld [vmem:[#allocation3 + $0x238] sm:$0xff] }
 0x3a4   :  { %2386 = vmatpush.msra.mxu0 %v7989_v41  ;;  %2426 = vmatpush.msra.mxu2 %v7992_v47  ;;  %v13403_v41 = vld [vmem:[#allocation86_spill] sm:$0xff]  ;;  %v13404_v47 = vld [vmem:[#allocation88_spill] sm:$0xff] }
 0x3a5   :  { %v8874_v11 = vld [vmem:[#allocation3 + $0x6f8] sm:$0xff] }
 0x3a6   :  { %2387 = vmatpush.msra.mxu0 %v7995_v39  ;;  %2427 = vmatpush.msra.mxu2 %v7998_v35  ;;  %v13405_v39 = vld [vmem:[#allocation84_spill] sm:$0xff]  ;;  %v13406_v35 = vld [vmem:[#allocation85_spill] sm:$0xff] }
 0x3a7   :  { %v5412_v13 = vpop.eup %5411 }
 0x3a8   :  { %v8715_v25 = vmul.f32 %v5412_v13, %v2197_v16  ;;  %2388 = vmatpush.msra.mxu0 %v8003_v50  ;;  %2428 = vmatpush.msra.mxu2 %v8006_v26  ;;  %v13407_v50 = vld [vmem:[#allocation90_spill] sm:$0xff]  ;;  %v13408_v26 = vld [vmem:[#allocation92_spill] sm:$0xff] }
 0x3a9   :  { %v8877_v13 = vld [vmem:[#allocation3 + $0x1f0] sm:$0xff] }
 0x3aa   :  { %2258 = vmatmul.f32.vlgmr.msra.gmra.mxu1 %v8715_v25  ;;  %2298 = vmatmul.f32.vlgmr.msra.gmra.mxu3 %v8715_v25  ;;  %13429 = vst [vmem:[#allocation203_spill] sm:$0xff] %v8877_v13  ;;  %v8880_v16 = vld [vmem:[#allocation3 + $0x6b0] sm:$0xff] }
 0x3ab   :  { %2389 = vmatpush.msra.mxu0 %v8011_v23  ;;  %2406 = vmatpush.msra.mxu1 %v8014_v61  ;;  %v13409_v23 = vld [vmem:[#allocation87_spill] sm:$0xff]  ;;  %v13410_v61 = vld [vmem:[#allocation89_spill] sm:$0xff]  ;;  %13430 = vst [vmem:[#allocation204_spill] sm:$0xff] %v8880_v16 }
 0x3ac   :  { %2429 = vmatpush.msra.mxu2 %v8017_v31  ;;  %2446 = vmatpush.msra.mxu3 %v8020_v55  ;;  %v13411_v31 = vld [vmem:[#allocation94_spill] sm:$0xff]  ;;  %v13412_v55 = vld [vmem:[#allocation96_spill] sm:$0xff] }
 0x3ad   :  { %2320 = vmatmul.f32.vlgmr.msrb.gmra.mxu0 %v8706_v28  ;;  %2360 = vmatmul.f32.vlgmr.msrb.gmra.mxu2 %v8706_v28 }
 0x3ae   :  { %2390 = vmatpush.msra.mxu0 %v8025_v17  ;;  %2407 = vmatpush.msra.mxu1 %v8028_v34  ;;  %v13413_v17 = vld [vmem:[#allocation91_spill] sm:$0xff]  ;;  %v13414_v34 = vld [vmem:[#allocation93_spill] sm:$0xff] }
 0x3af   :  { %2430 = vmatpush.msra.mxu2 %v8031_v44  ;;  %2447 = vmatpush.msra.mxu3 %v8034_v58  ;;  %v8763_v44 = vld [vmem:[#allocation3 + $0xe8] sm:$0xff] }
 0x3b0   :  { %2391 = vmatpush.msra.mxu0 %v8037_v4  ;;  %2408 = vmatpush.msra.mxu1 %v8040_v24  ;;  %v13415_v58 = vld [vmem:[#allocation98_spill] sm:$0xff]  ;;  %v13416_v24 = vld [vmem:[#allocation100_spill] sm:$0xff] }
 0x3b1   :  { %2431 = vmatpush.msra.mxu2 %v8043_v2  ;;  %2448 = vmatpush.msra.mxu3 %v8046_v14  ;;  %v8767_v4 = vld [vmem:[#allocation3 + $0xa0] sm:$0xff]  ;;  %v8771_v2 = vld [vmem:[#allocation3 + $0xa8] sm:$0xff] }
 0x3b2   :  { %2392 = vmatpush.msra.mxu0 %v8049_v43  ;;  %2409 = vmatpush.msra.mxu1 %v8052_v3  ;;  %v13417_v14 = vld [vmem:[#allocation95_spill] sm:$0xff]  ;;  %v8775_v43 = vld [vmem:[#allocation3 + $0x60] sm:$0xff] }
 0x3b3   :  { %2432 = vmatpush.msra.mxu2 %v8055_v60  ;;  %2449 = vmatpush.msra.mxu3 %v8058_v19  ;;  %v13418_v3 = vld [vmem:[#allocation97_spill] sm:$0xff]  ;;  %v8779_v60 = vld [vmem:[#allocation3 + $0x68] sm:$0xff] }
 0x3b4   :  { %2340 = vmatmul.f32.vlgmr.msrb.gmra.mxu1 %v8715_v25  ;;  %2380 = vmatmul.f32.vlgmr.msrb.gmra.mxu3 %v8715_v25  ;;  %v13419_v19 = vld [vmem:[#allocation102_spill] sm:$0xff] }
 0x3b5   :  { %2393 = vmatpush.msra.mxu0 %v8063_v45  ;;  %2410 = vmatpush.msra.mxu1 %v8066_v18  ;;  %v8783_v45 = vld [vmem:[#allocation3 + $0x20] sm:$0xff]  ;;  %v13420_v18 = vld [vmem:[#allocation104_spill] sm:$0xff] }
 0x3b6   :  { %2433 = vmatpush.msra.mxu2 %v8069_v6  ;;  %2450 = vmatpush.msra.mxu3 %v8072_v9  ;;  %v8787_v6 = vld [vmem:[#allocation3 + $0x28] sm:$0xff] }
 0x3b7   :  { %2394 = vmatpush.msra.mxu0 %v8075_v0  ;;  %2411 = vmatpush.msra.mxu1 %v8078_v37  ;;  %v13421_v9 = vld [vmem:[#allocation99_spill] sm:$0xff]  ;;  %v8796_v37 = vld [vmem:[#allocation3 + $0x3f8] sm:$0xff] }
 0x3b8   :  { %2434 = vmatpush.msra.mxu2 %v8081_v5  ;;  %2451 = vmatpush.msra.mxu3 %v8084_v40  ;;  %v8793_v0 = vld [vmem:[#allocation3 + $0x3f0] sm:$0xff]  ;;  %v13422_v5 = vld [vmem:[#allocation101_spill] sm:$0xff]  ;;  %v13423_v40 = vld [vmem:[#allocation106_spill] sm:$0xff] }
 0x3b9   :  { %2395 = vmatpush.msra.mxu0 %v8087_v1  ;;  %2412 = vmatpush.msra.mxu1 %v8090_v46  ;;  %v8801_v1 = vld [vmem:[#allocation3 + $0x3b0] sm:$0xff]  ;;  %v8804_v46 = vld [vmem:[#allocation3 + $0x3b8] sm:$0xff] }
 0x3ba   :  { %2435 = vmatpush.msra.mxu2 %v13403_v41  ;;  %2452 = vmatpush.msra.mxu3 %v13404_v47  ;;  %v8883_v41 = vld [vmem:[#allocation3 + $0x1f8] sm:$0xff] }
 0x3bb   :  { %2396 = vmatpush.msra.mxu0 %v13405_v39  ;;  %2413 = vmatpush.msra.mxu1 %v13406_v35  ;;  %13431 = vst [vmem:[#allocation213_spill] sm:$0xff] %v8883_v41  ;;  %v8886_v47 = vld [vmem:[#allocation3 + $0x6b8] sm:$0xff]  ;;  %v8889_v39 = vld [vmem:[#allocation3 + $0x1b0] sm:$0xff] }
 0x3bc   :  { %2436 = vmatpush.msra.mxu2 %v13407_v50  ;;  %2453 = vmatpush.msra.mxu3 %v13408_v26  ;;  %13432 = vst [vmem:[#allocation214_spill] sm:$0xff] %v8886_v47  ;;  %v8892_v35 = vld [vmem:[#allocation3 + $0x670] sm:$0xff]  ;;  %v8895_v50 = vld [vmem:[#allocation3 + $0x1b8] sm:$0xff] }
 0x3bd   :  { %2397 = vmatpush.msra.mxu0 %v13409_v23  ;;  %2414 = vmatpush.msra.mxu1 %v13410_v61  ;;  %13433 = vst [vmem:[#allocation207_spill] sm:$0xff] %v8889_v39  ;;  %v8898_v26 = vld [vmem:[#allocation3 + $0x678] sm:$0xff]  ;;  %v8901_v23 = vld [vmem:[#allocation3 + $0x170] sm:$0xff] }
 0x3be   :  { %2437 = vmatpush.msra.mxu2 %v13411_v31  ;;  %2454 = vmatpush.msra.mxu3 %v13412_v55  ;;  %13434 = vst [vmem:[#allocation208_spill] sm:$0xff] %v8892_v35  ;;  %v8904_v61 = vld [vmem:[#allocation3 + $0x630] sm:$0xff]  ;;  %v8907_v31 = vld [vmem:[#allocation3 + $0x178] sm:$0xff] }
 0x3bf   :  { %2398 = vmatpush.msra.mxu0 %v13413_v17  ;;  %2415 = vmatpush.msra.mxu1 %v13414_v34  ;;  %13435 = vst [vmem:[#allocation217_spill] sm:$0xff] %v8895_v50  ;;  %v8910_v55 = vld [vmem:[#allocation3 + $0x638] sm:$0xff]  ;;  %v8913_v17 = vld [vmem:[#allocation3 + $0x130] sm:$0xff] }
 0x3c0   :  { %2438 = vmatpush.msra.mxu2 %v8763_v44  ;;  %2455 = vmatpush.msra.mxu3 %v13415_v58  ;;  %13436 = vst [vmem:[#allocation211_spill] sm:$0xff] %v8898_v26  ;;  %v8916_v34 = vld [vmem:[#allocation3 + $0x5f0] sm:$0xff]  ;;  %v8919_v58 = vld [vmem:[#allocation3 + $0x138] sm:$0xff] }
 0x3c1   :  { %2399 = vmatpush.msra.mxu0 %v8767_v4  ;;  %2416 = vmatpush.msra.mxu1 %v13416_v24  ;;  %13437 = vst [vmem:[#allocation212_spill] sm:$0xff] %v8901_v23  ;;  %v8922_v24 = vld [vmem:[#allocation3 + $0x5f8] sm:$0xff] }
 0x3c2   :  { %2439 = vmatpush.msra.mxu2 %v8771_v2  ;;  %2456 = vmatpush.msra.mxu3 %v13417_v14  ;;  %13438 = vst [vmem:[#allocation215_spill] sm:$0xff] %v8904_v61  ;;  %v8925_v14 = vld [vmem:[#allocation3 + $0xf0] sm:$0xff] }
 0x3c3   :  { %2400 = vmatpush.msra.mxu0 %v8775_v43  ;;  %2417 = vmatpush.msra.mxu1 %v13418_v3  ;;  %13439 = vst [vmem:[#allocation216_spill] sm:$0xff] %v8907_v31  ;;  %v8928_v3 = vld [vmem:[#allocation3 + $0x5b0] sm:$0xff] }
 0x3c4   :  { %2440 = vmatpush.msra.mxu2 %v8779_v60  ;;  %2457 = vmatpush.msra.mxu3 %v13419_v19  ;;  %13440 = vst [vmem:[#allocation20_spill] sm:$0xff] %v8910_v55  ;;  %v8931_v19 = vld [vmem:[#allocation3 + $0xf8] sm:$0xff] }
 0x3c5   :  { %2401 = vmatpush.msra.mxu0 %v8783_v45  ;;  %2418 = vmatpush.msra.mxu1 %v13420_v18  ;;  %13441 = vst [vmem:[#allocation18_spill] sm:$0xff] %v8913_v17  ;;  %v8934_v18 = vld [vmem:[#allocation3 + $0x5b8] sm:$0xff] }
 0x3c6   :  { %2441 = vmatpush.msra.mxu2 %v8787_v6  ;;  %2458 = vmatpush.msra.mxu3 %v13421_v9  ;;  %13442 = vst [vmem:[#allocation21_spill] sm:$0xff] %v8916_v34  ;;  %v8937_v9 = vld [vmem:[#allocation3 + $0xb0] sm:$0xff] }
 0x3c7   :  { %2402 = vmatmul.f32.vlgmr.msra.gmra.mxu0 %v8706_v28  ;;  %2442 = vmatmul.f32.vlgmr.msra.gmra.mxu2 %v8706_v28  ;;  %13443 = vst [vmem:[#allocation19_spill] sm:$0xff] %v8919_v58 }
 0x3c8   :  { %2468 = vmatpush.msrb.mxu0 %v8793_v0  ;;  %2508 = vmatpush.msrb.mxu2 %v8796_v37  ;;  %13444 = vst [vmem:[#allocation50_spill] sm:$0xff] %v8922_v24 }
 0x3c9   :  { %2419 = vmatpush.msra.mxu1 %v13422_v5  ;;  %2459 = vmatpush.msra.mxu3 %v13423_v40  ;;  %13445 = vst [vmem:[#allocation51_spill] sm:$0xff] %v8925_v14  ;;  %v8940_v5 = vld [vmem:[#allocation3 + $0x570] sm:$0xff]  ;;  %v8943_v40 = vld [vmem:[#allocation3 + $0xb8] sm:$0xff] }
 0x3ca   :  { %2469 = vmatpush.msrb.mxu0 %v8801_v1  ;;  %2509 = vmatpush.msrb.mxu2 %v8804_v46  ;;  %13446 = vst [vmem:[#allocation52_spill] sm:$0xff] %v8928_v3 }
 0x3cb   :  { %2420 = vmatpush.msra.mxu1 %v13424_v48  ;;  %2460 = vmatpush.msra.mxu3 %v13425_v36  ;;  %13447 = vst [vmem:[#allocation53_spill] sm:$0xff] %v8931_v19  ;;  %v8946_v48 = vld [vmem:[#allocation3 + $0x578] sm:$0xff]  ;;  %v8949_v36 = vld [vmem:[#allocation3 + $0x70] sm:$0xff] }
 0x3cc   :  { %2470 = vmatpush.msrb.mxu0 %v8809_v56  ;;  %2510 = vmatpush.msrb.mxu2 %v8812_v29  ;;  %13448 = vst [vmem:[#allocation86_spill] sm:$0xff] %v8934_v18 }
 0x3cd   :  { %2421 = vmatpush.msra.mxu1 %v13426_v21  ;;  %2461 = vmatpush.msra.mxu3 %v13427_v63  ;;  %13449 = vst [vmem:[#allocation88_spill] sm:$0xff] %v8937_v9  ;;  %v8952_v21 = vld [vmem:[#allocation3 + $0x530] sm:$0xff]  ;;  %v8955_v63 = vld [vmem:[#allocation3 + $0x78] sm:$0xff] }
 0x3ce   :  { %2422 = vmatmul.f32.vlgmr.msra.gmra.mxu1 %v8715_v25  ;;  %2462 = vmatmul.f32.vlgmr.msra.gmra.mxu3 %v8715_v25  ;;  %13450 = vst [vmem:[#allocation84_spill] sm:$0xff] %v8940_v5 }
 0x3cf   :  { %2471 = vmatpush.msrb.mxu0 %v8819_v42  ;;  %2488 = vmatpush.msrb.mxu1 %v13428_v62  ;;  %13451 = vst [vmem:[#allocation85_spill] sm:$0xff] %v8943_v40  ;;  %v8958_v62 = vld [vmem:[#allocation3 + $0x538] sm:$0xff] }
 0x3d0   :  { %2511 = vmatpush.msrb.mxu2 %v8823_v27  ;;  %2528 = vmatpush.msrb.mxu3 %v8826_v51  ;;  %13452 = vst [vmem:[#allocation90_spill] sm:$0xff] %v8946_v48 }
 0x3d1   :  { %2472 = vmatpush.msrb.mxu0 %v8829_v33  ;;  %2489 = vmatpush.msrb.mxu1 %v8832_v54  ;;  %13453 = vst [vmem:[#allocation92_spill] sm:$0xff] %v8949_v36 }
 0x3d2   :  { %2512 = vmatpush.msrb.mxu2 %v8835_v52  ;;  %2529 = vmatpush.msrb.mxu3 %v8838_v59  ;;  %13454 = vst [vmem:[#allocation87_spill] sm:$0xff] %v8952_v21 }
 0x3d3   :  { %2473 = vmatpush.msrb.mxu0 %v8841_v10  ;;  %2490 = vmatpush.msrb.mxu1 %v8844_v30  ;;  %13455 = vst [vmem:[#allocation89_spill] sm:$0xff] %v8955_v63 }
 0x3d4   :  { %2513 = vmatpush.msrb.mxu2 %v8847_v38  ;;  %2530 = vmatpush.msrb.mxu3 %v8850_v57  ;;  %13456 = vst [vmem:[#allocation94_spill] sm:$0xff] %v8958_v62 }
 0x3d5   :  { %2474 = vmatpush.msrb.mxu0 %v8853_v7  ;;  %2491 = vmatpush.msrb.mxu1 %v8856_v49 }
 0x3d6   :  { %2514 = vmatpush.msrb.mxu2 %v8859_v32  ;;  %2531 = vmatpush.msrb.mxu3 %v8862_v22 }
 0x3d7   :  { %2475 = vmatpush.msrb.mxu0 %v8865_v15  ;;  %2492 = vmatpush.msrb.mxu1 %v8868_v12 }
 0x3d8   :  { %2515 = vmatpush.msrb.mxu2 %v8871_v8  ;;  %2532 = vmatpush.msrb.mxu3 %v8874_v11 }
 0x3d9   :  { %2476 = vmatpush.msrb.mxu0 %v8877_v13  ;;  %2493 = vmatpush.msrb.mxu1 %v8880_v16 }
 0x3da   :  { %2516 = vmatpush.msrb.mxu2 %v8883_v41  ;;  %2533 = vmatpush.msrb.mxu3 %v8886_v47  ;;  %v13601_v47 = vld [vmem:[#allocation56_spill] sm:$0xff] }
 0x3db   :  { %2477 = vmatpush.msrb.mxu0 %v8889_v39  ;;  %2494 = vmatpush.msrb.mxu1 %v8892_v35 }
 0x3dc   :  { %2517 = vmatpush.msrb.mxu2 %v8895_v50  ;;  %2534 = vmatpush.msrb.mxu3 %v8898_v26 }
 0x3dd   :  { %2478 = vmatpush.msrb.mxu0 %v8901_v23  ;;  %2495 = vmatpush.msrb.mxu1 %v8904_v61  ;;  %v13598_v23 = vld [vmem:[#allocation23_spill] sm:$0xff] }
 0x3de   :  { %2518 = vmatpush.msrb.mxu2 %v8907_v31  ;;  %2535 = vmatpush.msrb.mxu3 %v8910_v55 }
 0x3df   :  { %2479 = vmatpush.msrb.mxu0 %v8913_v17  ;;  %2496 = vmatpush.msrb.mxu1 %v8916_v34 }
 0x3e0   :  { %2519 = vmatpush.msrb.mxu2 %v8919_v58  ;;  %2536 = vmatpush.msrb.mxu3 %v8922_v24 }
 0x3e1   :  { %2480 = vmatpush.msrb.mxu0 %v8925_v14  ;;  %2497 = vmatpush.msrb.mxu1 %v8928_v3 }
 0x3e2   :  { %2520 = vmatpush.msrb.mxu2 %v8931_v19  ;;  %2537 = vmatpush.msrb.mxu3 %v8934_v18  ;;  %v13504_v18 = vld [vmem:[#allocation126_spill] sm:$0xff] }
 0x3e3   :  { %2481 = vmatpush.msrb.mxu0 %v8937_v9  ;;  %2498 = vmatpush.msrb.mxu1 %v8940_v5  ;;  %v13498_v5 = vld [vmem:[#allocation115_spill] sm:$0xff] }
 0x3e4   :  { %2521 = vmatpush.msrb.mxu2 %v8943_v40  ;;  %2538 = vmatpush.msrb.mxu3 %v8946_v48  ;;  %v8961_v40 = vld [vmem:[#allocation3 + $0x30] sm:$0xff] }
 0x3e5   :  { %2482 = vmatpush.msrb.mxu0 %v8949_v36  ;;  %2499 = vmatpush.msrb.mxu1 %v8952_v21  ;;  %13457 = vst [vmem:[#allocation96_spill] sm:$0xff] %v8961_v40  ;;  %v8964_v48 = vld [vmem:[#allocation3 + $0x4f0] sm:$0xff]  ;;  %v8967_v36 = vld [vmem:[#allocation3 + $0x38] sm:$0xff] }
 0x3e6   :  { %2522 = vmatpush.msrb.mxu2 %v8955_v63  ;;  %2539 = vmatpush.msrb.mxu3 %v8958_v62  ;;  %13458 = vst [vmem:[#allocation91_spill] sm:$0xff] %v8964_v48  ;;  %v8970_v21 = vld [vmem:[#allocation3 + $0x4f8] sm:$0xff]  ;;  %v8975_v62 = vld [vmem:[#allocation3 + $0x4b0] sm:$0xff]  ;;  %v9055_v63 = vld [vmem:[#allocation3 + $0x6c0] sm:$0xff] }
 0x3e7   :  { %2483 = vmatpush.msrb.mxu0 %v8961_v40  ;;  %2500 = vmatpush.msrb.mxu1 %v8964_v48  ;;  %13459 = vst [vmem:[#allocation93_spill] sm:$0xff] %v8967_v36  ;;  %v8978_v40 = vld [vmem:[#allocation3 + $0x4b8] sm:$0xff]  ;;  %v8981_v48 = vld [vmem:[#allocation3 + $0x3c0] sm:$0xff]  ;;  %v13502_v9 = vld [vmem:[#allocation119_spill] sm:$0xff] }
 0x3e8   :  { %2523 = vmatpush.msrb.mxu2 %v8967_v36  ;;  %13460 = vst [vmem:[#allocation98_spill] sm:$0xff] %v8970_v21  ;;  %2540 = vmatpush.msrb.mxu3 %v8970_v21  ;;  %v8984_v36 = vld [vmem:[#allocation3 + $0x3c8] sm:$0xff]  ;;  %v8987_v21 = vld [vmem:[#allocation3 + $0x470] sm:$0xff] }
 0x3e9   :  { %2484 = vmatmul.f32.vlgmr.msrb.gmra.mxu0 %v8706_v28  ;;  %2524 = vmatmul.f32.vlgmr.msrb.gmra.mxu2 %v8706_v28  ;;  %13461 = vst [vmem:[#allocation100_spill] sm:$0xff] %v8975_v62  ;;  %v8990_v28 = vld [vmem:[#allocation3 + $0x478] sm:$0xff] }
 0x3ea   :  { %2501 = vmatpush.msrb.mxu1 %v8975_v62  ;;  %13462 = vst [vmem:[#allocation95_spill] sm:$0xff] %v8978_v40  ;;  %2541 = vmatpush.msrb.mxu3 %v8978_v40  ;;  %v8993_v62 = vld [vmem:[#allocation3 + $0x380] sm:$0xff]  ;;  %v8996_v40 = vld [vmem:[#allocation3 + $0x388] sm:$0xff] }
 0x3eb   :  { %13463 = vst [vmem:[#allocation97_spill] sm:$0xff] %v8981_v48  ;;  %2687 = vmatpush.msra.mxu0 %v8981_v48  ;;  %2727 = vmatpush.msra.mxu2 %v8984_v36  ;;  %v8999_v48 = vld [vmem:[#allocation3 + $0x430] sm:$0xff] }
 0x3ec   :  { %13464 = vst [vmem:[#allocation102_spill] sm:$0xff] %v8984_v36  ;;  %2502 = vmatpush.msrb.mxu1 %v8987_v21  ;;  %2542 = vmatpush.msrb.mxu3 %v8990_v28  ;;  %v9002_v36 = vld [vmem:[#allocation3 + $0x438] sm:$0xff] }
 0x3ed   :  { %13465 = vst [vmem:[#allocation104_spill] sm:$0xff] %v8987_v21  ;;  %2688 = vmatpush.msra.mxu0 %v8993_v62  ;;  %2728 = vmatpush.msra.mxu2 %v8996_v40  ;;  %v9047_v21 = vld [vmem:[#allocation3 + $0x700] sm:$0xff] }
 0x3ee   :  { %13466 = vst [vmem:[#allocation99_spill] sm:$0xff] %v8990_v28  ;;  %2503 = vmatpush.msrb.mxu1 %v8999_v48  ;;  %2543 = vmatpush.msrb.mxu3 %v9002_v36  ;;  %v9007_v28 = vld [vmem:[#allocation3 + $0x340] sm:$0xff] }
 0x3ef   :  { %13467 = vst [vmem:[#allocation101_spill] sm:$0xff] %v8993_v62  ;;  %2504 = vmatmul.f32.vlgmr.msrb.gmra.mxu1 %v8715_v25  ;;  %2544 = vmatmul.f32.vlgmr.msrb.gmra.mxu3 %v8715_v25  ;;  %v9010_v62 = vld [vmem:[#allocation3 + $0x348] sm:$0xff] }
 0x3f0   :  { %13468 = vst [vmem:[#allocation106_spill] sm:$0xff] %v8996_v40  ;;  %2689 = vmatpush.msra.mxu0 %v9007_v28  ;;  %2729 = vmatpush.msra.mxu2 %v9010_v62  ;;  %v9013_v40 = vld [vmem:[#allocation3 + $0x7c0] sm:$0xff]  ;;  %v9022_v25 = vld [vmem:[#allocation3 + $0x308] sm:$0xff] }
 0x3f1   :  { %13469 = vst [vmem:[#allocation108_spill] sm:$0xff] %v8999_v48  ;;  %2707 = vmatpush.msra.mxu1 %v9013_v40  ;;  %v9016_v48 = vld [vmem:[#allocation3 + $0x7c8] sm:$0xff] }
 0x3f2   :  { %13470 = vst [vmem:[#allocation103_spill] sm:$0xff] %v9002_v36  ;;  %2747 = vmatpush.msra.mxu3 %v9016_v48  ;;  %v9019_v36 = vld [vmem:[#allocation3 + $0x300] sm:$0xff]  ;;  %2730 = vmatpush.msra.mxu2 %v9022_v25 }
 0x3f3   :  { %13471 = vst [vmem:[#allocation105_spill] sm:$0xff] %v9007_v28  ;;  %2690 = vmatpush.msra.mxu0 %v9019_v36  ;;  %v9025_v28 = vld [vmem:[#allocation3 + $0x780] sm:$0xff] }
 0x3f4   :  { %13472 = vst [vmem:[#allocation110_spill] sm:$0xff] %v9010_v62  ;;  %2708 = vmatpush.msra.mxu1 %v9025_v28  ;;  %v9028_v62 = vld [vmem:[#allocation3 + $0x788] sm:$0xff] }
 0x3f5   :  { %13473 = vst [vmem:[#allocation112_spill] sm:$0xff] %v9013_v40  ;;  %2748 = vmatpush.msra.mxu3 %v9028_v62  ;;  %v9031_v40 = vld [vmem:[#allocation3 + $0x2c0] sm:$0xff] }
 0x3f6   :  { %13474 = vst [vmem:[#allocation218_spill] sm:$0xff] %v9016_v48  ;;  %2691 = vmatpush.msra.mxu0 %v9031_v40  ;;  %v9034_v48 = vld [vmem:[#allocation3 + $0x2c8] sm:$0xff] }
 0x3f7   :  { %13475 = vst [vmem:[#allocation219_spill] sm:$0xff] %v9019_v36  ;;  %2731 = vmatpush.msra.mxu2 %v9034_v48  ;;  %v9037_v36 = vld [vmem:[#allocation3 + $0x740] sm:$0xff] }
 0x3f8   :  { %13476 = vst [vmem:[#allocation220_spill] sm:$0xff] %v9022_v25  ;;  %2709 = vmatpush.msra.mxu1 %v9037_v36  ;;  %v9040_v25 = vld [vmem:[#allocation3 + $0x748] sm:$0xff] }
 0x3f9   :  { %13477 = vst [vmem:[#allocation221_spill] sm:$0xff] %v9025_v28  ;;  %2749 = vmatpush.msra.mxu3 %v9040_v25  ;;  %v9043_v28 = vld [vmem:[#allocation3 + $0x280] sm:$0xff] }
 0x3fa   :  { %13478 = vst [vmem:[#allocation222_spill] sm:$0xff] %v9028_v62  ;;  %2692 = vmatpush.msra.mxu0 %v9043_v28  ;;  %v13484_v62 = vld [vmem:[#allocation107_spill] sm:$0xff]  ;;  %2710 = vmatpush.msra.mxu1 %v9047_v21 }
 0x3fb   :  { %13479 = vst [vmem:[#allocation223_spill] sm:$0xff] %v9031_v40  ;;  %2732 = vmatpush.msra.mxu2 %v13484_v62  ;;  %v9050_v40 = vld [vmem:[#allocation3 + $0x708] sm:$0xff]  ;;  %v13491_v62 = vld [vmem:[#allocation116_spill] sm:$0xff] }
 0x3fc   :  { %13480 = vst [vmem:[#allocation224_spill] sm:$0xff] %v9034_v48  ;;  %2750 = vmatpush.msra.mxu3 %v9050_v40  ;;  %v13487_v48 = vld [vmem:[#allocation109_spill] sm:$0xff]  ;;  %2711 = vmatpush.msra.mxu1 %v9055_v63 }
 0x3fd   :  { %13481 = vst [vmem:[#allocation225_spill] sm:$0xff] %v9037_v36  ;;  %2693 = vmatpush.msra.mxu0 %v13487_v48  ;;  %v13488_v36 = vld [vmem:[#allocation114_spill] sm:$0xff]  ;;  %v13495_v48 = vld [vmem:[#allocation113_spill] sm:$0xff] }
 0x3fe   :  { %13482 = vst [vmem:[#allocation226_spill] sm:$0xff] %v9040_v25  ;;  %2733 = vmatpush.msra.mxu2 %v13488_v36  ;;  %v9058_v25 = vld [vmem:[#allocation3 + $0x6c8] sm:$0xff] }
 0x3ff   :  { %13483 = vst [vmem:[#allocation227_spill] sm:$0xff] %v9043_v28  ;;  %2751 = vmatpush.msra.mxu3 %v9058_v25  ;;  %2694 = vmatpush.msra.mxu0 %v13491_v62  ;;  %v13492_v28 = vld [vmem:[#allocation111_spill] sm:$0xff]  ;;  %v13496_v36 = vld [vmem:[#allocation118_spill] sm:$0xff] }
 0x400   :  { %13485 = vst [vmem:[#allocation107_spill] sm:$0xff] %v9047_v21  ;;  %2734 = vmatpush.msra.mxu2 %v13492_v28  ;;  %v9063_v21 = vld [vmem:[#allocation3 + $0x680] sm:$0xff]  ;;  %v13501_v28 = vld [vmem:[#allocation124_spill] sm:$0xff] }
 0x401   :  { %13486 = vst [vmem:[#allocation228_spill] sm:$0xff] %v9050_v40  ;;  %2712 = vmatpush.msra.mxu1 %v9063_v21  ;;  %v9066_v40 = vld [vmem:[#allocation3 + $0x688] sm:$0xff]  ;;  %2695 = vmatpush.msra.mxu0 %v13495_v48 }
 0x402   :  { %13489 = vst [vmem:[#allocation109_spill] sm:$0xff] %v9055_v63  ;;  %2752 = vmatpush.msra.mxu3 %v9066_v40  ;;  %2735 = vmatpush.msra.mxu2 %v13496_v36  ;;  %v13497_v63 = vld [vmem:[#allocation120_spill] sm:$0xff]  ;;  %v13500_v62 = vld [vmem:[#allocation122_spill] sm:$0xff]  ;;  %v13506_v48 = vld [vmem:[#allocation123_spill] sm:$0xff] }
 0x403   :  { %13490 = vst [vmem:[#allocation114_spill] sm:$0xff] %v9058_v25  ;;  %2713 = vmatpush.msra.mxu1 %v13497_v63  ;;  %v13499_v25 = vld [vmem:[#allocation117_spill] sm:$0xff]  ;;  %v13508_v63 = vld [vmem:[#allocation130_spill] sm:$0xff] }
 0x404   :  { %13493 = vst [vmem:[#allocation116_spill] sm:$0xff] %v9063_v21  ;;  %2753 = vmatpush.msra.mxu3 %v13498_v5  ;;  %2696 = vmatpush.msra.mxu0 %v13499_v25  ;;  %v13503_v21 = vld [vmem:[#allocation121_spill] sm:$0xff]  ;;  %v13509_v5 = vld [vmem:[#allocation132_spill] sm:$0xff]  ;;  %v13510_v25 = vld [vmem:[#allocation127_spill] sm:$0xff] }
 0x405   :  { %13494 = vst [vmem:[#allocation111_spill] sm:$0xff] %v9066_v40  ;;  %2736 = vmatpush.msra.mxu2 %v13500_v62  ;;  %2714 = vmatpush.msra.mxu1 %v13501_v28  ;;  %v13505_v40 = vld [vmem:[#allocation128_spill] sm:$0xff]  ;;  %v13507_v36 = vld [vmem:[#allocation125_spill] sm:$0xff]  ;;  %v13512_v28 = vld [vmem:[#allocation134_spill] sm:$0xff] }
 0x406   :  { %2754 = vmatpush.msra.mxu3 %v13502_v9  ;;  %2697 = vmatpush.msra.mxu0 %v13503_v21  ;;  %v13511_v62 = vld [vmem:[#allocation129_spill] sm:$0xff]  ;;  %v13513_v9 = vld [vmem:[#allocation136_spill] sm:$0xff]  ;;  %v13514_v21 = vld [vmem:[#allocation131_spill] sm:$0xff] }
 0x407   :  { %2737 = vmatpush.msra.mxu2 %v13504_v18  ;;  %2715 = vmatpush.msra.mxu1 %v13505_v40  ;;  %v13515_v18 = vld [vmem:[#allocation133_spill] sm:$0xff]  ;;  %v13516_v40 = vld [vmem:[#allocation138_spill] sm:$0xff] }
 0x408   :  { %2755 = vmatpush.msra.mxu3 %v13506_v48  ;;  %2698 = vmatpush.msra.mxu0 %v13507_v36  ;;  %v13517_v48 = vld [vmem:[#allocation140_spill] sm:$0xff]  ;;  %v13518_v36 = vld [vmem:[#allocation135_spill] sm:$0xff] }
 0x409   :  { %2738 = vmatpush.msra.mxu2 %v13508_v63  ;;  %2716 = vmatpush.msra.mxu1 %v13509_v5  ;;  %v13519_v63 = vld [vmem:[#allocation137_spill] sm:$0xff]  ;;  %v13520_v5 = vld [vmem:[#allocation139_spill] sm:$0xff] }
 0x40a   :  { %2756 = vmatpush.msra.mxu3 %v13510_v25  ;;  %2699 = vmatpush.msra.mxu0 %v13511_v62  ;;  %v13521_v25 = vld [vmem:[#allocation141_spill] sm:$0xff]  ;;  %v13522_v62 = vld [vmem:[#allocation16_spill] sm:$0xff] }
 0x40b   :  { %2739 = vmatpush.msra.mxu2 %v13512_v28  ;;  %2717 = vmatpush.msra.mxu1 %v13513_v9  ;;  %v13523_v28 = vld [vmem:[#allocation14_spill] sm:$0xff]  ;;  %v13524_v9 = vld [vmem:[#allocation17_spill] sm:$0xff] }
 0x40c   :  { %2757 = vmatpush.msra.mxu3 %v13514_v21  ;;  %2700 = vmatpush.msra.mxu0 %v13515_v18  ;;  %v13525_v21 = vld [vmem:[#allocation15_spill] sm:$0xff] }
 0x40d   :  { %2740 = vmatpush.msra.mxu2 %v13516_v40  ;;  %2718 = vmatpush.msra.mxu1 %v13517_v48  ;;  %v13526_v18 = vld [vmem:[#allocation47_spill] sm:$0xff]  ;;  %v13527_v40 = vld [vmem:[#allocation46_spill] sm:$0xff]  ;;  %v13528_v48 = vld [vmem:[#allocation48_spill] sm:$0xff] }
 0x40e   :  { %2758 = vmatpush.msra.mxu3 %v13518_v36  ;;  %2701 = vmatpush.msra.mxu0 %v13519_v63  ;;  %v13529_v36 = vld [vmem:[#allocation49_spill] sm:$0xff]  ;;  %v13530_v63 = vld [vmem:[#allocation142_spill] sm:$0xff] }
 0x40f   :  { %2741 = vmatpush.msra.mxu2 %v13520_v5  ;;  %2719 = vmatpush.msra.mxu1 %v13521_v25  ;;  %v13531_v5 = vld [vmem:[#allocation143_spill] sm:$0xff]  ;;  %v13532_v25 = vld [vmem:[#allocation144_spill] sm:$0xff] }
 0x410   :  { %2759 = vmatpush.msra.mxu3 %v13522_v62  ;;  %2702 = vmatpush.msra.mxu0 %v13523_v28  ;;  %v13533_v62 = vld [vmem:[#allocation145_spill] sm:$0xff]  ;;  %v13534_v28 = vld [vmem:[#allocation147_spill] sm:$0xff] }
 0x411   :  { %2742 = vmatpush.msra.mxu2 %v13524_v9  ;;  %2720 = vmatpush.msra.mxu1 %v13527_v40  ;;  %v13535_v9 = vld [vmem:[#allocation149_spill] sm:$0xff]  ;;  %v13538_v40 = vld [vmem:[#allocation155_spill] sm:$0xff] }
 0x412   :  { %2769 = vmatpush.msrb.mxu0 %v13525_v21  ;;  %2760 = vmatpush.msra.mxu3 %v13528_v48  ;;  %v13536_v21 = vld [vmem:[#allocation151_spill] sm:$0xff]  ;;  %v13539_v48 = vld [vmem:[#allocation157_spill] sm:$0xff] }
 0x413   :  { %2809 = vmatpush.msrb.mxu2 %v13526_v18  ;;  %2721 = vmatpush.msra.mxu1 %v13531_v5  ;;  %v13537_v18 = vld [vmem:[#allocation153_spill] sm:$0xff]  ;;  %v13542_v5 = vld [vmem:[#allocation148_spill] sm:$0xff] }
 0x414   :  { %2770 = vmatpush.msrb.mxu0 %v13529_v36  ;;  %2761 = vmatpush.msra.mxu3 %v13532_v25  ;;  %v13540_v36 = vld [vmem:[#allocation146_spill] sm:$0xff]  ;;  %v13543_v25 = vld [vmem:[#allocation161_spill] sm:$0xff] }
 0x415   :  { %2810 = vmatpush.msrb.mxu2 %v13530_v63  ;;  %2722 = vmatpush.msra.mxu1 %v13535_v9  ;;  %v13541_v63 = vld [vmem:[#allocation159_spill] sm:$0xff]  ;;  %v13546_v9 = vld [vmem:[#allocation152_spill] sm:$0xff] }
 0x416   :  { %2771 = vmatpush.msrb.mxu0 %v13533_v62  ;;  %2762 = vmatpush.msra.mxu3 %v13536_v21  ;;  %v13544_v62 = vld [vmem:[#allocation150_spill] sm:$0xff]  ;;  %v13547_v21 = vld [vmem:[#allocation165_spill] sm:$0xff] }
 0x417   :  { %2811 = vmatpush.msrb.mxu2 %v13534_v28  ;;  %2789 = vmatpush.msrb.mxu1 %v13538_v40  ;;  %v13545_v28 = vld [vmem:[#allocation163_spill] sm:$0xff] }
 0x418   :  { %2772 = vmatpush.msrb.mxu0 %v13537_v18  ;;  %2829 = vmatpush.msrb.mxu3 %v13540_v36  ;;  %v13548_v18 = vld [vmem:[#allocation154_spill] sm:$0xff]  ;;  %v13549_v40 = vld [vmem:[#allocation167_spill] sm:$0xff]  ;;  %v13551_v36 = vld [vmem:[#allocation169_spill] sm:$0xff] }
 0x419   :  { %2812 = vmatpush.msrb.mxu2 %v13539_v48  ;;  %2790 = vmatpush.msrb.mxu1 %v13542_v5  ;;  %v13550_v48 = vld [vmem:[#allocation156_spill] sm:$0xff]  ;;  %v13553_v5 = vld [vmem:[#allocation171_spill] sm:$0xff] }
 0x41a   :  { %2773 = vmatpush.msrb.mxu0 %v13541_v63  ;;  %2830 = vmatpush.msrb.mxu3 %v13544_v62  ;;  %v13552_v63 = vld [vmem:[#allocation158_spill] sm:$0xff]  ;;  %v13555_v62 = vld [vmem:[#allocation173_spill] sm:$0xff] }
 0x41b   :  { %2813 = vmatpush.msrb.mxu2 %v13543_v25  ;;  %2791 = vmatpush.msrb.mxu1 %v13546_v9  ;;  %v13554_v25 = vld [vmem:[#allocation160_spill] sm:$0xff]  ;;  %v13557_v9 = vld [vmem:[#allocation175_spill] sm:$0xff] }
 0x41c   :  { %2774 = vmatpush.msrb.mxu0 %v13545_v28  ;;  %2831 = vmatpush.msrb.mxu3 %v13548_v18  ;;  %v13556_v28 = vld [vmem:[#allocation162_spill] sm:$0xff]  ;;  %v13559_v18 = vld [vmem:[#allocation177_spill] sm:$0xff] }
 0x41d   :  { %2814 = vmatpush.msrb.mxu2 %v13547_v21  ;;  %2792 = vmatpush.msrb.mxu1 %v13550_v48  ;;  %v13558_v21 = vld [vmem:[#allocation164_spill] sm:$0xff]  ;;  %v13561_v48 = vld [vmem:[#allocation179_spill] sm:$0xff] }
 0x41e   :  { %2775 = vmatpush.msrb.mxu0 %v13549_v40  ;;  %2832 = vmatpush.msrb.mxu3 %v13552_v63  ;;  %v13560_v40 = vld [vmem:[#allocation166_spill] sm:$0xff]  ;;  %v13563_v63 = vld [vmem:[#allocation181_spill] sm:$0xff] }
 0x41f   :  { %2815 = vmatpush.msrb.mxu2 %v13551_v36  ;;  %2793 = vmatpush.msrb.mxu1 %v13554_v25  ;;  %v13562_v36 = vld [vmem:[#allocation168_spill] sm:$0xff]  ;;  %v13565_v25 = vld [vmem:[#allocation183_spill] sm:$0xff] }
 0x420   :  { %2776 = vmatpush.msrb.mxu0 %v13553_v5  ;;  %2833 = vmatpush.msrb.mxu3 %v13556_v28  ;;  %v13564_v5 = vld [vmem:[#allocation170_spill] sm:$0xff]  ;;  %v13567_v28 = vld [vmem:[#allocation185_spill] sm:$0xff] }
 0x421   :  { %2816 = vmatpush.msrb.mxu2 %v13555_v62  ;;  %2794 = vmatpush.msrb.mxu1 %v13558_v21  ;;  %v13566_v62 = vld [vmem:[#allocation172_spill] sm:$0xff]  ;;  %v13569_v21 = vld [vmem:[#allocation187_spill] sm:$0xff] }
 0x422   :  { %2777 = vmatpush.msrb.mxu0 %v13557_v9  ;;  %2834 = vmatpush.msrb.mxu3 %v13560_v40  ;;  %v13568_v9 = vld [vmem:[#allocation174_spill] sm:$0xff]  ;;  %v13571_v40 = vld [vmem:[#allocation189_spill] sm:$0xff] }
 0x423   :  { %2817 = vmatpush.msrb.mxu2 %v13559_v18  ;;  %2795 = vmatpush.msrb.mxu1 %v13562_v36  ;;  %v13570_v18 = vld [vmem:[#allocation176_spill] sm:$0xff]  ;;  %v13573_v36 = vld [vmem:[#allocation191_spill] sm:$0xff] }
 0x424   :  { %2778 = vmatpush.msrb.mxu0 %v13561_v48  ;;  %2835 = vmatpush.msrb.mxu3 %v13564_v5  ;;  %v13572_v48 = vld [vmem:[#allocation178_spill] sm:$0xff]  ;;  %v13575_v5 = vld [vmem:[#allocation193_spill] sm:$0xff] }
 0x425   :  { %2818 = vmatpush.msrb.mxu2 %v13563_v63  ;;  %2796 = vmatpush.msrb.mxu1 %v13566_v62  ;;  %v13574_v63 = vld [vmem:[#allocation180_spill] sm:$0xff]  ;;  %v13577_v62 = vld [vmem:[#allocation195_spill] sm:$0xff] }
 0x426   :  { %2779 = vmatpush.msrb.mxu0 %v13565_v25  ;;  %2836 = vmatpush.msrb.mxu3 %v13568_v9  ;;  %v13576_v25 = vld [vmem:[#allocation182_spill] sm:$0xff] }
 0x427   :  { %2819 = vmatpush.msrb.mxu2 %v13567_v28  ;;  %2797 = vmatpush.msrb.mxu1 %v13570_v18  ;;  %v13578_v28 = vld [vmem:[#allocation184_spill] sm:$0xff]  ;;  %v13579_v9 = vld [vmem:[#allocation186_spill] sm:$0xff] }
 0x428   :  { %2780 = vmatpush.msrb.mxu0 %v13569_v21  ;;  %2837 = vmatpush.msrb.mxu3 %v13572_v48  ;;  %v13580_v21 = vld [vmem:[#allocation188_spill] sm:$0xff]  ;;  %v13581_v18 = vld [vmem:[#allocation190_spill] sm:$0xff] }
 0x429   :  { %2820 = vmatpush.msrb.mxu2 %v13571_v40  ;;  %2798 = vmatpush.msrb.mxu1 %v13574_v63  ;;  %v13582_v40 = vld [vmem:[#allocation192_spill] sm:$0xff]  ;;  %v13583_v48 = vld [vmem:[#allocation194_spill] sm:$0xff]  ;;  %v13585_v63 = vld [vmem:[#allocation201_spill] sm:$0xff] }
 0x42a   :  { %2781 = vmatpush.msrb.mxu0 %v13573_v36  ;;  %2838 = vmatpush.msrb.mxu3 %v13576_v25  ;;  %v13584_v36 = vld [vmem:[#allocation196_spill] sm:$0xff]  ;;  %v13587_v25 = vld [vmem:[#allocation197_spill] sm:$0xff] }
 0x42b   :  { %2821 = vmatpush.msrb.mxu2 %v13575_v5  ;;  %2799 = vmatpush.msrb.mxu1 %v13578_v28  ;;  %v13586_v5 = vld [vmem:[#allocation202_spill] sm:$0xff]  ;;  %v13589_v28 = vld [vmem:[#allocation205_spill] sm:$0xff] }
 0x42c   :  { %2782 = vmatpush.msrb.mxu0 %v13577_v62  ;;  %2839 = vmatpush.msrb.mxu3 %v13580_v21  ;;  %v13588_v62 = vld [vmem:[#allocation198_spill] sm:$0xff]  ;;  %v13591_v21 = vld [vmem:[#allocation199_spill] sm:$0xff] }
 0x42d   :  { %2822 = vmatpush.msrb.mxu2 %v13579_v9  ;;  %2800 = vmatpush.msrb.mxu1 %v13582_v40  ;;  %v13590_v9 = vld [vmem:[#allocation206_spill] sm:$0xff]  ;;  %v13593_v40 = vld [vmem:[#allocation209_spill] sm:$0xff]  ;;  %v2299_v19 = vpop.f32.mrf.mxu3 }
 0x42e   :  { %2783 = vmatpush.msrb.mxu0 %v13581_v18  ;;  %2840 = vmatpush.msrb.mxu3 %v13584_v36  ;;  %v13592_v18 = vld [vmem:[#allocation200_spill] sm:$0xff]  ;;  %v2259_v36 = vpop.f32.mrf.mxu1 }
 0x42f   :  { %2823 = vmatpush.msrb.mxu2 %v13583_v48  ;;  %2801 = vmatpush.msrb.mxu1 %v13586_v5  ;;  %v13594_v48 = vld [vmem:[#allocation210_spill] sm:$0xff]  ;;  %v2279_v5 = vpop.f32.mrf.mxu2 }
 0x430   :  { %2784 = vmatpush.msrb.mxu0 %v13585_v63  ;;  %2841 = vmatpush.msrb.mxu3 %v13588_v62  ;;  %v2239_v63 = vpop.f32.mrf.mxu0  ;;  %v2300_v55 = vadd.f32 %v2299_v19, %v2279_v5 }
 0x431   :  { %2824 = vmatpush.msrb.mxu2 %v13587_v25  ;;  %2802 = vmatpush.msrb.mxu1 %v13589_v28  ;;  %v2260_v62 = vadd.f32 %v2259_v36, %v2239_v63  ;;  %v13595_v28 = vld [vmem:[#allocation24_spill] sm:$0xff] }
 0x432   :  { %2842 = vmatpush.msrb.mxu3 %v13590_v9  ;;  %v2303_v26 = vadd.f32 %v2300_v55, %v13598_v23  ;;  %v13600_v23 = vld [vmem:[#allocation55_spill] sm:$0xff] }
 0x433   :  { %2803 = vmatpush.msrb.mxu1 %v13591_v21  ;;  %v13596_v21 = vld [vmem:[#allocation22_spill] sm:$0xff] }
 0x434   :  { %2843 = vmatpush.msrb.mxu3 %v13592_v18  ;;  %v2302_v17 = vadd.f32 %v2260_v62, %v13596_v21  ;;  %v5300_v36 = vmul.f32 -1.442695, %v2303_v26 }
 0x435   :  { %2804 = vmatpush.msrb.mxu1 %v13593_v40  ;;  %v13597_v40 = vld [vmem:[#allocation25_spill] sm:$0xff] }
 0x436   :  { %2844 = vmatpush.msrb.mxu3 %v13594_v48  ;;  %v2341_v3 = vpop.f32.mrf.mxu1  ;;  %v5299_v48 = vmul.f32 -1.442695, %v2302_v17 }
 0x437   :  { %v2381_v24 = vpop.f32.mrf.mxu3  ;;  %v2361_v9 = vpop.f32.mrf.mxu2 }
 0x438   :  { %v2321_v25 = vpop.f32.mrf.mxu0  ;;  %v2382_v34 = vadd.f32 %v2381_v24, %v2361_v9 }
 0x439   :  { %v2342_v14 = vadd.f32 %v2341_v3, %v2321_v25 }
 0x43a   :  { %v2385_v31 = vadd.f32 %v2382_v34, %v13597_v40 }
 0x43b   :  { %v2384_v58 = vadd.f32 %v2342_v14, %v13595_v28  ;;  %v13599_v14 = vld [vmem:[#allocation54_spill] sm:$0xff] }
 0x43c   :  { %v5302_v35 = vmul.f32 -1.442695, %v2385_v31 }
 0x43d   :  { %v5301_v18 = vmul.f32 -1.442695, %v2384_v58 }
 0x43f   :  { %5413 = vpow2.f32 %v5301_v18 }
 0x440   :  { %5415 = vpow2.f32 %v5299_v48 }
 0x441   :  { %5417 = vpow2.f32 %v5302_v35 }
 0x442   :  { %5419 = vpow2.f32 %v5300_v36 }
 0x444   :  { %v2403_v50 = vpop.f32.mrf.mxu0 }
 0x445   :  { %v5414_v63 = vpop.eup %5413 }
 0x446   :  { %v5416_v19 = vpop.eup %5415  ;;  %v9174_v34 = vadd.f32 1.0, %v5414_v63 }
 0x447   :  { %v5418_v5 = vpop.eup %5417  ;;  %v2556_v28 = vadd.f32 1.0, %v5416_v19 }
 0x448   :  { %5421 = vrcp.f32 %v9174_v34  ;;  %v9178_v26 = vadd.f32 1.0, %v5418_v5  ;;  %v2607_v39 = vand.u32 2147483648, %v9174_v34  ;;  %vm2601_vm4 = vweird.f32 %v9174_v34 }
 0x449   :  { %vm2563_vm6 = vweird.f32 %v2556_v28 }
 0x44a   :  { %v2443_v62 = vpop.f32.mrf.mxu2  ;;  %v2608_v16 = vor.u32 1.1754944e-38, %v2607_v39  ;;  %v2622_v39 = vand.u32 2147483648, %v9178_v26  ;;  %vm2616_vm12 = vweird.f32 %v9178_v26 }
 0x44b   :  { %v2423_v61 = vpop.f32.mrf.mxu1 }
 0x44c   :  { %v2424_v3 = vadd.f32 %v2423_v61, %v2403_v50  ;;  %v5420_v50 = vpop.eup %5419 }
 0x44d   :  { %v9180_v61 = vadd.f32 1.0, %v5420_v50 }
 0x44e   :  { %v2466_v24 = vadd.f32 %v2424_v3, %v13599_v14  ;;  %v5422_v31 = vpop.eup %5421 }
 0x44f   :  { %v2597_v18 = vmul.f32 %v5422_v31, %v9174_v34  ;;  %vm2602_vm2 = vweird.f32 %v5422_v31  ;;  %vm2578_vm9 = vweird.f32 %v9180_v61 }
 0x450   :  { %v5303_v17 = vmul.f32 -1.442695, %v2466_v24  ;;  %vm9214_vm5 = vmor %vm2601_vm4, %vm2602_vm2 }
 0x451   :  { %v2463_v25 = vpop.f32.mrf.mxu3  ;;  %v2598_v63 = vsub.f32 1.0, %v2597_v18 }
 0x452   :  { %v2464_v58 = vadd.f32 %v2463_v25, %v2443_v62  ;;  %5423 = vpow2.f32 %v5303_v17 }
 0x453   :  { %5425 = vrcp.f32 %v2556_v28  ;;  %v2599_v19 = vmul.f32 %v5422_v31, %v2598_v63 }
 0x454   :  { %v2467_v55 = vadd.f32 %v2464_v58, %v13600_v23  ;;  %5427 = vrcp.f32 %v9178_v26 }
 0x456   :  { %v5304_v35 = vmul.f32 -1.442695, %v2467_v55 }
 0x458   :  { %v5424_v9 = vpop.eup %5423  ;;  %5429 = vpow2.f32 %v5304_v35 }
 0x459   :  { %v9183_v21 = vpop.eup %5425  ;;  %5431 = vrcp.f32 %v9180_v61  ;;  %v9187_v40 = vadd.f32 1.0, %v5424_v9  ;;  %v2567_v9 = vand.u32 2147483647, %v2556_v28 }
 0x45a   :  { %v9189_v48 = vpop.eup %5427  ;;  %v2559_v3 = vmul.f32 %v9183_v21, %v2556_v28  ;;  %vm2564_vm3 = vweird.f32 %v9183_v21 }
 0x45b   :  { %5433 = vrcp.f32 %v9187_v40  ;;  %v2612_v25 = vmul.f32 %v9189_v48, %v9178_v26  ;;  %vm9220_vm7 = vcmp.eq.f32.partialorder %v2567_v9, 8.507059e+37  ;;  %vm9229_vm8 = vmor %vm2563_vm6, %vm2564_vm3  ;;  %vm2617_vm10 = vweird.f32 %v9189_v48 }
 0x45c   :  { %v2560_v24 = vsub.f32 1.0, %v2559_v3  ;;  %v2569_v3 = vand.u32 2147483648, %v2556_v28  ;;  %vm9247_vm14 = vmor %vm2616_vm12, %vm2617_vm10  ;;  %vm2639_vm3 = vweird.f32 %v9187_v40 }
 0x45d   :  { %v2613_v5 = vsub.f32 1.0, %v2612_v25 }
 0x45e   :  { %v5430_v36 = vpop.eup %5429  ;;  %v2561_v50 = vmul.f32 %v9183_v21, %v2560_v24 }
 0x45f   :  { %v9193_v14 = vpop.eup %5431  ;;  %v9197_v62 = vadd.f32 1.0, %v5430_v36  ;;  %v2600_v36 = vadd.f32 %v5422_v31, %v2599_v19  ;;  %v2614_v25 = vmul.f32 %v9189_v48, %v2613_v5 }
 0x460   :  { %v2574_v58 = vmul.f32 %v9193_v14, %v9180_v61  ;;  %v2562_v24 = vadd.f32 %v9183_v21, %v2561_v50  ;;  %vm2579_vm13 = vweird.f32 %v9193_v14 }
 0x461   :  { %v9201_v17 = vpop.eup %5433  ;;  %5435 = vrcp.f32 %v9197_v62  ;;  %v2604_v5 = vsel %vm9214_vm5, %v5422_v31, %v2600_v36  ;;  %v2615_v9 = vadd.f32 %v9189_v48, %v2614_v25  ;;  %v13608_v36 = vld [vmem:[#allocation57_spill] sm:$0xff]  ;;  %vm9262_vm15 = vmor %vm2578_vm9, %vm2579_vm13 }
 0x462   :  { %v2575_v18 = vsub.f32 1.0, %v2574_v58  ;;  %v2635_v63 = vmul.f32 %v9201_v17, %v9187_v40  ;;  %v2605_v58 = vand.u32 2147483647, %v9174_v34  ;;  %v2566_v31 = vsel %vm9229_vm8, %v9183_v21, %v2562_v24 }
 0x463   :  { %vm2640_vm1 = vweird.f32 %v9201_v17 }
 0x464   :  { %v2576_v34 = vmul.f32 %v9193_v14, %v2575_v18  ;;  %v2636_v13 = vsub.f32 1.0, %v2635_v63  ;;  %vm2606_vm11 = vcmp.eq.f32.partialorder %v2605_v58, 8.507059e+37  ;;  %v2584_v58 = vand.u32 2147483648, %v9180_v61  ;;  %vm2641_vm4 = vmor %vm2639_vm3, %vm2640_vm1 }
 0x466   :  { %v2485_v23 = vpop.f32.mrf.mxu0  ;;  %v2637_v25 = vmul.f32 %v9201_v17, %v2636_v13  ;;  %v9310_v13 = vld [vmem:[#allocation3 + $0x368] sm:$0xff] }
 0x467   :  { %v9218_v19 = vpop.eup %5435 }
 0x468   :  { %v2650_v18 = vmul.f32 %v9218_v19, %v9197_v62  ;;  %vm2655_vm6 = vweird.f32 %v9218_v19 }
 0x46c   :  { %v2505_v55 = vpop.f32.mrf.mxu1 }
 0x46d   :  { %v2506_v35 = vadd.f32 %v2505_v55, %v2485_v23  ;;  %v2570_v55 = vor.u32 1.1754944e-38, %v2569_v3  ;;  %v2609_v3 = vsel %vm2606_vm11, %v2608_v16, %v2604_v5  ;;  %v2577_v23 = vadd.f32 %v9193_v14, %v2576_v34 }
 0x46e   :  { %v2666_v5 = vmul.f32 %v2609_v3, %v8684_v53  ;;  %v2582_v34 = vand.u32 2147483647, %v9180_v61 }
 0x46f   :  { %v2548_v41 = vadd.f32 %v2506_v35, %v13601_v47  ;;  %v2525_v35 = vpop.f32.mrf.mxu2  ;;  %v2571_v16 = vsel %vm9220_vm7, %v2570_v55, %v2566_v31  ;;  %v2581_v53 = vsel %vm9262_vm15, %v9193_v14, %v2577_v23  ;;  %v2638_v55 = vadd.f32 %v9201_v17, %v2637_v25 }
 0x470   :  { %vm2583_vm2 = vcmp.eq.f32.partialorder %v2582_v34, 8.507059e+37  ;;  %vm2654_vm7 = vweird.f32 %v9197_v62 }
 0x471   :  { %5437 = vtanh.f32 %v2548_v41  ;;  %v2623_v41 = vor.u32 1.1754944e-38, %v2622_v39  ;;  %v2643_v39 = vand.u32 2147483647, %v9187_v40  ;;  %vm2656_vm8 = vmor %vm2654_vm7, %vm2655_vm6 }
 0x472   :  { %v2545_v50 = vpop.f32.mrf.mxu3 }
 0x473   :  { %v2546_v28 = vadd.f32 %v2545_v50, %v2525_v35  ;;  %v2620_v35 = vand.u32 2147483647, %v9178_v26  ;;  %v2619_v26 = vsel %vm9247_vm14, %v9189_v48, %v2615_v9  ;;  %v2585_v48 = vor.u32 1.1754944e-38, %v2584_v58 }
 0x474   :  { %v2645_v9 = vand.u32 2147483648, %v9187_v40  ;;  %vm2644_vm5 = vcmp.eq.f32.partialorder %v2643_v39, 8.507059e+37  ;;  %v2660_v40 = vand.u32 2147483648, %v9197_v62  ;;  %v9335_v39 = vld [vmem:[#allocation3 + $0x2e8] sm:$0xff] }
 0x475   :  { %v2549_v63 = vadd.f32 %v2546_v28, %v13608_v36  ;;  %v2651_v28 = vsub.f32 1.0, %v2650_v18  ;;  %vm2621_vm0 = vcmp.eq.f32.partialorder %v2620_v35, 8.507059e+37  ;;  %v2586_v14 = vsel %vm2583_vm2, %v2585_v48, %v2581_v53  ;;  %v9315_v53 = vld [vmem:[#allocation3 + $0x320] sm:$0xff]  ;;  %v9321_v48 = vld [vmem:[#allocation3 + $0x328] sm:$0xff] }
 0x476   :  { %v2624_v31 = vsel %vm2621_vm0, %v2623_v41, %v2619_v26  ;;  %v2646_v23 = vor.u32 1.1754944e-38, %v2645_v9  ;;  %v2661_v58 = vor.u32 1.1754944e-38, %v2660_v40  ;;  %v9299_v26 = vld [vmem:[#allocation3 + $0x3a0] sm:$0xff] }
 0x477   :  { %v5438_v21 = vpop.eup %5437  ;;  %5439 = vtanh.f32 %v2549_v63  ;;  %v2652_v18 = vmul.f32 %v9218_v19, %v2651_v28  ;;  %v2667_v3 = vmul.f32 %v2624_v31, %v8698_v20  ;;  %v2642_v63 = vsel %vm2641_vm4, %v9201_v17, %v2638_v55  ;;  %v9307_v28 = vld [vmem:[#allocation3 + $0x360] sm:$0xff]  ;;  %v9324_v31 = vld [vmem:[#allocation3 + $0x7e8] sm:$0xff] }
 0x478   :  { %v2668_v50 = vmul.f32 %v5438_v21, %v2571_v16  ;;  %v2647_v25 = vsel %vm2644_vm5, %v2646_v23, %v2642_v63  ;;  %v2658_v20 = vand.u32 2147483647, %v9197_v62  ;;  %v9318_v55 = vld [vmem:[#allocation3 + $0x7e0] sm:$0xff]  ;;  %v9350_v63 = vld [vmem:[#allocation3 + $0x768] sm:$0xff] }
 0x479   :  { %v2653_v21 = vadd.f32 %v9218_v19, %v2652_v18  ;;  %v9329_v9 = vld [vmem:[#allocation3 + $0x2e0] sm:$0xff]  ;;  %v9338_v18 = vld [vmem:[#allocation3 + $0x7a8] sm:$0xff] }
 0x47a   :  { %v9266_v47 = vadd.f32 %v2668_v50, %v2666_v5  ;;  %v9293_v5 = vld [vmem:[#allocation3 + $0x3e0] sm:$0xff]  ;;  %v9296_v50 = vld [vmem:[#allocation3 + $0x3e8] sm:$0xff]  ;;  %vm2659_vm9 = vcmp.eq.f32.partialorder %v2658_v20, 8.507059e+37 }
 0x47b   :  { %v2657_v17 = vsel %vm2656_vm8, %v9218_v19, %v2653_v21  ;;  %v9302_v19 = vld [vmem:[#allocation3 + $0x3a8] sm:$0xff]  ;;  %v9353_v23 = vld [vmem:[#allocation3 + $0x260] sm:$0xff] }
 0x47c   :  { %5441 = vtanh.f32 %v9266_v47  ;;  %v2662_v34 = vsel %vm2659_vm9, %v2661_v58, %v2657_v17  ;;  %v9356_v21 = vld [vmem:[#allocation3 + $0x720] sm:$0xff]  ;;  %v9373_v17 = vld [vmem:[#allocation3 + $0x228] sm:$0xff] }
 0x47d   :  { %v5440_v61 = vpop.eup %5439  ;;  %v9367_v40 = vld [vmem:[#allocation3 + $0x220] sm:$0xff]  ;;  %13615 = vst [vmem:[#allocation120_spill] sm:$0xff] %v9373_v17  ;;  %v9376_v58 = vld [vmem:[#allocation3 + $0x6e8] sm:$0xff] }
 0x47e   :  { %v2669_v36 = vmul.f32 %v5440_v61, %v2586_v14  ;;  %v9332_v61 = vld [vmem:[#allocation3 + $0x7a0] sm:$0xff]  ;;  %13613 = vst [vmem:[#allocation113_spill] sm:$0xff] %v9367_v40 }
 0x47f   :  { %v9341_v14 = vld [vmem:[#allocation3 + $0x2a0] sm:$0xff]  ;;  %13616 = vst [vmem:[#allocation115_spill] sm:$0xff] %v9376_v58 }
 0x480   :  { %v9280_v35 = vadd.f32 %v2669_v36, %v2667_v3  ;;  %v9344_v3 = vld [vmem:[#allocation3 + $0x760] sm:$0xff]  ;;  %v9347_v36 = vld [vmem:[#allocation3 + $0x2a8] sm:$0xff] }
 0x481   :  { %v9370_v20 = vld [vmem:[#allocation3 + $0x6e0] sm:$0xff] }
 0x482   :  { %v5442_v24 = vpop.eup %5441  ;;  %5443 = vtanh.f32 %v9280_v35  ;;  %13614 = vst [vmem:[#allocation118_spill] sm:$0xff] %v9370_v20 }
 0x483   :  { %v9288_v16 = vmul.f32 %v5442_v24, %v2647_v25  ;;  %v9359_v24 = vld [vmem:[#allocation3 + $0x268] sm:$0xff] }
 0x484   :  { %v9362_v25 = vld [vmem:[#allocation3 + $0x728] sm:$0xff] }
 0x485   :  { %2703 = vmatmul.f32.vlgmr.msra.gmra.mxu0 %v9288_v16  ;;  %2743 = vmatmul.f32.vlgmr.msra.gmra.mxu2 %v9288_v16 }
 0x486   :  { %2851 = vmatpush.msra.mxu0 %v9293_v5  ;;  %2891 = vmatpush.msra.mxu2 %v9296_v50 }
 0x488   :  { %v5444_v62 = vpop.eup %5443  ;;  %2852 = vmatpush.msra.mxu0 %v9299_v26  ;;  %2892 = vmatpush.msra.mxu2 %v9302_v19 }
 0x489   :  { %v9305_v41 = vmul.f32 %v5444_v62, %v2662_v34  ;;  %v9379_v62 = vld [vmem:[#allocation3 + $0x1e0] sm:$0xff] }
 0x48a   :  { %2853 = vmatpush.msra.mxu0 %v9307_v28  ;;  %2893 = vmatpush.msra.mxu2 %v9310_v13  ;;  %13617 = vst [vmem:[#allocation117_spill] sm:$0xff] %v9379_v62  ;;  %v9382_v34 = vld [vmem:[#allocation3 + $0x6a0] sm:$0xff] }
 0x48b   :  { %2723 = vmatmul.f32.vlgmr.msra.gmra.mxu1 %v9305_v41  ;;  %2763 = vmatmul.f32.vlgmr.msra.gmra.mxu3 %v9305_v41  ;;  %13618 = vst [vmem:[#allocation122_spill] sm:$0xff] %v9382_v34 }
 0x48c   :  { %2854 = vmatpush.msra.mxu0 %v9315_v53  ;;  %2871 = vmatpush.msra.mxu1 %v9318_v55 }
 0x48d   :  { %2894 = vmatpush.msra.mxu2 %v9321_v48  ;;  %2911 = vmatpush.msra.mxu3 %v9324_v31 }
 0x48e   :  { %2785 = vmatmul.f32.vlgmr.msrb.gmra.mxu0 %v9288_v16  ;;  %2825 = vmatmul.f32.vlgmr.msrb.gmra.mxu2 %v9288_v16 }
 0x48f   :  { %2855 = vmatpush.msra.mxu0 %v9329_v9  ;;  %2872 = vmatpush.msra.mxu1 %v9332_v61 }
 0x490   :  { %2895 = vmatpush.msra.mxu2 %v9335_v39  ;;  %2912 = vmatpush.msra.mxu3 %v9338_v18 }
 0x491   :  { %2856 = vmatpush.msra.mxu0 %v9341_v14  ;;  %2873 = vmatpush.msra.mxu1 %v9344_v3 }
 0x492   :  { %2896 = vmatpush.msra.mxu2 %v9347_v36  ;;  %2913 = vmatpush.msra.mxu3 %v9350_v63 }
 0x493   :  { %2857 = vmatpush.msra.mxu0 %v9353_v23  ;;  %2874 = vmatpush.msra.mxu1 %v9356_v21 }
 0x494   :  { %2897 = vmatpush.msra.mxu2 %v9359_v24  ;;  %2914 = vmatpush.msra.mxu3 %v9362_v25 }
 0x495   :  { %2805 = vmatmul.f32.vlgmr.msrb.gmra.mxu1 %v9305_v41  ;;  %2845 = vmatmul.f32.vlgmr.msrb.gmra.mxu3 %v9305_v41 }
 0x496   :  { %2858 = vmatpush.msra.mxu0 %v9367_v40  ;;  %2875 = vmatpush.msra.mxu1 %v9370_v20  ;;  %v9385_v40 = vld [vmem:[#allocation3 + $0x1e8] sm:$0xff] }
 0x497   :  { %2898 = vmatpush.msra.mxu2 %v9373_v17  ;;  %2915 = vmatpush.msra.mxu3 %v9376_v58  ;;  %13619 = vst [vmem:[#allocation124_spill] sm:$0xff] %v9385_v40  ;;  %v9388_v20 = vld [vmem:[#allocation3 + $0x6a8] sm:$0xff]  ;;  %v9391_v17 = vld [vmem:[#allocation3 + $0x1a0] sm:$0xff] }
 0x498   :  { %2859 = vmatpush.msra.mxu0 %v9379_v62  ;;  %2876 = vmatpush.msra.mxu1 %v9382_v34  ;;  %13620 = vst [vmem:[#allocation119_spill] sm:$0xff] %v9388_v20  ;;  %v9394_v58 = vld [vmem:[#allocation3 + $0x660] sm:$0xff]  ;;  %v9397_v62 = vld [vmem:[#allocation3 + $0x1a8] sm:$0xff] }
 0x499   :  { %2899 = vmatpush.msra.mxu2 %v9385_v40  ;;  %2916 = vmatpush.msra.mxu3 %v9388_v20  ;;  %13621 = vst [vmem:[#allocation121_spill] sm:$0xff] %v9391_v17  ;;  %v9400_v34 = vld [vmem:[#allocation3 + $0x668] sm:$0xff]  ;;  %v9403_v40 = vld [vmem:[#allocation3 + $0x160] sm:$0xff] }
 0x49a   :  { %2860 = vmatpush.msra.mxu0 %v9391_v17  ;;  %13622 = vst [vmem:[#allocation126_spill] sm:$0xff] %v9394_v58  ;;  %2877 = vmatpush.msra.mxu1 %v9394_v58  ;;  %v9406_v20 = vld [vmem:[#allocation3 + $0x620] sm:$0xff]  ;;  %v9409_v17 = vld [vmem:[#allocation3 + $0x168] sm:$0xff] }
 0x49b   :  { %13623 = vst [vmem:[#allocation128_spill] sm:$0xff] %v9397_v62  ;;  %2900 = vmatpush.msra.mxu2 %v9397_v62  ;;  %2917 = vmatpush.msra.mxu3 %v9400_v34  ;;  %v9412_v58 = vld [vmem:[#allocation3 + $0x628] sm:$0xff]  ;;  %v9415_v62 = vld [vmem:[#allocation3 + $0x120] sm:$0xff] }
 0x49c   :  { %13624 = vst [vmem:[#allocation123_spill] sm:$0xff] %v9400_v34  ;;  %2861 = vmatpush.msra.mxu0 %v9403_v40  ;;  %2878 = vmatpush.msra.mxu1 %v9406_v20  ;;  %v9418_v34 = vld [vmem:[#allocation3 + $0x5e0] sm:$0xff] }
 0x49d   :  { %13625 = vst [vmem:[#allocation125_spill] sm:$0xff] %v9403_v40  ;;  %2901 = vmatpush.msra.mxu2 %v9409_v17  ;;  %2918 = vmatpush.msra.mxu3 %v9412_v58  ;;  %v9421_v40 = vld [vmem:[#allocation3 + $0x128] sm:$0xff] }
 0x49e   :  { %13626 = vst [vmem:[#allocation130_spill] sm:$0xff] %v9406_v20  ;;  %2862 = vmatpush.msra.mxu0 %v9415_v62  ;;  %2879 = vmatpush.msra.mxu1 %v9418_v34  ;;  %v9424_v20 = vld [vmem:[#allocation3 + $0x5e8] sm:$0xff] }
 0x49f   :  { %13627 = vst [vmem:[#allocation132_spill] sm:$0xff] %v9409_v17  ;;  %2902 = vmatpush.msra.mxu2 %v9421_v40  ;;  %2919 = vmatpush.msra.mxu3 %v9424_v20  ;;  %v9427_v17 = vld [vmem:[#allocation3 + $0xe0] sm:$0xff] }
 0x4a0   :  { %13628 = vst [vmem:[#allocation127_spill] sm:$0xff] %v9412_v58  ;;  %2863 = vmatpush.msra.mxu0 %v9427_v17  ;;  %v9430_v58 = vld [vmem:[#allocation3 + $0x5a0] sm:$0xff] }
 0x4a1   :  { %13629 = vst [vmem:[#allocation129_spill] sm:$0xff] %v9415_v62  ;;  %2880 = vmatpush.msra.mxu1 %v9430_v58  ;;  %2903 = vmatpush.msra.mxu2 %v8763_v44  ;;  %v9434_v62 = vld [vmem:[#allocation3 + $0x5a8] sm:$0xff] }
 0x4a2   :  { %13630 = vst [vmem:[#allocation134_spill] sm:$0xff] %v9421_v40  ;;  %2920 = vmatpush.msra.mxu3 %v9434_v62  ;;  %2864 = vmatpush.msra.mxu0 %v8767_v4  ;;  %v9438_v40 = vld [vmem:[#allocation3 + $0x560] sm:$0xff]  ;;  %v9450_v44 = vld [vmem:[#allocation3 + $0x528] sm:$0xff] }
 0x4a3   :  { %13631 = vst [vmem:[#allocation136_spill] sm:$0xff] %v9424_v20  ;;  %2881 = vmatpush.msra.mxu1 %v9438_v40  ;;  %2904 = vmatpush.msra.mxu2 %v8771_v2  ;;  %v9442_v20 = vld [vmem:[#allocation3 + $0x568] sm:$0xff]  ;;  %v9454_v4 = vld [vmem:[#allocation3 + $0x4e0] sm:$0xff] }
 0x4a4   :  { %13632 = vst [vmem:[#allocation131_spill] sm:$0xff] %v9430_v58  ;;  %2921 = vmatpush.msra.mxu3 %v9442_v20  ;;  %2865 = vmatpush.msra.mxu0 %v8775_v43  ;;  %v9446_v58 = vld [vmem:[#allocation3 + $0x520] sm:$0xff]  ;;  %v9458_v2 = vld [vmem:[#allocation3 + $0x4e8] sm:$0xff] }
 0x4a5   :  { %2882 = vmatpush.msra.mxu1 %v9446_v58  ;;  %2905 = vmatpush.msra.mxu2 %v8779_v60  ;;  %v9465_v43 = vld [vmem:[#allocation3 + $0x4a0] sm:$0xff]  ;;  %v9468_v60 = vld [vmem:[#allocation3 + $0x4a8] sm:$0xff] }
 0x4a6   :  { %2922 = vmatpush.msra.mxu3 %v9450_v44  ;;  %2866 = vmatpush.msra.mxu0 %v8783_v45  ;;  %13633 = vst [vmem:[#allocation133_spill] sm:$0xff] %v9468_v60  ;;  %v9473_v45 = vld [vmem:[#allocation3 + $0x460] sm:$0xff] }
 0x4a7   :  { %2883 = vmatpush.msra.mxu1 %v9454_v4  ;;  %2906 = vmatpush.msra.mxu2 %v8787_v6  ;;  %13634 = vst [vmem:[#allocation138_spill] sm:$0xff] %v9473_v45  ;;  %v9476_v6 = vld [vmem:[#allocation3 + $0x468] sm:$0xff] }
 0x4a8   :  { %2923 = vmatpush.msra.mxu3 %v9458_v2  ;;  %2867 = vmatmul.f32.vlgmr.msra.gmra.mxu0 %v9288_v16  ;;  %13635 = vst [vmem:[#allocation140_spill] sm:$0xff] %v9476_v6 }
 0x4a9   :  { %2907 = vmatmul.f32.vlgmr.msra.gmra.mxu2 %v9288_v16  ;;  %2933 = vmatpush.msrb.mxu0 %v8793_v0  ;;  %v9481_v0 = vld [vmem:[#allocation3 + $0x420] sm:$0xff] }
 0x4aa   :  { %2973 = vmatpush.msrb.mxu2 %v8796_v37  ;;  %2884 = vmatpush.msra.mxu1 %v9465_v43  ;;  %13636 = vst [vmem:[#allocation135_spill] sm:$0xff] %v9481_v0  ;;  %v9484_v37 = vld [vmem:[#allocation3 + $0x428] sm:$0xff] }
 0x4ab   :  { %2924 = vmatpush.msra.mxu3 %v9468_v60  ;;  %2934 = vmatpush.msrb.mxu0 %v8801_v1  ;;  %13637 = vst [vmem:[#allocation137_spill] sm:$0xff] %v9484_v37  ;;  %v9490_v1 = vld [vmem:[#allocation3 + $0x7f0] sm:$0xff] }
 0x4ac   :  { %2974 = vmatpush.msrb.mxu2 %v8804_v46  ;;  %2885 = vmatpush.msra.mxu1 %v9473_v45  ;;  %13638 = vst [vmem:[#allocation139_spill] sm:$0xff] %v9490_v1  ;;  %v13639_v46 = vld [vmem:[#allocation203_spill] sm:$0xff] }
 0x4ad   :  { %2925 = vmatpush.msra.mxu3 %v9476_v6  ;;  %2935 = vmatpush.msrb.mxu0 %v8809_v56  ;;  %v13640_v56 = vld [vmem:[#allocation204_spill] sm:$0xff] }
 0x4ae   :  { %2975 = vmatpush.msrb.mxu2 %v8812_v29  ;;  %2886 = vmatpush.msra.mxu1 %v9481_v0  ;;  %v13641_v29 = vld [vmem:[#allocation213_spill] sm:$0xff]  ;;  %v13811_v0 = vld [vmem:[#allocation60_spill] sm:$0xff] }
 0x4af   :  { %2926 = vmatpush.msra.mxu3 %v9484_v37  ;;  %2887 = vmatmul.f32.vlgmr.msra.gmra.mxu1 %v9305_v41 }
 0x4b0   :  { %2927 = vmatmul.f32.vlgmr.msra.gmra.mxu3 %v9305_v41  ;;  %2936 = vmatpush.msrb.mxu0 %v8819_v42  ;;  %v13642_v42 = vld [vmem:[#allocation214_spill] sm:$0xff] }
 0x4b1   :  { %2953 = vmatpush.msrb.mxu1 %v9490_v1  ;;  %2976 = vmatpush.msrb.mxu2 %v8823_v27  ;;  %v13643_v27 = vld [vmem:[#allocation207_spill] sm:$0xff] }
 0x4b2   :  { %2993 = vmatpush.msrb.mxu3 %v8826_v51  ;;  %2937 = vmatpush.msrb.mxu0 %v8829_v33  ;;  %v13644_v51 = vld [vmem:[#allocation208_spill] sm:$0xff]  ;;  %v13645_v33 = vld [vmem:[#allocation217_spill] sm:$0xff] }
 0x4b3   :  { %2954 = vmatpush.msrb.mxu1 %v8832_v54  ;;  %2977 = vmatpush.msrb.mxu2 %v8835_v52  ;;  %v13646_v54 = vld [vmem:[#allocation211_spill] sm:$0xff]  ;;  %v13647_v52 = vld [vmem:[#allocation212_spill] sm:$0xff] }
 0x4b4   :  { %2994 = vmatpush.msrb.mxu3 %v8838_v59  ;;  %2938 = vmatpush.msrb.mxu0 %v8841_v10  ;;  %v13648_v59 = vld [vmem:[#allocation215_spill] sm:$0xff]  ;;  %v13649_v10 = vld [vmem:[#allocation216_spill] sm:$0xff] }
 0x4b5   :  { %2955 = vmatpush.msrb.mxu1 %v8844_v30  ;;  %2978 = vmatpush.msrb.mxu2 %v8847_v38  ;;  %v13650_v30 = vld [vmem:[#allocation20_spill] sm:$0xff]  ;;  %v13651_v38 = vld [vmem:[#allocation18_spill] sm:$0xff] }
 0x4b6   :  { %2995 = vmatpush.msrb.mxu3 %v8850_v57  ;;  %2939 = vmatpush.msrb.mxu0 %v8853_v7  ;;  %v13652_v57 = vld [vmem:[#allocation21_spill] sm:$0xff]  ;;  %v13653_v7 = vld [vmem:[#allocation19_spill] sm:$0xff] }
 0x4b7   :  { %2956 = vmatpush.msrb.mxu1 %v8856_v49  ;;  %2979 = vmatpush.msrb.mxu2 %v8859_v32  ;;  %v13654_v49 = vld [vmem:[#allocation50_spill] sm:$0xff]  ;;  %v13655_v32 = vld [vmem:[#allocation51_spill] sm:$0xff] }
 0x4b8   :  { %2996 = vmatpush.msrb.mxu3 %v8862_v22  ;;  %2940 = vmatpush.msrb.mxu0 %v8865_v15  ;;  %v13656_v22 = vld [vmem:[#allocation52_spill] sm:$0xff]  ;;  %v13657_v15 = vld [vmem:[#allocation53_spill] sm:$0xff] }
 0x4b9   :  { %2957 = vmatpush.msrb.mxu1 %v8868_v12  ;;  %2980 = vmatpush.msrb.mxu2 %v8871_v8  ;;  %v13658_v12 = vld [vmem:[#allocation86_spill] sm:$0xff]  ;;  %v13659_v8 = vld [vmem:[#allocation88_spill] sm:$0xff] }
 0x4ba   :  { %2997 = vmatpush.msrb.mxu3 %v8874_v11  ;;  %2941 = vmatpush.msrb.mxu0 %v13639_v46  ;;  %v13660_v11 = vld [vmem:[#allocation84_spill] sm:$0xff]  ;;  %v13661_v46 = vld [vmem:[#allocation85_spill] sm:$0xff] }
 0x4bb   :  { %2958 = vmatpush.msrb.mxu1 %v13640_v56  ;;  %2981 = vmatpush.msrb.mxu2 %v13641_v29  ;;  %v13662_v56 = vld [vmem:[#allocation90_spill] sm:$0xff]  ;;  %v13663_v29 = vld [vmem:[#allocation92_spill] sm:$0xff] }
 0x4bc   :  { %2998 = vmatpush.msrb.mxu3 %v13642_v42  ;;  %2942 = vmatpush.msrb.mxu0 %v13643_v27  ;;  %v13664_v42 = vld [vmem:[#allocation87_spill] sm:$0xff]  ;;  %v13665_v27 = vld [vmem:[#allocation89_spill] sm:$0xff] }
 0x4bd   :  { %2959 = vmatpush.msrb.mxu1 %v13644_v51  ;;  %2982 = vmatpush.msrb.mxu2 %v13645_v33  ;;  %v13666_v51 = vld [vmem:[#allocation94_spill] sm:$0xff]  ;;  %v13667_v33 = vld [vmem:[#allocation96_spill] sm:$0xff] }
 0x4be   :  { %2999 = vmatpush.msrb.mxu3 %v13646_v54  ;;  %2943 = vmatpush.msrb.mxu0 %v13647_v52  ;;  %v13668_v54 = vld [vmem:[#allocation91_spill] sm:$0xff]  ;;  %v13669_v52 = vld [vmem:[#allocation93_spill] sm:$0xff] }
 0x4bf   :  { %2960 = vmatpush.msrb.mxu1 %v13648_v59  ;;  %2983 = vmatpush.msrb.mxu2 %v13649_v10  ;;  %v13670_v59 = vld [vmem:[#allocation98_spill] sm:$0xff]  ;;  %v13671_v10 = vld [vmem:[#allocation100_spill] sm:$0xff] }
 0x4c0   :  { %3000 = vmatpush.msrb.mxu3 %v13650_v30  ;;  %2944 = vmatpush.msrb.mxu0 %v13651_v38  ;;  %v13672_v30 = vld [vmem:[#allocation95_spill] sm:$0xff]  ;;  %v13673_v38 = vld [vmem:[#allocation97_spill] sm:$0xff] }
 0x4c1   :  { %2961 = vmatpush.msrb.mxu1 %v13652_v57  ;;  %2984 = vmatpush.msrb.mxu2 %v13653_v7  ;;  %v13674_v57 = vld [vmem:[#allocation102_spill] sm:$0xff]  ;;  %v13675_v7 = vld [vmem:[#allocation104_spill] sm:$0xff] }
 0x4c2   :  { %3001 = vmatpush.msrb.mxu3 %v13654_v49  ;;  %2945 = vmatpush.msrb.mxu0 %v13655_v32  ;;  %v13676_v49 = vld [vmem:[#allocation99_spill] sm:$0xff]  ;;  %v13677_v32 = vld [vmem:[#allocation101_spill] sm:$0xff] }
 0x4c3   :  { %2962 = vmatpush.msrb.mxu1 %v13656_v22  ;;  %2985 = vmatpush.msrb.mxu2 %v13657_v15  ;;  %v13678_v22 = vld [vmem:[#allocation106_spill] sm:$0xff]  ;;  %v13679_v15 = vld [vmem:[#allocation108_spill] sm:$0xff] }
 0x4c4   :  { %3002 = vmatpush.msrb.mxu3 %v13658_v12  ;;  %2946 = vmatpush.msrb.mxu0 %v13659_v8  ;;  %v13680_v12 = vld [vmem:[#allocation103_spill] sm:$0xff]  ;;  %v13682_v8 = vld [vmem:[#allocation110_spill] sm:$0xff] }
 0x4c5   :  { %2963 = vmatpush.msrb.mxu1 %v13660_v11  ;;  %2986 = vmatpush.msrb.mxu2 %v13661_v46  ;;  %v13683_v11 = vld [vmem:[#allocation112_spill] sm:$0xff]  ;;  %v13684_v46 = vld [vmem:[#allocation218_spill] sm:$0xff] }
 0x4c6   :  { %3003 = vmatpush.msrb.mxu3 %v13662_v56  ;;  %2947 = vmatpush.msrb.mxu0 %v13663_v29  ;;  %v13685_v56 = vld [vmem:[#allocation219_spill] sm:$0xff]  ;;  %v13686_v29 = vld [vmem:[#allocation220_spill] sm:$0xff] }
 0x4c7   :  { %2964 = vmatpush.msrb.mxu1 %v13664_v42  ;;  %2987 = vmatpush.msrb.mxu2 %v13665_v27  ;;  %v13687_v42 = vld [vmem:[#allocation221_spill] sm:$0xff]  ;;  %v13688_v27 = vld [vmem:[#allocation222_spill] sm:$0xff] }
 0x4c8   :  { %3004 = vmatpush.msrb.mxu3 %v13666_v51  ;;  %2948 = vmatpush.msrb.mxu0 %v13667_v33  ;;  %v13689_v51 = vld [vmem:[#allocation223_spill] sm:$0xff]  ;;  %v13690_v33 = vld [vmem:[#allocation224_spill] sm:$0xff] }
 0x4c9   :  { %2965 = vmatpush.msrb.mxu1 %v13668_v54  ;;  %2988 = vmatpush.msrb.mxu2 %v13669_v52  ;;  %v13692_v54 = vld [vmem:[#allocation226_spill] sm:$0xff]  ;;  %v13693_v52 = vld [vmem:[#allocation227_spill] sm:$0xff] }
 0x4ca   :  { %3005 = vmatpush.msrb.mxu3 %v13670_v59  ;;  %2949 = vmatmul.f32.vlgmr.msrb.gmra.mxu0 %v9288_v16  ;;  %v9570_v59 = vld [vmem:[#allocation3 + $0x288] sm:$0xff] }
 0x4cb   :  { %2989 = vmatmul.f32.vlgmr.msrb.gmra.mxu2 %v9288_v16  ;;  %2966 = vmatpush.msrb.mxu1 %v13671_v10  ;;  %v13681_v16 = vld [vmem:[#allocation105_spill] sm:$0xff]  ;;  %13694 = vst [vmem:[#allocation141_spill] sm:$0xff] %v9570_v59  ;;  %v13695_v10 = vld [vmem:[#allocation107_spill] sm:$0xff] }
 0x4cc   :  { %3006 = vmatpush.msrb.mxu3 %v13672_v30  ;;  %3152 = vmatpush.msra.mxu0 %v13673_v38  ;;  %v13696_v30 = vld [vmem:[#allocation228_spill] sm:$0xff]  ;;  %v9575_v38 = vld [vmem:[#allocation3 + $0x240] sm:$0xff] }
 0x4cd   :  { %3192 = vmatpush.msra.mxu2 %v13674_v57  ;;  %2967 = vmatpush.msrb.mxu1 %v13675_v7  ;;  %13697 = vst [vmem:[#allocation16_spill] sm:$0xff] %v9575_v38  ;;  %v9578_v57 = vld [vmem:[#allocation3 + $0x248] sm:$0xff]  ;;  %v13699_v7 = vld [vmem:[#allocation109_spill] sm:$0xff] }
 0x4ce   :  { %3007 = vmatpush.msrb.mxu3 %v13676_v49  ;;  %3153 = vmatpush.msra.mxu0 %v13677_v32  ;;  %13698 = vst [vmem:[#allocation14_spill] sm:$0xff] %v9578_v57  ;;  %v13700_v49 = vld [vmem:[#allocation114_spill] sm:$0xff] }
 0x4cf   :  { %3193 = vmatpush.msra.mxu2 %v13678_v22  ;;  %2968 = vmatpush.msrb.mxu1 %v13679_v15  ;;  %v9583_v32 = vld [vmem:[#allocation3 + $0x200] sm:$0xff]  ;;  %v9586_v22 = vld [vmem:[#allocation3 + $0x208] sm:$0xff]  ;;  %v13703_v15 = vld [vmem:[#allocation116_spill] sm:$0xff] }
 0x4d0   :  { %3008 = vmatpush.msrb.mxu3 %v13680_v12  ;;  %2969 = vmatmul.f32.vlgmr.msrb.gmra.mxu1 %v9305_v41  ;;  %13701 = vst [vmem:[#allocation17_spill] sm:$0xff] %v9583_v32  ;;  %v13704_v12 = vld [vmem:[#allocation111_spill] sm:$0xff] }
 0x4d1   :  { %3009 = vmatmul.f32.vlgmr.msrb.gmra.mxu3 %v9305_v41  ;;  %3154 = vmatpush.msra.mxu0 %v13681_v16  ;;  %v13691_v41 = vld [vmem:[#allocation225_spill] sm:$0xff]  ;;  %13702 = vst [vmem:[#allocation15_spill] sm:$0xff] %v9586_v22 }
 0x4d2   :  { %3194 = vmatpush.msra.mxu2 %v13682_v8  ;;  %3172 = vmatpush.msra.mxu1 %v13683_v11  ;;  %v9591_v16 = vld [vmem:[#allocation3 + $0x1c0] sm:$0xff]  ;;  %v9594_v8 = vld [vmem:[#allocation3 + $0x1c8] sm:$0xff] }
 0x4d3   :  { %3212 = vmatpush.msra.mxu3 %v13684_v46  ;;  %3155 = vmatpush.msra.mxu0 %v13685_v56  ;;  %13705 = vst [vmem:[#allocation47_spill] sm:$0xff] %v9591_v16  ;;  %v9597_v11 = vld [vmem:[#allocation3 + $0x640] sm:$0xff]  ;;  %v9600_v46 = vld [vmem:[#allocation3 + $0x648] sm:$0xff] }
 0x4d4   :  { %3195 = vmatpush.msra.mxu2 %v13686_v29  ;;  %3173 = vmatpush.msra.mxu1 %v13687_v42  ;;  %13706 = vst [vmem:[#allocation46_spill] sm:$0xff] %v9594_v8  ;;  %v9603_v56 = vld [vmem:[#allocation3 + $0x180] sm:$0xff]  ;;  %v9606_v29 = vld [vmem:[#allocation3 + $0x188] sm:$0xff] }
 0x4d5   :  { %3213 = vmatpush.msra.mxu3 %v13688_v27  ;;  %3156 = vmatpush.msra.mxu0 %v13689_v51  ;;  %13707 = vst [vmem:[#allocation48_spill] sm:$0xff] %v9597_v11  ;;  %v9609_v42 = vld [vmem:[#allocation3 + $0x600] sm:$0xff]  ;;  %v9612_v27 = vld [vmem:[#allocation3 + $0x608] sm:$0xff] }
 0x4d6   :  { %3196 = vmatpush.msra.mxu2 %v13690_v33  ;;  %3174 = vmatpush.msra.mxu1 %v13691_v41  ;;  %13708 = vst [vmem:[#allocation49_spill] sm:$0xff] %v9600_v46  ;;  %v9615_v51 = vld [vmem:[#allocation3 + $0x140] sm:$0xff]  ;;  %v9618_v33 = vld [vmem:[#allocation3 + $0x148] sm:$0xff] }
 0x4d7   :  { %3214 = vmatpush.msra.mxu3 %v13692_v54  ;;  %3157 = vmatpush.msra.mxu0 %v13693_v52  ;;  %13709 = vst [vmem:[#allocation142_spill] sm:$0xff] %v9603_v56  ;;  %v9621_v41 = vld [vmem:[#allocation3 + $0x5c0] sm:$0xff]  ;;  %v9624_v54 = vld [vmem:[#allocation3 + $0x5c8] sm:$0xff] }
 0x4d8   :  { %3197 = vmatpush.msra.mxu2 %v9570_v59  ;;  %3175 = vmatpush.msra.mxu1 %v13695_v10  ;;  %13710 = vst [vmem:[#allocation143_spill] sm:$0xff] %v9606_v29  ;;  %v9627_v52 = vld [vmem:[#allocation3 + $0x100] sm:$0xff]  ;;  %v9630_v10 = vld [vmem:[#allocation3 + $0x108] sm:$0xff] }
 0x4d9   :  { %3215 = vmatpush.msra.mxu3 %v13696_v30  ;;  %3158 = vmatpush.msra.mxu0 %v9575_v38  ;;  %13711 = vst [vmem:[#allocation144_spill] sm:$0xff] %v9609_v42  ;;  %v9633_v30 = vld [vmem:[#allocation3 + $0x580] sm:$0xff] }
 0x4da   :  { %3198 = vmatpush.msra.mxu2 %v9578_v57  ;;  %3176 = vmatpush.msra.mxu1 %v13699_v7  ;;  %13712 = vst [vmem:[#allocation145_spill] sm:$0xff] %v9612_v27  ;;  %v9636_v7 = vld [vmem:[#allocation3 + $0x588] sm:$0xff] }
 0x4db   :  { %3216 = vmatpush.msra.mxu3 %v13700_v49  ;;  %3159 = vmatpush.msra.mxu0 %v9583_v32  ;;  %13713 = vst [vmem:[#allocation147_spill] sm:$0xff] %v9615_v51  ;;  %v9639_v49 = vld [vmem:[#allocation3 + $0xc0] sm:$0xff]  ;;  %v13808_v57 = vld [vmem:[#allocation27_spill] sm:$0xff] }
 0x4dc   :  { %3199 = vmatpush.msra.mxu2 %v9586_v22  ;;  %3177 = vmatpush.msra.mxu1 %v13703_v15  ;;  %13714 = vst [vmem:[#allocation149_spill] sm:$0xff] %v9618_v33  ;;  %v9642_v15 = vld [vmem:[#allocation3 + $0xc8] sm:$0xff] }
 0x4dd   :  { %3217 = vmatpush.msra.mxu3 %v13704_v12  ;;  %3160 = vmatpush.msra.mxu0 %v9591_v16  ;;  %13715 = vst [vmem:[#allocation151_spill] sm:$0xff] %v9621_v41  ;;  %v9645_v12 = vld [vmem:[#allocation3 + $0x540] sm:$0xff] }
 0x4de   :  { %3200 = vmatpush.msra.mxu2 %v9594_v8  ;;  %3178 = vmatpush.msra.mxu1 %v9597_v11  ;;  %13716 = vst [vmem:[#allocation153_spill] sm:$0xff] %v9624_v54  ;;  %v13807_v16 = vld [vmem:[#allocation29_spill] sm:$0xff] }
 0x4df   :  { %3218 = vmatpush.msra.mxu3 %v9600_v46  ;;  %3161 = vmatpush.msra.mxu0 %v9603_v56  ;;  %13717 = vst [vmem:[#allocation155_spill] sm:$0xff] %v9627_v52  ;;  %v13806_v46 = vld [vmem:[#allocation26_spill] sm:$0xff] }
 0x4e0   :  { %3201 = vmatpush.msra.mxu2 %v9606_v29  ;;  %3179 = vmatpush.msra.mxu1 %v9609_v42  ;;  %13718 = vst [vmem:[#allocation157_spill] sm:$0xff] %v9630_v10  ;;  %v13805_v42 = vld [vmem:[#allocation28_spill] sm:$0xff] }
 0x4e1   :  { %3219 = vmatpush.msra.mxu3 %v9612_v27  ;;  %3162 = vmatpush.msra.mxu0 %v9615_v51  ;;  %13719 = vst [vmem:[#allocation146_spill] sm:$0xff] %v9633_v30 }
 0x4e2   :  { %3202 = vmatpush.msra.mxu2 %v9618_v33  ;;  %3180 = vmatpush.msra.mxu1 %v9621_v41  ;;  %13720 = vst [vmem:[#allocation159_spill] sm:$0xff] %v9636_v7 }
 0x4e3   :  { %3220 = vmatpush.msra.mxu3 %v9624_v54  ;;  %3163 = vmatpush.msra.mxu0 %v9627_v52  ;;  %13721 = vst [vmem:[#allocation148_spill] sm:$0xff] %v9639_v49 }
 0x4e4   :  { %3203 = vmatpush.msra.mxu2 %v9630_v10  ;;  %3181 = vmatpush.msra.mxu1 %v9633_v30  ;;  %13722 = vst [vmem:[#allocation161_spill] sm:$0xff] %v9642_v15  ;;  %v9648_v10 = vld [vmem:[#allocation3 + $0x548] sm:$0xff]  ;;  %v9651_v30 = vld [vmem:[#allocation3 + $0x80] sm:$0xff] }
 0x4e5   :  { %3221 = vmatpush.msra.mxu3 %v9636_v7  ;;  %3164 = vmatpush.msra.mxu0 %v9639_v49  ;;  %13723 = vst [vmem:[#allocation150_spill] sm:$0xff] %v9645_v12  ;;  %v9654_v7 = vld [vmem:[#allocation3 + $0x88] sm:$0xff]  ;;  %v9657_v49 = vld [vmem:[#allocation3 + $0x500] sm:$0xff] }
 0x4e6   :  { %3204 = vmatpush.msra.mxu2 %v9642_v15  ;;  %3182 = vmatpush.msra.mxu1 %v9645_v12  ;;  %13724 = vst [vmem:[#allocation163_spill] sm:$0xff] %v9648_v10  ;;  %v9660_v15 = vld [vmem:[#allocation3 + $0x508] sm:$0xff]  ;;  %v9663_v12 = vld [vmem:[#allocation3 + $0x40] sm:$0xff] }
 0x4e7   :  { %3222 = vmatpush.msra.mxu3 %v9648_v10  ;;  %13725 = vst [vmem:[#allocation152_spill] sm:$0xff] %v9651_v30  ;;  %3165 = vmatpush.msra.mxu0 %v9651_v30  ;;  %v9666_v10 = vld [vmem:[#allocation3 + $0x48] sm:$0xff]  ;;  %v9669_v30 = vld [vmem:[#allocation3 + $0x4c0] sm:$0xff] }
 0x4e8   :  { %13726 = vst [vmem:[#allocation165_spill] sm:$0xff] %v9654_v7  ;;  %3205 = vmatpush.msra.mxu2 %v9654_v7  ;;  %3183 = vmatpush.msra.mxu1 %v9657_v49  ;;  %v9672_v7 = vld [vmem:[#allocation3 + $0x4c8] sm:$0xff] }
 0x4e9   :  { %13727 = vst [vmem:[#allocation154_spill] sm:$0xff] %v9657_v49  ;;  %3223 = vmatpush.msra.mxu3 %v9660_v15  ;;  %3166 = vmatpush.msra.mxu0 %v9663_v12  ;;  %v9675_v49 = vld [vmem:[#allocation3] sm:$0xff] }
 0x4ea   :  { %13728 = vst [vmem:[#allocation167_spill] sm:$0xff] %v9660_v15  ;;  %3206 = vmatpush.msra.mxu2 %v9666_v10  ;;  %3184 = vmatpush.msra.mxu1 %v9669_v30  ;;  %v9678_v15 = vld [vmem:[#allocation3 + $0x8] sm:$0xff] }
 0x4eb   :  { %13729 = vst [vmem:[#allocation156_spill] sm:$0xff] %v9663_v12  ;;  %3224 = vmatpush.msra.mxu3 %v9672_v7  ;;  %3167 = vmatpush.msra.mxu0 %v9675_v49  ;;  %v9681_v12 = vld [vmem:[#allocation3 + $0x3d0] sm:$0xff] }
 0x4ec   :  { %13730 = vst [vmem:[#allocation169_spill] sm:$0xff] %v9666_v10  ;;  %3207 = vmatpush.msra.mxu2 %v9678_v15  ;;  %v9684_v10 = vld [vmem:[#allocation3 + $0x3d8] sm:$0xff] }
 0x4ed   :  { %13731 = vst [vmem:[#allocation158_spill] sm:$0xff] %v9669_v30  ;;  %3234 = vmatpush.msrb.mxu0 %v9681_v12  ;;  %v9687_v30 = vld [vmem:[#allocation3 + $0x480] sm:$0xff] }
 0x4ee   :  { %13732 = vst [vmem:[#allocation171_spill] sm:$0xff] %v9672_v7  ;;  %3274 = vmatpush.msrb.mxu2 %v9684_v10  ;;  %3185 = vmatpush.msra.mxu1 %v9687_v30  ;;  %v9690_v7 = vld [vmem:[#allocation3 + $0x488] sm:$0xff] }
 0x4ef   :  { %13733 = vst [vmem:[#allocation160_spill] sm:$0xff] %v9675_v49  ;;  %3225 = vmatpush.msra.mxu3 %v9690_v7  ;;  %v9693_v49 = vld [vmem:[#allocation3 + $0x390] sm:$0xff] }
 0x4f0   :  { %13734 = vst [vmem:[#allocation173_spill] sm:$0xff] %v9678_v15  ;;  %3235 = vmatpush.msrb.mxu0 %v9693_v49  ;;  %v9696_v15 = vld [vmem:[#allocation3 + $0x398] sm:$0xff] }
 0x4f1   :  { %13735 = vst [vmem:[#allocation162_spill] sm:$0xff] %v9681_v12  ;;  %3275 = vmatpush.msrb.mxu2 %v9696_v15  ;;  %v9699_v12 = vld [vmem:[#allocation3 + $0x440] sm:$0xff] }
 0x4f2   :  { %13736 = vst [vmem:[#allocation175_spill] sm:$0xff] %v9684_v10  ;;  %3186 = vmatpush.msra.mxu1 %v9699_v12  ;;  %v9702_v10 = vld [vmem:[#allocation3 + $0x448] sm:$0xff] }
 0x4f3   :  { %13737 = vst [vmem:[#allocation164_spill] sm:$0xff] %v9687_v30  ;;  %3226 = vmatpush.msra.mxu3 %v9702_v10  ;;  %v9705_v30 = vld [vmem:[#allocation3 + $0x350] sm:$0xff] }
 0x4f4   :  { %13738 = vst [vmem:[#allocation177_spill] sm:$0xff] %v9690_v7  ;;  %3236 = vmatpush.msrb.mxu0 %v9705_v30  ;;  %v9708_v7 = vld [vmem:[#allocation3 + $0x358] sm:$0xff] }
 0x4f5   :  { %13739 = vst [vmem:[#allocation166_spill] sm:$0xff] %v9693_v49  ;;  %3276 = vmatpush.msrb.mxu2 %v9708_v7  ;;  %v9711_v49 = vld [vmem:[#allocation3 + $0x400] sm:$0xff] }
 0x4f6   :  { %13740 = vst [vmem:[#allocation179_spill] sm:$0xff] %v9696_v15  ;;  %3187 = vmatpush.msra.mxu1 %v9711_v49  ;;  %v9714_v15 = vld [vmem:[#allocation3 + $0x408] sm:$0xff] }
 0x4f7   :  { %13741 = vst [vmem:[#allocation168_spill] sm:$0xff] %v9699_v12  ;;  %3227 = vmatpush.msra.mxu3 %v9714_v15  ;;  %v9717_v12 = vld [vmem:[#allocation3 + $0x310] sm:$0xff] }
 0x4f8   :  { %13742 = vst [vmem:[#allocation181_spill] sm:$0xff] %v9702_v10  ;;  %3237 = vmatpush.msrb.mxu0 %v9717_v12  ;;  %v9720_v10 = vld [vmem:[#allocation3 + $0x7d0] sm:$0xff] }
 0x4f9   :  { %13743 = vst [vmem:[#allocation170_spill] sm:$0xff] %v9705_v30  ;;  %3254 = vmatpush.msrb.mxu1 %v9720_v10  ;;  %v9723_v30 = vld [vmem:[#allocation3 + $0x318] sm:$0xff] }
 0x4fa   :  { %13744 = vst [vmem:[#allocation183_spill] sm:$0xff] %v9708_v7  ;;  %3277 = vmatpush.msrb.mxu2 %v9723_v30  ;;  %v9726_v7 = vld [vmem:[#allocation3 + $0x7d8] sm:$0xff] }
 0x4fb   :  { %13745 = vst [vmem:[#allocation172_spill] sm:$0xff] %v9711_v49  ;;  %3294 = vmatpush.msrb.mxu3 %v9726_v7  ;;  %v9729_v49 = vld [vmem:[#allocation3 + $0x2d0] sm:$0xff] }
 0x4fc   :  { %13746 = vst [vmem:[#allocation185_spill] sm:$0xff] %v9714_v15  ;;  %3238 = vmatpush.msrb.mxu0 %v9729_v49  ;;  %v9732_v15 = vld [vmem:[#allocation3 + $0x790] sm:$0xff] }
 0x4fd   :  { %13747 = vst [vmem:[#allocation174_spill] sm:$0xff] %v9717_v12  ;;  %3255 = vmatpush.msrb.mxu1 %v9732_v15  ;;  %v9735_v12 = vld [vmem:[#allocation3 + $0x2d8] sm:$0xff] }
 0x4fe   :  { %13748 = vst [vmem:[#allocation187_spill] sm:$0xff] %v9720_v10  ;;  %3278 = vmatpush.msrb.mxu2 %v9735_v12  ;;  %v9738_v10 = vld [vmem:[#allocation3 + $0x798] sm:$0xff] }
 0x4ff   :  { %13749 = vst [vmem:[#allocation176_spill] sm:$0xff] %v9723_v30  ;;  %3295 = vmatpush.msrb.mxu3 %v9738_v10  ;;  %v9741_v30 = vld [vmem:[#allocation3 + $0x290] sm:$0xff] }
 0x500   :  { %13750 = vst [vmem:[#allocation189_spill] sm:$0xff] %v9726_v7  ;;  %3239 = vmatpush.msrb.mxu0 %v9741_v30  ;;  %v9744_v7 = vld [vmem:[#allocation3 + $0x750] sm:$0xff] }
 0x501   :  { %13751 = vst [vmem:[#allocation178_spill] sm:$0xff] %v9729_v49  ;;  %3256 = vmatpush.msrb.mxu1 %v9744_v7  ;;  %v9747_v49 = vld [vmem:[#allocation3 + $0x298] sm:$0xff] }
 0x502   :  { %13752 = vst [vmem:[#allocation191_spill] sm:$0xff] %v9732_v15  ;;  %3279 = vmatpush.msrb.mxu2 %v9747_v49  ;;  %v9750_v15 = vld [vmem:[#allocation3 + $0x758] sm:$0xff]  ;;  %v2704_v52 = vpop.f32.mrf.mxu0 }
 0x503   :  { %13753 = vst [vmem:[#allocation180_spill] sm:$0xff] %v9735_v12  ;;  %3296 = vmatpush.msrb.mxu3 %v9750_v15  ;;  %v9753_v12 = vld [vmem:[#allocation3 + $0x250] sm:$0xff] }
 0x504   :  { %13754 = vst [vmem:[#allocation193_spill] sm:$0xff] %v9738_v10  ;;  %3240 = vmatpush.msrb.mxu0 %v9753_v12  ;;  %v9756_v10 = vld [vmem:[#allocation3 + $0x710] sm:$0xff] }
 0x505   :  { %13755 = vst [vmem:[#allocation182_spill] sm:$0xff] %v9741_v30  ;;  %3257 = vmatpush.msrb.mxu1 %v9756_v10  ;;  %v9759_v30 = vld [vmem:[#allocation3 + $0x258] sm:$0xff] }
 0x506   :  { %13756 = vst [vmem:[#allocation195_spill] sm:$0xff] %v9744_v7  ;;  %3280 = vmatpush.msrb.mxu2 %v9759_v30  ;;  %v9762_v7 = vld [vmem:[#allocation3 + $0x718] sm:$0xff] }
 0x507   :  { %13757 = vst [vmem:[#allocation184_spill] sm:$0xff] %v9747_v49  ;;  %3297 = vmatpush.msrb.mxu3 %v9762_v7  ;;  %v9765_v49 = vld [vmem:[#allocation3 + $0x210] sm:$0xff] }
 0x508   :  { %13758 = vst [vmem:[#allocation186_spill] sm:$0xff] %v9750_v15  ;;  %3241 = vmatpush.msrb.mxu0 %v9765_v49  ;;  %v9768_v15 = vld [vmem:[#allocation3 + $0x6d0] sm:$0xff] }
 0x509   :  { %13759 = vst [vmem:[#allocation188_spill] sm:$0xff] %v9753_v12  ;;  %3258 = vmatpush.msrb.mxu1 %v9768_v15  ;;  %v9771_v12 = vld [vmem:[#allocation3 + $0x218] sm:$0xff] }
 0x50a   :  { %13760 = vst [vmem:[#allocation190_spill] sm:$0xff] %v9756_v10  ;;  %3281 = vmatpush.msrb.mxu2 %v9771_v12  ;;  %v9774_v10 = vld [vmem:[#allocation3 + $0x6d8] sm:$0xff] }
 0x50b   :  { %13761 = vst [vmem:[#allocation192_spill] sm:$0xff] %v9759_v30  ;;  %3298 = vmatpush.msrb.mxu3 %v9774_v10  ;;  %v9777_v30 = vld [vmem:[#allocation3 + $0x1d0] sm:$0xff]  ;;  %v2786_v33 = vpop.f32.mrf.mxu0 }
 0x50c   :  { %13762 = vst [vmem:[#allocation194_spill] sm:$0xff] %v9762_v7  ;;  %3242 = vmatpush.msrb.mxu0 %v9777_v30  ;;  %v9780_v7 = vld [vmem:[#allocation3 + $0x690] sm:$0xff] }
 0x50d   :  { %13763 = vst [vmem:[#allocation196_spill] sm:$0xff] %v9765_v49  ;;  %3259 = vmatpush.msrb.mxu1 %v9780_v7  ;;  %v9783_v49 = vld [vmem:[#allocation3 + $0x1d8] sm:$0xff] }
 0x50e   :  { %13764 = vst [vmem:[#allocation201_spill] sm:$0xff] %v9768_v15  ;;  %3282 = vmatpush.msrb.mxu2 %v9783_v49  ;;  %v9786_v15 = vld [vmem:[#allocation3 + $0x698] sm:$0xff]  ;;  %v2764_v54 = vpop.f32.mrf.mxu3 }
 0x50f   :  { %13765 = vst [vmem:[#allocation202_spill] sm:$0xff] %v9771_v12  ;;  %3299 = vmatpush.msrb.mxu3 %v9786_v15  ;;  %v9789_v12 = vld [vmem:[#allocation3 + $0x190] sm:$0xff] }
 0x510   :  { %13766 = vst [vmem:[#allocation197_spill] sm:$0xff] %v9774_v10  ;;  %3243 = vmatpush.msrb.mxu0 %v9789_v12  ;;  %v9792_v10 = vld [vmem:[#allocation3 + $0x650] sm:$0xff] }
 0x511   :  { %13767 = vst [vmem:[#allocation198_spill] sm:$0xff] %v9777_v30  ;;  %3260 = vmatpush.msrb.mxu1 %v9792_v10  ;;  %v9795_v30 = vld [vmem:[#allocation3 + $0x198] sm:$0xff] }
 0x512   :  { %13768 = vst [vmem:[#allocation205_spill] sm:$0xff] %v9780_v7  ;;  %3283 = vmatpush.msrb.mxu2 %v9795_v30  ;;  %v9798_v7 = vld [vmem:[#allocation3 + $0x658] sm:$0xff] }
 0x513   :  { %13769 = vst [vmem:[#allocation206_spill] sm:$0xff] %v9783_v49  ;;  %3300 = vmatpush.msrb.mxu3 %v9798_v7  ;;  %v9801_v49 = vld [vmem:[#allocation3 + $0x150] sm:$0xff] }
 0x514   :  { %13770 = vst [vmem:[#allocation199_spill] sm:$0xff] %v9786_v15  ;;  %3244 = vmatpush.msrb.mxu0 %v9801_v49  ;;  %v9804_v15 = vld [vmem:[#allocation3 + $0x610] sm:$0xff] }
 0x515   :  { %13771 = vst [vmem:[#allocation200_spill] sm:$0xff] %v9789_v12  ;;  %3261 = vmatpush.msrb.mxu1 %v9804_v15  ;;  %v9807_v12 = vld [vmem:[#allocation3 + $0x158] sm:$0xff] }
 0x516   :  { %13772 = vst [vmem:[#allocation209_spill] sm:$0xff] %v9792_v10  ;;  %3284 = vmatpush.msrb.mxu2 %v9807_v12  ;;  %v9810_v10 = vld [vmem:[#allocation3 + $0x618] sm:$0xff] }
 0x517   :  { %13773 = vst [vmem:[#allocation210_spill] sm:$0xff] %v9795_v30  ;;  %3301 = vmatpush.msrb.mxu3 %v9810_v10  ;;  %v9813_v30 = vld [vmem:[#allocation3 + $0x110] sm:$0xff] }
 0x518   :  { %13774 = vst [vmem:[#allocation24_spill] sm:$0xff] %v9798_v7  ;;  %3245 = vmatpush.msrb.mxu0 %v9813_v30  ;;  %v9816_v7 = vld [vmem:[#allocation3 + $0x5d0] sm:$0xff]  ;;  %v2846_v27 = vpop.f32.mrf.mxu3 }
 0x519   :  { %13775 = vst [vmem:[#allocation22_spill] sm:$0xff] %v9801_v49  ;;  %3262 = vmatpush.msrb.mxu1 %v9816_v7  ;;  %v9819_v49 = vld [vmem:[#allocation3 + $0x118] sm:$0xff] }
 0x51a   :  { %13776 = vst [vmem:[#allocation25_spill] sm:$0xff] %v9804_v15  ;;  %3285 = vmatpush.msrb.mxu2 %v9819_v49  ;;  %v9822_v15 = vld [vmem:[#allocation3 + $0x5d8] sm:$0xff] }
 0x51b   :  { %13777 = vst [vmem:[#allocation23_spill] sm:$0xff] %v9807_v12  ;;  %3302 = vmatpush.msrb.mxu3 %v9822_v15  ;;  %v9825_v12 = vld [vmem:[#allocation3 + $0xd0] sm:$0xff] }
 0x51c   :  { %13778 = vst [vmem:[#allocation54_spill] sm:$0xff] %v9810_v10  ;;  %3246 = vmatpush.msrb.mxu0 %v9825_v12  ;;  %v9828_v10 = vld [vmem:[#allocation3 + $0x590] sm:$0xff] }
 0x51d   :  { %13779 = vst [vmem:[#allocation55_spill] sm:$0xff] %v9813_v30  ;;  %3263 = vmatpush.msrb.mxu1 %v9828_v10  ;;  %v9831_v30 = vld [vmem:[#allocation3 + $0xd8] sm:$0xff] }
 0x51e   :  { %13780 = vst [vmem:[#allocation56_spill] sm:$0xff] %v9816_v7  ;;  %3286 = vmatpush.msrb.mxu2 %v9831_v30  ;;  %v9834_v7 = vld [vmem:[#allocation3 + $0x598] sm:$0xff] }
 0x51f   :  { %13781 = vst [vmem:[#allocation57_spill] sm:$0xff] %v9819_v49  ;;  %3303 = vmatpush.msrb.mxu3 %v9834_v7  ;;  %v9837_v49 = vld [vmem:[#allocation3 + $0x90] sm:$0xff] }
 0x520   :  { %13782 = vst [vmem:[#allocation203_spill] sm:$0xff] %v9822_v15  ;;  %3247 = vmatpush.msrb.mxu0 %v9837_v49  ;;  %v9840_v15 = vld [vmem:[#allocation3 + $0x550] sm:$0xff] }
 0x521   :  { %13783 = vst [vmem:[#allocation204_spill] sm:$0xff] %v9825_v12  ;;  %3264 = vmatpush.msrb.mxu1 %v9840_v15  ;;  %v9843_v12 = vld [vmem:[#allocation3 + $0x98] sm:$0xff] }
 0x522   :  { %13784 = vst [vmem:[#allocation213_spill] sm:$0xff] %v9828_v10  ;;  %3287 = vmatpush.msrb.mxu2 %v9843_v12  ;;  %v9846_v10 = vld [vmem:[#allocation3 + $0x558] sm:$0xff] }
 0x523   :  { %13785 = vst [vmem:[#allocation214_spill] sm:$0xff] %v9831_v30  ;;  %3304 = vmatpush.msrb.mxu3 %v9846_v10  ;;  %v9849_v30 = vld [vmem:[#allocation3 + $0x50] sm:$0xff] }
 0x524   :  { %13786 = vst [vmem:[#allocation207_spill] sm:$0xff] %v9834_v7  ;;  %3248 = vmatpush.msrb.mxu0 %v9849_v30  ;;  %v9852_v7 = vld [vmem:[#allocation3 + $0x510] sm:$0xff] }
 0x525   :  { %13787 = vst [vmem:[#allocation208_spill] sm:$0xff] %v9837_v49  ;;  %3265 = vmatpush.msrb.mxu1 %v9852_v7  ;;  %v9855_v49 = vld [vmem:[#allocation3 + $0x58] sm:$0xff]  ;;  %v2868_v59 = vpop.f32.mrf.mxu0 }
 0x526   :  { %13788 = vst [vmem:[#allocation217_spill] sm:$0xff] %v9840_v15  ;;  %3288 = vmatpush.msrb.mxu2 %v9855_v49  ;;  %v9858_v15 = vld [vmem:[#allocation3 + $0x518] sm:$0xff] }
 0x527   :  { %13789 = vst [vmem:[#allocation211_spill] sm:$0xff] %v9843_v12  ;;  %3305 = vmatpush.msrb.mxu3 %v9858_v15  ;;  %v9861_v12 = vld [vmem:[#allocation3 + $0x10] sm:$0xff] }
 0x528   :  { %13790 = vst [vmem:[#allocation212_spill] sm:$0xff] %v9846_v10  ;;  %3249 = vmatpush.msrb.mxu0 %v9861_v12  ;;  %v9864_v10 = vld [vmem:[#allocation3 + $0x4d0] sm:$0xff] }
 0x529   :  { %13791 = vst [vmem:[#allocation215_spill] sm:$0xff] %v9849_v30  ;;  %3266 = vmatpush.msrb.mxu1 %v9864_v10  ;;  %v9867_v30 = vld [vmem:[#allocation3 + $0x18] sm:$0xff] }
 0x52a   :  { %13792 = vst [vmem:[#allocation216_spill] sm:$0xff] %v9852_v7  ;;  %3289 = vmatpush.msrb.mxu2 %v9867_v30  ;;  %v9870_v7 = vld [vmem:[#allocation3 + $0x4d8] sm:$0xff] }
 0x52b   :  { %13793 = vst [vmem:[#allocation20_spill] sm:$0xff] %v9855_v49  ;;  %3306 = vmatpush.msrb.mxu3 %v9870_v7  ;;  %v9873_v49 = vld [vmem:[#allocation3 + $0x490] sm:$0xff] }
 0x52c   :  { %13794 = vst [vmem:[#allocation18_spill] sm:$0xff] %v9858_v15  ;;  %3267 = vmatpush.msrb.mxu1 %v9873_v49  ;;  %v9876_v15 = vld [vmem:[#allocation3 + $0x498] sm:$0xff] }
 0x52d   :  { %13795 = vst [vmem:[#allocation21_spill] sm:$0xff] %v9861_v12  ;;  %3307 = vmatpush.msrb.mxu3 %v9876_v15  ;;  %v9879_v12 = vld [vmem:[#allocation3 + $0x450] sm:$0xff] }
 0x52e   :  { %13796 = vst [vmem:[#allocation19_spill] sm:$0xff] %v9864_v10  ;;  %3268 = vmatpush.msrb.mxu1 %v9879_v12  ;;  %v9882_v10 = vld [vmem:[#allocation3 + $0x458] sm:$0xff] }
 0x52f   :  { %13797 = vst [vmem:[#allocation50_spill] sm:$0xff] %v9867_v30  ;;  %3308 = vmatpush.msrb.mxu3 %v9882_v10  ;;  %v9885_v30 = vld [vmem:[#allocation3 + $0x410] sm:$0xff] }
 0x530   :  { %13798 = vst [vmem:[#allocation51_spill] sm:$0xff] %v9870_v7  ;;  %3269 = vmatpush.msrb.mxu1 %v9885_v30  ;;  %v9888_v7 = vld [vmem:[#allocation3 + $0x418] sm:$0xff] }
 0x531   :  { %13799 = vst [vmem:[#allocation52_spill] sm:$0xff] %v9873_v49  ;;  %3309 = vmatpush.msrb.mxu3 %v9888_v7  ;;  %v2724_v49 = vpop.f32.mrf.mxu1 }
 0x532   :  { %13800 = vst [vmem:[#allocation53_spill] sm:$0xff] %v9876_v15  ;;  %v2744_v15 = vpop.f32.mrf.mxu2 }
 0x533   :  { %13801 = vst [vmem:[#allocation86_spill] sm:$0xff] %v9879_v12  ;;  %v2725_v12 = vadd.f32 %v2724_v49, %v2704_v52  ;;  %v2765_v8 = vadd.f32 %v2764_v54, %v2744_v15 }
 0x534   :  { %13802 = vst [vmem:[#allocation88_spill] sm:$0xff] %v9882_v10 }
 0x535   :  { %13803 = vst [vmem:[#allocation84_spill] sm:$0xff] %v9885_v30  ;;  %v2767_v11 = vadd.f32 %v2725_v12, %v13806_v46  ;;  %v2768_v38 = vadd.f32 %v2765_v8, %v13808_v57  ;;  %v13810_v57 = vld [vmem:[#allocation59_spill] sm:$0xff] }
 0x536   :  { %13804 = vst [vmem:[#allocation85_spill] sm:$0xff] %v9888_v7 }
 0x537   :  { %v5305_v7 = vmul.f32 -1.442695, %v2767_v11 }
 0x539   :  { %v2806_v41 = vpop.f32.mrf.mxu1 }
 0x53a   :  { %v2807_v51 = vadd.f32 %v2806_v41, %v2786_v33  ;;  %v2826_v10 = vpop.f32.mrf.mxu2  ;;  %v5306_v41 = vmul.f32 -1.442695, %v2768_v38 }
 0x53b   :  { %v2847_v56 = vadd.f32 %v2846_v27, %v2826_v10 }
 0x53c   :  { %v2849_v29 = vadd.f32 %v2807_v51, %v13805_v42  ;;  %v13809_v42 = vld [vmem:[#allocation58_spill] sm:$0xff]  ;;  %v2928_v51 = vpop.f32.mrf.mxu3 }
 0x53d   :  { %v2850_v22 = vadd.f32 %v2847_v56, %v13807_v16 }
 0x53e   :  { %v5307_v30 = vmul.f32 -1.442695, %v2849_v29 }
 0x53f   :  { %v5308_v1 = vmul.f32 -1.442695, %v2850_v22 }
 0x540   :  { %5445 = vpow2.f32 %v5307_v30 }
 0x541   :  { %v2888_v32 = vpop.f32.mrf.mxu1  ;;  %5447 = vpow2.f32 %v5305_v7 }
 0x542   :  { %v2889_v33 = vadd.f32 %v2888_v32, %v2868_v59  ;;  %5449 = vpow2.f32 %v5308_v1  ;;  %v2908_v46 = vpop.f32.mrf.mxu2 }
 0x543   :  { %v2929_v29 = vadd.f32 %v2928_v51, %v2908_v46  ;;  %5451 = vpow2.f32 %v5306_v41 }
 0x544   :  { %v2931_v27 = vadd.f32 %v2889_v33, %v13809_v42 }
 0x545   :  { %v2932_v8 = vadd.f32 %v2929_v29, %v13810_v57 }
 0x546   :  { %v5446_v52 = vpop.eup %5445  ;;  %v5309_v11 = vmul.f32 -1.442695, %v2931_v27 }
 0x547   :  { %v5448_v54 = vpop.eup %5447  ;;  %v9896_v16 = vadd.f32 1.0, %v5446_v52  ;;  %v5310_v1 = vmul.f32 -1.442695, %v2932_v8  ;;  %v2950_v57 = vpop.f32.mrf.mxu0 }
 0x548   :  { %v5450_v56 = vpop.eup %5449  ;;  %v3021_v10 = vadd.f32 1.0, %v5448_v54 }
 0x549   :  { %5453 = vrcp.f32 %v9896_v16  ;;  %v5452_v59 = vpop.eup %5451  ;;  %v9900_v38 = vadd.f32 1.0, %v5450_v56  ;;  %v3072_v37 = vand.u32 2147483648, %v9896_v16  ;;  %vm3066_vm12 = vweird.f32 %v9896_v16 }
 0x54a   :  { %5455 = vpow2.f32 %v5309_v11  ;;  %v9902_v32 = vadd.f32 1.0, %v5452_v59  ;;  %vm3028_vm14 = vweird.f32 %v3021_v10 }
 0x54b   :  { %5457 = vrcp.f32 %v3021_v10  ;;  %v3073_v45 = vor.u32 1.1754944e-38, %v3072_v37  ;;  %v3087_v37 = vand.u32 2147483648, %v9900_v38  ;;  %vm3081_vm4 = vweird.f32 %v9900_v38 }
 0x54c   :  { %5459 = vrcp.f32 %v9900_v38  ;;  %vm3043_vm1 = vweird.f32 %v9902_v32 }
 0x54d   :  { %5461 = vpow2.f32 %v5310_v1  ;;  %v2970_v8 = vpop.f32.mrf.mxu1 }
 0x54e   :  { %5463 = vrcp.f32 %v9902_v32  ;;  %v2971_v1 = vadd.f32 %v2970_v8, %v2950_v57 }
 0x54f   :  { %v5454_v22 = vpop.eup %5453 }
 0x550   :  { %v5456_v30 = vpop.eup %5455  ;;  %v3062_v49 = vmul.f32 %v5454_v22, %v9896_v16  ;;  %vm3067_vm10 = vweird.f32 %v5454_v22  ;;  %v3013_v6 = vadd.f32 %v2971_v1, %v13811_v0  ;;  %v2990_v1 = vpop.f32.mrf.mxu2 }
 0x551   :  { %v9905_v7 = vpop.eup %5457  ;;  %v9909_v15 = vadd.f32 1.0, %v5456_v30  ;;  %v3032_v30 = vand.u32 2147483647, %v3021_v10  ;;  %vm9936_vm13 = vmor %vm3066_vm12, %vm3067_vm10 }
 0x552   :  { %v9911_v12 = vpop.eup %5459  ;;  %v3024_v33 = vmul.f32 %v9905_v7, %v3021_v10  ;;  %v3063_v52 = vsub.f32 1.0, %v3062_v49  ;;  %vm3029_vm11 = vweird.f32 %v9905_v7 }
 0x553   :  { %v5462_v41 = vpop.eup %5461  ;;  %5465 = vrcp.f32 %v9909_v15  ;;  %v3077_v51 = vmul.f32 %v9911_v12, %v9900_v38  ;;  %vm9942_vm15 = vcmp.eq.f32.partialorder %v3032_v30, 8.507059e+37  ;;  %vm9951_vm0 = vmor %vm3028_vm14, %vm3029_vm11  ;;  %vm3082_vm2 = vweird.f32 %v9911_v12 }
 0x554   :  { %v9915_v42 = vpop.eup %5463  ;;  %v3025_v27 = vsub.f32 1.0, %v3024_v33  ;;  %v9919_v46 = vadd.f32 1.0, %v5462_v41  ;;  %v3064_v54 = vmul.f32 %v5454_v22, %v3063_v52  ;;  %v3034_v33 = vand.u32 2147483648, %v3021_v10  ;;  %vm9969_vm6 = vmor %vm3081_vm4, %vm3082_vm2 }
 0x555   :  { %v3039_v29 = vmul.f32 %v9915_v42, %v9902_v32  ;;  %v3078_v56 = vsub.f32 1.0, %v3077_v51  ;;  %vm3044_vm5 = vweird.f32 %v9915_v42  ;;  %vm3104_vm11 = vweird.f32 %v9909_v15 }
 0x556   :  { %5467 = vrcp.f32 %v9919_v46  ;;  %v3026_v59 = vmul.f32 %v9905_v7, %v3025_v27  ;;  %v3065_v41 = vadd.f32 %v5454_v22, %v3064_v54  ;;  %v3035_v8 = vor.u32 1.1754944e-38, %v3034_v33  ;;  %vm9984_vm7 = vmor %vm3043_vm1, %vm3044_vm5 }
 0x557   :  { %v3040_v49 = vsub.f32 1.0, %v3039_v29  ;;  %v3079_v51 = vmul.f32 %v9911_v12, %v3078_v56  ;;  %v3070_v29 = vand.u32 2147483647, %v9896_v16  ;;  %5469 = vtanh.f32 %v3013_v6 }
 0x558   :  { %v3027_v27 = vadd.f32 %v9905_v7, %v3026_v59  ;;  %v3069_v56 = vsel %vm9936_vm13, %v5454_v22, %v3065_v41  ;;  %v3010_v59 = vpop.f32.mrf.mxu3  ;;  %v13818_v41 = vld [vmem:[#allocation61_spill] sm:$0xff]  ;;  %v3088_v6 = vor.u32 1.1754944e-38, %v3087_v37  ;;  %v3108_v37 = vand.u32 2147483647, %v9909_v15 }
 0x559   :  { %v9923_v11 = vpop.eup %5465  ;;  %v3041_v16 = vmul.f32 %v9915_v42, %v3040_v49  ;;  %v3011_v10 = vadd.f32 %v3010_v59, %v2990_v1  ;;  %vm3071_vm3 = vcmp.eq.f32.partialorder %v3070_v29, 8.507059e+37  ;;  %v3080_v30 = vadd.f32 %v9911_v12, %v3079_v51 }
 0x55a   :  { %v3100_v52 = vmul.f32 %v9923_v11, %v9909_v15  ;;  %v3031_v22 = vsel %vm9951_vm0, %v9905_v7, %v3027_v27  ;;  %v3074_v33 = vsel %vm3071_vm3, %v3073_v45, %v3069_v56  ;;  %v3085_v1 = vand.u32 2147483647, %v9900_v38 }
 0x55b   :  { %v3042_v57 = vadd.f32 %v9915_v42, %v3041_v16  ;;  %v3036_v45 = vsel %vm9942_vm15, %v3035_v8, %v3031_v22  ;;  %v3049_v29 = vand.u32 2147483648, %v9902_v32  ;;  %v3131_v56 = vmul.f32 %v3074_v33, %v9266_v47 }
 0x55c   :  { %v9940_v54 = vpop.eup %5467  ;;  %v3101_v60 = vsub.f32 1.0, %v3100_v52  ;;  %v3014_v52 = vadd.f32 %v3011_v10, %v13818_v41  ;;  %v3047_v16 = vand.u32 2147483647, %v9902_v32  ;;  %v3084_v38 = vsel %vm9969_vm6, %v9911_v12, %v3080_v30 }
 0x55d   :  { %v3115_v49 = vmul.f32 %v9940_v54, %v9919_v46  ;;  %v5470_v7 = vpop.eup %5469  ;;  %v3046_v47 = vsel %vm9984_vm7, %v9915_v42, %v3042_v57  ;;  %vm3086_vm8 = vcmp.eq.f32.partialorder %v3085_v1, 8.507059e+37  ;;  %vm3105_vm9 = vweird.f32 %v9923_v11 }
 0x55e   :  { %v3102_v51 = vmul.f32 %v9923_v11, %v3101_v60  ;;  %5471 = vtanh.f32 %v3014_v52  ;;  %v3133_v59 = vmul.f32 %v5470_v7, %v3036_v45  ;;  %v3050_v12 = vor.u32 1.1754944e-38, %v3049_v29  ;;  %vm3106_vm12 = vmor %vm3104_vm11, %vm3105_vm9  ;;  %v13847_v60 = vld [vmem:[#allocation137_spill] sm:$0xff] }
 0x55f   :  { %v3116_v10 = vsub.f32 1.0, %v3115_v49  ;;  %v3089_v22 = vsel %vm3086_vm8, %v3088_v6, %v3084_v38  ;;  %v3110_v30 = vand.u32 2147483648, %v9909_v15  ;;  %vm3048_vm10 = vcmp.eq.f32.partialorder %v3047_v16, 8.507059e+37  ;;  %v13844_v16 = vld [vmem:[#allocation138_spill] sm:$0xff]  ;;  %v13845_v38 = vld [vmem:[#allocation140_spill] sm:$0xff] }
 0x560   :  { %v9988_v0 = vadd.f32 %v3133_v59, %v3131_v56  ;;  %v3103_v8 = vadd.f32 %v9923_v11, %v3102_v51  ;;  %v3051_v42 = vsel %vm3048_vm10, %v3050_v12, %v3046_v47  ;;  %v3132_v33 = vmul.f32 %v3089_v22, %v9280_v35  ;;  %v10113_v6 = vld [vmem:[#allocation3 + $0x370] sm:$0xff]  ;;  %v10127_v12 = vld [vmem:[#allocation3 + $0x338] sm:$0xff] }
 0x561   :  { %v3117_v49 = vmul.f32 %v9940_v54, %v3116_v10  ;;  %v3111_v57 = vor.u32 1.1754944e-38, %v3110_v30  ;;  %vm3109_vm13 = vcmp.eq.f32.partialorder %v3108_v37, 8.507059e+37  ;;  %vm3120_vm14 = vweird.f32 %v9940_v54  ;;  %v10116_v10 = vld [vmem:[#allocation3 + $0x378] sm:$0xff]  ;;  %v10123_v47 = vld [vmem:[#allocation3 + $0x330] sm:$0xff] }
 0x562   :  { %5473 = vtanh.f32 %v9988_v0  ;;  %v3107_v52 = vsel %vm3106_vm12, %v9923_v11, %v3103_v8  ;;  %v3125_v15 = vand.u32 2147483648, %v9919_v46  ;;  %vm3119_vm15 = vweird.f32 %v9919_v46  ;;  %v13848_v8 = vld [vmem:[#allocation139_spill] sm:$0xff]  ;;  %v10130_v22 = vld [vmem:[#allocation3 + $0x7f8] sm:$0xff] }
 0x563   :  { %v3118_v7 = vadd.f32 %v9940_v54, %v3117_v49  ;;  %v3112_v51 = vsel %vm3109_vm13, %v3111_v57, %v3107_v52  ;;  %v3123_v35 = vand.u32 2147483647, %v9919_v46  ;;  %vm3121_vm0 = vmor %vm3119_vm15, %vm3120_vm14  ;;  %v10133_v30 = vld [vmem:[#allocation3 + $0x2f0] sm:$0xff]  ;;  %v10139_v37 = vld [vmem:[#allocation3 + $0x2f8] sm:$0xff] }
 0x564   :  { %v5472_v32 = vpop.eup %5471  ;;  %v3126_v29 = vor.u32 1.1754944e-38, %v3125_v15  ;;  %v10142_v49 = vld [vmem:[#allocation3 + $0x7b8] sm:$0xff]  ;;  %v10157_v57 = vld [vmem:[#allocation3 + $0x270] sm:$0xff] }
 0x565   :  { %v3134_v41 = vmul.f32 %v5472_v32, %v3051_v42  ;;  %v3122_v11 = vsel %vm3121_vm0, %v9940_v54, %v3118_v7  ;;  %vm3124_vm1 = vcmp.eq.f32.partialorder %v3123_v35, 8.507059e+37  ;;  %v10083_v54 = vld [vmem:[#allocation3 + $0x68] sm:$0xff]  ;;  %v10136_v32 = vld [vmem:[#allocation3 + $0x7b0] sm:$0xff]  ;;  %v10154_v52 = vld [vmem:[#allocation3 + $0x778] sm:$0xff] }
 0x566   :  { %v3127_v59 = vsel %vm3124_vm1, %v3126_v29, %v3122_v11  ;;  %v10145_v42 = vld [vmem:[#allocation3 + $0x2b0] sm:$0xff]  ;;  %v10175_v11 = vld [vmem:[#allocation3 + $0x238] sm:$0xff] }
 0x567   :  { %v10002_v1 = vadd.f32 %v3134_v41, %v3132_v33  ;;  %v10148_v33 = vld [vmem:[#allocation3 + $0x770] sm:$0xff]  ;;  %v10151_v41 = vld [vmem:[#allocation3 + $0x2b8] sm:$0xff] }
 0x568   :  { %v5474_v27 = vpop.eup %5473  ;;  %v10160_v7 = vld [vmem:[#allocation3 + $0x730] sm:$0xff]  ;;  %v10178_v29 = vld [vmem:[#allocation3 + $0x6f8] sm:$0xff] }
 0x569   :  { %5475 = vtanh.f32 %v10002_v1  ;;  %v10010_v45 = vmul.f32 %v5474_v27, %v3112_v51  ;;  %v10163_v27 = vld [vmem:[#allocation3 + $0x278] sm:$0xff]  ;;  %v10169_v15 = vld [vmem:[#allocation3 + $0x230] sm:$0xff] }
 0x56a   :  { %v10166_v51 = vld [vmem:[#allocation3 + $0x738] sm:$0xff]  ;;  %v10172_v35 = vld [vmem:[#allocation3 + $0x6f0] sm:$0xff] }
 0x56b   :  { %3168 = vmatmul.f32.vlgmr.msra.gmra.mxu0 %v10010_v45  ;;  %3208 = vmatmul.f32.vlgmr.msra.gmra.mxu2 %v10010_v45 }
 0x56c   :  { %3316 = vmatpush.msra.mxu0 %v9293_v5  ;;  %3356 = vmatpush.msra.mxu2 %v9296_v50  ;;  %v13823_v5 = vld [vmem:[#allocation113_spill] sm:$0xff]  ;;  %v13824_v50 = vld [vmem:[#allocation118_spill] sm:$0xff] }
 0x56e   :  { %3317 = vmatpush.msra.mxu0 %v9299_v26  ;;  %3357 = vmatpush.msra.mxu2 %v9302_v19  ;;  %v13825_v26 = vld [vmem:[#allocation120_spill] sm:$0xff]  ;;  %v13826_v19 = vld [vmem:[#allocation115_spill] sm:$0xff] }
 0x56f   :  { %v5476_v56 = vpop.eup %5475 }
 0x570   :  { %v10019_v46 = vmul.f32 %v5476_v56, %v3127_v59  ;;  %3318 = vmatpush.msra.mxu0 %v9307_v28  ;;  %3358 = vmatpush.msra.mxu2 %v9310_v13  ;;  %v13827_v28 = vld [vmem:[#allocation117_spill] sm:$0xff]  ;;  %v13828_v13 = vld [vmem:[#allocation122_spill] sm:$0xff]  ;;  %v10181_v56 = vld [vmem:[#allocation3 + $0x1f0] sm:$0xff] }
 0x571   :  { %13849 = vst [vmem:[#allocation90_spill] sm:$0xff] %v10181_v56  ;;  %v10184_v59 = vld [vmem:[#allocation3 + $0x6b0] sm:$0xff] }
 0x572   :  { %3188 = vmatmul.f32.vlgmr.msra.gmra.mxu1 %v10019_v46  ;;  %3228 = vmatmul.f32.vlgmr.msra.gmra.mxu3 %v10019_v46  ;;  %13850 = vst [vmem:[#allocation92_spill] sm:$0xff] %v10184_v59 }
 0x573   :  { %3319 = vmatpush.msra.mxu0 %v9315_v53  ;;  %3336 = vmatpush.msra.mxu1 %v9318_v55  ;;  %v13829_v53 = vld [vmem:[#allocation124_spill] sm:$0xff]  ;;  %v13830_v55 = vld [vmem:[#allocation119_spill] sm:$0xff] }
 0x574   :  { %3359 = vmatpush.msra.mxu2 %v9321_v48  ;;  %3376 = vmatpush.msra.mxu3 %v9324_v31  ;;  %v13831_v48 = vld [vmem:[#allocation121_spill] sm:$0xff]  ;;  %v13832_v31 = vld [vmem:[#allocation126_spill] sm:$0xff] }
 0x575   :  { %3250 = vmatmul.f32.vlgmr.msrb.gmra.mxu0 %v10010_v45  ;;  %3290 = vmatmul.f32.vlgmr.msrb.gmra.mxu2 %v10010_v45 }
 0x576   :  { %3320 = vmatpush.msra.mxu0 %v9329_v9  ;;  %3337 = vmatpush.msra.mxu1 %v9332_v61  ;;  %v13833_v9 = vld [vmem:[#allocation128_spill] sm:$0xff]  ;;  %v13834_v61 = vld [vmem:[#allocation123_spill] sm:$0xff] }
 0x577   :  { %3360 = vmatpush.msra.mxu2 %v9335_v39  ;;  %3377 = vmatpush.msra.mxu3 %v9338_v18  ;;  %v13835_v39 = vld [vmem:[#allocation125_spill] sm:$0xff]  ;;  %v13836_v18 = vld [vmem:[#allocation130_spill] sm:$0xff] }
 0x578   :  { %3321 = vmatpush.msra.mxu0 %v9341_v14  ;;  %3338 = vmatpush.msra.mxu1 %v9344_v3  ;;  %v13837_v14 = vld [vmem:[#allocation132_spill] sm:$0xff]  ;;  %v13838_v3 = vld [vmem:[#allocation127_spill] sm:$0xff] }
 0x579   :  { %3361 = vmatpush.msra.mxu2 %v9347_v36  ;;  %3378 = vmatpush.msra.mxu3 %v9350_v63  ;;  %v13839_v36 = vld [vmem:[#allocation129_spill] sm:$0xff]  ;;  %v13840_v63 = vld [vmem:[#allocation134_spill] sm:$0xff] }
 0x57a   :  { %3322 = vmatpush.msra.mxu0 %v9353_v23  ;;  %3339 = vmatpush.msra.mxu1 %v9356_v21  ;;  %v13841_v23 = vld [vmem:[#allocation136_spill] sm:$0xff]  ;;  %v13842_v21 = vld [vmem:[#allocation131_spill] sm:$0xff] }
 0x57b   :  { %3362 = vmatpush.msra.mxu2 %v9359_v24  ;;  %3379 = vmatpush.msra.mxu3 %v9362_v25  ;;  %v10067_v24 = vld [vmem:[#allocation3 + $0xe8] sm:$0xff]  ;;  %v10071_v25 = vld [vmem:[#allocation3 + $0xa0] sm:$0xff] }
 0x57c   :  { %3270 = vmatmul.f32.vlgmr.msrb.gmra.mxu1 %v10019_v46  ;;  %3310 = vmatmul.f32.vlgmr.msrb.gmra.mxu3 %v10019_v46 }
 0x57d   :  { %3323 = vmatpush.msra.mxu0 %v13823_v5  ;;  %3340 = vmatpush.msra.mxu1 %v13824_v50  ;;  %v10187_v5 = vld [vmem:[#allocation3 + $0x1f8] sm:$0xff] }
 0x57e   :  { %3363 = vmatpush.msra.mxu2 %v13825_v26  ;;  %3380 = vmatpush.msra.mxu3 %v13826_v19  ;;  %13851 = vst [vmem:[#allocation87_spill] sm:$0xff] %v10187_v5  ;;  %v10190_v50 = vld [vmem:[#allocation3 + $0x6b8] sm:$0xff]  ;;  %v10193_v26 = vld [vmem:[#allocation3 + $0x1b0] sm:$0xff] }
 0x57f   :  { %3324 = vmatpush.msra.mxu0 %v13827_v28  ;;  %3341 = vmatpush.msra.mxu1 %v13828_v13  ;;  %13852 = vst [vmem:[#allocation89_spill] sm:$0xff] %v10190_v50  ;;  %v10196_v19 = vld [vmem:[#allocation3 + $0x670] sm:$0xff]  ;;  %v10199_v28 = vld [vmem:[#allocation3 + $0x1b8] sm:$0xff] }
 0x580   :  { %3364 = vmatpush.msra.mxu2 %v13829_v53  ;;  %3381 = vmatpush.msra.mxu3 %v13830_v55  ;;  %13853 = vst [vmem:[#allocation94_spill] sm:$0xff] %v10193_v26  ;;  %v10202_v13 = vld [vmem:[#allocation3 + $0x678] sm:$0xff]  ;;  %v10205_v53 = vld [vmem:[#allocation3 + $0x170] sm:$0xff] }
 0x581   :  { %3325 = vmatpush.msra.mxu0 %v13831_v48  ;;  %3342 = vmatpush.msra.mxu1 %v13832_v31  ;;  %13854 = vst [vmem:[#allocation96_spill] sm:$0xff] %v10196_v19  ;;  %v10208_v55 = vld [vmem:[#allocation3 + $0x630] sm:$0xff]  ;;  %v10211_v48 = vld [vmem:[#allocation3 + $0x178] sm:$0xff] }
 0x582   :  { %3365 = vmatpush.msra.mxu2 %v13833_v9  ;;  %3382 = vmatpush.msra.mxu3 %v13834_v61  ;;  %13855 = vst [vmem:[#allocation91_spill] sm:$0xff] %v10199_v28  ;;  %v10214_v31 = vld [vmem:[#allocation3 + $0x638] sm:$0xff]  ;;  %v10217_v9 = vld [vmem:[#allocation3 + $0x130] sm:$0xff] }
 0x583   :  { %3326 = vmatpush.msra.mxu0 %v13835_v39  ;;  %3343 = vmatpush.msra.mxu1 %v13836_v18  ;;  %13856 = vst [vmem:[#allocation93_spill] sm:$0xff] %v10202_v13  ;;  %v10220_v61 = vld [vmem:[#allocation3 + $0x5f0] sm:$0xff]  ;;  %v10223_v39 = vld [vmem:[#allocation3 + $0x138] sm:$0xff] }
 0x584   :  { %3366 = vmatpush.msra.mxu2 %v13837_v14  ;;  %3383 = vmatpush.msra.mxu3 %v13838_v3  ;;  %13857 = vst [vmem:[#allocation98_spill] sm:$0xff] %v10205_v53  ;;  %v10226_v18 = vld [vmem:[#allocation3 + $0x5f8] sm:$0xff]  ;;  %v10229_v14 = vld [vmem:[#allocation3 + $0xf0] sm:$0xff] }
 0x585   :  { %3327 = vmatpush.msra.mxu0 %v13839_v36  ;;  %3344 = vmatpush.msra.mxu1 %v9418_v34  ;;  %v10075_v34 = vld [vmem:[#allocation3 + $0xa8] sm:$0xff]  ;;  %13858 = vst [vmem:[#allocation100_spill] sm:$0xff] %v10208_v55  ;;  %v10232_v3 = vld [vmem:[#allocation3 + $0x5b0] sm:$0xff]  ;;  %v10235_v36 = vld [vmem:[#allocation3 + $0xf8] sm:$0xff] }
 0x586   :  { %3367 = vmatpush.msra.mxu2 %v13840_v63  ;;  %3384 = vmatpush.msra.mxu3 %v13841_v23  ;;  %13859 = vst [vmem:[#allocation95_spill] sm:$0xff] %v10211_v48  ;;  %v10238_v63 = vld [vmem:[#allocation3 + $0x5b8] sm:$0xff]  ;;  %v10241_v23 = vld [vmem:[#allocation3 + $0xb0] sm:$0xff] }
 0x587   :  { %3328 = vmatpush.msra.mxu0 %v9427_v17  ;;  %3345 = vmatpush.msra.mxu1 %v13842_v21  ;;  %v10079_v17 = vld [vmem:[#allocation3 + $0x60] sm:$0xff]  ;;  %13860 = vst [vmem:[#allocation97_spill] sm:$0xff] %v10214_v31  ;;  %v10244_v21 = vld [vmem:[#allocation3 + $0x570] sm:$0xff] }
 0x588   :  { %3368 = vmatpush.msra.mxu2 %v10067_v24  ;;  %3385 = vmatpush.msra.mxu3 %v9434_v62  ;;  %v10087_v62 = vld [vmem:[#allocation3 + $0x20] sm:$0xff]  ;;  %13861 = vst [vmem:[#allocation102_spill] sm:$0xff] %v10217_v9 }
 0x589   :  { %3329 = vmatpush.msra.mxu0 %v10071_v25  ;;  %3346 = vmatpush.msra.mxu1 %v9438_v40  ;;  %v10091_v40 = vld [vmem:[#allocation3 + $0x28] sm:$0xff]  ;;  %13862 = vst [vmem:[#allocation104_spill] sm:$0xff] %v10220_v61 }
 0x58a   :  { %3369 = vmatpush.msra.mxu2 %v10075_v34  ;;  %3386 = vmatpush.msra.mxu3 %v9442_v20  ;;  %v10097_v20 = vld [vmem:[#allocation3 + $0x3f0] sm:$0xff]  ;;  %13863 = vst [vmem:[#allocation99_spill] sm:$0xff] %v10223_v39 }
 0x58b   :  { %3330 = vmatpush.msra.mxu0 %v10079_v17  ;;  %3347 = vmatpush.msra.mxu1 %v9446_v58  ;;  %v10100_v58 = vld [vmem:[#allocation3 + $0x3f8] sm:$0xff]  ;;  %13864 = vst [vmem:[#allocation101_spill] sm:$0xff] %v10226_v18 }
 0x58c   :  { %3370 = vmatpush.msra.mxu2 %v10083_v54  ;;  %3387 = vmatpush.msra.mxu3 %v9450_v44  ;;  %v13843_v44 = vld [vmem:[#allocation133_spill] sm:$0xff]  ;;  %13865 = vst [vmem:[#allocation106_spill] sm:$0xff] %v10229_v14 }
 0x58d   :  { %3331 = vmatpush.msra.mxu0 %v10087_v62  ;;  %3348 = vmatpush.msra.mxu1 %v9454_v4  ;;  %v10105_v4 = vld [vmem:[#allocation3 + $0x3b0] sm:$0xff]  ;;  %13866 = vst [vmem:[#allocation108_spill] sm:$0xff] %v10232_v3 }
 0x58e   :  { %3371 = vmatpush.msra.mxu2 %v10091_v40  ;;  %3388 = vmatpush.msra.mxu3 %v9458_v2  ;;  %v10108_v2 = vld [vmem:[#allocation3 + $0x3b8] sm:$0xff]  ;;  %13867 = vst [vmem:[#allocation103_spill] sm:$0xff] %v10235_v36 }
 0x58f   :  { %3332 = vmatmul.f32.vlgmr.msra.gmra.mxu0 %v10010_v45  ;;  %3372 = vmatmul.f32.vlgmr.msra.gmra.mxu2 %v10010_v45  ;;  %13868 = vst [vmem:[#allocation105_spill] sm:$0xff] %v10238_v63 }
 0x590   :  { %3398 = vmatpush.msrb.mxu0 %v10097_v20  ;;  %3438 = vmatpush.msrb.mxu2 %v10100_v58  ;;  %13869 = vst [vmem:[#allocation110_spill] sm:$0xff] %v10241_v23 }
 0x591   :  { %3349 = vmatpush.msra.mxu1 %v9465_v43  ;;  %3389 = vmatpush.msra.mxu3 %v13843_v44  ;;  %v13846_v43 = vld [vmem:[#allocation135_spill] sm:$0xff]  ;;  %13870 = vst [vmem:[#allocation112_spill] sm:$0xff] %v10244_v21  ;;  %v10247_v44 = vld [vmem:[#allocation3 + $0xb8] sm:$0xff] }
 0x592   :  { %3399 = vmatpush.msrb.mxu0 %v10105_v4  ;;  %3439 = vmatpush.msrb.mxu2 %v10108_v2  ;;  %13871 = vst [vmem:[#allocation218_spill] sm:$0xff] %v10247_v44 }
 0x593   :  { %3350 = vmatpush.msra.mxu1 %v13844_v16  ;;  %3390 = vmatpush.msra.mxu3 %v13845_v38  ;;  %v10250_v16 = vld [vmem:[#allocation3 + $0x578] sm:$0xff]  ;;  %v10253_v38 = vld [vmem:[#allocation3 + $0x70] sm:$0xff] }
 0x594   :  { %3400 = vmatpush.msrb.mxu0 %v10113_v6  ;;  %3440 = vmatpush.msrb.mxu2 %v10116_v10  ;;  %13872 = vst [vmem:[#allocation219_spill] sm:$0xff] %v10250_v16 }
 0x595   :  { %3351 = vmatpush.msra.mxu1 %v13846_v43  ;;  %3391 = vmatpush.msra.mxu3 %v13847_v60  ;;  %13873 = vst [vmem:[#allocation220_spill] sm:$0xff] %v10253_v38  ;;  %v10256_v43 = vld [vmem:[#allocation3 + $0x530] sm:$0xff]  ;;  %v10259_v60 = vld [vmem:[#allocation3 + $0x78] sm:$0xff] }
 0x596   :  { %3352 = vmatmul.f32.vlgmr.msra.gmra.mxu1 %v10019_v46  ;;  %3392 = vmatmul.f32.vlgmr.msra.gmra.mxu3 %v10019_v46  ;;  %13874 = vst [vmem:[#allocation221_spill] sm:$0xff] %v10256_v43 }
 0x597   :  { %3401 = vmatpush.msrb.mxu0 %v10123_v47  ;;  %3418 = vmatpush.msrb.mxu1 %v13848_v8  ;;  %13875 = vst [vmem:[#allocation222_spill] sm:$0xff] %v10259_v60  ;;  %v10262_v8 = vld [vmem:[#allocation3 + $0x538] sm:$0xff] }
 0x598   :  { %3441 = vmatpush.msrb.mxu2 %v10127_v12  ;;  %3458 = vmatpush.msrb.mxu3 %v10130_v22  ;;  %13876 = vst [vmem:[#allocation223_spill] sm:$0xff] %v10262_v8 }
 0x599   :  { %3402 = vmatpush.msrb.mxu0 %v10133_v30  ;;  %3419 = vmatpush.msrb.mxu1 %v10136_v32 }
 0x59a   :  { %3442 = vmatpush.msrb.mxu2 %v10139_v37  ;;  %3459 = vmatpush.msrb.mxu3 %v10142_v49 }
 0x59b   :  { %3403 = vmatpush.msrb.mxu0 %v10145_v42  ;;  %3420 = vmatpush.msrb.mxu1 %v10148_v33 }
 0x59c   :  { %3443 = vmatpush.msrb.mxu2 %v10151_v41  ;;  %3460 = vmatpush.msrb.mxu3 %v10154_v52 }
 0x59d   :  { %3404 = vmatpush.msrb.mxu0 %v10157_v57  ;;  %3421 = vmatpush.msrb.mxu1 %v10160_v7 }
 0x59e   :  { %3444 = vmatpush.msrb.mxu2 %v10163_v27  ;;  %3461 = vmatpush.msrb.mxu3 %v10166_v51 }
 0x59f   :  { %3405 = vmatpush.msrb.mxu0 %v10169_v15  ;;  %3422 = vmatpush.msrb.mxu1 %v10172_v35 }
 0x5a0   :  { %3445 = vmatpush.msrb.mxu2 %v10175_v11  ;;  %3462 = vmatpush.msrb.mxu3 %v10178_v29 }
 0x5a1   :  { %3406 = vmatpush.msrb.mxu0 %v10181_v56  ;;  %3423 = vmatpush.msrb.mxu1 %v10184_v59 }
 0x5a2   :  { %3446 = vmatpush.msrb.mxu2 %v10187_v5  ;;  %3463 = vmatpush.msrb.mxu3 %v10190_v50  ;;  %v14021_v50 = vld [vmem:[#allocation64_spill] sm:$0xff] }
 0x5a3   :  { %3407 = vmatpush.msrb.mxu0 %v10193_v26  ;;  %3424 = vmatpush.msrb.mxu1 %v10196_v19 }
 0x5a4   :  { %3447 = vmatpush.msrb.mxu2 %v10199_v28  ;;  %3464 = vmatpush.msrb.mxu3 %v10202_v13 }
 0x5a5   :  { %3408 = vmatpush.msrb.mxu0 %v10205_v53  ;;  %3425 = vmatpush.msrb.mxu1 %v10208_v55  ;;  %v14018_v53 = vld [vmem:[#allocation31_spill] sm:$0xff] }
 0x5a6   :  { %3448 = vmatpush.msrb.mxu2 %v10211_v48  ;;  %3465 = vmatpush.msrb.mxu3 %v10214_v31 }
 0x5a7   :  { %3409 = vmatpush.msrb.mxu0 %v10217_v9  ;;  %3426 = vmatpush.msrb.mxu1 %v10220_v61 }
 0x5a8   :  { %3449 = vmatpush.msrb.mxu2 %v10223_v39  ;;  %3466 = vmatpush.msrb.mxu3 %v10226_v18 }
 0x5a9   :  { %3410 = vmatpush.msrb.mxu0 %v10229_v14  ;;  %3427 = vmatpush.msrb.mxu1 %v10232_v3 }
 0x5aa   :  { %3450 = vmatpush.msrb.mxu2 %v10235_v36  ;;  %3467 = vmatpush.msrb.mxu3 %v10238_v63  ;;  %v13924_v63 = vld [vmem:[#allocation149_spill] sm:$0xff] }
 0x5ab   :  { %3411 = vmatpush.msrb.mxu0 %v10241_v23  ;;  %3428 = vmatpush.msrb.mxu1 %v10244_v21  ;;  %v13918_v21 = vld [vmem:[#allocation49_spill] sm:$0xff] }
 0x5ac   :  { %3451 = vmatpush.msrb.mxu2 %v10247_v44  ;;  %3468 = vmatpush.msrb.mxu3 %v10250_v16  ;;  %v10265_v44 = vld [vmem:[#allocation3 + $0x30] sm:$0xff]  ;;  %v13922_v23 = vld [vmem:[#allocation145_spill] sm:$0xff] }
 0x5ad   :  { %3412 = vmatpush.msrb.mxu0 %v10253_v38  ;;  %3429 = vmatpush.msrb.mxu1 %v10256_v43  ;;  %13877 = vst [vmem:[#allocation224_spill] sm:$0xff] %v10265_v44  ;;  %v10268_v16 = vld [vmem:[#allocation3 + $0x4f0] sm:$0xff]  ;;  %v10271_v38 = vld [vmem:[#allocation3 + $0x38] sm:$0xff] }
 0x5ae   :  { %3452 = vmatpush.msrb.mxu2 %v10259_v60  ;;  %3469 = vmatpush.msrb.mxu3 %v10262_v8  ;;  %13878 = vst [vmem:[#allocation225_spill] sm:$0xff] %v10268_v16  ;;  %v10274_v43 = vld [vmem:[#allocation3 + $0x4f8] sm:$0xff]  ;;  %v10279_v8 = vld [vmem:[#allocation3 + $0x4b0] sm:$0xff]  ;;  %v10359_v60 = vld [vmem:[#allocation3 + $0x6c0] sm:$0xff] }
 0x5af   :  { %3413 = vmatpush.msrb.mxu0 %v10265_v44  ;;  %3430 = vmatpush.msrb.mxu1 %v10268_v16  ;;  %13879 = vst [vmem:[#allocation226_spill] sm:$0xff] %v10271_v38  ;;  %v10282_v44 = vld [vmem:[#allocation3 + $0x4b8] sm:$0xff]  ;;  %v10285_v16 = vld [vmem:[#allocation3 + $0x3c0] sm:$0xff] }
 0x5b0   :  { %3453 = vmatpush.msrb.mxu2 %v10271_v38  ;;  %13880 = vst [vmem:[#allocation227_spill] sm:$0xff] %v10274_v43  ;;  %3470 = vmatpush.msrb.mxu3 %v10274_v43  ;;  %v10288_v38 = vld [vmem:[#allocation3 + $0x3c8] sm:$0xff]  ;;  %v10291_v43 = vld [vmem:[#allocation3 + $0x470] sm:$0xff] }
 0x5b1   :  { %3414 = vmatmul.f32.vlgmr.msrb.gmra.mxu0 %v10010_v45  ;;  %3454 = vmatmul.f32.vlgmr.msrb.gmra.mxu2 %v10010_v45  ;;  %13881 = vst [vmem:[#allocation107_spill] sm:$0xff] %v10279_v8  ;;  %v10294_v45 = vld [vmem:[#allocation3 + $0x478] sm:$0xff] }
 0x5b2   :  { %3431 = vmatpush.msrb.mxu1 %v10279_v8  ;;  %13882 = vst [vmem:[#allocation228_spill] sm:$0xff] %v10282_v44  ;;  %3471 = vmatpush.msrb.mxu3 %v10282_v44  ;;  %v10297_v8 = vld [vmem:[#allocation3 + $0x380] sm:$0xff]  ;;  %v10300_v44 = vld [vmem:[#allocation3 + $0x388] sm:$0xff] }
 0x5b3   :  { %13883 = vst [vmem:[#allocation109_spill] sm:$0xff] %v10285_v16  ;;  %3617 = vmatpush.msra.mxu0 %v10285_v16  ;;  %3657 = vmatpush.msra.mxu2 %v10288_v38  ;;  %v10303_v16 = vld [vmem:[#allocation3 + $0x430] sm:$0xff] }
 0x5b4   :  { %13884 = vst [vmem:[#allocation114_spill] sm:$0xff] %v10288_v38  ;;  %3432 = vmatpush.msrb.mxu1 %v10291_v43  ;;  %3472 = vmatpush.msrb.mxu3 %v10294_v45  ;;  %v10306_v38 = vld [vmem:[#allocation3 + $0x438] sm:$0xff] }
 0x5b5   :  { %13885 = vst [vmem:[#allocation116_spill] sm:$0xff] %v10291_v43  ;;  %3618 = vmatpush.msra.mxu0 %v10297_v8  ;;  %3658 = vmatpush.msra.mxu2 %v10300_v44  ;;  %v10351_v43 = vld [vmem:[#allocation3 + $0x700] sm:$0xff] }
 0x5b6   :  { %13886 = vst [vmem:[#allocation111_spill] sm:$0xff] %v10294_v45  ;;  %3433 = vmatpush.msrb.mxu1 %v10303_v16  ;;  %3473 = vmatpush.msrb.mxu3 %v10306_v38  ;;  %v10311_v45 = vld [vmem:[#allocation3 + $0x340] sm:$0xff] }
 0x5b7   :  { %13887 = vst [vmem:[#allocation28_spill] sm:$0xff] %v10297_v8  ;;  %3434 = vmatmul.f32.vlgmr.msrb.gmra.mxu1 %v10019_v46  ;;  %3474 = vmatmul.f32.vlgmr.msrb.gmra.mxu3 %v10019_v46  ;;  %v10314_v8 = vld [vmem:[#allocation3 + $0x348] sm:$0xff] }
 0x5b8   :  { %13888 = vst [vmem:[#allocation26_spill] sm:$0xff] %v10300_v44  ;;  %3619 = vmatpush.msra.mxu0 %v10311_v45  ;;  %3659 = vmatpush.msra.mxu2 %v10314_v8  ;;  %v10317_v44 = vld [vmem:[#allocation3 + $0x7c0] sm:$0xff]  ;;  %v10326_v46 = vld [vmem:[#allocation3 + $0x308] sm:$0xff] }
 0x5b9   :  { %13889 = vst [vmem:[#allocation29_spill] sm:$0xff] %v10303_v16  ;;  %3637 = vmatpush.msra.mxu1 %v10317_v44  ;;  %v10320_v16 = vld [vmem:[#allocation3 + $0x7c8] sm:$0xff] }
 0x5ba   :  { %13890 = vst [vmem:[#allocation27_spill] sm:$0xff] %v10306_v38  ;;  %3677 = vmatpush.msra.mxu3 %v10320_v16  ;;  %v10323_v38 = vld [vmem:[#allocation3 + $0x300] sm:$0xff]  ;;  %3660 = vmatpush.msra.mxu2 %v10326_v46 }
 0x5bb   :  { %13891 = vst [vmem:[#allocation58_spill] sm:$0xff] %v10311_v45  ;;  %3620 = vmatpush.msra.mxu0 %v10323_v38  ;;  %v10329_v45 = vld [vmem:[#allocation3 + $0x780] sm:$0xff] }
 0x5bc   :  { %13892 = vst [vmem:[#allocation59_spill] sm:$0xff] %v10314_v8  ;;  %3638 = vmatpush.msra.mxu1 %v10329_v45  ;;  %v10332_v8 = vld [vmem:[#allocation3 + $0x788] sm:$0xff] }
 0x5bd   :  { %13893 = vst [vmem:[#allocation60_spill] sm:$0xff] %v10317_v44  ;;  %3678 = vmatpush.msra.mxu3 %v10332_v8  ;;  %v10335_v44 = vld [vmem:[#allocation3 + $0x2c0] sm:$0xff] }
 0x5be   :  { %13894 = vst [vmem:[#allocation61_spill] sm:$0xff] %v10320_v16  ;;  %3621 = vmatpush.msra.mxu0 %v10335_v44  ;;  %v10338_v16 = vld [vmem:[#allocation3 + $0x2c8] sm:$0xff] }
 0x5bf   :  { %13895 = vst [vmem:[#allocation113_spill] sm:$0xff] %v10323_v38  ;;  %3661 = vmatpush.msra.mxu2 %v10338_v16  ;;  %v10341_v38 = vld [vmem:[#allocation3 + $0x740] sm:$0xff] }
 0x5c0   :  { %13896 = vst [vmem:[#allocation118_spill] sm:$0xff] %v10326_v46  ;;  %3639 = vmatpush.msra.mxu1 %v10341_v38  ;;  %v10344_v46 = vld [vmem:[#allocation3 + $0x748] sm:$0xff] }
 0x5c1   :  { %13897 = vst [vmem:[#allocation120_spill] sm:$0xff] %v10329_v45  ;;  %3679 = vmatpush.msra.mxu3 %v10344_v46  ;;  %v10347_v45 = vld [vmem:[#allocation3 + $0x280] sm:$0xff] }
 0x5c2   :  { %13898 = vst [vmem:[#allocation115_spill] sm:$0xff] %v10332_v8  ;;  %3622 = vmatpush.msra.mxu0 %v10347_v45  ;;  %v13904_v8 = vld [vmem:[#allocation141_spill] sm:$0xff]  ;;  %3640 = vmatpush.msra.mxu1 %v10351_v43 }
 0x5c3   :  { %13899 = vst [vmem:[#allocation117_spill] sm:$0xff] %v10335_v44  ;;  %3662 = vmatpush.msra.mxu2 %v13904_v8  ;;  %v10354_v44 = vld [vmem:[#allocation3 + $0x708] sm:$0xff]  ;;  %v13911_v8 = vld [vmem:[#allocation17_spill] sm:$0xff] }
 0x5c4   :  { %13900 = vst [vmem:[#allocation122_spill] sm:$0xff] %v10338_v16  ;;  %3680 = vmatpush.msra.mxu3 %v10354_v44  ;;  %v13907_v16 = vld [vmem:[#allocation16_spill] sm:$0xff]  ;;  %3641 = vmatpush.msra.mxu1 %v10359_v60 }
 0x5c5   :  { %13901 = vst [vmem:[#allocation124_spill] sm:$0xff] %v10341_v38  ;;  %3623 = vmatpush.msra.mxu0 %v13907_v16  ;;  %v13908_v38 = vld [vmem:[#allocation14_spill] sm:$0xff]  ;;  %v13915_v16 = vld [vmem:[#allocation47_spill] sm:$0xff] }
 0x5c6   :  { %13902 = vst [vmem:[#allocation119_spill] sm:$0xff] %v10344_v46  ;;  %3663 = vmatpush.msra.mxu2 %v13908_v38  ;;  %v10362_v46 = vld [vmem:[#allocation3 + $0x6c8] sm:$0xff] }
 0x5c7   :  { %13903 = vst [vmem:[#allocation121_spill] sm:$0xff] %v10347_v45  ;;  %3681 = vmatpush.msra.mxu3 %v10362_v46  ;;  %3624 = vmatpush.msra.mxu0 %v13911_v8  ;;  %v13912_v45 = vld [vmem:[#allocation15_spill] sm:$0xff]  ;;  %v13916_v38 = vld [vmem:[#allocation46_spill] sm:$0xff] }
 0x5c8   :  { %13905 = vst [vmem:[#allocation126_spill] sm:$0xff] %v10351_v43  ;;  %3664 = vmatpush.msra.mxu2 %v13912_v45  ;;  %v10367_v43 = vld [vmem:[#allocation3 + $0x680] sm:$0xff]  ;;  %v13920_v8 = vld [vmem:[#allocation143_spill] sm:$0xff]  ;;  %v13921_v45 = vld [vmem:[#allocation144_spill] sm:$0xff] }
 0x5c9   :  { %13906 = vst [vmem:[#allocation128_spill] sm:$0xff] %v10354_v44  ;;  %3642 = vmatpush.msra.mxu1 %v10367_v43  ;;  %v10370_v44 = vld [vmem:[#allocation3 + $0x688] sm:$0xff]  ;;  %3625 = vmatpush.msra.mxu0 %v13915_v16  ;;  %v13926_v16 = vld [vmem:[#allocation153_spill] sm:$0xff] }
 0x5ca   :  { %13909 = vst [vmem:[#allocation123_spill] sm:$0xff] %v10359_v60  ;;  %3682 = vmatpush.msra.mxu3 %v10370_v44  ;;  %3665 = vmatpush.msra.mxu2 %v13916_v38  ;;  %v13917_v60 = vld [vmem:[#allocation48_spill] sm:$0xff]  ;;  %v13927_v38 = vld [vmem:[#allocation155_spill] sm:$0xff] }
 0x5cb   :  { %13910 = vst [vmem:[#allocation125_spill] sm:$0xff] %v10362_v46  ;;  %3643 = vmatpush.msra.mxu1 %v13917_v60  ;;  %v13919_v46 = vld [vmem:[#allocation142_spill] sm:$0xff]  ;;  %v13928_v60 = vld [vmem:[#allocation157_spill] sm:$0xff] }
 0x5cc   :  { %13913 = vst [vmem:[#allocation130_spill] sm:$0xff] %v10367_v43  ;;  %3683 = vmatpush.msra.mxu3 %v13918_v21  ;;  %3626 = vmatpush.msra.mxu0 %v13919_v46  ;;  %v13923_v43 = vld [vmem:[#allocation147_spill] sm:$0xff]  ;;  %v13929_v21 = vld [vmem:[#allocation146_spill] sm:$0xff] }
 0x5cd   :  { %13914 = vst [vmem:[#allocation132_spill] sm:$0xff] %v10370_v44  ;;  %3666 = vmatpush.msra.mxu2 %v13920_v8  ;;  %3644 = vmatpush.msra.mxu1 %v13921_v45  ;;  %v13925_v44 = vld [vmem:[#allocation151_spill] sm:$0xff]  ;;  %v13931_v8 = vld [vmem:[#allocation148_spill] sm:$0xff]  ;;  %v13932_v45 = vld [vmem:[#allocation161_spill] sm:$0xff] }
 0x5ce   :  { %3684 = vmatpush.msra.mxu3 %v13922_v23  ;;  %3627 = vmatpush.msra.mxu0 %v13923_v43  ;;  %v13930_v46 = vld [vmem:[#allocation159_spill] sm:$0xff]  ;;  %v13933_v23 = vld [vmem:[#allocation150_spill] sm:$0xff] }
 0x5cf   :  { %3667 = vmatpush.msra.mxu2 %v13924_v63  ;;  %3645 = vmatpush.msra.mxu1 %v13925_v44  ;;  %v13934_v43 = vld [vmem:[#allocation163_spill] sm:$0xff]  ;;  %v13935_v63 = vld [vmem:[#allocation152_spill] sm:$0xff]  ;;  %v13936_v44 = vld [vmem:[#allocation165_spill] sm:$0xff] }
 0x5d0   :  { %3685 = vmatpush.msra.mxu3 %v13926_v16  ;;  %3628 = vmatpush.msra.mxu0 %v13927_v38  ;;  %v13937_v16 = vld [vmem:[#allocation154_spill] sm:$0xff]  ;;  %v13938_v38 = vld [vmem:[#allocation167_spill] sm:$0xff] }
 0x5d1   :  { %3668 = vmatpush.msra.mxu2 %v13928_v60  ;;  %3646 = vmatpush.msra.mxu1 %v13929_v21  ;;  %v13939_v60 = vld [vmem:[#allocation156_spill] sm:$0xff]  ;;  %v13940_v21 = vld [vmem:[#allocation169_spill] sm:$0xff] }
 0x5d2   :  { %3686 = vmatpush.msra.mxu3 %v13930_v46  ;;  %3629 = vmatpush.msra.mxu0 %v13931_v8  ;;  %v13941_v46 = vld [vmem:[#allocation158_spill] sm:$0xff]  ;;  %v13942_v8 = vld [vmem:[#allocation171_spill] sm:$0xff] }
 0x5d3   :  { %3669 = vmatpush.msra.mxu2 %v13932_v45  ;;  %3647 = vmatpush.msra.mxu1 %v13933_v23  ;;  %v13943_v45 = vld [vmem:[#allocation160_spill] sm:$0xff]  ;;  %v13944_v23 = vld [vmem:[#allocation173_spill] sm:$0xff] }
 0x5d4   :  { %3687 = vmatpush.msra.mxu3 %v13934_v43  ;;  %3630 = vmatpush.msra.mxu0 %v13935_v63  ;;  %v13945_v43 = vld [vmem:[#allocation162_spill] sm:$0xff]  ;;  %v13946_v63 = vld [vmem:[#allocation175_spill] sm:$0xff] }
 0x5d5   :  { %3670 = vmatpush.msra.mxu2 %v13936_v44  ;;  %3648 = vmatpush.msra.mxu1 %v13937_v16  ;;  %v13947_v44 = vld [vmem:[#allocation164_spill] sm:$0xff]  ;;  %v13948_v16 = vld [vmem:[#allocation177_spill] sm:$0xff] }
 0x5d6   :  { %3688 = vmatpush.msra.mxu3 %v13938_v38  ;;  %3631 = vmatpush.msra.mxu0 %v13939_v60  ;;  %v13949_v38 = vld [vmem:[#allocation166_spill] sm:$0xff]  ;;  %v13950_v60 = vld [vmem:[#allocation179_spill] sm:$0xff] }
 0x5d7   :  { %3671 = vmatpush.msra.mxu2 %v13940_v21  ;;  %3649 = vmatpush.msra.mxu1 %v13941_v46  ;;  %v13951_v21 = vld [vmem:[#allocation168_spill] sm:$0xff]  ;;  %v13952_v46 = vld [vmem:[#allocation181_spill] sm:$0xff] }
 0x5d8   :  { %3689 = vmatpush.msra.mxu3 %v13942_v8  ;;  %3632 = vmatpush.msra.mxu0 %v13943_v45  ;;  %v13953_v8 = vld [vmem:[#allocation170_spill] sm:$0xff]  ;;  %v13954_v45 = vld [vmem:[#allocation183_spill] sm:$0xff] }
 0x5d9   :  { %3672 = vmatpush.msra.mxu2 %v13944_v23  ;;  %3650 = vmatpush.msra.mxu1 %v13947_v44  ;;  %v13955_v23 = vld [vmem:[#allocation172_spill] sm:$0xff]  ;;  %v13958_v44 = vld [vmem:[#allocation187_spill] sm:$0xff] }
 0x5da   :  { %3699 = vmatpush.msrb.mxu0 %v13945_v43  ;;  %3690 = vmatpush.msra.mxu3 %v13948_v16  ;;  %v13956_v43 = vld [vmem:[#allocation185_spill] sm:$0xff]  ;;  %v13959_v16 = vld [vmem:[#allocation176_spill] sm:$0xff] }
 0x5db   :  { %3739 = vmatpush.msrb.mxu2 %v13946_v63  ;;  %3651 = vmatpush.msra.mxu1 %v13951_v21  ;;  %v13957_v63 = vld [vmem:[#allocation174_spill] sm:$0xff]  ;;  %v13962_v21 = vld [vmem:[#allocation191_spill] sm:$0xff] }
 0x5dc   :  { %3700 = vmatpush.msrb.mxu0 %v13949_v38  ;;  %3691 = vmatpush.msra.mxu3 %v13952_v46  ;;  %v13960_v38 = vld [vmem:[#allocation189_spill] sm:$0xff]  ;;  %v13963_v46 = vld [vmem:[#allocation180_spill] sm:$0xff] }
 0x5dd   :  { %3740 = vmatpush.msrb.mxu2 %v13950_v60  ;;  %3652 = vmatpush.msra.mxu1 %v13955_v23  ;;  %v13961_v60 = vld [vmem:[#allocation178_spill] sm:$0xff]  ;;  %v13966_v23 = vld [vmem:[#allocation195_spill] sm:$0xff] }
 0x5de   :  { %3701 = vmatpush.msrb.mxu0 %v13953_v8  ;;  %3692 = vmatpush.msra.mxu3 %v13956_v43  ;;  %v13964_v8 = vld [vmem:[#allocation193_spill] sm:$0xff]  ;;  %v13967_v43 = vld [vmem:[#allocation184_spill] sm:$0xff] }
 0x5df   :  { %3741 = vmatpush.msrb.mxu2 %v13954_v45  ;;  %3719 = vmatpush.msrb.mxu1 %v13958_v44  ;;  %v13965_v45 = vld [vmem:[#allocation182_spill] sm:$0xff]  ;;  %v13969_v44 = vld [vmem:[#allocation188_spill] sm:$0xff] }
 0x5e0   :  { %3702 = vmatpush.msrb.mxu0 %v13957_v63  ;;  %3759 = vmatpush.msrb.mxu3 %v13960_v38  ;;  %v13968_v63 = vld [vmem:[#allocation186_spill] sm:$0xff]  ;;  %v13971_v38 = vld [vmem:[#allocation192_spill] sm:$0xff] }
 0x5e1   :  { %3742 = vmatpush.msrb.mxu2 %v13959_v16  ;;  %3720 = vmatpush.msrb.mxu1 %v13962_v21  ;;  %v13970_v16 = vld [vmem:[#allocation190_spill] sm:$0xff]  ;;  %v13973_v21 = vld [vmem:[#allocation196_spill] sm:$0xff] }
 0x5e2   :  { %3703 = vmatpush.msrb.mxu0 %v13961_v60  ;;  %3760 = vmatpush.msrb.mxu3 %v13964_v8  ;;  %v13972_v60 = vld [vmem:[#allocation194_spill] sm:$0xff] }
 0x5e3   :  { %3743 = vmatpush.msrb.mxu2 %v13963_v46  ;;  %3721 = vmatpush.msrb.mxu1 %v13966_v23  ;;  %v13974_v46 = vld [vmem:[#allocation201_spill] sm:$0xff]  ;;  %v13975_v8 = vld [vmem:[#allocation202_spill] sm:$0xff] }
 0x5e4   :  { %3704 = vmatpush.msrb.mxu0 %v13965_v45  ;;  %3761 = vmatpush.msrb.mxu3 %v13968_v63  ;;  %v13976_v45 = vld [vmem:[#allocation197_spill] sm:$0xff]  ;;  %v13977_v23 = vld [vmem:[#allocation198_spill] sm:$0xff] }
 0x5e5   :  { %3744 = vmatpush.msrb.mxu2 %v13967_v43  ;;  %3722 = vmatpush.msrb.mxu1 %v13970_v16  ;;  %v13978_v43 = vld [vmem:[#allocation205_spill] sm:$0xff]  ;;  %v13979_v63 = vld [vmem:[#allocation206_spill] sm:$0xff]  ;;  %v13981_v16 = vld [vmem:[#allocation200_spill] sm:$0xff] }
 0x5e6   :  { %3705 = vmatpush.msrb.mxu0 %v13969_v44  ;;  %3762 = vmatpush.msrb.mxu3 %v13972_v60  ;;  %v13980_v44 = vld [vmem:[#allocation199_spill] sm:$0xff]  ;;  %v13983_v60 = vld [vmem:[#allocation210_spill] sm:$0xff] }
 0x5e7   :  { %3745 = vmatpush.msrb.mxu2 %v13971_v38  ;;  %3723 = vmatpush.msrb.mxu1 %v13974_v46  ;;  %v13982_v38 = vld [vmem:[#allocation209_spill] sm:$0xff]  ;;  %v13985_v46 = vld [vmem:[#allocation22_spill] sm:$0xff] }
 0x5e8   :  { %3706 = vmatpush.msrb.mxu0 %v13973_v21  ;;  %3763 = vmatpush.msrb.mxu3 %v13976_v45  ;;  %v13984_v21 = vld [vmem:[#allocation24_spill] sm:$0xff]  ;;  %v13987_v45 = vld [vmem:[#allocation23_spill] sm:$0xff] }
 0x5e9   :  { %3746 = vmatpush.msrb.mxu2 %v13975_v8  ;;  %3724 = vmatpush.msrb.mxu1 %v13978_v43  ;;  %v13986_v8 = vld [vmem:[#allocation25_spill] sm:$0xff]  ;;  %v13989_v43 = vld [vmem:[#allocation55_spill] sm:$0xff] }
 0x5ea   :  { %3707 = vmatpush.msrb.mxu0 %v13977_v23  ;;  %3764 = vmatpush.msrb.mxu3 %v13980_v44  ;;  %v13988_v23 = vld [vmem:[#allocation54_spill] sm:$0xff]  ;;  %v13991_v44 = vld [vmem:[#allocation57_spill] sm:$0xff] }
 0x5eb   :  { %3747 = vmatpush.msrb.mxu2 %v13979_v63  ;;  %3725 = vmatpush.msrb.mxu1 %v13982_v38  ;;  %v13990_v63 = vld [vmem:[#allocation56_spill] sm:$0xff] }
 0x5ec   :  { %3708 = vmatpush.msrb.mxu0 %v13981_v16  ;;  %3765 = vmatpush.msrb.mxu3 %v13984_v21  ;;  %v13992_v16 = vld [vmem:[#allocation203_spill] sm:$0xff]  ;;  %v13993_v38 = vld [vmem:[#allocation204_spill] sm:$0xff]  ;;  %v13995_v21 = vld [vmem:[#allocation214_spill] sm:$0xff] }
 0x5ed   :  { %3748 = vmatpush.msrb.mxu2 %v13983_v60  ;;  %3726 = vmatpush.msrb.mxu1 %v13986_v8  ;;  %v13994_v60 = vld [vmem:[#allocation213_spill] sm:$0xff]  ;;  %v13997_v8 = vld [vmem:[#allocation208_spill] sm:$0xff] }
 0x5ee   :  { %3709 = vmatpush.msrb.mxu0 %v13985_v46  ;;  %3766 = vmatpush.msrb.mxu3 %v13988_v23  ;;  %v13996_v46 = vld [vmem:[#allocation207_spill] sm:$0xff] }
 0x5ef   :  { %3749 = vmatpush.msrb.mxu2 %v13987_v45  ;;  %3727 = vmatpush.msrb.mxu1 %v13990_v63  ;;  %v13998_v45 = vld [vmem:[#allocation217_spill] sm:$0xff]  ;;  %v13999_v23 = vld [vmem:[#allocation211_spill] sm:$0xff] }
 0x5f0   :  { %3710 = vmatpush.msrb.mxu0 %v13989_v43  ;;  %3767 = vmatpush.msrb.mxu3 %v13992_v16  ;;  %v14000_v43 = vld [vmem:[#allocation212_spill] sm:$0xff]  ;;  %v14001_v63 = vld [vmem:[#allocation215_spill] sm:$0xff] }
 0x5f1   :  { %3750 = vmatpush.msrb.mxu2 %v13991_v44  ;;  %3728 = vmatpush.msrb.mxu1 %v13994_v60  ;;  %v14002_v44 = vld [vmem:[#allocation216_spill] sm:$0xff]  ;;  %v14005_v60 = vld [vmem:[#allocation21_spill] sm:$0xff] }
 0x5f2   :  { %3711 = vmatpush.msrb.mxu0 %v13993_v38  ;;  %3768 = vmatpush.msrb.mxu3 %v13996_v46  ;;  %v14003_v16 = vld [vmem:[#allocation20_spill] sm:$0xff]  ;;  %v14004_v38 = vld [vmem:[#allocation18_spill] sm:$0xff] }
 0x5f3   :  { %3751 = vmatpush.msrb.mxu2 %v13995_v21  ;;  %3729 = vmatpush.msrb.mxu1 %v13998_v45  ;;  %v14006_v21 = vld [vmem:[#allocation19_spill] sm:$0xff]  ;;  %v14007_v46 = vld [vmem:[#allocation50_spill] sm:$0xff]  ;;  %v14009_v45 = vld [vmem:[#allocation52_spill] sm:$0xff] }
 0x5f4   :  { %3712 = vmatpush.msrb.mxu0 %v13997_v8  ;;  %3769 = vmatpush.msrb.mxu3 %v14000_v43  ;;  %v14008_v8 = vld [vmem:[#allocation51_spill] sm:$0xff]  ;;  %v14011_v43 = vld [vmem:[#allocation86_spill] sm:$0xff] }
 0x5f5   :  { %3752 = vmatpush.msrb.mxu2 %v13999_v23  ;;  %3730 = vmatpush.msrb.mxu1 %v14002_v44  ;;  %v14010_v23 = vld [vmem:[#allocation53_spill] sm:$0xff]  ;;  %v14013_v44 = vld [vmem:[#allocation84_spill] sm:$0xff]  ;;  %v3229_v36 = vpop.f32.mrf.mxu3 }
 0x5f6   :  { %3713 = vmatpush.msrb.mxu0 %v14001_v63  ;;  %3770 = vmatpush.msrb.mxu3 %v14004_v38  ;;  %v14012_v63 = vld [vmem:[#allocation88_spill] sm:$0xff]  ;;  %v3189_v38 = vpop.f32.mrf.mxu1 }
 0x5f7   :  { %3753 = vmatpush.msrb.mxu2 %v14003_v16  ;;  %3731 = vmatpush.msrb.mxu1 %v14006_v21  ;;  %v14014_v16 = vld [vmem:[#allocation85_spill] sm:$0xff]  ;;  %v3209_v21 = vpop.f32.mrf.mxu2 }
 0x5f8   :  { %3714 = vmatpush.msrb.mxu0 %v14005_v60  ;;  %3771 = vmatpush.msrb.mxu3 %v14008_v8  ;;  %v3169_v60 = vpop.f32.mrf.mxu0  ;;  %v3230_v31 = vadd.f32 %v3229_v36, %v3209_v21 }
 0x5f9   :  { %3754 = vmatpush.msrb.mxu2 %v14007_v46  ;;  %3732 = vmatpush.msrb.mxu1 %v14009_v45  ;;  %v3190_v8 = vadd.f32 %v3189_v38, %v3169_v60  ;;  %v14015_v45 = vld [vmem:[#allocation32_spill] sm:$0xff] }
 0x5fa   :  { %3772 = vmatpush.msrb.mxu3 %v14010_v23  ;;  %v3233_v13 = vadd.f32 %v3230_v31, %v14018_v53  ;;  %v14020_v53 = vld [vmem:[#allocation63_spill] sm:$0xff] }
 0x5fb   :  { %3733 = vmatpush.msrb.mxu1 %v14011_v43  ;;  %v14016_v43 = vld [vmem:[#allocation30_spill] sm:$0xff] }
 0x5fc   :  { %3773 = vmatpush.msrb.mxu3 %v14012_v63  ;;  %v3232_v9 = vadd.f32 %v3190_v8, %v14016_v43  ;;  %v5312_v38 = vmul.f32 -1.442695, %v3233_v13 }
 0x5fd   :  { %3734 = vmatpush.msrb.mxu1 %v14013_v44  ;;  %v14017_v44 = vld [vmem:[#allocation33_spill] sm:$0xff] }
 0x5fe   :  { %3774 = vmatpush.msrb.mxu3 %v14014_v16  ;;  %v3271_v3 = vpop.f32.mrf.mxu1  ;;  %v5311_v16 = vmul.f32 -1.442695, %v3232_v9 }
 0x5ff   :  { %v3311_v18 = vpop.f32.mrf.mxu3  ;;  %v3291_v23 = vpop.f32.mrf.mxu2 }
 0x600   :  { %v3251_v46 = vpop.f32.mrf.mxu0  ;;  %v3312_v61 = vadd.f32 %v3311_v18, %v3291_v23 }
 0x601   :  { %v3272_v14 = vadd.f32 %v3271_v3, %v3251_v46 }
 0x602   :  { %v3315_v48 = vadd.f32 %v3312_v61, %v14017_v44 }
 0x603   :  { %v3314_v39 = vadd.f32 %v3272_v14, %v14015_v45  ;;  %v14019_v14 = vld [vmem:[#allocation62_spill] sm:$0xff] }
 0x604   :  { %v5314_v19 = vmul.f32 -1.442695, %v3315_v48 }
 0x605   :  { %v5313_v63 = vmul.f32 -1.442695, %v3314_v39 }
 0x607   :  { %5477 = vpow2.f32 %v5313_v63 }
 0x608   :  { %5479 = vpow2.f32 %v5311_v16 }
 0x609   :  { %5481 = vpow2.f32 %v5314_v19 }
 0x60a   :  { %5483 = vpow2.f32 %v5312_v38 }
 0x60c   :  { %v3333_v28 = vpop.f32.mrf.mxu0 }
 0x60d   :  { %v5478_v60 = vpop.eup %5477 }
 0x60e   :  { %v5480_v36 = vpop.eup %5479  ;;  %v10478_v61 = vadd.f32 1.0, %v5478_v60 }
 0x60f   :  { %v5482_v21 = vpop.eup %5481  ;;  %v3486_v45 = vadd.f32 1.0, %v5480_v36 }
 0x610   :  { %5485 = vrcp.f32 %v10478_v61  ;;  %v10482_v13 = vadd.f32 1.0, %v5482_v21  ;;  %v3537_v26 = vand.u32 2147483648, %v10478_v61  ;;  %vm3531_vm4 = vweird.f32 %v10478_v61 }
 0x611   :  { %vm3493_vm6 = vweird.f32 %v3486_v45 }
 0x612   :  { %v3373_v8 = vpop.f32.mrf.mxu2  ;;  %v3538_v59 = vor.u32 1.1754944e-38, %v3537_v26  ;;  %v3552_v26 = vand.u32 2147483648, %v10482_v13  ;;  %vm3546_vm12 = vweird.f32 %v10482_v13 }
 0x613   :  { %v3353_v55 = vpop.f32.mrf.mxu1 }
 0x614   :  { %v3354_v3 = vadd.f32 %v3353_v55, %v3333_v28  ;;  %v5484_v28 = vpop.eup %5483 }
 0x615   :  { %v10484_v55 = vadd.f32 1.0, %v5484_v28 }
 0x616   :  { %v3396_v18 = vadd.f32 %v3354_v3, %v14019_v14  ;;  %v5486_v48 = vpop.eup %5485 }
 0x617   :  { %v3527_v63 = vmul.f32 %v5486_v48, %v10478_v61  ;;  %vm3532_vm2 = vweird.f32 %v5486_v48  ;;  %vm3508_vm9 = vweird.f32 %v10484_v55 }
 0x618   :  { %v5315_v9 = vmul.f32 -1.442695, %v3396_v18  ;;  %vm10518_vm5 = vmor %vm3531_vm4, %vm3532_vm2 }
 0x619   :  { %v3393_v46 = vpop.f32.mrf.mxu3  ;;  %v3528_v60 = vsub.f32 1.0, %v3527_v63 }
 0x61a   :  { %v3394_v39 = vadd.f32 %v3393_v46, %v3373_v8  ;;  %5487 = vpow2.f32 %v5315_v9 }
 0x61b   :  { %5489 = vrcp.f32 %v3486_v45  ;;  %v3529_v36 = vmul.f32 %v5486_v48, %v3528_v60 }
 0x61c   :  { %v3397_v31 = vadd.f32 %v3394_v39, %v14020_v53  ;;  %5491 = vrcp.f32 %v10482_v13 }
 0x61e   :  { %v5316_v19 = vmul.f32 -1.442695, %v3397_v31 }
 0x620   :  { %v5488_v23 = vpop.eup %5487  ;;  %5493 = vpow2.f32 %v5316_v19 }
 0x621   :  { %v10487_v43 = vpop.eup %5489  ;;  %5495 = vrcp.f32 %v10484_v55  ;;  %v10491_v44 = vadd.f32 1.0, %v5488_v23  ;;  %v3497_v23 = vand.u32 2147483647, %v3486_v45 }
 0x622   :  { %v10493_v16 = vpop.eup %5491  ;;  %v3489_v3 = vmul.f32 %v10487_v43, %v3486_v45  ;;  %vm3494_vm3 = vweird.f32 %v10487_v43 }
 0x623   :  { %5497 = vrcp.f32 %v10491_v44  ;;  %v3542_v46 = vmul.f32 %v10493_v16, %v10482_v13  ;;  %vm10524_vm7 = vcmp.eq.f32.partialorder %v3497_v23, 8.507059e+37  ;;  %vm10533_vm8 = vmor %vm3493_vm6, %vm3494_vm3  ;;  %vm3547_vm10 = vweird.f32 %v10493_v16 }
 0x624   :  { %v3490_v18 = vsub.f32 1.0, %v3489_v3  ;;  %v3499_v3 = vand.u32 2147483648, %v3486_v45  ;;  %vm10551_vm14 = vmor %vm3546_vm12, %vm3547_vm10  ;;  %vm3569_vm3 = vweird.f32 %v10491_v44 }
 0x625   :  { %v3543_v21 = vsub.f32 1.0, %v3542_v46 }
 0x626   :  { %v5494_v38 = vpop.eup %5493  ;;  %v3491_v28 = vmul.f32 %v10487_v43, %v3490_v18 }
 0x627   :  { %v10497_v14 = vpop.eup %5495  ;;  %v10501_v8 = vadd.f32 1.0, %v5494_v38  ;;  %v3530_v38 = vadd.f32 %v5486_v48, %v3529_v36  ;;  %v3544_v46 = vmul.f32 %v10493_v16, %v3543_v21 }
 0x628   :  { %v3504_v39 = vmul.f32 %v10497_v14, %v10484_v55  ;;  %v3492_v18 = vadd.f32 %v10487_v43, %v3491_v28  ;;  %vm3509_vm13 = vweird.f32 %v10497_v14 }
 0x629   :  { %v10505_v9 = vpop.eup %5497  ;;  %5499 = vrcp.f32 %v10501_v8  ;;  %v3534_v21 = vsel %vm10518_vm5, %v5486_v48, %v3530_v38  ;;  %v3545_v23 = vadd.f32 %v10493_v16, %v3544_v46  ;;  %v14028_v38 = vld [vmem:[#allocation65_spill] sm:$0xff]  ;;  %vm10566_vm15 = vmor %vm3508_vm9, %vm3509_vm13 }
 0x62a   :  { %v3505_v63 = vsub.f32 1.0, %v3504_v39  ;;  %v3565_v60 = vmul.f32 %v10505_v9, %v10491_v44  ;;  %v3535_v39 = vand.u32 2147483647, %v10478_v61  ;;  %v3496_v48 = vsel %vm10533_vm8, %v10487_v43, %v3492_v18 }
 0x62b   :  { %vm3570_vm1 = vweird.f32 %v10505_v9 }
 0x62c   :  { %v3506_v61 = vmul.f32 %v10497_v14, %v3505_v63  ;;  %v3566_v56 = vsub.f32 1.0, %v3565_v60  ;;  %vm3536_vm11 = vcmp.eq.f32.partialorder %v3535_v39, 8.507059e+37  ;;  %v3514_v39 = vand.u32 2147483648, %v10484_v55  ;;  %vm3571_vm4 = vmor %vm3569_vm3, %vm3570_vm1 }
 0x62e   :  { %v3415_v53 = vpop.f32.mrf.mxu0  ;;  %v3567_v46 = vmul.f32 %v10505_v9, %v3566_v56  ;;  %v10614_v56 = vld [vmem:[#allocation3 + $0x368] sm:$0xff] }
 0x62f   :  { %v10522_v36 = vpop.eup %5499 }
 0x630   :  { %v3580_v63 = vmul.f32 %v10522_v36, %v10501_v8  ;;  %vm3585_vm6 = vweird.f32 %v10522_v36 }
 0x634   :  { %v3435_v31 = vpop.f32.mrf.mxu1 }
 0x635   :  { %v3436_v19 = vadd.f32 %v3435_v31, %v3415_v53  ;;  %v3500_v31 = vor.u32 1.1754944e-38, %v3499_v3  ;;  %v3539_v3 = vsel %vm3536_vm11, %v3538_v59, %v3534_v21  ;;  %v3507_v53 = vadd.f32 %v10497_v14, %v3506_v61 }
 0x636   :  { %v3596_v21 = vmul.f32 %v3539_v3, %v9988_v0  ;;  %v3512_v61 = vand.u32 2147483647, %v10484_v55 }
 0x637   :  { %v3478_v5 = vadd.f32 %v3436_v19, %v14021_v50  ;;  %v3455_v19 = vpop.f32.mrf.mxu2  ;;  %v3501_v59 = vsel %vm10524_vm7, %v3500_v31, %v3496_v48  ;;  %v3511_v0 = vsel %vm10566_vm15, %v10497_v14, %v3507_v53  ;;  %v3568_v31 = vadd.f32 %v10505_v9, %v3567_v46 }
 0x638   :  { %vm3513_vm2 = vcmp.eq.f32.partialorder %v3512_v61, 8.507059e+37  ;;  %vm3584_vm7 = vweird.f32 %v10501_v8 }
 0x639   :  { %5501 = vtanh.f32 %v3478_v5  ;;  %v3553_v5 = vor.u32 1.1754944e-38, %v3552_v26  ;;  %v3573_v26 = vand.u32 2147483647, %v10491_v44  ;;  %vm3586_vm8 = vmor %vm3584_vm7, %vm3585_vm6 }
 0x63a   :  { %v3475_v28 = vpop.f32.mrf.mxu3 }
 0x63b   :  { %v3476_v45 = vadd.f32 %v3475_v28, %v3455_v19  ;;  %v3550_v19 = vand.u32 2147483647, %v10482_v13  ;;  %v3549_v13 = vsel %vm10551_vm14, %v10493_v16, %v3545_v23  ;;  %v3515_v16 = vor.u32 1.1754944e-38, %v3514_v39 }
 0x63c   :  { %v3575_v23 = vand.u32 2147483648, %v10491_v44  ;;  %vm3574_vm5 = vcmp.eq.f32.partialorder %v3573_v26, 8.507059e+37  ;;  %v3590_v44 = vand.u32 2147483648, %v10501_v8  ;;  %v10639_v26 = vld [vmem:[#allocation3 + $0x2e8] sm:$0xff] }
 0x63d   :  { %v3479_v60 = vadd.f32 %v3476_v45, %v14028_v38  ;;  %v3581_v45 = vsub.f32 1.0, %v3580_v63  ;;  %vm3551_vm0 = vcmp.eq.f32.partialorder %v3550_v19, 8.507059e+37  ;;  %v3516_v14 = vsel %vm3513_vm2, %v3515_v16, %v3511_v0  ;;  %v10619_v0 = vld [vmem:[#allocation3 + $0x320] sm:$0xff]  ;;  %v10625_v16 = vld [vmem:[#allocation3 + $0x328] sm:$0xff] }
 0x63e   :  { %v3554_v48 = vsel %vm3551_vm0, %v3553_v5, %v3549_v13  ;;  %v3576_v53 = vor.u32 1.1754944e-38, %v3575_v23  ;;  %v3591_v39 = vor.u32 1.1754944e-38, %v3590_v44  ;;  %v10603_v13 = vld [vmem:[#allocation3 + $0x3a0] sm:$0xff] }
 0x63f   :  { %v5502_v43 = vpop.eup %5501  ;;  %5503 = vtanh.f32 %v3479_v60  ;;  %v3582_v63 = vmul.f32 %v10522_v36, %v3581_v45  ;;  %v3597_v3 = vmul.f32 %v3554_v48, %v10002_v1  ;;  %v3572_v60 = vsel %vm3571_vm4, %v10505_v9, %v3568_v31  ;;  %v10611_v45 = vld [vmem:[#allocation3 + $0x360] sm:$0xff]  ;;  %v10628_v48 = vld [vmem:[#allocation3 + $0x7e8] sm:$0xff] }
 0x640   :  { %v3598_v28 = vmul.f32 %v5502_v43, %v3501_v59  ;;  %v3577_v46 = vsel %vm3574_vm5, %v3576_v53, %v3572_v60  ;;  %v3588_v1 = vand.u32 2147483647, %v10501_v8  ;;  %v10622_v31 = vld [vmem:[#allocation3 + $0x7e0] sm:$0xff]  ;;  %v10654_v60 = vld [vmem:[#allocation3 + $0x768] sm:$0xff] }
 0x641   :  { %v3583_v43 = vadd.f32 %v10522_v36, %v3582_v63  ;;  %v10633_v23 = vld [vmem:[#allocation3 + $0x2e0] sm:$0xff]  ;;  %v10642_v63 = vld [vmem:[#allocation3 + $0x7a8] sm:$0xff] }
 0x642   :  { %v10570_v50 = vadd.f32 %v3598_v28, %v3596_v21  ;;  %v10597_v21 = vld [vmem:[#allocation3 + $0x3e0] sm:$0xff]  ;;  %v10600_v28 = vld [vmem:[#allocation3 + $0x3e8] sm:$0xff]  ;;  %vm3589_vm9 = vcmp.eq.f32.partialorder %v3588_v1, 8.507059e+37 }
 0x643   :  { %v3587_v9 = vsel %vm3586_vm8, %v10522_v36, %v3583_v43  ;;  %v10606_v36 = vld [vmem:[#allocation3 + $0x3a8] sm:$0xff]  ;;  %v10657_v53 = vld [vmem:[#allocation3 + $0x260] sm:$0xff] }
 0x644   :  { %5505 = vtanh.f32 %v10570_v50  ;;  %v3592_v61 = vsel %vm3589_vm9, %v3591_v39, %v3587_v9  ;;  %v10660_v43 = vld [vmem:[#allocation3 + $0x720] sm:$0xff]  ;;  %v10677_v9 = vld [vmem:[#allocation3 + $0x228] sm:$0xff] }
 0x645   :  { %v5504_v55 = vpop.eup %5503  ;;  %v10671_v44 = vld [vmem:[#allocation3 + $0x220] sm:$0xff]  ;;  %14035 = vst [vmem:[#allocation134_spill] sm:$0xff] %v10677_v9  ;;  %v10680_v39 = vld [vmem:[#allocation3 + $0x6e8] sm:$0xff] }
 0x646   :  { %v3599_v38 = vmul.f32 %v5504_v55, %v3516_v14  ;;  %v10636_v55 = vld [vmem:[#allocation3 + $0x7a0] sm:$0xff]  ;;  %14033 = vst [vmem:[#allocation127_spill] sm:$0xff] %v10671_v44 }
 0x647   :  { %v10645_v14 = vld [vmem:[#allocation3 + $0x2a0] sm:$0xff]  ;;  %14036 = vst [vmem:[#allocation136_spill] sm:$0xff] %v10680_v39 }
 0x648   :  { %v10584_v19 = vadd.f32 %v3599_v38, %v3597_v3  ;;  %v10648_v3 = vld [vmem:[#allocation3 + $0x760] sm:$0xff]  ;;  %v10651_v38 = vld [vmem:[#allocation3 + $0x2a8] sm:$0xff] }
 0x649   :  { %v10674_v1 = vld [vmem:[#allocation3 + $0x6e0] sm:$0xff] }
 0x64a   :  { %v5506_v18 = vpop.eup %5505  ;;  %5507 = vtanh.f32 %v10584_v19  ;;  %14034 = vst [vmem:[#allocation129_spill] sm:$0xff] %v10674_v1 }
 0x64b   :  { %v10592_v59 = vmul.f32 %v5506_v18, %v3577_v46  ;;  %v10663_v18 = vld [vmem:[#allocation3 + $0x268] sm:$0xff] }
 0x64c   :  { %v10666_v46 = vld [vmem:[#allocation3 + $0x728] sm:$0xff] }
 0x64d   :  { %3633 = vmatmul.f32.vlgmr.msra.gmra.mxu0 %v10592_v59  ;;  %3673 = vmatmul.f32.vlgmr.msra.gmra.mxu2 %v10592_v59 }
 0x64e   :  { %3781 = vmatpush.msra.mxu0 %v10597_v21  ;;  %3821 = vmatpush.msra.mxu2 %v10600_v28 }
 0x650   :  { %v5508_v8 = vpop.eup %5507  ;;  %3782 = vmatpush.msra.mxu0 %v10603_v13  ;;  %3822 = vmatpush.msra.mxu2 %v10606_v36 }
 0x651   :  { %v10609_v5 = vmul.f32 %v5508_v8, %v3592_v61  ;;  %v10683_v8 = vld [vmem:[#allocation3 + $0x1e0] sm:$0xff] }
 0x652   :  { %3783 = vmatpush.msra.mxu0 %v10611_v45  ;;  %3823 = vmatpush.msra.mxu2 %v10614_v56  ;;  %14037 = vst [vmem:[#allocation131_spill] sm:$0xff] %v10683_v8  ;;  %v10686_v61 = vld [vmem:[#allocation3 + $0x6a0] sm:$0xff] }
 0x653   :  { %3653 = vmatmul.f32.vlgmr.msra.gmra.mxu1 %v10609_v5  ;;  %3693 = vmatmul.f32.vlgmr.msra.gmra.mxu3 %v10609_v5  ;;  %14038 = vst [vmem:[#allocation133_spill] sm:$0xff] %v10686_v61 }
 0x654   :  { %3784 = vmatpush.msra.mxu0 %v10619_v0  ;;  %3801 = vmatpush.msra.mxu1 %v10622_v31 }
 0x655   :  { %3824 = vmatpush.msra.mxu2 %v10625_v16  ;;  %3841 = vmatpush.msra.mxu3 %v10628_v48 }
 0x656   :  { %3715 = vmatmul.f32.vlgmr.msrb.gmra.mxu0 %v10592_v59  ;;  %3755 = vmatmul.f32.vlgmr.msrb.gmra.mxu2 %v10592_v59 }
 0x657   :  { %3785 = vmatpush.msra.mxu0 %v10633_v23  ;;  %3802 = vmatpush.msra.mxu1 %v10636_v55 }
 0x658   :  { %3825 = vmatpush.msra.mxu2 %v10639_v26  ;;  %3842 = vmatpush.msra.mxu3 %v10642_v63 }
 0x659   :  { %3786 = vmatpush.msra.mxu0 %v10645_v14  ;;  %3803 = vmatpush.msra.mxu1 %v10648_v3 }
 0x65a   :  { %3826 = vmatpush.msra.mxu2 %v10651_v38  ;;  %3843 = vmatpush.msra.mxu3 %v10654_v60 }
 0x65b   :  { %3787 = vmatpush.msra.mxu0 %v10657_v53  ;;  %3804 = vmatpush.msra.mxu1 %v10660_v43 }
 0x65c   :  { %3827 = vmatpush.msra.mxu2 %v10663_v18  ;;  %3844 = vmatpush.msra.mxu3 %v10666_v46 }
 0x65d   :  { %3735 = vmatmul.f32.vlgmr.msrb.gmra.mxu1 %v10609_v5  ;;  %3775 = vmatmul.f32.vlgmr.msrb.gmra.mxu3 %v10609_v5 }
 0x65e   :  { %3788 = vmatpush.msra.mxu0 %v10671_v44  ;;  %3805 = vmatpush.msra.mxu1 %v10674_v1  ;;  %v10689_v44 = vld [vmem:[#allocation3 + $0x1e8] sm:$0xff] }
 0x65f   :  { %3828 = vmatpush.msra.mxu2 %v10677_v9  ;;  %3845 = vmatpush.msra.mxu3 %v10680_v39  ;;  %14039 = vst [vmem:[#allocation138_spill] sm:$0xff] %v10689_v44  ;;  %v10692_v1 = vld [vmem:[#allocation3 + $0x6a8] sm:$0xff]  ;;  %v10695_v9 = vld [vmem:[#allocation3 + $0x1a0] sm:$0xff] }
 0x660   :  { %3789 = vmatpush.msra.mxu0 %v10683_v8  ;;  %3806 = vmatpush.msra.mxu1 %v10686_v61  ;;  %14040 = vst [vmem:[#allocation140_spill] sm:$0xff] %v10692_v1  ;;  %v10698_v39 = vld [vmem:[#allocation3 + $0x660] sm:$0xff]  ;;  %v10701_v8 = vld [vmem:[#allocation3 + $0x1a8] sm:$0xff] }
 0x661   :  { %3829 = vmatpush.msra.mxu2 %v10689_v44  ;;  %3846 = vmatpush.msra.mxu3 %v10692_v1  ;;  %14041 = vst [vmem:[#allocation135_spill] sm:$0xff] %v10695_v9  ;;  %v10704_v61 = vld [vmem:[#allocation3 + $0x668] sm:$0xff]  ;;  %v10707_v44 = vld [vmem:[#allocation3 + $0x160] sm:$0xff] }
 0x662   :  { %3790 = vmatpush.msra.mxu0 %v10695_v9  ;;  %14042 = vst [vmem:[#allocation137_spill] sm:$0xff] %v10698_v39  ;;  %3807 = vmatpush.msra.mxu1 %v10698_v39  ;;  %v10710_v1 = vld [vmem:[#allocation3 + $0x620] sm:$0xff]  ;;  %v10713_v9 = vld [vmem:[#allocation3 + $0x168] sm:$0xff] }
 0x663   :  { %14043 = vst [vmem:[#allocation139_spill] sm:$0xff] %v10701_v8  ;;  %3830 = vmatpush.msra.mxu2 %v10701_v8  ;;  %3847 = vmatpush.msra.mxu3 %v10704_v61  ;;  %v10716_v39 = vld [vmem:[#allocation3 + $0x628] sm:$0xff]  ;;  %v10719_v8 = vld [vmem:[#allocation3 + $0x120] sm:$0xff] }
 0x664   :  { %14044 = vst [vmem:[#allocation141_spill] sm:$0xff] %v10704_v61  ;;  %3791 = vmatpush.msra.mxu0 %v10707_v44  ;;  %3808 = vmatpush.msra.mxu1 %v10710_v1  ;;  %v10722_v61 = vld [vmem:[#allocation3 + $0x5e0] sm:$0xff] }
 0x665   :  { %14045 = vst [vmem:[#allocation16_spill] sm:$0xff] %v10707_v44  ;;  %3831 = vmatpush.msra.mxu2 %v10713_v9  ;;  %3848 = vmatpush.msra.mxu3 %v10716_v39  ;;  %v10725_v44 = vld [vmem:[#allocation3 + $0x128] sm:$0xff] }
 0x666   :  { %14046 = vst [vmem:[#allocation14_spill] sm:$0xff] %v10710_v1  ;;  %3792 = vmatpush.msra.mxu0 %v10719_v8  ;;  %3809 = vmatpush.msra.mxu1 %v10722_v61  ;;  %v10728_v1 = vld [vmem:[#allocation3 + $0x5e8] sm:$0xff] }
 0x667   :  { %14047 = vst [vmem:[#allocation17_spill] sm:$0xff] %v10713_v9  ;;  %3832 = vmatpush.msra.mxu2 %v10725_v44  ;;  %3849 = vmatpush.msra.mxu3 %v10728_v1  ;;  %v10731_v9 = vld [vmem:[#allocation3 + $0xe0] sm:$0xff] }
 0x668   :  { %14048 = vst [vmem:[#allocation15_spill] sm:$0xff] %v10716_v39  ;;  %3793 = vmatpush.msra.mxu0 %v10731_v9  ;;  %v10734_v39 = vld [vmem:[#allocation3 + $0x5a0] sm:$0xff] }
 0x669   :  { %14049 = vst [vmem:[#allocation47_spill] sm:$0xff] %v10719_v8  ;;  %3810 = vmatpush.msra.mxu1 %v10734_v39  ;;  %3833 = vmatpush.msra.mxu2 %v10067_v24  ;;  %v10738_v8 = vld [vmem:[#allocation3 + $0x5a8] sm:$0xff] }
 0x66a   :  { %14050 = vst [vmem:[#allocation46_spill] sm:$0xff] %v10725_v44  ;;  %3850 = vmatpush.msra.mxu3 %v10738_v8  ;;  %3794 = vmatpush.msra.mxu0 %v10071_v25  ;;  %v10742_v44 = vld [vmem:[#allocation3 + $0x560] sm:$0xff]  ;;  %v10754_v24 = vld [vmem:[#allocation3 + $0x528] sm:$0xff] }
 0x66b   :  { %14051 = vst [vmem:[#allocation48_spill] sm:$0xff] %v10728_v1  ;;  %3811 = vmatpush.msra.mxu1 %v10742_v44  ;;  %3834 = vmatpush.msra.mxu2 %v10075_v34  ;;  %v10746_v1 = vld [vmem:[#allocation3 + $0x568] sm:$0xff]  ;;  %v10758_v25 = vld [vmem:[#allocation3 + $0x4e0] sm:$0xff] }
 0x66c   :  { %14052 = vst [vmem:[#allocation49_spill] sm:$0xff] %v10734_v39  ;;  %3851 = vmatpush.msra.mxu3 %v10746_v1  ;;  %3795 = vmatpush.msra.mxu0 %v10079_v17  ;;  %v10750_v39 = vld [vmem:[#allocation3 + $0x520] sm:$0xff]  ;;  %v10762_v34 = vld [vmem:[#allocation3 + $0x4e8] sm:$0xff] }
 0x66d   :  { %3812 = vmatpush.msra.mxu1 %v10750_v39  ;;  %3835 = vmatpush.msra.mxu2 %v10083_v54  ;;  %v10769_v17 = vld [vmem:[#allocation3 + $0x4a0] sm:$0xff]  ;;  %v10772_v54 = vld [vmem:[#allocation3 + $0x4a8] sm:$0xff] }
 0x66e   :  { %3852 = vmatpush.msra.mxu3 %v10754_v24  ;;  %3796 = vmatpush.msra.mxu0 %v10087_v62  ;;  %14053 = vst [vmem:[#allocation142_spill] sm:$0xff] %v10772_v54  ;;  %v10777_v62 = vld [vmem:[#allocation3 + $0x460] sm:$0xff] }
 0x66f   :  { %3813 = vmatpush.msra.mxu1 %v10758_v25  ;;  %3836 = vmatpush.msra.mxu2 %v10091_v40  ;;  %14054 = vst [vmem:[#allocation143_spill] sm:$0xff] %v10777_v62  ;;  %v10780_v40 = vld [vmem:[#allocation3 + $0x468] sm:$0xff] }
 0x670   :  { %3853 = vmatpush.msra.mxu3 %v10762_v34  ;;  %3797 = vmatmul.f32.vlgmr.msra.gmra.mxu0 %v10592_v59  ;;  %14055 = vst [vmem:[#allocation144_spill] sm:$0xff] %v10780_v40 }
 0x671   :  { %3837 = vmatmul.f32.vlgmr.msra.gmra.mxu2 %v10592_v59  ;;  %3863 = vmatpush.msrb.mxu0 %v10097_v20  ;;  %v10785_v20 = vld [vmem:[#allocation3 + $0x420] sm:$0xff] }
 0x672   :  { %3903 = vmatpush.msrb.mxu2 %v10100_v58  ;;  %3814 = vmatpush.msra.mxu1 %v10769_v17  ;;  %14056 = vst [vmem:[#allocation145_spill] sm:$0xff] %v10785_v20  ;;  %v10788_v58 = vld [vmem:[#allocation3 + $0x428] sm:$0xff] }
 0x673   :  { %3854 = vmatpush.msra.mxu3 %v10772_v54  ;;  %3864 = vmatpush.msrb.mxu0 %v10105_v4  ;;  %14057 = vst [vmem:[#allocation147_spill] sm:$0xff] %v10788_v58  ;;  %v10794_v4 = vld [vmem:[#allocation3 + $0x7f0] sm:$0xff] }
 0x674   :  { %3904 = vmatpush.msrb.mxu2 %v10108_v2  ;;  %3815 = vmatpush.msra.mxu1 %v10777_v62  ;;  %14058 = vst [vmem:[#allocation149_spill] sm:$0xff] %v10794_v4  ;;  %v14059_v2 = vld [vmem:[#allocation90_spill] sm:$0xff] }
 0x675   :  { %3855 = vmatpush.msra.mxu3 %v10780_v40  ;;  %3865 = vmatpush.msrb.mxu0 %v10113_v6  ;;  %v14060_v6 = vld [vmem:[#allocation92_spill] sm:$0xff] }
 0x676   :  { %3905 = vmatpush.msrb.mxu2 %v10116_v10  ;;  %3816 = vmatpush.msra.mxu1 %v10785_v20  ;;  %v14061_v10 = vld [vmem:[#allocation87_spill] sm:$0xff]  ;;  %v14231_v20 = vld [vmem:[#allocation68_spill] sm:$0xff] }
 0x677   :  { %3856 = vmatpush.msra.mxu3 %v10788_v58  ;;  %3817 = vmatmul.f32.vlgmr.msra.gmra.mxu1 %v10609_v5 }
 0x678   :  { %3857 = vmatmul.f32.vlgmr.msra.gmra.mxu3 %v10609_v5  ;;  %3866 = vmatpush.msrb.mxu0 %v10123_v47  ;;  %v14062_v47 = vld [vmem:[#allocation89_spill] sm:$0xff] }
 0x679   :  { %3883 = vmatpush.msrb.mxu1 %v10794_v4  ;;  %3906 = vmatpush.msrb.mxu2 %v10127_v12  ;;  %v14063_v12 = vld [vmem:[#allocation94_spill] sm:$0xff] }
 0x67a   :  { %3923 = vmatpush.msrb.mxu3 %v10130_v22  ;;  %3867 = vmatpush.msrb.mxu0 %v10133_v30  ;;  %v14064_v22 = vld [vmem:[#allocation96_spill] sm:$0xff]  ;;  %v14065_v30 = vld [vmem:[#allocation91_spill] sm:$0xff] }
 0x67b   :  { %3884 = vmatpush.msrb.mxu1 %v10136_v32  ;;  %3907 = vmatpush.msrb.mxu2 %v10139_v37  ;;  %v14066_v32 = vld [vmem:[#allocation93_spill] sm:$0xff]  ;;  %v14067_v37 = vld [vmem:[#allocation98_spill] sm:$0xff] }
 0x67c   :  { %3924 = vmatpush.msrb.mxu3 %v10142_v49  ;;  %3868 = vmatpush.msrb.mxu0 %v10145_v42  ;;  %v14068_v49 = vld [vmem:[#allocation100_spill] sm:$0xff]  ;;  %v14069_v42 = vld [vmem:[#allocation95_spill] sm:$0xff] }
 0x67d   :  { %3885 = vmatpush.msrb.mxu1 %v10148_v33  ;;  %3908 = vmatpush.msrb.mxu2 %v10151_v41  ;;  %v14070_v33 = vld [vmem:[#allocation97_spill] sm:$0xff]  ;;  %v14071_v41 = vld [vmem:[#allocation102_spill] sm:$0xff] }
 0x67e   :  { %3925 = vmatpush.msrb.mxu3 %v10154_v52  ;;  %3869 = vmatpush.msrb.mxu0 %v10157_v57  ;;  %v14072_v52 = vld [vmem:[#allocation104_spill] sm:$0xff]  ;;  %v14073_v57 = vld [vmem:[#allocation99_spill] sm:$0xff] }
 0x67f   :  { %3886 = vmatpush.msrb.mxu1 %v10160_v7  ;;  %3909 = vmatpush.msrb.mxu2 %v10163_v27  ;;  %v14074_v7 = vld [vmem:[#allocation101_spill] sm:$0xff]  ;;  %v14075_v27 = vld [vmem:[#allocation106_spill] sm:$0xff] }
 0x680   :  { %3926 = vmatpush.msrb.mxu3 %v10166_v51  ;;  %3870 = vmatpush.msrb.mxu0 %v10169_v15  ;;  %v14076_v51 = vld [vmem:[#allocation108_spill] sm:$0xff]  ;;  %v14077_v15 = vld [vmem:[#allocation103_spill] sm:$0xff] }
 0x681   :  { %3887 = vmatpush.msrb.mxu1 %v10172_v35  ;;  %3910 = vmatpush.msrb.mxu2 %v10175_v11  ;;  %v14078_v35 = vld [vmem:[#allocation105_spill] sm:$0xff]  ;;  %v14079_v11 = vld [vmem:[#allocation110_spill] sm:$0xff] }
 0x682   :  { %3927 = vmatpush.msrb.mxu3 %v10178_v29  ;;  %3871 = vmatpush.msrb.mxu0 %v14059_v2  ;;  %v14080_v29 = vld [vmem:[#allocation112_spill] sm:$0xff]  ;;  %v14081_v2 = vld [vmem:[#allocation218_spill] sm:$0xff] }
 0x683   :  { %3888 = vmatpush.msrb.mxu1 %v14060_v6  ;;  %3911 = vmatpush.msrb.mxu2 %v14061_v10  ;;  %v14082_v6 = vld [vmem:[#allocation219_spill] sm:$0xff]  ;;  %v14083_v10 = vld [vmem:[#allocation220_spill] sm:$0xff] }
 0x684   :  { %3928 = vmatpush.msrb.mxu3 %v14062_v47  ;;  %3872 = vmatpush.msrb.mxu0 %v14063_v12  ;;  %v14084_v47 = vld [vmem:[#allocation221_spill] sm:$0xff]  ;;  %v14085_v12 = vld [vmem:[#allocation222_spill] sm:$0xff] }
 0x685   :  { %3889 = vmatpush.msrb.mxu1 %v14064_v22  ;;  %3912 = vmatpush.msrb.mxu2 %v14065_v30  ;;  %v14086_v22 = vld [vmem:[#allocation223_spill] sm:$0xff]  ;;  %v14087_v30 = vld [vmem:[#allocation224_spill] sm:$0xff] }
 0x686   :  { %3929 = vmatpush.msrb.mxu3 %v14066_v32  ;;  %3873 = vmatpush.msrb.mxu0 %v14067_v37  ;;  %v14088_v32 = vld [vmem:[#allocation225_spill] sm:$0xff]  ;;  %v14089_v37 = vld [vmem:[#allocation226_spill] sm:$0xff] }
 0x687   :  { %3890 = vmatpush.msrb.mxu1 %v14068_v49  ;;  %3913 = vmatpush.msrb.mxu2 %v14069_v42  ;;  %v14090_v49 = vld [vmem:[#allocation227_spill] sm:$0xff] }
 0x688   :  { %3930 = vmatpush.msrb.mxu3 %v14070_v33  ;;  %3874 = vmatpush.msrb.mxu0 %v14071_v41  ;;  %v14091_v42 = vld [vmem:[#allocation107_spill] sm:$0xff]  ;;  %v14092_v33 = vld [vmem:[#allocation228_spill] sm:$0xff]  ;;  %v14093_v41 = vld [vmem:[#allocation109_spill] sm:$0xff] }
 0x689   :  { %3891 = vmatpush.msrb.mxu1 %v14072_v52  ;;  %3914 = vmatpush.msrb.mxu2 %v14073_v57  ;;  %v14094_v52 = vld [vmem:[#allocation114_spill] sm:$0xff]  ;;  %v14095_v57 = vld [vmem:[#allocation116_spill] sm:$0xff] }
 0x68a   :  { %3931 = vmatpush.msrb.mxu3 %v14074_v7  ;;  %3875 = vmatpush.msrb.mxu0 %v14075_v27  ;;  %v14096_v7 = vld [vmem:[#allocation111_spill] sm:$0xff]  ;;  %v14097_v27 = vld [vmem:[#allocation28_spill] sm:$0xff] }
 0x68b   :  { %3892 = vmatpush.msrb.mxu1 %v14076_v51  ;;  %3915 = vmatpush.msrb.mxu2 %v14077_v15  ;;  %v14098_v51 = vld [vmem:[#allocation26_spill] sm:$0xff]  ;;  %v14099_v15 = vld [vmem:[#allocation29_spill] sm:$0xff] }
 0x68c   :  { %3932 = vmatpush.msrb.mxu3 %v14078_v35  ;;  %3876 = vmatpush.msrb.mxu0 %v14079_v11  ;;  %v14100_v35 = vld [vmem:[#allocation27_spill] sm:$0xff] }
 0x68d   :  { %3893 = vmatpush.msrb.mxu1 %v14080_v29  ;;  %3916 = vmatpush.msrb.mxu2 %v14081_v2  ;;  %v14102_v11 = vld [vmem:[#allocation59_spill] sm:$0xff]  ;;  %v14103_v29 = vld [vmem:[#allocation60_spill] sm:$0xff]  ;;  %v14104_v2 = vld [vmem:[#allocation61_spill] sm:$0xff] }
 0x68e   :  { %3933 = vmatpush.msrb.mxu3 %v14082_v6  ;;  %3877 = vmatpush.msrb.mxu0 %v14083_v10  ;;  %v14105_v6 = vld [vmem:[#allocation113_spill] sm:$0xff]  ;;  %v14106_v10 = vld [vmem:[#allocation118_spill] sm:$0xff] }
 0x68f   :  { %3894 = vmatpush.msrb.mxu1 %v14084_v47  ;;  %3917 = vmatpush.msrb.mxu2 %v14085_v12  ;;  %v14107_v47 = vld [vmem:[#allocation120_spill] sm:$0xff]  ;;  %v14108_v12 = vld [vmem:[#allocation115_spill] sm:$0xff] }
 0x690   :  { %3934 = vmatpush.msrb.mxu3 %v14086_v22  ;;  %3878 = vmatpush.msrb.mxu0 %v14087_v30  ;;  %v14109_v22 = vld [vmem:[#allocation117_spill] sm:$0xff]  ;;  %v14110_v30 = vld [vmem:[#allocation122_spill] sm:$0xff] }
 0x691   :  { %3895 = vmatpush.msrb.mxu1 %v14088_v32  ;;  %3918 = vmatpush.msrb.mxu2 %v14089_v37  ;;  %v14112_v32 = vld [vmem:[#allocation119_spill] sm:$0xff]  ;;  %v14113_v37 = vld [vmem:[#allocation121_spill] sm:$0xff] }
 0x692   :  { %3935 = vmatpush.msrb.mxu3 %v14090_v49  ;;  %3879 = vmatmul.f32.vlgmr.msrb.gmra.mxu0 %v10592_v59  ;;  %v10874_v49 = vld [vmem:[#allocation3 + $0x288] sm:$0xff] }
 0x693   :  { %3919 = vmatmul.f32.vlgmr.msrb.gmra.mxu2 %v10592_v59  ;;  %3896 = vmatpush.msrb.mxu1 %v14091_v42  ;;  %v14101_v59 = vld [vmem:[#allocation58_spill] sm:$0xff]  ;;  %14114 = vst [vmem:[#allocation151_spill] sm:$0xff] %v10874_v49 }
 0x694   :  { %3936 = vmatpush.msrb.mxu3 %v14092_v33  ;;  %4082 = vmatpush.msra.mxu0 %v14093_v41  ;;  %v14115_v42 = vld [vmem:[#allocation126_spill] sm:$0xff]  ;;  %v14116_v33 = vld [vmem:[#allocation128_spill] sm:$0xff] }
 0x695   :  { %4122 = vmatpush.msra.mxu2 %v14094_v52  ;;  %3897 = vmatpush.msrb.mxu1 %v14095_v57  ;;  %v10879_v41 = vld [vmem:[#allocation3 + $0x240] sm:$0xff]  ;;  %v10882_v52 = vld [vmem:[#allocation3 + $0x248] sm:$0xff] }
 0x696   :  { %3937 = vmatpush.msrb.mxu3 %v14096_v7  ;;  %4083 = vmatpush.msra.mxu0 %v14097_v27  ;;  %14117 = vst [vmem:[#allocation153_spill] sm:$0xff] %v10879_v41  ;;  %v14119_v57 = vld [vmem:[#allocation123_spill] sm:$0xff]  ;;  %v14120_v7 = vld [vmem:[#allocation125_spill] sm:$0xff] }
 0x697   :  { %4123 = vmatpush.msra.mxu2 %v14098_v51  ;;  %3898 = vmatpush.msrb.mxu1 %v14099_v15  ;;  %14118 = vst [vmem:[#allocation155_spill] sm:$0xff] %v10882_v52  ;;  %v10887_v27 = vld [vmem:[#allocation3 + $0x200] sm:$0xff]  ;;  %v10890_v51 = vld [vmem:[#allocation3 + $0x208] sm:$0xff] }
 0x698   :  { %3938 = vmatpush.msrb.mxu3 %v14100_v35  ;;  %3899 = vmatmul.f32.vlgmr.msrb.gmra.mxu1 %v10609_v5  ;;  %14121 = vst [vmem:[#allocation157_spill] sm:$0xff] %v10887_v27  ;;  %v14123_v15 = vld [vmem:[#allocation130_spill] sm:$0xff]  ;;  %v14124_v35 = vld [vmem:[#allocation132_spill] sm:$0xff] }
 0x699   :  { %3939 = vmatmul.f32.vlgmr.msrb.gmra.mxu3 %v10609_v5  ;;  %4084 = vmatpush.msra.mxu0 %v14101_v59  ;;  %v14111_v5 = vld [vmem:[#allocation124_spill] sm:$0xff]  ;;  %14122 = vst [vmem:[#allocation146_spill] sm:$0xff] %v10890_v51  ;;  %v10895_v59 = vld [vmem:[#allocation3 + $0x1c0] sm:$0xff] }
 0x69a   :  { %4124 = vmatpush.msra.mxu2 %v14102_v11  ;;  %4102 = vmatpush.msra.mxu1 %v14103_v29  ;;  %14125 = vst [vmem:[#allocation159_spill] sm:$0xff] %v10895_v59  ;;  %v10898_v11 = vld [vmem:[#allocation3 + $0x1c8] sm:$0xff]  ;;  %v10901_v29 = vld [vmem:[#allocation3 + $0x640] sm:$0xff] }
 0x69b   :  { %4142 = vmatpush.msra.mxu3 %v14104_v2  ;;  %4085 = vmatpush.msra.mxu0 %v14105_v6  ;;  %14126 = vst [vmem:[#allocation148_spill] sm:$0xff] %v10898_v11  ;;  %v10904_v2 = vld [vmem:[#allocation3 + $0x648] sm:$0xff]  ;;  %v10907_v6 = vld [vmem:[#allocation3 + $0x180] sm:$0xff] }
 0x69c   :  { %4125 = vmatpush.msra.mxu2 %v14106_v10  ;;  %4103 = vmatpush.msra.mxu1 %v14107_v47  ;;  %14127 = vst [vmem:[#allocation161_spill] sm:$0xff] %v10901_v29  ;;  %v10910_v10 = vld [vmem:[#allocation3 + $0x188] sm:$0xff]  ;;  %v10913_v47 = vld [vmem:[#allocation3 + $0x600] sm:$0xff] }
 0x69d   :  { %4143 = vmatpush.msra.mxu3 %v14108_v12  ;;  %4086 = vmatpush.msra.mxu0 %v14109_v22  ;;  %14128 = vst [vmem:[#allocation150_spill] sm:$0xff] %v10904_v2  ;;  %v10916_v12 = vld [vmem:[#allocation3 + $0x608] sm:$0xff]  ;;  %v10919_v22 = vld [vmem:[#allocation3 + $0x140] sm:$0xff] }
 0x69e   :  { %4126 = vmatpush.msra.mxu2 %v14110_v30  ;;  %4104 = vmatpush.msra.mxu1 %v14111_v5  ;;  %14129 = vst [vmem:[#allocation163_spill] sm:$0xff] %v10907_v6  ;;  %v10922_v30 = vld [vmem:[#allocation3 + $0x148] sm:$0xff]  ;;  %v10925_v5 = vld [vmem:[#allocation3 + $0x5c0] sm:$0xff] }
 0x69f   :  { %4144 = vmatpush.msra.mxu3 %v14112_v32  ;;  %4087 = vmatpush.msra.mxu0 %v14113_v37  ;;  %14130 = vst [vmem:[#allocation152_spill] sm:$0xff] %v10910_v10  ;;  %v10928_v32 = vld [vmem:[#allocation3 + $0x5c8] sm:$0xff]  ;;  %v10931_v37 = vld [vmem:[#allocation3 + $0x100] sm:$0xff] }
 0x6a0   :  { %4127 = vmatpush.msra.mxu2 %v10874_v49  ;;  %4105 = vmatpush.msra.mxu1 %v14115_v42  ;;  %14131 = vst [vmem:[#allocation165_spill] sm:$0xff] %v10913_v47  ;;  %v10934_v42 = vld [vmem:[#allocation3 + $0x108] sm:$0xff] }
 0x6a1   :  { %4145 = vmatpush.msra.mxu3 %v14116_v33  ;;  %4088 = vmatpush.msra.mxu0 %v10879_v41  ;;  %14132 = vst [vmem:[#allocation154_spill] sm:$0xff] %v10916_v12  ;;  %v10937_v33 = vld [vmem:[#allocation3 + $0x580] sm:$0xff] }
 0x6a2   :  { %4128 = vmatpush.msra.mxu2 %v10882_v52  ;;  %4106 = vmatpush.msra.mxu1 %v14119_v57  ;;  %14133 = vst [vmem:[#allocation167_spill] sm:$0xff] %v10919_v22  ;;  %v10940_v57 = vld [vmem:[#allocation3 + $0x588] sm:$0xff] }
 0x6a3   :  { %4146 = vmatpush.msra.mxu3 %v14120_v7  ;;  %4089 = vmatpush.msra.mxu0 %v10887_v27  ;;  %14134 = vst [vmem:[#allocation156_spill] sm:$0xff] %v10922_v30  ;;  %v10943_v7 = vld [vmem:[#allocation3 + $0xc0] sm:$0xff]  ;;  %v14228_v52 = vld [vmem:[#allocation35_spill] sm:$0xff] }
 0x6a4   :  { %4129 = vmatpush.msra.mxu2 %v10890_v51  ;;  %4107 = vmatpush.msra.mxu1 %v14123_v15  ;;  %14135 = vst [vmem:[#allocation169_spill] sm:$0xff] %v10925_v5  ;;  %v10946_v15 = vld [vmem:[#allocation3 + $0xc8] sm:$0xff] }
 0x6a5   :  { %4147 = vmatpush.msra.mxu3 %v14124_v35  ;;  %4090 = vmatpush.msra.mxu0 %v10895_v59  ;;  %14136 = vst [vmem:[#allocation158_spill] sm:$0xff] %v10928_v32  ;;  %v10949_v35 = vld [vmem:[#allocation3 + $0x540] sm:$0xff] }
 0x6a6   :  { %4130 = vmatpush.msra.mxu2 %v10898_v11  ;;  %4108 = vmatpush.msra.mxu1 %v10901_v29  ;;  %14137 = vst [vmem:[#allocation171_spill] sm:$0xff] %v10931_v37  ;;  %v14227_v59 = vld [vmem:[#allocation37_spill] sm:$0xff] }
 0x6a7   :  { %4148 = vmatpush.msra.mxu3 %v10904_v2  ;;  %4091 = vmatpush.msra.mxu0 %v10907_v6  ;;  %14138 = vst [vmem:[#allocation160_spill] sm:$0xff] %v10934_v42  ;;  %v14226_v2 = vld [vmem:[#allocation34_spill] sm:$0xff] }
 0x6a8   :  { %4131 = vmatpush.msra.mxu2 %v10910_v10  ;;  %4109 = vmatpush.msra.mxu1 %v10913_v47  ;;  %14139 = vst [vmem:[#allocation173_spill] sm:$0xff] %v10937_v33  ;;  %v14225_v47 = vld [vmem:[#allocation36_spill] sm:$0xff] }
 0x6a9   :  { %4149 = vmatpush.msra.mxu3 %v10916_v12  ;;  %4092 = vmatpush.msra.mxu0 %v10919_v22  ;;  %14140 = vst [vmem:[#allocation162_spill] sm:$0xff] %v10940_v57 }
 0x6aa   :  { %4132 = vmatpush.msra.mxu2 %v10922_v30  ;;  %4110 = vmatpush.msra.mxu1 %v10925_v5  ;;  %14141 = vst [vmem:[#allocation175_spill] sm:$0xff] %v10943_v7 }
 0x6ab   :  { %4150 = vmatpush.msra.mxu3 %v10928_v32  ;;  %4093 = vmatpush.msra.mxu0 %v10931_v37  ;;  %14142 = vst [vmem:[#allocation164_spill] sm:$0xff] %v10946_v15 }
 0x6ac   :  { %4133 = vmatpush.msra.mxu2 %v10934_v42  ;;  %4111 = vmatpush.msra.mxu1 %v10937_v33  ;;  %14143 = vst [vmem:[#allocation177_spill] sm:$0xff] %v10949_v35  ;;  %v10952_v42 = vld [vmem:[#allocation3 + $0x548] sm:$0xff]  ;;  %v10955_v33 = vld [vmem:[#allocation3 + $0x80] sm:$0xff] }
 0x6ad   :  { %4151 = vmatpush.msra.mxu3 %v10940_v57  ;;  %4094 = vmatpush.msra.mxu0 %v10943_v7  ;;  %14144 = vst [vmem:[#allocation166_spill] sm:$0xff] %v10952_v42  ;;  %v10958_v57 = vld [vmem:[#allocation3 + $0x88] sm:$0xff]  ;;  %v10961_v7 = vld [vmem:[#allocation3 + $0x500] sm:$0xff] }
 0x6ae   :  { %4134 = vmatpush.msra.mxu2 %v10946_v15  ;;  %4112 = vmatpush.msra.mxu1 %v10949_v35  ;;  %14145 = vst [vmem:[#allocation179_spill] sm:$0xff] %v10955_v33  ;;  %v10964_v15 = vld [vmem:[#allocation3 + $0x508] sm:$0xff]  ;;  %v10967_v35 = vld [vmem:[#allocation3 + $0x40] sm:$0xff] }
 0x6af   :  { %4152 = vmatpush.msra.mxu3 %v10952_v42  ;;  %4095 = vmatpush.msra.mxu0 %v10955_v33  ;;  %14146 = vst [vmem:[#allocation168_spill] sm:$0xff] %v10958_v57  ;;  %v10970_v42 = vld [vmem:[#allocation3 + $0x48] sm:$0xff]  ;;  %v10973_v33 = vld [vmem:[#allocation3 + $0x4c0] sm:$0xff] }
 0x6b0   :  { %4135 = vmatpush.msra.mxu2 %v10958_v57  ;;  %14147 = vst [vmem:[#allocation181_spill] sm:$0xff] %v10961_v7  ;;  %4113 = vmatpush.msra.mxu1 %v10961_v7  ;;  %v10976_v57 = vld [vmem:[#allocation3 + $0x4c8] sm:$0xff]  ;;  %v10979_v7 = vld [vmem:[#allocation3] sm:$0xff] }
 0x6b1   :  { %14148 = vst [vmem:[#allocation170_spill] sm:$0xff] %v10964_v15  ;;  %4153 = vmatpush.msra.mxu3 %v10964_v15  ;;  %4096 = vmatpush.msra.mxu0 %v10967_v35  ;;  %v10982_v15 = vld [vmem:[#allocation3 + $0x8] sm:$0xff] }
 0x6b2   :  { %14149 = vst [vmem:[#allocation183_spill] sm:$0xff] %v10967_v35  ;;  %4136 = vmatpush.msra.mxu2 %v10970_v42  ;;  %4114 = vmatpush.msra.mxu1 %v10973_v33  ;;  %v10985_v35 = vld [vmem:[#allocation3 + $0x3d0] sm:$0xff] }
 0x6b3   :  { %14150 = vst [vmem:[#allocation172_spill] sm:$0xff] %v10970_v42  ;;  %4154 = vmatpush.msra.mxu3 %v10976_v57  ;;  %4097 = vmatpush.msra.mxu0 %v10979_v7  ;;  %v10988_v42 = vld [vmem:[#allocation3 + $0x3d8] sm:$0xff] }
 0x6b4   :  { %14151 = vst [vmem:[#allocation185_spill] sm:$0xff] %v10973_v33  ;;  %4137 = vmatpush.msra.mxu2 %v10982_v15  ;;  %v10991_v33 = vld [vmem:[#allocation3 + $0x480] sm:$0xff] }
 0x6b5   :  { %14152 = vst [vmem:[#allocation174_spill] sm:$0xff] %v10976_v57  ;;  %4164 = vmatpush.msrb.mxu0 %v10985_v35  ;;  %4115 = vmatpush.msra.mxu1 %v10991_v33  ;;  %v10994_v57 = vld [vmem:[#allocation3 + $0x488] sm:$0xff] }
 0x6b6   :  { %14153 = vst [vmem:[#allocation187_spill] sm:$0xff] %v10979_v7  ;;  %4204 = vmatpush.msrb.mxu2 %v10988_v42  ;;  %4155 = vmatpush.msra.mxu3 %v10994_v57  ;;  %v10997_v7 = vld [vmem:[#allocation3 + $0x390] sm:$0xff] }
 0x6b7   :  { %14154 = vst [vmem:[#allocation176_spill] sm:$0xff] %v10982_v15  ;;  %4165 = vmatpush.msrb.mxu0 %v10997_v7  ;;  %v11000_v15 = vld [vmem:[#allocation3 + $0x398] sm:$0xff] }
 0x6b8   :  { %14155 = vst [vmem:[#allocation189_spill] sm:$0xff] %v10985_v35  ;;  %4205 = vmatpush.msrb.mxu2 %v11000_v15  ;;  %v11003_v35 = vld [vmem:[#allocation3 + $0x440] sm:$0xff] }
 0x6b9   :  { %14156 = vst [vmem:[#allocation178_spill] sm:$0xff] %v10988_v42  ;;  %4116 = vmatpush.msra.mxu1 %v11003_v35  ;;  %v11006_v42 = vld [vmem:[#allocation3 + $0x448] sm:$0xff] }
 0x6ba   :  { %14157 = vst [vmem:[#allocation191_spill] sm:$0xff] %v10991_v33  ;;  %4156 = vmatpush.msra.mxu3 %v11006_v42  ;;  %v11009_v33 = vld [vmem:[#allocation3 + $0x350] sm:$0xff] }
 0x6bb   :  { %14158 = vst [vmem:[#allocation180_spill] sm:$0xff] %v10994_v57  ;;  %4166 = vmatpush.msrb.mxu0 %v11009_v33  ;;  %v11012_v57 = vld [vmem:[#allocation3 + $0x358] sm:$0xff] }
 0x6bc   :  { %14159 = vst [vmem:[#allocation193_spill] sm:$0xff] %v10997_v7  ;;  %4206 = vmatpush.msrb.mxu2 %v11012_v57  ;;  %v11015_v7 = vld [vmem:[#allocation3 + $0x400] sm:$0xff] }
 0x6bd   :  { %14160 = vst [vmem:[#allocation182_spill] sm:$0xff] %v11000_v15  ;;  %4117 = vmatpush.msra.mxu1 %v11015_v7  ;;  %v11018_v15 = vld [vmem:[#allocation3 + $0x408] sm:$0xff] }
 0x6be   :  { %14161 = vst [vmem:[#allocation195_spill] sm:$0xff] %v11003_v35  ;;  %4157 = vmatpush.msra.mxu3 %v11018_v15  ;;  %v11021_v35 = vld [vmem:[#allocation3 + $0x310] sm:$0xff] }
 0x6bf   :  { %14162 = vst [vmem:[#allocation184_spill] sm:$0xff] %v11006_v42  ;;  %4167 = vmatpush.msrb.mxu0 %v11021_v35  ;;  %v11024_v42 = vld [vmem:[#allocation3 + $0x7d0] sm:$0xff] }
 0x6c0   :  { %14163 = vst [vmem:[#allocation186_spill] sm:$0xff] %v11009_v33  ;;  %4184 = vmatpush.msrb.mxu1 %v11024_v42  ;;  %v11027_v33 = vld [vmem:[#allocation3 + $0x318] sm:$0xff] }
 0x6c1   :  { %14164 = vst [vmem:[#allocation188_spill] sm:$0xff] %v11012_v57  ;;  %4207 = vmatpush.msrb.mxu2 %v11027_v33  ;;  %v11030_v57 = vld [vmem:[#allocation3 + $0x7d8] sm:$0xff] }
 0x6c2   :  { %14165 = vst [vmem:[#allocation190_spill] sm:$0xff] %v11015_v7  ;;  %4224 = vmatpush.msrb.mxu3 %v11030_v57  ;;  %v11033_v7 = vld [vmem:[#allocation3 + $0x2d0] sm:$0xff] }
 0x6c3   :  { %14166 = vst [vmem:[#allocation192_spill] sm:$0xff] %v11018_v15  ;;  %4168 = vmatpush.msrb.mxu0 %v11033_v7  ;;  %v11036_v15 = vld [vmem:[#allocation3 + $0x790] sm:$0xff] }
 0x6c4   :  { %14167 = vst [vmem:[#allocation194_spill] sm:$0xff] %v11021_v35  ;;  %4185 = vmatpush.msrb.mxu1 %v11036_v15  ;;  %v11039_v35 = vld [vmem:[#allocation3 + $0x2d8] sm:$0xff] }
 0x6c5   :  { %14168 = vst [vmem:[#allocation196_spill] sm:$0xff] %v11024_v42  ;;  %4208 = vmatpush.msrb.mxu2 %v11039_v35  ;;  %v11042_v42 = vld [vmem:[#allocation3 + $0x798] sm:$0xff] }
 0x6c6   :  { %14169 = vst [vmem:[#allocation201_spill] sm:$0xff] %v11027_v33  ;;  %4225 = vmatpush.msrb.mxu3 %v11042_v42  ;;  %v11045_v33 = vld [vmem:[#allocation3 + $0x290] sm:$0xff] }
 0x6c7   :  { %14170 = vst [vmem:[#allocation202_spill] sm:$0xff] %v11030_v57  ;;  %4169 = vmatpush.msrb.mxu0 %v11045_v33  ;;  %v11048_v57 = vld [vmem:[#allocation3 + $0x750] sm:$0xff] }
 0x6c8   :  { %14171 = vst [vmem:[#allocation197_spill] sm:$0xff] %v11033_v7  ;;  %4186 = vmatpush.msrb.mxu1 %v11048_v57  ;;  %v11051_v7 = vld [vmem:[#allocation3 + $0x298] sm:$0xff] }
 0x6c9   :  { %14172 = vst [vmem:[#allocation198_spill] sm:$0xff] %v11036_v15  ;;  %4209 = vmatpush.msrb.mxu2 %v11051_v7  ;;  %v11054_v15 = vld [vmem:[#allocation3 + $0x758] sm:$0xff] }
 0x6ca   :  { %14173 = vst [vmem:[#allocation205_spill] sm:$0xff] %v11039_v35  ;;  %4226 = vmatpush.msrb.mxu3 %v11054_v15  ;;  %v11057_v35 = vld [vmem:[#allocation3 + $0x250] sm:$0xff]  ;;  %v3634_v37 = vpop.f32.mrf.mxu0 }
 0x6cb   :  { %14174 = vst [vmem:[#allocation206_spill] sm:$0xff] %v11042_v42  ;;  %4170 = vmatpush.msrb.mxu0 %v11057_v35  ;;  %v11060_v42 = vld [vmem:[#allocation3 + $0x710] sm:$0xff] }
 0x6cc   :  { %14175 = vst [vmem:[#allocation199_spill] sm:$0xff] %v11045_v33  ;;  %4187 = vmatpush.msrb.mxu1 %v11060_v42  ;;  %v11063_v33 = vld [vmem:[#allocation3 + $0x258] sm:$0xff] }
 0x6cd   :  { %14176 = vst [vmem:[#allocation200_spill] sm:$0xff] %v11048_v57  ;;  %4210 = vmatpush.msrb.mxu2 %v11063_v33  ;;  %v11066_v57 = vld [vmem:[#allocation3 + $0x718] sm:$0xff] }
 0x6ce   :  { %14177 = vst [vmem:[#allocation209_spill] sm:$0xff] %v11051_v7  ;;  %4227 = vmatpush.msrb.mxu3 %v11066_v57  ;;  %v11069_v7 = vld [vmem:[#allocation3 + $0x210] sm:$0xff] }
 0x6cf   :  { %14178 = vst [vmem:[#allocation210_spill] sm:$0xff] %v11054_v15  ;;  %4171 = vmatpush.msrb.mxu0 %v11069_v7  ;;  %v11072_v15 = vld [vmem:[#allocation3 + $0x6d0] sm:$0xff] }
 0x6d0   :  { %14179 = vst [vmem:[#allocation24_spill] sm:$0xff] %v11057_v35  ;;  %4188 = vmatpush.msrb.mxu1 %v11072_v15  ;;  %v11075_v35 = vld [vmem:[#allocation3 + $0x218] sm:$0xff] }
 0x6d1   :  { %14180 = vst [vmem:[#allocation22_spill] sm:$0xff] %v11060_v42  ;;  %4211 = vmatpush.msrb.mxu2 %v11075_v35  ;;  %v11078_v42 = vld [vmem:[#allocation3 + $0x6d8] sm:$0xff] }
 0x6d2   :  { %14181 = vst [vmem:[#allocation25_spill] sm:$0xff] %v11063_v33  ;;  %4228 = vmatpush.msrb.mxu3 %v11078_v42  ;;  %v11081_v33 = vld [vmem:[#allocation3 + $0x1d0] sm:$0xff] }
 0x6d3   :  { %14182 = vst [vmem:[#allocation23_spill] sm:$0xff] %v11066_v57  ;;  %4172 = vmatpush.msrb.mxu0 %v11081_v33  ;;  %v11084_v57 = vld [vmem:[#allocation3 + $0x690] sm:$0xff]  ;;  %v3716_v30 = vpop.f32.mrf.mxu0 }
 0x6d4   :  { %14183 = vst [vmem:[#allocation54_spill] sm:$0xff] %v11069_v7  ;;  %4189 = vmatpush.msrb.mxu1 %v11084_v57  ;;  %v11087_v7 = vld [vmem:[#allocation3 + $0x1d8] sm:$0xff] }
 0x6d5   :  { %14184 = vst [vmem:[#allocation55_spill] sm:$0xff] %v11072_v15  ;;  %4212 = vmatpush.msrb.mxu2 %v11087_v7  ;;  %v11090_v15 = vld [vmem:[#allocation3 + $0x698] sm:$0xff] }
 0x6d6   :  { %14185 = vst [vmem:[#allocation56_spill] sm:$0xff] %v11075_v35  ;;  %4229 = vmatpush.msrb.mxu3 %v11090_v15  ;;  %v11093_v35 = vld [vmem:[#allocation3 + $0x190] sm:$0xff]  ;;  %v3694_v32 = vpop.f32.mrf.mxu3 }
 0x6d7   :  { %14186 = vst [vmem:[#allocation57_spill] sm:$0xff] %v11078_v42  ;;  %4173 = vmatpush.msrb.mxu0 %v11093_v35  ;;  %v11096_v42 = vld [vmem:[#allocation3 + $0x650] sm:$0xff] }
 0x6d8   :  { %14187 = vst [vmem:[#allocation203_spill] sm:$0xff] %v11081_v33  ;;  %4190 = vmatpush.msrb.mxu1 %v11096_v42  ;;  %v11099_v33 = vld [vmem:[#allocation3 + $0x198] sm:$0xff] }
 0x6d9   :  { %14188 = vst [vmem:[#allocation204_spill] sm:$0xff] %v11084_v57  ;;  %4213 = vmatpush.msrb.mxu2 %v11099_v33  ;;  %v11102_v57 = vld [vmem:[#allocation3 + $0x658] sm:$0xff] }
 0x6da   :  { %14189 = vst [vmem:[#allocation213_spill] sm:$0xff] %v11087_v7  ;;  %4230 = vmatpush.msrb.mxu3 %v11102_v57  ;;  %v11105_v7 = vld [vmem:[#allocation3 + $0x150] sm:$0xff] }
 0x6db   :  { %14190 = vst [vmem:[#allocation214_spill] sm:$0xff] %v11090_v15  ;;  %4174 = vmatpush.msrb.mxu0 %v11105_v7  ;;  %v11108_v15 = vld [vmem:[#allocation3 + $0x610] sm:$0xff] }
 0x6dc   :  { %14191 = vst [vmem:[#allocation207_spill] sm:$0xff] %v11093_v35  ;;  %4191 = vmatpush.msrb.mxu1 %v11108_v15  ;;  %v11111_v35 = vld [vmem:[#allocation3 + $0x158] sm:$0xff] }
 0x6dd   :  { %14192 = vst [vmem:[#allocation208_spill] sm:$0xff] %v11096_v42  ;;  %4214 = vmatpush.msrb.mxu2 %v11111_v35  ;;  %v11114_v42 = vld [vmem:[#allocation3 + $0x618] sm:$0xff] }
 0x6de   :  { %14193 = vst [vmem:[#allocation217_spill] sm:$0xff] %v11099_v33  ;;  %4231 = vmatpush.msrb.mxu3 %v11114_v42  ;;  %v11117_v33 = vld [vmem:[#allocation3 + $0x110] sm:$0xff] }
 0x6df   :  { %14194 = vst [vmem:[#allocation211_spill] sm:$0xff] %v11102_v57  ;;  %4175 = vmatpush.msrb.mxu0 %v11117_v33  ;;  %v11120_v57 = vld [vmem:[#allocation3 + $0x5d0] sm:$0xff] }
 0x6e0   :  { %14195 = vst [vmem:[#allocation212_spill] sm:$0xff] %v11105_v7  ;;  %4192 = vmatpush.msrb.mxu1 %v11120_v57  ;;  %v11123_v7 = vld [vmem:[#allocation3 + $0x118] sm:$0xff]  ;;  %v3776_v12 = vpop.f32.mrf.mxu3 }
 0x6e1   :  { %14196 = vst [vmem:[#allocation215_spill] sm:$0xff] %v11108_v15  ;;  %4215 = vmatpush.msrb.mxu2 %v11123_v7  ;;  %v11126_v15 = vld [vmem:[#allocation3 + $0x5d8] sm:$0xff] }
 0x6e2   :  { %14197 = vst [vmem:[#allocation216_spill] sm:$0xff] %v11111_v35  ;;  %4232 = vmatpush.msrb.mxu3 %v11126_v15  ;;  %v11129_v35 = vld [vmem:[#allocation3 + $0xd0] sm:$0xff] }
 0x6e3   :  { %14198 = vst [vmem:[#allocation20_spill] sm:$0xff] %v11114_v42  ;;  %4176 = vmatpush.msrb.mxu0 %v11129_v35  ;;  %v11132_v42 = vld [vmem:[#allocation3 + $0x590] sm:$0xff] }
 0x6e4   :  { %14199 = vst [vmem:[#allocation18_spill] sm:$0xff] %v11117_v33  ;;  %4193 = vmatpush.msrb.mxu1 %v11132_v42  ;;  %v11135_v33 = vld [vmem:[#allocation3 + $0xd8] sm:$0xff] }
 0x6e5   :  { %14200 = vst [vmem:[#allocation21_spill] sm:$0xff] %v11120_v57  ;;  %4216 = vmatpush.msrb.mxu2 %v11135_v33  ;;  %v11138_v57 = vld [vmem:[#allocation3 + $0x598] sm:$0xff] }
 0x6e6   :  { %14201 = vst [vmem:[#allocation19_spill] sm:$0xff] %v11123_v7  ;;  %4233 = vmatpush.msrb.mxu3 %v11138_v57  ;;  %v11141_v7 = vld [vmem:[#allocation3 + $0x90] sm:$0xff] }
 0x6e7   :  { %14202 = vst [vmem:[#allocation50_spill] sm:$0xff] %v11126_v15  ;;  %4177 = vmatpush.msrb.mxu0 %v11141_v7  ;;  %v11144_v15 = vld [vmem:[#allocation3 + $0x550] sm:$0xff] }
 0x6e8   :  { %14203 = vst [vmem:[#allocation51_spill] sm:$0xff] %v11129_v35  ;;  %4194 = vmatpush.msrb.mxu1 %v11144_v15  ;;  %v11147_v35 = vld [vmem:[#allocation3 + $0x98] sm:$0xff] }
 0x6e9   :  { %14204 = vst [vmem:[#allocation52_spill] sm:$0xff] %v11132_v42  ;;  %4217 = vmatpush.msrb.mxu2 %v11147_v35  ;;  %v11150_v42 = vld [vmem:[#allocation3 + $0x558] sm:$0xff] }
 0x6ea   :  { %14205 = vst [vmem:[#allocation53_spill] sm:$0xff] %v11135_v33  ;;  %4234 = vmatpush.msrb.mxu3 %v11150_v42  ;;  %v11153_v33 = vld [vmem:[#allocation3 + $0x50] sm:$0xff] }
 0x6eb   :  { %14206 = vst [vmem:[#allocation86_spill] sm:$0xff] %v11138_v57  ;;  %4178 = vmatpush.msrb.mxu0 %v11153_v33  ;;  %v11156_v57 = vld [vmem:[#allocation3 + $0x510] sm:$0xff] }
 0x6ec   :  { %14207 = vst [vmem:[#allocation88_spill] sm:$0xff] %v11141_v7  ;;  %4195 = vmatpush.msrb.mxu1 %v11156_v57  ;;  %v11159_v7 = vld [vmem:[#allocation3 + $0x58] sm:$0xff] }
 0x6ed   :  { %14208 = vst [vmem:[#allocation84_spill] sm:$0xff] %v11144_v15  ;;  %4218 = vmatpush.msrb.mxu2 %v11159_v7  ;;  %v11162_v15 = vld [vmem:[#allocation3 + $0x518] sm:$0xff]  ;;  %v3798_v49 = vpop.f32.mrf.mxu0 }
 0x6ee   :  { %14209 = vst [vmem:[#allocation85_spill] sm:$0xff] %v11147_v35  ;;  %4235 = vmatpush.msrb.mxu3 %v11162_v15  ;;  %v11165_v35 = vld [vmem:[#allocation3 + $0x10] sm:$0xff] }
 0x6ef   :  { %14210 = vst [vmem:[#allocation32_spill] sm:$0xff] %v11150_v42  ;;  %4179 = vmatpush.msrb.mxu0 %v11165_v35  ;;  %v11168_v42 = vld [vmem:[#allocation3 + $0x4d0] sm:$0xff] }
 0x6f0   :  { %14211 = vst [vmem:[#allocation30_spill] sm:$0xff] %v11153_v33  ;;  %4196 = vmatpush.msrb.mxu1 %v11168_v42  ;;  %v11171_v33 = vld [vmem:[#allocation3 + $0x18] sm:$0xff] }
 0x6f1   :  { %14212 = vst [vmem:[#allocation33_spill] sm:$0xff] %v11156_v57  ;;  %4219 = vmatpush.msrb.mxu2 %v11171_v33  ;;  %v11174_v57 = vld [vmem:[#allocation3 + $0x4d8] sm:$0xff] }
 0x6f2   :  { %14213 = vst [vmem:[#allocation31_spill] sm:$0xff] %v11159_v7  ;;  %4236 = vmatpush.msrb.mxu3 %v11174_v57  ;;  %v11177_v7 = vld [vmem:[#allocation3 + $0x490] sm:$0xff] }
 0x6f3   :  { %14214 = vst [vmem:[#allocation62_spill] sm:$0xff] %v11162_v15  ;;  %4197 = vmatpush.msrb.mxu1 %v11177_v7  ;;  %v11180_v15 = vld [vmem:[#allocation3 + $0x498] sm:$0xff] }
 0x6f4   :  { %14215 = vst [vmem:[#allocation63_spill] sm:$0xff] %v11165_v35  ;;  %4237 = vmatpush.msrb.mxu3 %v11180_v15  ;;  %v11183_v35 = vld [vmem:[#allocation3 + $0x450] sm:$0xff] }
 0x6f5   :  { %14216 = vst [vmem:[#allocation64_spill] sm:$0xff] %v11168_v42  ;;  %4198 = vmatpush.msrb.mxu1 %v11183_v35  ;;  %v11186_v42 = vld [vmem:[#allocation3 + $0x458] sm:$0xff] }
 0x6f6   :  { %14217 = vst [vmem:[#allocation65_spill] sm:$0xff] %v11171_v33  ;;  %4238 = vmatpush.msrb.mxu3 %v11186_v42  ;;  %v11189_v33 = vld [vmem:[#allocation3 + $0x410] sm:$0xff] }
 0x6f7   :  { %14218 = vst [vmem:[#allocation90_spill] sm:$0xff] %v11174_v57  ;;  %4199 = vmatpush.msrb.mxu1 %v11189_v33  ;;  %v11192_v57 = vld [vmem:[#allocation3 + $0x418] sm:$0xff] }
 0x6f8   :  { %14219 = vst [vmem:[#allocation92_spill] sm:$0xff] %v11177_v7  ;;  %4239 = vmatpush.msrb.mxu3 %v11192_v57  ;;  %v3654_v7 = vpop.f32.mrf.mxu1 }
 0x6f9   :  { %14220 = vst [vmem:[#allocation87_spill] sm:$0xff] %v11180_v15  ;;  %v3674_v15 = vpop.f32.mrf.mxu2 }
 0x6fa   :  { %14221 = vst [vmem:[#allocation89_spill] sm:$0xff] %v11183_v35  ;;  %v3655_v35 = vadd.f32 %v3654_v7, %v3634_v37  ;;  %v3695_v11 = vadd.f32 %v3694_v32, %v3674_v15 }
 0x6fb   :  { %14222 = vst [vmem:[#allocation94_spill] sm:$0xff] %v11186_v42 }
 0x6fc   :  { %14223 = vst [vmem:[#allocation96_spill] sm:$0xff] %v11189_v33  ;;  %v3697_v29 = vadd.f32 %v3655_v35, %v14226_v2  ;;  %v3698_v41 = vadd.f32 %v3695_v11, %v14228_v52  ;;  %v14230_v52 = vld [vmem:[#allocation67_spill] sm:$0xff] }
 0x6fd   :  { %14224 = vst [vmem:[#allocation91_spill] sm:$0xff] %v11192_v57 }
 0x6fe   :  { %v5317_v57 = vmul.f32 -1.442695, %v3697_v29 }
 0x700   :  { %v3736_v5 = vpop.f32.mrf.mxu1 }
 0x701   :  { %v3737_v22 = vadd.f32 %v3736_v5, %v3716_v30  ;;  %v3756_v42 = vpop.f32.mrf.mxu2  ;;  %v5318_v5 = vmul.f32 -1.442695, %v3698_v41 }
 0x702   :  { %v3777_v6 = vadd.f32 %v3776_v12, %v3756_v42 }
 0x703   :  { %v3779_v10 = vadd.f32 %v3737_v22, %v14225_v47  ;;  %v14229_v47 = vld [vmem:[#allocation66_spill] sm:$0xff]  ;;  %v3858_v22 = vpop.f32.mrf.mxu3 }
 0x704   :  { %v3780_v51 = vadd.f32 %v3777_v6, %v14227_v59 }
 0x705   :  { %v5319_v33 = vmul.f32 -1.442695, %v3779_v10 }
 0x706   :  { %v5320_v4 = vmul.f32 -1.442695, %v3780_v51 }
 0x707   :  { %5509 = vpow2.f32 %v5319_v33 }
 0x708   :  { %v3818_v27 = vpop.f32.mrf.mxu1  ;;  %5511 = vpow2.f32 %v5317_v57 }
 0x709   :  { %v3819_v30 = vadd.f32 %v3818_v27, %v3798_v49  ;;  %5513 = vpow2.f32 %v5320_v4  ;;  %v3838_v2 = vpop.f32.mrf.mxu2 }
 0x70a   :  { %v3859_v10 = vadd.f32 %v3858_v22, %v3838_v2  ;;  %5515 = vpow2.f32 %v5318_v5 }
 0x70b   :  { %v3861_v12 = vadd.f32 %v3819_v30, %v14229_v47 }
 0x70c   :  { %v3862_v11 = vadd.f32 %v3859_v10, %v14230_v52 }
 0x70d   :  { %v5510_v37 = vpop.eup %5509  ;;  %v5321_v29 = vmul.f32 -1.442695, %v3861_v12 }
 0x70e   :  { %v5512_v32 = vpop.eup %5511  ;;  %v11200_v59 = vadd.f32 1.0, %v5510_v37  ;;  %v5322_v4 = vmul.f32 -1.442695, %v3862_v11 }
 0x70f   :  { %v5514_v6 = vpop.eup %5513  ;;  %v3951_v42 = vadd.f32 1.0, %v5512_v32  ;;  %v3880_v52 = vpop.f32.mrf.mxu0 }
 0x710   :  { %5517 = vrcp.f32 %v11200_v59  ;;  %v5516_v49 = vpop.eup %5515  ;;  %v11204_v41 = vadd.f32 1.0, %v5514_v6  ;;  %v4002_v58 = vand.u32 2147483648, %v11200_v59  ;;  %vm3996_vm12 = vweird.f32 %v11200_v59 }
 0x711   :  { %5519 = vpow2.f32 %v5321_v29  ;;  %v11206_v27 = vadd.f32 1.0, %v5516_v49  ;;  %vm3958_vm14 = vweird.f32 %v3951_v42 }
 0x712   :  { %5521 = vrcp.f32 %v3951_v42  ;;  %v4003_v62 = vor.u32 1.1754944e-38, %v4002_v58  ;;  %v4017_v58 = vand.u32 2147483648, %v11204_v41  ;;  %vm4011_vm4 = vweird.f32 %v11204_v41 }
 0x713   :  { %5523 = vrcp.f32 %v11204_v41  ;;  %vm3973_vm1 = vweird.f32 %v11206_v27 }
 0x714   :  { %5525 = vpow2.f32 %v5322_v4 }
 0x715   :  { %5527 = vrcp.f32 %v11206_v27  ;;  %v3900_v11 = vpop.f32.mrf.mxu1 }
 0x716   :  { %v5518_v51 = vpop.eup %5517  ;;  %v3901_v4 = vadd.f32 %v3900_v11, %v3880_v52 }
 0x717   :  { %v5520_v33 = vpop.eup %5519  ;;  %v3992_v7 = vmul.f32 %v5518_v51, %v11200_v59  ;;  %vm3997_vm10 = vweird.f32 %v5518_v51 }
 0x718   :  { %v11209_v57 = vpop.eup %5521  ;;  %v11213_v15 = vadd.f32 1.0, %v5520_v33  ;;  %v3962_v33 = vand.u32 2147483647, %v3951_v42  ;;  %v3943_v40 = vadd.f32 %v3901_v4, %v14231_v20  ;;  %vm11240_vm13 = vmor %vm3996_vm12, %vm3997_vm10  ;;  %v3920_v4 = vpop.f32.mrf.mxu2 }
 0x719   :  { %v11215_v35 = vpop.eup %5523  ;;  %v3954_v30 = vmul.f32 %v11209_v57, %v3951_v42  ;;  %v3993_v37 = vsub.f32 1.0, %v3992_v7  ;;  %vm3959_vm11 = vweird.f32 %v11209_v57 }
 0x71a   :  { %v5526_v5 = vpop.eup %5525  ;;  %5529 = vrcp.f32 %v11213_v15  ;;  %v4007_v22 = vmul.f32 %v11215_v35, %v11204_v41  ;;  %vm11246_vm15 = vcmp.eq.f32.partialorder %v3962_v33, 8.507059e+37  ;;  %vm11255_vm0 = vmor %vm3958_vm14, %vm3959_vm11  ;;  %vm4012_vm2 = vweird.f32 %v11215_v35 }
 0x71b   :  { %v11219_v47 = vpop.eup %5527  ;;  %v3955_v12 = vsub.f32 1.0, %v3954_v30  ;;  %v11223_v2 = vadd.f32 1.0, %v5526_v5  ;;  %v3994_v32 = vmul.f32 %v5518_v51, %v3993_v37  ;;  %v3964_v30 = vand.u32 2147483648, %v3951_v42  ;;  %vm11273_vm6 = vmor %vm4011_vm4, %vm4012_vm2 }
 0x71c   :  { %v3969_v10 = vmul.f32 %v11219_v47, %v11206_v27  ;;  %v4008_v6 = vsub.f32 1.0, %v4007_v22  ;;  %vm3974_vm5 = vweird.f32 %v11219_v47  ;;  %vm4034_vm11 = vweird.f32 %v11213_v15 }
 0x71d   :  { %5531 = vrcp.f32 %v11223_v2  ;;  %v3956_v49 = vmul.f32 %v11209_v57, %v3955_v12  ;;  %v3995_v5 = vadd.f32 %v5518_v51, %v3994_v32  ;;  %v3965_v11 = vor.u32 1.1754944e-38, %v3964_v30  ;;  %vm11288_vm7 = vmor %vm3973_vm1, %vm3974_vm5 }
 0x71e   :  { %v3970_v7 = vsub.f32 1.0, %v3969_v10  ;;  %v4009_v22 = vmul.f32 %v11215_v35, %v4008_v6  ;;  %v4000_v10 = vand.u32 2147483647, %v11200_v59  ;;  %5533 = vtanh.f32 %v3943_v40 }
 0x71f   :  { %v3957_v12 = vadd.f32 %v11209_v57, %v3956_v49  ;;  %v3999_v6 = vsel %vm11240_vm13, %v5518_v51, %v3995_v5  ;;  %v3940_v49 = vpop.f32.mrf.mxu3  ;;  %v14238_v5 = vld [vmem:[#allocation69_spill] sm:$0xff]  ;;  %v4018_v40 = vor.u32 1.1754944e-38, %v4017_v58  ;;  %v4038_v58 = vand.u32 2147483647, %v11213_v15 }
 0x720   :  { %v11227_v29 = vpop.eup %5529  ;;  %v3971_v59 = vmul.f32 %v11219_v47, %v3970_v7  ;;  %v3941_v42 = vadd.f32 %v3940_v49, %v3920_v4  ;;  %vm4001_vm3 = vcmp.eq.f32.partialorder %v4000_v10, 8.507059e+37  ;;  %v4010_v33 = vadd.f32 %v11215_v35, %v4009_v22 }
 0x721   :  { %v4030_v37 = vmul.f32 %v11227_v29, %v11213_v15  ;;  %v3961_v51 = vsel %vm11255_vm0, %v11209_v57, %v3957_v12  ;;  %v4004_v30 = vsel %vm4001_vm3, %v4003_v62, %v3999_v6  ;;  %v4015_v4 = vand.u32 2147483647, %v11204_v41 }
 0x722   :  { %v3972_v52 = vadd.f32 %v11219_v47, %v3971_v59  ;;  %v3966_v62 = vsel %vm11246_vm15, %v3965_v11, %v3961_v51  ;;  %v3979_v10 = vand.u32 2147483648, %v11206_v27  ;;  %v4061_v6 = vmul.f32 %v4004_v30, %v10570_v50 }
 0x723   :  { %v11244_v32 = vpop.eup %5531  ;;  %v4031_v54 = vsub.f32 1.0, %v4030_v37  ;;  %v3944_v37 = vadd.f32 %v3941_v42, %v14238_v5  ;;  %v3977_v59 = vand.u32 2147483647, %v11206_v27  ;;  %v4014_v41 = vsel %vm11273_vm6, %v11215_v35, %v4010_v33 }
 0x724   :  { %v4045_v7 = vmul.f32 %v11244_v32, %v11223_v2  ;;  %v5534_v57 = vpop.eup %5533  ;;  %v3976_v50 = vsel %vm11288_vm7, %v11219_v47, %v3972_v52  ;;  %vm4016_vm8 = vcmp.eq.f32.partialorder %v4015_v4, 8.507059e+37  ;;  %vm4035_vm9 = vweird.f32 %v11227_v29 }
 0x725   :  { %v4032_v22 = vmul.f32 %v11227_v29, %v4031_v54  ;;  %5535 = vtanh.f32 %v3944_v37  ;;  %v4063_v49 = vmul.f32 %v5534_v57, %v3966_v62  ;;  %v3980_v35 = vor.u32 1.1754944e-38, %v3979_v10  ;;  %vm4036_vm12 = vmor %vm4034_vm11, %vm4035_vm9  ;;  %v14267_v54 = vld [vmem:[#allocation147_spill] sm:$0xff] }
 0x726   :  { %v4046_v42 = vsub.f32 1.0, %v4045_v7  ;;  %v4019_v51 = vsel %vm4016_vm8, %v4018_v40, %v4014_v41  ;;  %v4040_v33 = vand.u32 2147483648, %v11213_v15  ;;  %vm3978_vm10 = vcmp.eq.f32.partialorder %v3977_v59, 8.507059e+37  ;;  %v14264_v59 = vld [vmem:[#allocation143_spill] sm:$0xff]  ;;  %v14265_v41 = vld [vmem:[#allocation144_spill] sm:$0xff] }
 0x727   :  { %v11292_v20 = vadd.f32 %v4063_v49, %v4061_v6  ;;  %v4033_v11 = vadd.f32 %v11227_v29, %v4032_v22  ;;  %v3981_v47 = vsel %vm3978_vm10, %v3980_v35, %v3976_v50  ;;  %v4062_v30 = vmul.f32 %v4019_v51, %v10584_v19  ;;  %v11417_v40 = vld [vmem:[#allocation3 + $0x370] sm:$0xff]  ;;  %v11431_v35 = vld [vmem:[#allocation3 + $0x338] sm:$0xff] }
 0x728   :  { %v4047_v7 = vmul.f32 %v11244_v32, %v4046_v42  ;;  %v4041_v52 = vor.u32 1.1754944e-38, %v4040_v33  ;;  %vm4039_vm13 = vcmp.eq.f32.partialorder %v4038_v58, 8.507059e+37  ;;  %vm4050_vm14 = vweird.f32 %v11244_v32  ;;  %v11420_v42 = vld [vmem:[#allocation3 + $0x378] sm:$0xff]  ;;  %v11427_v50 = vld [vmem:[#allocation3 + $0x330] sm:$0xff] }
 0x729   :  { %5537 = vtanh.f32 %v11292_v20  ;;  %v4037_v37 = vsel %vm4036_vm12, %v11227_v29, %v4033_v11  ;;  %v4055_v15 = vand.u32 2147483648, %v11223_v2  ;;  %vm4049_vm15 = vweird.f32 %v11223_v2  ;;  %v14268_v11 = vld [vmem:[#allocation149_spill] sm:$0xff]  ;;  %v11437_v33 = vld [vmem:[#allocation3 + $0x2f0] sm:$0xff] }
 0x72a   :  { %v4048_v57 = vadd.f32 %v11244_v32, %v4047_v7  ;;  %v4042_v22 = vsel %vm4039_vm13, %v4041_v52, %v4037_v37  ;;  %v4053_v19 = vand.u32 2147483647, %v11223_v2  ;;  %vm4051_vm0 = vmor %vm4049_vm15, %vm4050_vm14  ;;  %v11434_v51 = vld [vmem:[#allocation3 + $0x7f8] sm:$0xff]  ;;  %v11461_v52 = vld [vmem:[#allocation3 + $0x270] sm:$0xff] }
 0x72b   :  { %v5536_v27 = vpop.eup %5535  ;;  %v4056_v10 = vor.u32 1.1754944e-38, %v4055_v15  ;;  %v11443_v58 = vld [vmem:[#allocation3 + $0x2f8] sm:$0xff]  ;;  %v11473_v15 = vld [vmem:[#allocation3 + $0x230] sm:$0xff] }
 0x72c   :  { %v4064_v5 = vmul.f32 %v5536_v27, %v3981_v47  ;;  %v4052_v29 = vsel %vm4051_vm0, %v11244_v32, %v4048_v57  ;;  %vm4054_vm1 = vcmp.eq.f32.partialorder %v4053_v19, 8.507059e+37  ;;  %v11387_v32 = vld [vmem:[#allocation3 + $0x68] sm:$0xff]  ;;  %v11440_v27 = vld [vmem:[#allocation3 + $0x7b0] sm:$0xff]  ;;  %v11446_v7 = vld [vmem:[#allocation3 + $0x7b8] sm:$0xff] }
 0x72d   :  { %v4057_v49 = vsel %vm4054_vm1, %v4056_v10, %v4052_v29  ;;  %v11449_v47 = vld [vmem:[#allocation3 + $0x2b0] sm:$0xff]  ;;  %v11458_v37 = vld [vmem:[#allocation3 + $0x778] sm:$0xff] }
 0x72e   :  { %v11306_v4 = vadd.f32 %v4064_v5, %v4062_v30  ;;  %v11452_v30 = vld [vmem:[#allocation3 + $0x770] sm:$0xff]  ;;  %v11455_v5 = vld [vmem:[#allocation3 + $0x2b8] sm:$0xff] }
 0x72f   :  { %v5538_v12 = vpop.eup %5537  ;;  %v11464_v57 = vld [vmem:[#allocation3 + $0x730] sm:$0xff]  ;;  %v11479_v29 = vld [vmem:[#allocation3 + $0x238] sm:$0xff] }
 0x730   :  { %5539 = vtanh.f32 %v11306_v4  ;;  %v11314_v62 = vmul.f32 %v5538_v12, %v4042_v22  ;;  %v11467_v12 = vld [vmem:[#allocation3 + $0x278] sm:$0xff]  ;;  %v11476_v19 = vld [vmem:[#allocation3 + $0x6f0] sm:$0xff] }
 0x731   :  { %v11470_v22 = vld [vmem:[#allocation3 + $0x738] sm:$0xff] }
 0x732   :  { %4098 = vmatmul.f32.vlgmr.msra.gmra.mxu0 %v11314_v62  ;;  %4138 = vmatmul.f32.vlgmr.msra.gmra.mxu2 %v11314_v62  ;;  %v11482_v10 = vld [vmem:[#allocation3 + $0x6f8] sm:$0xff] }
 0x733   :  { %4246 = vmatpush.msra.mxu0 %v10597_v21  ;;  %4286 = vmatpush.msra.mxu2 %v10600_v28  ;;  %v14243_v21 = vld [vmem:[#allocation127_spill] sm:$0xff]  ;;  %v14244_v28 = vld [vmem:[#allocation129_spill] sm:$0xff] }
 0x735   :  { %4247 = vmatpush.msra.mxu0 %v10603_v13  ;;  %4287 = vmatpush.msra.mxu2 %v10606_v36  ;;  %v14245_v13 = vld [vmem:[#allocation134_spill] sm:$0xff]  ;;  %v14246_v36 = vld [vmem:[#allocation136_spill] sm:$0xff] }
 0x736   :  { %v5540_v6 = vpop.eup %5539 }
 0x737   :  { %v11323_v2 = vmul.f32 %v5540_v6, %v4057_v49  ;;  %4248 = vmatpush.msra.mxu0 %v10611_v45  ;;  %4288 = vmatpush.msra.mxu2 %v10614_v56  ;;  %v14247_v45 = vld [vmem:[#allocation131_spill] sm:$0xff]  ;;  %v14248_v56 = vld [vmem:[#allocation133_spill] sm:$0xff] }
 0x738   :  { %v11485_v6 = vld [vmem:[#allocation3 + $0x1f0] sm:$0xff] }
 0x739   :  { %4118 = vmatmul.f32.vlgmr.msra.gmra.mxu1 %v11323_v2  ;;  %4158 = vmatmul.f32.vlgmr.msra.gmra.mxu3 %v11323_v2  ;;  %14269 = vst [vmem:[#allocation93_spill] sm:$0xff] %v11485_v6  ;;  %v11488_v49 = vld [vmem:[#allocation3 + $0x6b0] sm:$0xff] }
 0x73a   :  { %4249 = vmatpush.msra.mxu0 %v10619_v0  ;;  %4266 = vmatpush.msra.mxu1 %v10622_v31  ;;  %v14249_v0 = vld [vmem:[#allocation138_spill] sm:$0xff]  ;;  %v14250_v31 = vld [vmem:[#allocation140_spill] sm:$0xff]  ;;  %14270 = vst [vmem:[#allocation98_spill] sm:$0xff] %v11488_v49 }
 0x73b   :  { %4289 = vmatpush.msra.mxu2 %v10625_v16  ;;  %4306 = vmatpush.msra.mxu3 %v10628_v48  ;;  %v14251_v16 = vld [vmem:[#allocation135_spill] sm:$0xff]  ;;  %v14252_v48 = vld [vmem:[#allocation137_spill] sm:$0xff] }
 0x73c   :  { %4180 = vmatmul.f32.vlgmr.msrb.gmra.mxu0 %v11314_v62  ;;  %4220 = vmatmul.f32.vlgmr.msrb.gmra.mxu2 %v11314_v62 }
 0x73d   :  { %4250 = vmatpush.msra.mxu0 %v10633_v23  ;;  %4267 = vmatpush.msra.mxu1 %v10636_v55  ;;  %v14253_v23 = vld [vmem:[#allocation139_spill] sm:$0xff]  ;;  %v14254_v55 = vld [vmem:[#allocation141_spill] sm:$0xff] }
 0x73e   :  { %4290 = vmatpush.msra.mxu2 %v10639_v26  ;;  %4307 = vmatpush.msra.mxu3 %v10642_v63  ;;  %v14255_v26 = vld [vmem:[#allocation16_spill] sm:$0xff]  ;;  %v14256_v63 = vld [vmem:[#allocation14_spill] sm:$0xff] }
 0x73f   :  { %4251 = vmatpush.msra.mxu0 %v10645_v14  ;;  %4268 = vmatpush.msra.mxu1 %v10648_v3  ;;  %v14257_v14 = vld [vmem:[#allocation17_spill] sm:$0xff]  ;;  %v14258_v3 = vld [vmem:[#allocation15_spill] sm:$0xff] }
 0x740   :  { %4291 = vmatpush.msra.mxu2 %v10651_v38  ;;  %4308 = vmatpush.msra.mxu3 %v10654_v60  ;;  %v14259_v38 = vld [vmem:[#allocation47_spill] sm:$0xff]  ;;  %v14260_v60 = vld [vmem:[#allocation46_spill] sm:$0xff] }
 0x741   :  { %4252 = vmatpush.msra.mxu0 %v10657_v53  ;;  %4269 = vmatpush.msra.mxu1 %v10660_v43  ;;  %v14261_v53 = vld [vmem:[#allocation48_spill] sm:$0xff]  ;;  %v14262_v43 = vld [vmem:[#allocation49_spill] sm:$0xff] }
 0x742   :  { %4292 = vmatpush.msra.mxu2 %v10663_v18  ;;  %4309 = vmatpush.msra.mxu3 %v10666_v46  ;;  %v11371_v18 = vld [vmem:[#allocation3 + $0xe8] sm:$0xff]  ;;  %v11375_v46 = vld [vmem:[#allocation3 + $0xa0] sm:$0xff] }
 0x743   :  { %4200 = vmatmul.f32.vlgmr.msrb.gmra.mxu1 %v11323_v2  ;;  %4240 = vmatmul.f32.vlgmr.msrb.gmra.mxu3 %v11323_v2 }
 0x744   :  { %4253 = vmatpush.msra.mxu0 %v14243_v21  ;;  %4270 = vmatpush.msra.mxu1 %v14244_v28  ;;  %v11491_v21 = vld [vmem:[#allocation3 + $0x1f8] sm:$0xff] }
 0x745   :  { %4293 = vmatpush.msra.mxu2 %v14245_v13  ;;  %4310 = vmatpush.msra.mxu3 %v14246_v36  ;;  %14271 = vst [vmem:[#allocation100_spill] sm:$0xff] %v11491_v21  ;;  %v11494_v28 = vld [vmem:[#allocation3 + $0x6b8] sm:$0xff]  ;;  %v11497_v13 = vld [vmem:[#allocation3 + $0x1b0] sm:$0xff] }
 0x746   :  { %4254 = vmatpush.msra.mxu0 %v14247_v45  ;;  %4271 = vmatpush.msra.mxu1 %v14248_v56  ;;  %14272 = vst [vmem:[#allocation95_spill] sm:$0xff] %v11494_v28  ;;  %v11500_v36 = vld [vmem:[#allocation3 + $0x670] sm:$0xff]  ;;  %v11503_v45 = vld [vmem:[#allocation3 + $0x1b8] sm:$0xff] }
 0x747   :  { %4294 = vmatpush.msra.mxu2 %v14249_v0  ;;  %4311 = vmatpush.msra.mxu3 %v14250_v31  ;;  %14273 = vst [vmem:[#allocation97_spill] sm:$0xff] %v11497_v13  ;;  %v11506_v56 = vld [vmem:[#allocation3 + $0x678] sm:$0xff]  ;;  %v11509_v0 = vld [vmem:[#allocation3 + $0x170] sm:$0xff] }
 0x748   :  { %4255 = vmatpush.msra.mxu0 %v14251_v16  ;;  %4272 = vmatpush.msra.mxu1 %v14252_v48  ;;  %14274 = vst [vmem:[#allocation102_spill] sm:$0xff] %v11500_v36  ;;  %v11512_v31 = vld [vmem:[#allocation3 + $0x630] sm:$0xff]  ;;  %v11515_v16 = vld [vmem:[#allocation3 + $0x178] sm:$0xff] }
 0x749   :  { %4295 = vmatpush.msra.mxu2 %v14253_v23  ;;  %4312 = vmatpush.msra.mxu3 %v14254_v55  ;;  %14275 = vst [vmem:[#allocation104_spill] sm:$0xff] %v11503_v45  ;;  %v11518_v48 = vld [vmem:[#allocation3 + $0x638] sm:$0xff]  ;;  %v11521_v23 = vld [vmem:[#allocation3 + $0x130] sm:$0xff] }
 0x74a   :  { %4256 = vmatpush.msra.mxu0 %v14255_v26  ;;  %4273 = vmatpush.msra.mxu1 %v14256_v63  ;;  %14276 = vst [vmem:[#allocation99_spill] sm:$0xff] %v11506_v56  ;;  %v11524_v55 = vld [vmem:[#allocation3 + $0x5f0] sm:$0xff]  ;;  %v11527_v26 = vld [vmem:[#allocation3 + $0x138] sm:$0xff] }
 0x74b   :  { %4296 = vmatpush.msra.mxu2 %v14257_v14  ;;  %4313 = vmatpush.msra.mxu3 %v14258_v3  ;;  %14277 = vst [vmem:[#allocation101_spill] sm:$0xff] %v11509_v0  ;;  %v11530_v63 = vld [vmem:[#allocation3 + $0x5f8] sm:$0xff]  ;;  %v11533_v14 = vld [vmem:[#allocation3 + $0xf0] sm:$0xff] }
 0x74c   :  { %4257 = vmatpush.msra.mxu0 %v14259_v38  ;;  %4274 = vmatpush.msra.mxu1 %v10722_v61  ;;  %v11379_v61 = vld [vmem:[#allocation3 + $0xa8] sm:$0xff]  ;;  %14278 = vst [vmem:[#allocation106_spill] sm:$0xff] %v11512_v31  ;;  %v11536_v3 = vld [vmem:[#allocation3 + $0x5b0] sm:$0xff]  ;;  %v11539_v38 = vld [vmem:[#allocation3 + $0xf8] sm:$0xff] }
 0x74d   :  { %4297 = vmatpush.msra.mxu2 %v14260_v60  ;;  %4314 = vmatpush.msra.mxu3 %v14261_v53  ;;  %14279 = vst [vmem:[#allocation108_spill] sm:$0xff] %v11515_v16  ;;  %v11542_v60 = vld [vmem:[#allocation3 + $0x5b8] sm:$0xff]  ;;  %v11545_v53 = vld [vmem:[#allocation3 + $0xb0] sm:$0xff] }
 0x74e   :  { %4258 = vmatpush.msra.mxu0 %v10731_v9  ;;  %4275 = vmatpush.msra.mxu1 %v14262_v43  ;;  %v11383_v9 = vld [vmem:[#allocation3 + $0x60] sm:$0xff]  ;;  %14280 = vst [vmem:[#allocation103_spill] sm:$0xff] %v11518_v48  ;;  %v11548_v43 = vld [vmem:[#allocation3 + $0x570] sm:$0xff] }
 0x74f   :  { %4298 = vmatpush.msra.mxu2 %v11371_v18  ;;  %4315 = vmatpush.msra.mxu3 %v10738_v8  ;;  %v11391_v8 = vld [vmem:[#allocation3 + $0x20] sm:$0xff]  ;;  %14281 = vst [vmem:[#allocation105_spill] sm:$0xff] %v11521_v23 }
 0x750   :  { %4259 = vmatpush.msra.mxu0 %v11375_v46  ;;  %4276 = vmatpush.msra.mxu1 %v10742_v44  ;;  %v11395_v44 = vld [vmem:[#allocation3 + $0x28] sm:$0xff]  ;;  %14282 = vst [vmem:[#allocation110_spill] sm:$0xff] %v11524_v55 }
 0x751   :  { %4299 = vmatpush.msra.mxu2 %v11379_v61  ;;  %4316 = vmatpush.msra.mxu3 %v10746_v1  ;;  %v11401_v1 = vld [vmem:[#allocation3 + $0x3f0] sm:$0xff]  ;;  %14283 = vst [vmem:[#allocation112_spill] sm:$0xff] %v11527_v26 }
 0x752   :  { %4260 = vmatpush.msra.mxu0 %v11383_v9  ;;  %4277 = vmatpush.msra.mxu1 %v10750_v39  ;;  %v11404_v39 = vld [vmem:[#allocation3 + $0x3f8] sm:$0xff]  ;;  %14284 = vst [vmem:[#allocation218_spill] sm:$0xff] %v11530_v63 }
 0x753   :  { %4300 = vmatpush.msra.mxu2 %v11387_v32  ;;  %4317 = vmatpush.msra.mxu3 %v10754_v24  ;;  %v14263_v24 = vld [vmem:[#allocation142_spill] sm:$0xff]  ;;  %14285 = vst [vmem:[#allocation219_spill] sm:$0xff] %v11533_v14 }
 0x754   :  { %4261 = vmatpush.msra.mxu0 %v11391_v8  ;;  %4278 = vmatpush.msra.mxu1 %v10758_v25  ;;  %v11409_v25 = vld [vmem:[#allocation3 + $0x3b0] sm:$0xff]  ;;  %14286 = vst [vmem:[#allocation220_spill] sm:$0xff] %v11536_v3 }
 0x755   :  { %4301 = vmatpush.msra.mxu2 %v11395_v44  ;;  %4318 = vmatpush.msra.mxu3 %v10762_v34  ;;  %v11412_v34 = vld [vmem:[#allocation3 + $0x3b8] sm:$0xff]  ;;  %14287 = vst [vmem:[#allocation221_spill] sm:$0xff] %v11539_v38 }
 0x756   :  { %4262 = vmatmul.f32.vlgmr.msra.gmra.mxu0 %v11314_v62  ;;  %4302 = vmatmul.f32.vlgmr.msra.gmra.mxu2 %v11314_v62  ;;  %14288 = vst [vmem:[#allocation222_spill] sm:$0xff] %v11542_v60 }
 0x757   :  { %4328 = vmatpush.msrb.mxu0 %v11401_v1  ;;  %4368 = vmatpush.msrb.mxu2 %v11404_v39  ;;  %14289 = vst [vmem:[#allocation223_spill] sm:$0xff] %v11545_v53 }
 0x758   :  { %4279 = vmatpush.msra.mxu1 %v10769_v17  ;;  %4319 = vmatpush.msra.mxu3 %v14263_v24  ;;  %v14266_v17 = vld [vmem:[#allocation145_spill] sm:$0xff]  ;;  %14290 = vst [vmem:[#allocation224_spill] sm:$0xff] %v11548_v43 }
 0x759   :  { %4329 = vmatpush.msrb.mxu0 %v11409_v25  ;;  %4369 = vmatpush.msrb.mxu2 %v11412_v34  ;;  %v11551_v24 = vld [vmem:[#allocation3 + $0xb8] sm:$0xff] }
 0x75a   :  { %4280 = vmatpush.msra.mxu1 %v14264_v59  ;;  %4320 = vmatpush.msra.mxu3 %v14265_v41  ;;  %14291 = vst [vmem:[#allocation225_spill] sm:$0xff] %v11551_v24  ;;  %v11554_v59 = vld [vmem:[#allocation3 + $0x578] sm:$0xff]  ;;  %v11557_v41 = vld [vmem:[#allocation3 + $0x70] sm:$0xff] }
 0x75b   :  { %4330 = vmatpush.msrb.mxu0 %v11417_v40  ;;  %4370 = vmatpush.msrb.mxu2 %v11420_v42  ;;  %14292 = vst [vmem:[#allocation226_spill] sm:$0xff] %v11554_v59 }
 0x75c   :  { %4281 = vmatpush.msra.mxu1 %v14266_v17  ;;  %4321 = vmatpush.msra.mxu3 %v14267_v54  ;;  %14293 = vst [vmem:[#allocation227_spill] sm:$0xff] %v11557_v41  ;;  %v11560_v17 = vld [vmem:[#allocation3 + $0x530] sm:$0xff]  ;;  %v11563_v54 = vld [vmem:[#allocation3 + $0x78] sm:$0xff] }
 0x75d   :  { %4282 = vmatmul.f32.vlgmr.msra.gmra.mxu1 %v11323_v2  ;;  %4322 = vmatmul.f32.vlgmr.msra.gmra.mxu3 %v11323_v2  ;;  %14294 = vst [vmem:[#allocation107_spill] sm:$0xff] %v11560_v17 }
 0x75e   :  { %4331 = vmatpush.msrb.mxu0 %v11427_v50  ;;  %4348 = vmatpush.msrb.mxu1 %v14268_v11  ;;  %14295 = vst [vmem:[#allocation228_spill] sm:$0xff] %v11563_v54  ;;  %v11566_v11 = vld [vmem:[#allocation3 + $0x538] sm:$0xff] }
 0x75f   :  { %4371 = vmatpush.msrb.mxu2 %v11431_v35  ;;  %4388 = vmatpush.msrb.mxu3 %v11434_v51  ;;  %14296 = vst [vmem:[#allocation109_spill] sm:$0xff] %v11566_v11 }
 0x760   :  { %4332 = vmatpush.msrb.mxu0 %v11437_v33  ;;  %4349 = vmatpush.msrb.mxu1 %v11440_v27 }
 0x761   :  { %4372 = vmatpush.msrb.mxu2 %v11443_v58  ;;  %4389 = vmatpush.msrb.mxu3 %v11446_v7 }
 0x762   :  { %4333 = vmatpush.msrb.mxu0 %v11449_v47  ;;  %4350 = vmatpush.msrb.mxu1 %v11452_v30 }
 0x763   :  { %4373 = vmatpush.msrb.mxu2 %v11455_v5  ;;  %4390 = vmatpush.msrb.mxu3 %v11458_v37 }
 0x764   :  { %4334 = vmatpush.msrb.mxu0 %v11461_v52  ;;  %4351 = vmatpush.msrb.mxu1 %v11464_v57 }
 0x765   :  { %4374 = vmatpush.msrb.mxu2 %v11467_v12  ;;  %4391 = vmatpush.msrb.mxu3 %v11470_v22 }
 0x766   :  { %4335 = vmatpush.msrb.mxu0 %v11473_v15  ;;  %4352 = vmatpush.msrb.mxu1 %v11476_v19 }
 0x767   :  { %4375 = vmatpush.msrb.mxu2 %v11479_v29  ;;  %4392 = vmatpush.msrb.mxu3 %v11482_v10 }
 0x768   :  { %4336 = vmatpush.msrb.mxu0 %v11485_v6  ;;  %4353 = vmatpush.msrb.mxu1 %v11488_v49 }
 0x769   :  { %4376 = vmatpush.msrb.mxu2 %v11491_v21  ;;  %4393 = vmatpush.msrb.mxu3 %v11494_v28  ;;  %v14418_v28 = vld [vmem:[#allocation72_spill] sm:$0xff] }
 0x76a   :  { %4337 = vmatpush.msrb.mxu0 %v11497_v13  ;;  %4354 = vmatpush.msrb.mxu1 %v11500_v36 }
 0x76b   :  { %4377 = vmatpush.msrb.mxu2 %v11503_v45  ;;  %4394 = vmatpush.msrb.mxu3 %v11506_v56 }
 0x76c   :  { %4338 = vmatpush.msrb.mxu0 %v11509_v0  ;;  %4355 = vmatpush.msrb.mxu1 %v11512_v31  ;;  %v14415_v0 = vld [vmem:[#allocation39_spill] sm:$0xff] }
 0x76d   :  { %4378 = vmatpush.msrb.mxu2 %v11515_v16  ;;  %4395 = vmatpush.msrb.mxu3 %v11518_v48 }
 0x76e   :  { %4339 = vmatpush.msrb.mxu0 %v11521_v23  ;;  %4356 = vmatpush.msrb.mxu1 %v11524_v55 }
 0x76f   :  { %4379 = vmatpush.msrb.mxu2 %v11527_v26  ;;  %4396 = vmatpush.msrb.mxu3 %v11530_v63 }
 0x770   :  { %4340 = vmatpush.msrb.mxu0 %v11533_v14  ;;  %4357 = vmatpush.msrb.mxu1 %v11536_v3 }
 0x771   :  { %4380 = vmatpush.msrb.mxu2 %v11539_v38  ;;  %4397 = vmatpush.msrb.mxu3 %v11542_v60  ;;  %v6410_v60 = vld [vmem:[#allocation3 + $0x2c8] sm:$0xff] }
 0x772   :  { %4341 = vmatpush.msrb.mxu0 %v11545_v53  ;;  %4358 = vmatpush.msrb.mxu1 %v11548_v43  ;;  %v6398_v43 = vld [vmem:[#allocation3 + $0x388] sm:$0xff] }
 0x773   :  { %4381 = vmatpush.msrb.mxu2 %v11551_v24  ;;  %4398 = vmatpush.msrb.mxu3 %v11554_v59  ;;  %v11569_v24 = vld [vmem:[#allocation3 + $0x30] sm:$0xff]  ;;  %v6408_v53 = vld [vmem:[#allocation3 + $0x788] sm:$0xff] }
 0x774   :  { %4342 = vmatpush.msrb.mxu0 %v11557_v41  ;;  %4359 = vmatpush.msrb.mxu1 %v11560_v17  ;;  %14297 = vst [vmem:[#allocation114_spill] sm:$0xff] %v11569_v24  ;;  %v11572_v59 = vld [vmem:[#allocation3 + $0x4f0] sm:$0xff]  ;;  %v11575_v41 = vld [vmem:[#allocation3 + $0x38] sm:$0xff] }
 0x775   :  { %4382 = vmatpush.msrb.mxu2 %v11563_v54  ;;  %4399 = vmatpush.msrb.mxu3 %v11566_v11  ;;  %14298 = vst [vmem:[#allocation116_spill] sm:$0xff] %v11572_v59  ;;  %v11578_v17 = vld [vmem:[#allocation3 + $0x4f8] sm:$0xff]  ;;  %v11583_v11 = vld [vmem:[#allocation3 + $0x4b0] sm:$0xff]  ;;  %v6394_v54 = vld [vmem:[#allocation3 + $0x3c8] sm:$0xff] }
 0x776   :  { %4343 = vmatpush.msrb.mxu0 %v11569_v24  ;;  %4360 = vmatpush.msrb.mxu1 %v11572_v59  ;;  %14299 = vst [vmem:[#allocation111_spill] sm:$0xff] %v11575_v41  ;;  %v11586_v24 = vld [vmem:[#allocation3 + $0x4b8] sm:$0xff]  ;;  %v6393_v59 = vld [vmem:[#allocation3 + $0x3c0] sm:$0xff] }
 0x777   :  { %4383 = vmatpush.msrb.mxu2 %v11575_v41  ;;  %14300 = vst [vmem:[#allocation28_spill] sm:$0xff] %v11578_v17  ;;  %4400 = vmatpush.msrb.mxu3 %v11578_v17  ;;  %v11589_v41 = vld [vmem:[#allocation3 + $0x470] sm:$0xff]  ;;  %v11592_v17 = vld [vmem:[#allocation3 + $0x478] sm:$0xff] }
 0x778   :  { %4344 = vmatmul.f32.vlgmr.msrb.gmra.mxu0 %v11314_v62  ;;  %4384 = vmatmul.f32.vlgmr.msrb.gmra.mxu2 %v11314_v62  ;;  %14301 = vst [vmem:[#allocation26_spill] sm:$0xff] %v11583_v11  ;;  %v6397_v62 = vld [vmem:[#allocation3 + $0x380] sm:$0xff] }
 0x779   :  { %4361 = vmatpush.msrb.mxu1 %v11583_v11  ;;  %14302 = vst [vmem:[#allocation29_spill] sm:$0xff] %v11586_v24  ;;  %4401 = vmatpush.msrb.mxu3 %v11586_v24  ;;  %v11595_v11 = vld [vmem:[#allocation3 + $0x430] sm:$0xff]  ;;  %v11598_v24 = vld [vmem:[#allocation3 + $0x438] sm:$0xff] }
 0x77a   :  { %4547 = vmatpush.msra.mxu0 %v6393_v59  ;;  %4587 = vmatpush.msra.mxu2 %v6394_v54  ;;  %14303 = vst [vmem:[#allocation27_spill] sm:$0xff] %v11589_v41  ;;  %v6401_v59 = vld [vmem:[#allocation3 + $0x340] sm:$0xff]  ;;  %v6402_v54 = vld [vmem:[#allocation3 + $0x348] sm:$0xff] }
 0x77b   :  { %4362 = vmatpush.msrb.mxu1 %v11589_v41  ;;  %14304 = vst [vmem:[#allocation58_spill] sm:$0xff] %v11592_v17  ;;  %4402 = vmatpush.msrb.mxu3 %v11592_v17  ;;  %v6403_v17 = vld [vmem:[#allocation3 + $0x7c0] sm:$0xff]  ;;  %v6406_v41 = vld [vmem:[#allocation3 + $0x308] sm:$0xff] }
 0x77c   :  { %4548 = vmatpush.msra.mxu0 %v6397_v62  ;;  %4588 = vmatpush.msra.mxu2 %v6398_v43  ;;  %14305 = vst [vmem:[#allocation59_spill] sm:$0xff] %v11595_v11  ;;  %v6404_v62 = vld [vmem:[#allocation3 + $0x7c8] sm:$0xff]  ;;  %v6405_v43 = vld [vmem:[#allocation3 + $0x300] sm:$0xff] }
 0x77d   :  { %4363 = vmatpush.msrb.mxu1 %v11595_v11  ;;  %14306 = vst [vmem:[#allocation60_spill] sm:$0xff] %v11598_v24  ;;  %4403 = vmatpush.msrb.mxu3 %v11598_v24  ;;  %v6407_v11 = vld [vmem:[#allocation3 + $0x780] sm:$0xff] }
 0x77e   :  { %4364 = vmatmul.f32.vlgmr.msrb.gmra.mxu1 %v11323_v2  ;;  %4404 = vmatmul.f32.vlgmr.msrb.gmra.mxu3 %v11323_v2  ;;  %v6409_v24 = vld [vmem:[#allocation3 + $0x2c0] sm:$0xff] }
 0x77f   :  { %4549 = vmatpush.msra.mxu0 %v6401_v59  ;;  %4589 = vmatpush.msra.mxu2 %v6402_v54  ;;  %v6411_v2 = vld [vmem:[#allocation3 + $0x740] sm:$0xff]  ;;  %v6412_v59 = vld [vmem:[#allocation3 + $0x748] sm:$0xff] }
 0x780   :  { %4567 = vmatpush.msra.mxu1 %v6403_v17  ;;  %4607 = vmatpush.msra.mxu3 %v6404_v62  ;;  %v6413_v54 = vld [vmem:[#allocation3 + $0x280] sm:$0xff]  ;;  %v14307_v17 = vld [vmem:[#allocation151_spill] sm:$0xff] }
 0x781   :  { %4550 = vmatpush.msra.mxu0 %v6405_v43  ;;  %4590 = vmatpush.msra.mxu2 %v6406_v41  ;;  %v6414_v62 = vld [vmem:[#allocation3 + $0x700] sm:$0xff]  ;;  %v6415_v43 = vld [vmem:[#allocation3 + $0x708] sm:$0xff] }
 0x782   :  { %4568 = vmatpush.msra.mxu1 %v6407_v11  ;;  %4608 = vmatpush.msra.mxu3 %v6408_v53  ;;  %v14308_v41 = vld [vmem:[#allocation153_spill] sm:$0xff]  ;;  %v14309_v11 = vld [vmem:[#allocation155_spill] sm:$0xff] }
 0x783   :  { %4551 = vmatpush.msra.mxu0 %v6409_v24  ;;  %4591 = vmatpush.msra.mxu2 %v6410_v60  ;;  %v6416_v53 = vld [vmem:[#allocation3 + $0x6c0] sm:$0xff]  ;;  %v6417_v24 = vld [vmem:[#allocation3 + $0x6c8] sm:$0xff] }
 0x784   :  { %4569 = vmatpush.msra.mxu1 %v6411_v2  ;;  %4609 = vmatpush.msra.mxu3 %v6412_v59  ;;  %v14310_v60 = vld [vmem:[#allocation157_spill] sm:$0xff]  ;;  %v14311_v2 = vld [vmem:[#allocation146_spill] sm:$0xff] }
 0x785   :  { %4552 = vmatpush.msra.mxu0 %v6413_v54  ;;  %4592 = vmatpush.msra.mxu2 %v14307_v17  ;;  %v6418_v59 = vld [vmem:[#allocation3 + $0x680] sm:$0xff]  ;;  %v6419_v54 = vld [vmem:[#allocation3 + $0x688] sm:$0xff] }
 0x786   :  { %4570 = vmatpush.msra.mxu1 %v6414_v62  ;;  %4610 = vmatpush.msra.mxu3 %v6415_v43  ;;  %v14312_v17 = vld [vmem:[#allocation159_spill] sm:$0xff]  ;;  %v14313_v62 = vld [vmem:[#allocation148_spill] sm:$0xff]  ;;  %v14314_v43 = vld [vmem:[#allocation161_spill] sm:$0xff] }
 0x787   :  { %4553 = vmatpush.msra.mxu0 %v14308_v41  ;;  %4593 = vmatpush.msra.mxu2 %v14309_v11  ;;  %v14315_v41 = vld [vmem:[#allocation150_spill] sm:$0xff]  ;;  %v14316_v11 = vld [vmem:[#allocation163_spill] sm:$0xff] }
 0x788   :  { %4571 = vmatpush.msra.mxu1 %v6416_v53  ;;  %4611 = vmatpush.msra.mxu3 %v6417_v24  ;;  %v14317_v53 = vld [vmem:[#allocation152_spill] sm:$0xff]  ;;  %v14318_v24 = vld [vmem:[#allocation165_spill] sm:$0xff] }
 0x789   :  { %4554 = vmatpush.msra.mxu0 %v14310_v60  ;;  %4594 = vmatpush.msra.mxu2 %v14311_v2  ;;  %v14319_v60 = vld [vmem:[#allocation154_spill] sm:$0xff]  ;;  %v14320_v2 = vld [vmem:[#allocation167_spill] sm:$0xff] }
 0x78a   :  { %4572 = vmatpush.msra.mxu1 %v6418_v59  ;;  %4612 = vmatpush.msra.mxu3 %v6419_v54  ;;  %v14321_v59 = vld [vmem:[#allocation156_spill] sm:$0xff]  ;;  %v14322_v54 = vld [vmem:[#allocation169_spill] sm:$0xff] }
 0x78b   :  { %4555 = vmatpush.msra.mxu0 %v14312_v17  ;;  %4595 = vmatpush.msra.mxu2 %v14313_v62  ;;  %v14323_v17 = vld [vmem:[#allocation158_spill] sm:$0xff]  ;;  %v14324_v62 = vld [vmem:[#allocation171_spill] sm:$0xff] }
 0x78c   :  { %4573 = vmatpush.msra.mxu1 %v14314_v43  ;;  %4613 = vmatpush.msra.mxu3 %v14315_v41  ;;  %v14325_v43 = vld [vmem:[#allocation160_spill] sm:$0xff]  ;;  %v14326_v41 = vld [vmem:[#allocation173_spill] sm:$0xff] }
 0x78d   :  { %4556 = vmatpush.msra.mxu0 %v14316_v11  ;;  %4596 = vmatpush.msra.mxu2 %v14317_v53  ;;  %v14327_v11 = vld [vmem:[#allocation162_spill] sm:$0xff]  ;;  %v14328_v53 = vld [vmem:[#allocation175_spill] sm:$0xff] }
 0x78e   :  { %4574 = vmatpush.msra.mxu1 %v14318_v24  ;;  %4614 = vmatpush.msra.mxu3 %v14319_v60  ;;  %v14329_v24 = vld [vmem:[#allocation164_spill] sm:$0xff]  ;;  %v14330_v60 = vld [vmem:[#allocation177_spill] sm:$0xff] }
 0x78f   :  { %4557 = vmatpush.msra.mxu0 %v14320_v2  ;;  %4597 = vmatpush.msra.mxu2 %v14321_v59  ;;  %v14331_v2 = vld [vmem:[#allocation166_spill] sm:$0xff]  ;;  %v14332_v59 = vld [vmem:[#allocation179_spill] sm:$0xff] }
 0x790   :  { %4575 = vmatpush.msra.mxu1 %v14322_v54  ;;  %4615 = vmatpush.msra.mxu3 %v14323_v17  ;;  %v14333_v54 = vld [vmem:[#allocation168_spill] sm:$0xff]  ;;  %v14334_v17 = vld [vmem:[#allocation181_spill] sm:$0xff] }
 0x791   :  { %4558 = vmatpush.msra.mxu0 %v14324_v62  ;;  %4598 = vmatpush.msra.mxu2 %v14325_v43  ;;  %v14335_v62 = vld [vmem:[#allocation170_spill] sm:$0xff]  ;;  %v14336_v43 = vld [vmem:[#allocation183_spill] sm:$0xff] }
 0x792   :  { %4576 = vmatpush.msra.mxu1 %v14326_v41  ;;  %4616 = vmatpush.msra.mxu3 %v14327_v11  ;;  %v14337_v41 = vld [vmem:[#allocation172_spill] sm:$0xff]  ;;  %v14338_v11 = vld [vmem:[#allocation185_spill] sm:$0xff] }
 0x793   :  { %4559 = vmatpush.msra.mxu0 %v14328_v53  ;;  %4599 = vmatpush.msra.mxu2 %v14329_v24  ;;  %v14339_v53 = vld [vmem:[#allocation174_spill] sm:$0xff]  ;;  %v14340_v24 = vld [vmem:[#allocation187_spill] sm:$0xff] }
 0x794   :  { %4577 = vmatpush.msra.mxu1 %v14330_v60  ;;  %4617 = vmatpush.msra.mxu3 %v14331_v2  ;;  %v14341_v60 = vld [vmem:[#allocation176_spill] sm:$0xff]  ;;  %v14342_v2 = vld [vmem:[#allocation189_spill] sm:$0xff] }
 0x795   :  { %4560 = vmatpush.msra.mxu0 %v14332_v59  ;;  %4600 = vmatpush.msra.mxu2 %v14333_v54  ;;  %v14343_v59 = vld [vmem:[#allocation178_spill] sm:$0xff]  ;;  %v14344_v54 = vld [vmem:[#allocation191_spill] sm:$0xff] }
 0x796   :  { %4578 = vmatpush.msra.mxu1 %v14334_v17  ;;  %4618 = vmatpush.msra.mxu3 %v14335_v62  ;;  %v14345_v17 = vld [vmem:[#allocation180_spill] sm:$0xff]  ;;  %v14346_v62 = vld [vmem:[#allocation193_spill] sm:$0xff] }
 0x797   :  { %4561 = vmatpush.msra.mxu0 %v14336_v43  ;;  %4601 = vmatpush.msra.mxu2 %v14337_v41  ;;  %v14347_v43 = vld [vmem:[#allocation182_spill] sm:$0xff]  ;;  %v14348_v41 = vld [vmem:[#allocation195_spill] sm:$0xff] }
 0x798   :  { %4579 = vmatpush.msra.mxu1 %v14338_v11  ;;  %4619 = vmatpush.msra.mxu3 %v14339_v53  ;;  %v14349_v11 = vld [vmem:[#allocation184_spill] sm:$0xff]  ;;  %v14350_v53 = vld [vmem:[#allocation186_spill] sm:$0xff] }
 0x799   :  { %4562 = vmatpush.msra.mxu0 %v14340_v24  ;;  %4602 = vmatpush.msra.mxu2 %v14341_v60  ;;  %v14351_v24 = vld [vmem:[#allocation188_spill] sm:$0xff]  ;;  %v14352_v60 = vld [vmem:[#allocation190_spill] sm:$0xff] }
 0x79a   :  { %4580 = vmatpush.msra.mxu1 %v14344_v54  ;;  %4620 = vmatpush.msra.mxu3 %v14345_v17  ;;  %v14355_v54 = vld [vmem:[#allocation196_spill] sm:$0xff]  ;;  %v14356_v17 = vld [vmem:[#allocation201_spill] sm:$0xff] }
 0x79b   :  { %4629 = vmatpush.msrb.mxu0 %v14342_v2  ;;  %4669 = vmatpush.msrb.mxu2 %v14343_v59  ;;  %v14353_v2 = vld [vmem:[#allocation192_spill] sm:$0xff]  ;;  %v14354_v59 = vld [vmem:[#allocation194_spill] sm:$0xff] }
 0x79c   :  { %4581 = vmatpush.msra.mxu1 %v14348_v41  ;;  %4621 = vmatpush.msra.mxu3 %v14349_v11  ;;  %v14359_v41 = vld [vmem:[#allocation198_spill] sm:$0xff]  ;;  %v14360_v11 = vld [vmem:[#allocation205_spill] sm:$0xff] }
 0x79d   :  { %4630 = vmatpush.msrb.mxu0 %v14346_v62  ;;  %4670 = vmatpush.msrb.mxu2 %v14347_v43  ;;  %v14357_v62 = vld [vmem:[#allocation202_spill] sm:$0xff]  ;;  %v14358_v43 = vld [vmem:[#allocation197_spill] sm:$0xff] }
 0x79e   :  { %4582 = vmatpush.msra.mxu1 %v14352_v60  ;;  %4622 = vmatpush.msra.mxu3 %v14353_v2  ;;  %v14363_v60 = vld [vmem:[#allocation200_spill] sm:$0xff]  ;;  %v14364_v2 = vld [vmem:[#allocation209_spill] sm:$0xff] }
 0x79f   :  { %4631 = vmatpush.msrb.mxu0 %v14350_v53  ;;  %4671 = vmatpush.msrb.mxu2 %v14351_v24  ;;  %v14361_v53 = vld [vmem:[#allocation206_spill] sm:$0xff]  ;;  %v14362_v24 = vld [vmem:[#allocation199_spill] sm:$0xff] }
 0x7a0   :  { %4649 = vmatpush.msrb.mxu1 %v14355_v54  ;;  %4689 = vmatpush.msrb.mxu3 %v14357_v62  ;;  %v14366_v54 = vld [vmem:[#allocation24_spill] sm:$0xff]  ;;  %v14368_v62 = vld [vmem:[#allocation25_spill] sm:$0xff] }
 0x7a1   :  { %4632 = vmatpush.msrb.mxu0 %v14354_v59  ;;  %4672 = vmatpush.msrb.mxu2 %v14356_v17  ;;  %v14365_v59 = vld [vmem:[#allocation210_spill] sm:$0xff] }
 0x7a2   :  { %4650 = vmatpush.msrb.mxu1 %v14359_v41  ;;  %4690 = vmatpush.msrb.mxu3 %v14361_v53  ;;  %v14367_v17 = vld [vmem:[#allocation22_spill] sm:$0xff]  ;;  %v14372_v53 = vld [vmem:[#allocation56_spill] sm:$0xff] }
 0x7a3   :  { %4633 = vmatpush.msrb.mxu0 %v14358_v43  ;;  %4673 = vmatpush.msrb.mxu2 %v14360_v11  ;;  %v14369_v43 = vld [vmem:[#allocation23_spill] sm:$0xff]  ;;  %v14370_v41 = vld [vmem:[#allocation54_spill] sm:$0xff] }
 0x7a4   :  { %4651 = vmatpush.msrb.mxu1 %v14363_v60  ;;  %4691 = vmatpush.msrb.mxu3 %v14365_v59  ;;  %v14371_v11 = vld [vmem:[#allocation55_spill] sm:$0xff]  ;;  %v14376_v59 = vld [vmem:[#allocation213_spill] sm:$0xff] }
 0x7a5   :  { %4634 = vmatpush.msrb.mxu0 %v14362_v24  ;;  %4674 = vmatpush.msrb.mxu2 %v14364_v2  ;;  %v14373_v24 = vld [vmem:[#allocation57_spill] sm:$0xff]  ;;  %v14374_v60 = vld [vmem:[#allocation203_spill] sm:$0xff]  ;;  %v14375_v2 = vld [vmem:[#allocation204_spill] sm:$0xff] }
 0x7a6   :  { %4652 = vmatpush.msrb.mxu1 %v14367_v17  ;;  %4692 = vmatpush.msrb.mxu3 %v14369_v43  ;;  %v14378_v17 = vld [vmem:[#allocation207_spill] sm:$0xff]  ;;  %v14380_v43 = vld [vmem:[#allocation217_spill] sm:$0xff] }
 0x7a7   :  { %4635 = vmatpush.msrb.mxu0 %v14366_v54  ;;  %4675 = vmatpush.msrb.mxu2 %v14368_v62  ;;  %v14377_v54 = vld [vmem:[#allocation214_spill] sm:$0xff]  ;;  %v14379_v62 = vld [vmem:[#allocation208_spill] sm:$0xff] }
 0x7a8   :  { %4653 = vmatpush.msrb.mxu1 %v14371_v11  ;;  %4693 = vmatpush.msrb.mxu3 %v14373_v24  ;;  %v14382_v11 = vld [vmem:[#allocation212_spill] sm:$0xff] }
 0x7a9   :  { %4636 = vmatpush.msrb.mxu0 %v14370_v41  ;;  %4676 = vmatpush.msrb.mxu2 %v14372_v53  ;;  %v14381_v41 = vld [vmem:[#allocation211_spill] sm:$0xff]  ;;  %v14384_v24 = vld [vmem:[#allocation216_spill] sm:$0xff] }
 0x7aa   :  { %4654 = vmatpush.msrb.mxu1 %v14375_v2  ;;  %4694 = vmatpush.msrb.mxu3 %v14377_v54  ;;  %v14383_v53 = vld [vmem:[#allocation215_spill] sm:$0xff]  ;;  %v14386_v2 = vld [vmem:[#allocation18_spill] sm:$0xff] }
 0x7ab   :  { %4637 = vmatpush.msrb.mxu0 %v14374_v60  ;;  %4677 = vmatpush.msrb.mxu2 %v14376_v59  ;;  %v14385_v60 = vld [vmem:[#allocation20_spill] sm:$0xff]  ;;  %v14387_v59 = vld [vmem:[#allocation21_spill] sm:$0xff]  ;;  %v14388_v54 = vld [vmem:[#allocation19_spill] sm:$0xff] }
 0x7ac   :  { %4655 = vmatpush.msrb.mxu1 %v14379_v62  ;;  %4695 = vmatpush.msrb.mxu3 %v14381_v41  ;;  %v14390_v62 = vld [vmem:[#allocation51_spill] sm:$0xff]  ;;  %v14392_v41 = vld [vmem:[#allocation53_spill] sm:$0xff] }
 0x7ad   :  { %4638 = vmatpush.msrb.mxu0 %v14378_v17  ;;  %4678 = vmatpush.msrb.mxu2 %v14380_v43  ;;  %v14389_v17 = vld [vmem:[#allocation50_spill] sm:$0xff]  ;;  %v14391_v43 = vld [vmem:[#allocation52_spill] sm:$0xff] }
 0x7ae   :  { %4656 = vmatpush.msrb.mxu1 %v14383_v53  ;;  %4696 = vmatpush.msrb.mxu3 %v14385_v60  ;;  %v14394_v53 = vld [vmem:[#allocation88_spill] sm:$0xff]  ;;  %v14396_v60 = vld [vmem:[#allocation85_spill] sm:$0xff] }
 0x7af   :  { %4639 = vmatpush.msrb.mxu0 %v14382_v11  ;;  %4679 = vmatpush.msrb.mxu2 %v14384_v24  ;;  %v14393_v11 = vld [vmem:[#allocation86_spill] sm:$0xff]  ;;  %v14395_v24 = vld [vmem:[#allocation84_spill] sm:$0xff] }
 0x7b0   :  { %4657 = vmatpush.msrb.mxu1 %v14387_v59  ;;  %4697 = vmatpush.msrb.mxu3 %v14389_v17  ;;  %v14398_v59 = vld [vmem:[#allocation30_spill] sm:$0xff]  ;;  %v14400_v17 = vld [vmem:[#allocation31_spill] sm:$0xff] }
 0x7b1   :  { %4640 = vmatpush.msrb.mxu0 %v14386_v2  ;;  %4680 = vmatpush.msrb.mxu2 %v14388_v54  ;;  %v14397_v2 = vld [vmem:[#allocation32_spill] sm:$0xff]  ;;  %v14399_v54 = vld [vmem:[#allocation33_spill] sm:$0xff] }
 0x7b2   :  { %4658 = vmatpush.msrb.mxu1 %v14391_v43  ;;  %4698 = vmatpush.msrb.mxu3 %v14393_v11  ;;  %v14402_v43 = vld [vmem:[#allocation63_spill] sm:$0xff]  ;;  %v14404_v11 = vld [vmem:[#allocation65_spill] sm:$0xff] }
 0x7b3   :  { %4641 = vmatpush.msrb.mxu0 %v14390_v62  ;;  %4681 = vmatpush.msrb.mxu2 %v14392_v41  ;;  %v14401_v62 = vld [vmem:[#allocation62_spill] sm:$0xff]  ;;  %v14403_v41 = vld [vmem:[#allocation64_spill] sm:$0xff] }
 0x7b4   :  { %4659 = vmatpush.msrb.mxu1 %v14395_v24  ;;  %4699 = vmatpush.msrb.mxu3 %v14397_v2  ;;  %v14406_v24 = vld [vmem:[#allocation92_spill] sm:$0xff]  ;;  %v14408_v2 = vld [vmem:[#allocation89_spill] sm:$0xff] }
 0x7b5   :  { %4642 = vmatpush.msrb.mxu0 %v14394_v53  ;;  %4682 = vmatpush.msrb.mxu2 %v14396_v60  ;;  %v14405_v53 = vld [vmem:[#allocation90_spill] sm:$0xff]  ;;  %v14407_v60 = vld [vmem:[#allocation87_spill] sm:$0xff] }
 0x7b6   :  { %4660 = vmatpush.msrb.mxu1 %v14399_v54  ;;  %4700 = vmatpush.msrb.mxu3 %v14401_v62  ;;  %v14410_v54 = vld [vmem:[#allocation96_spill] sm:$0xff]  ;;  %v4119_v62 = vpop.f32.mrf.mxu1 }
 0x7b7   :  { %4643 = vmatpush.msrb.mxu0 %v14398_v59  ;;  %4683 = vmatpush.msrb.mxu2 %v14400_v17  ;;  %v14409_v59 = vld [vmem:[#allocation94_spill] sm:$0xff]  ;;  %v14411_v17 = vld [vmem:[#allocation91_spill] sm:$0xff] }
 0x7b8   :  { %4661 = vmatpush.msrb.mxu1 %v14403_v41  ;;  %4701 = vmatpush.msrb.mxu3 %v14405_v53  ;;  %v4139_v41 = vpop.f32.mrf.mxu2 }
 0x7b9   :  { %4644 = vmatpush.msrb.mxu0 %v14402_v43  ;;  %4684 = vmatpush.msrb.mxu2 %v14404_v11  ;;  %v4099_v43 = vpop.f32.mrf.mxu0 }
 0x7ba   :  { %4662 = vmatpush.msrb.mxu1 %v14406_v24  ;;  %4702 = vmatpush.msrb.mxu3 %v14407_v60  ;;  %v4120_v53 = vadd.f32 %v4119_v62, %v4099_v43  ;;  %v14412_v24 = vld [vmem:[#allocation40_spill] sm:$0xff] }
 0x7bc   :  { %4663 = vmatpush.msrb.mxu1 %v14408_v2  ;;  %4703 = vmatpush.msrb.mxu3 %v14409_v59  ;;  %v4159_v38 = vpop.f32.mrf.mxu3  ;;  %v14413_v2 = vld [vmem:[#allocation38_spill] sm:$0xff] }
 0x7bd   :  { %v4162_v23 = vadd.f32 %v4120_v53, %v14413_v2  ;;  %v4160_v48 = vadd.f32 %v4159_v38, %v4139_v41 }
 0x7be   :  { %4664 = vmatpush.msrb.mxu1 %v14410_v54  ;;  %4704 = vmatpush.msrb.mxu3 %v14411_v17  ;;  %v14414_v54 = vld [vmem:[#allocation41_spill] sm:$0xff] }
 0x7bf   :  { %v5323_v17 = vmul.f32 -1.442695, %v4162_v23  ;;  %v4163_v56 = vadd.f32 %v4160_v48, %v14415_v0  ;;  %v14417_v0 = vld [vmem:[#allocation71_spill] sm:$0xff] }
 0x7c0   :  { %v4201_v3 = vpop.f32.mrf.mxu1  ;;  %v4221_v60 = vpop.f32.mrf.mxu2 }
 0x7c1   :  { %v4181_v11 = vpop.f32.mrf.mxu0  ;;  %v5324_v62 = vmul.f32 -1.442695, %v4163_v56 }
 0x7c2   :  { %v4202_v14 = vadd.f32 %v4201_v3, %v4181_v11 }
 0x7c4   :  { %v4244_v26 = vadd.f32 %v4202_v14, %v14412_v24  ;;  %v14416_v14 = vld [vmem:[#allocation70_spill] sm:$0xff] }
 0x7c6   :  { %v4241_v63 = vpop.f32.mrf.mxu3  ;;  %v5325_v59 = vmul.f32 -1.442695, %v4244_v26 }
 0x7c7   :  { %v4242_v55 = vadd.f32 %v4241_v63, %v4221_v60 }
 0x7c8   :  { %5541 = vpow2.f32 %v5325_v59 }
 0x7c9   :  { %v4245_v16 = vadd.f32 %v4242_v55, %v14414_v54  ;;  %5543 = vpow2.f32 %v5323_v17 }
 0x7cb   :  { %v5326_v36 = vmul.f32 -1.442695, %v4245_v16 }
 0x7cd   :  { %5545 = vpow2.f32 %v5326_v36 }
 0x7ce   :  { %v5542_v43 = vpop.eup %5541  ;;  %5547 = vpow2.f32 %v5324_v62 }
 0x7cf   :  { %v5544_v38 = vpop.eup %5543  ;;  %v11713_v55 = vadd.f32 1.0, %v5542_v43 }
 0x7d0   :  { %v4416_v24 = vadd.f32 1.0, %v5544_v38 }
 0x7d1   :  { %5549 = vrcp.f32 %v11713_v55  ;;  %v4467_v13 = vand.u32 2147483648, %v11713_v55  ;;  %vm4461_vm4 = vweird.f32 %v11713_v55 }
 0x7d2   :  { %vm4423_vm6 = vweird.f32 %v4416_v24 }
 0x7d3   :  { %v4263_v45 = vpop.f32.mrf.mxu0  ;;  %v5546_v41 = vpop.eup %5545  ;;  %v4468_v49 = vor.u32 1.1754944e-38, %v4467_v13 }
 0x7d4   :  { %v11717_v56 = vadd.f32 1.0, %v5546_v41 }
 0x7d6   :  { %v4482_v13 = vand.u32 2147483648, %v11717_v56  ;;  %vm4476_vm12 = vweird.f32 %v11717_v56 }
 0x7d9   :  { %v4303_v53 = vpop.f32.mrf.mxu2 }
 0x7da   :  { %v4283_v31 = vpop.f32.mrf.mxu1 }
 0x7db   :  { %v4284_v3 = vadd.f32 %v4283_v31, %v4263_v45  ;;  %v5548_v45 = vpop.eup %5547 }
 0x7dc   :  { %v11719_v31 = vadd.f32 1.0, %v5548_v45  ;;  %v5550_v16 = vpop.eup %5549 }
 0x7dd   :  { %v4326_v63 = vadd.f32 %v4284_v3, %v14416_v14  ;;  %v4457_v59 = vmul.f32 %v5550_v16, %v11713_v55  ;;  %vm4462_vm2 = vweird.f32 %v5550_v16 }
 0x7de   :  { %vm11753_vm5 = vmor %vm4461_vm4, %vm4462_vm2  ;;  %vm4438_vm9 = vweird.f32 %v11719_v31 }
 0x7df   :  { %v5327_v23 = vmul.f32 -1.442695, %v4326_v63  ;;  %v4458_v43 = vsub.f32 1.0, %v4457_v59 }
 0x7e0   :  { %v4323_v11 = vpop.f32.mrf.mxu3 }
 0x7e1   :  { %v4324_v26 = vadd.f32 %v4323_v11, %v4303_v53  ;;  %5551 = vpow2.f32 %v5327_v23  ;;  %v4459_v38 = vmul.f32 %v5550_v16, %v4458_v43 }
 0x7e2   :  { %5553 = vrcp.f32 %v4416_v24 }
 0x7e3   :  { %v4327_v48 = vadd.f32 %v4324_v26, %v14417_v0  ;;  %5555 = vrcp.f32 %v11717_v56 }
 0x7e5   :  { %v5328_v36 = vmul.f32 -1.442695, %v4327_v48 }
 0x7e7   :  { %v5552_v60 = vpop.eup %5551  ;;  %5557 = vpow2.f32 %v5328_v36 }
 0x7e8   :  { %v11722_v2 = vpop.eup %5553  ;;  %5559 = vrcp.f32 %v11719_v31  ;;  %v11726_v54 = vadd.f32 1.0, %v5552_v60  ;;  %v4427_v60 = vand.u32 2147483647, %v4416_v24 }
 0x7e9   :  { %v11728_v17 = vpop.eup %5555  ;;  %v4419_v3 = vmul.f32 %v11722_v2, %v4416_v24  ;;  %vm4424_vm3 = vweird.f32 %v11722_v2 }
 0x7ea   :  { %5561 = vrcp.f32 %v11726_v54  ;;  %v4472_v11 = vmul.f32 %v11728_v17, %v11717_v56  ;;  %vm11759_vm7 = vcmp.eq.f32.partialorder %v4427_v60, 8.507059e+37  ;;  %vm11768_vm8 = vmor %vm4423_vm6, %vm4424_vm3  ;;  %vm4477_vm10 = vweird.f32 %v11728_v17 }
 0x7eb   :  { %v4420_v63 = vsub.f32 1.0, %v4419_v3  ;;  %v4429_v3 = vand.u32 2147483648, %v4416_v24  ;;  %vm11786_vm14 = vmor %vm4476_vm12, %vm4477_vm10  ;;  %vm4499_vm3 = vweird.f32 %v11726_v54 }
 0x7ec   :  { %v4473_v41 = vsub.f32 1.0, %v4472_v11 }
 0x7ed   :  { %v5558_v62 = vpop.eup %5557  ;;  %v4421_v45 = vmul.f32 %v11722_v2, %v4420_v63 }
 0x7ee   :  { %v11732_v14 = vpop.eup %5559  ;;  %v11736_v53 = vadd.f32 1.0, %v5558_v62  ;;  %v4460_v62 = vadd.f32 %v5550_v16, %v4459_v38  ;;  %v4474_v11 = vmul.f32 %v11728_v17, %v4473_v41 }
 0x7ef   :  { %v4434_v26 = vmul.f32 %v11732_v14, %v11719_v31  ;;  %v4422_v63 = vadd.f32 %v11722_v2, %v4421_v45  ;;  %vm4439_vm13 = vweird.f32 %v11732_v14 }
 0x7f0   :  { %v11740_v23 = vpop.eup %5561  ;;  %5563 = vrcp.f32 %v11736_v53  ;;  %v4464_v41 = vsel %vm11753_vm5, %v5550_v16, %v4460_v62  ;;  %v4475_v60 = vadd.f32 %v11728_v17, %v4474_v11  ;;  %v14425_v62 = vld [vmem:[#allocation73_spill] sm:$0xff]  ;;  %vm11801_vm15 = vmor %vm4438_vm9, %vm4439_vm13 }
 0x7f1   :  { %v4435_v59 = vsub.f32 1.0, %v4434_v26  ;;  %v4495_v43 = vmul.f32 %v11740_v23, %v11726_v54  ;;  %v4465_v26 = vand.u32 2147483647, %v11713_v55  ;;  %v4426_v16 = vsel %vm11768_vm8, %v11722_v2, %v4422_v63 }
 0x7f2   :  { %vm4500_vm1 = vweird.f32 %v11740_v23 }
 0x7f3   :  { %v4436_v55 = vmul.f32 %v11732_v14, %v4435_v59  ;;  %v4496_v6 = vsub.f32 1.0, %v4495_v43  ;;  %vm4466_vm11 = vcmp.eq.f32.partialorder %v4465_v26, 8.507059e+37  ;;  %v4444_v26 = vand.u32 2147483648, %v11719_v31  ;;  %vm4501_vm4 = vmor %vm4499_vm3, %vm4500_vm1 }
 0x7f5   :  { %v4345_v0 = vpop.f32.mrf.mxu0  ;;  %v4497_v11 = vmul.f32 %v11740_v23, %v4496_v6  ;;  %v6424_v6 = vld [vmem:[#allocation3 + $0x360] sm:$0xff] }
 0x7f6   :  { %v11757_v38 = vpop.eup %5563 }
 0x7f7   :  { %v4510_v59 = vmul.f32 %v11757_v38, %v11736_v53  ;;  %vm4515_vm6 = vweird.f32 %v11757_v38 }
 0x7fb   :  { %v4365_v48 = vpop.f32.mrf.mxu1 }
 0x7fc   :  { %v4366_v36 = vadd.f32 %v4365_v48, %v4345_v0  ;;  %v4430_v48 = vor.u32 1.1754944e-38, %v4429_v3  ;;  %v4469_v3 = vsel %vm4466_vm11, %v4468_v49, %v4464_v41  ;;  %v4437_v0 = vadd.f32 %v11732_v14, %v4436_v55 }
 0x7fd   :  { %v4526_v41 = vmul.f32 %v4469_v3, %v11292_v20  ;;  %v4442_v55 = vand.u32 2147483647, %v11719_v31 }
 0x7fe   :  { %v4408_v21 = vadd.f32 %v4366_v36, %v14418_v28  ;;  %v4385_v36 = vpop.f32.mrf.mxu2  ;;  %v4431_v49 = vsel %vm11759_vm7, %v4430_v48, %v4426_v16  ;;  %v4441_v20 = vsel %vm11801_vm15, %v11732_v14, %v4437_v0  ;;  %v4498_v48 = vadd.f32 %v11740_v23, %v4497_v11 }
 0x7ff   :  { %vm4443_vm2 = vcmp.eq.f32.partialorder %v4442_v55, 8.507059e+37  ;;  %vm4514_vm7 = vweird.f32 %v11736_v53 }
 0x800   :  { %5565 = vtanh.f32 %v4408_v21  ;;  %v4483_v21 = vor.u32 1.1754944e-38, %v4482_v13  ;;  %v4503_v13 = vand.u32 2147483647, %v11726_v54  ;;  %vm4516_vm8 = vmor %vm4514_vm7, %vm4515_vm6 }
 0x801   :  { %v4405_v45 = vpop.f32.mrf.mxu3 }
 0x802   :  { %v4406_v24 = vadd.f32 %v4405_v45, %v4385_v36  ;;  %v4480_v36 = vand.u32 2147483647, %v11717_v56  ;;  %v4479_v56 = vsel %vm11786_vm14, %v11728_v17, %v4475_v60  ;;  %v4445_v17 = vor.u32 1.1754944e-38, %v4444_v26 }
 0x803   :  { %v4505_v60 = vand.u32 2147483648, %v11726_v54  ;;  %vm4504_vm5 = vcmp.eq.f32.partialorder %v4503_v13, 8.507059e+37  ;;  %v4520_v54 = vand.u32 2147483648, %v11736_v53  ;;  %v6432_v13 = vld [vmem:[#allocation3 + $0x2e8] sm:$0xff] }
 0x804   :  { %v4409_v43 = vadd.f32 %v4406_v24, %v14425_v62  ;;  %v4511_v24 = vsub.f32 1.0, %v4510_v59  ;;  %vm4481_vm0 = vcmp.eq.f32.partialorder %v4480_v36, 8.507059e+37  ;;  %v4446_v14 = vsel %vm4443_vm2, %v4445_v17, %v4441_v20  ;;  %v6426_v20 = vld [vmem:[#allocation3 + $0x320] sm:$0xff]  ;;  %v6428_v17 = vld [vmem:[#allocation3 + $0x328] sm:$0xff] }
 0x805   :  { %v4484_v16 = vsel %vm4481_vm0, %v4483_v21, %v4479_v56  ;;  %v4506_v0 = vor.u32 1.1754944e-38, %v4505_v60  ;;  %v4521_v26 = vor.u32 1.1754944e-38, %v4520_v54  ;;  %v6422_v21 = vld [vmem:[#allocation3 + $0x3a0] sm:$0xff] }
 0x806   :  { %v5566_v2 = vpop.eup %5565  ;;  %5567 = vtanh.f32 %v4409_v43  ;;  %v4512_v59 = vmul.f32 %v11757_v38, %v4511_v24  ;;  %v4527_v3 = vmul.f32 %v4484_v16, %v11306_v4  ;;  %v4502_v43 = vsel %vm4501_vm4, %v11740_v23, %v4498_v48  ;;  %v6427_v48 = vld [vmem:[#allocation3 + $0x7e0] sm:$0xff]  ;;  %v6429_v16 = vld [vmem:[#allocation3 + $0x7e8] sm:$0xff] }
 0x807   :  { %v4528_v45 = vmul.f32 %v5566_v2, %v4431_v49  ;;  %v4507_v11 = vsel %vm4504_vm5, %v4506_v0, %v4502_v43  ;;  %v4518_v4 = vand.u32 2147483647, %v11736_v53  ;;  %v6423_v53 = vld [vmem:[#allocation3 + $0x3a8] sm:$0xff]  ;;  %v6430_v60 = vld [vmem:[#allocation3 + $0x2e0] sm:$0xff] }
 0x808   :  { %v4513_v2 = vadd.f32 %v11757_v38, %v4512_v59  ;;  %v6433_v59 = vld [vmem:[#allocation3 + $0x7a8] sm:$0xff]  ;;  %v6438_v0 = vld [vmem:[#allocation3 + $0x260] sm:$0xff] }
 0x809   :  { %v11805_v28 = vadd.f32 %v4528_v45, %v4526_v41  ;;  %v6420_v41 = vld [vmem:[#allocation3 + $0x3e0] sm:$0xff]  ;;  %v6421_v45 = vld [vmem:[#allocation3 + $0x3e8] sm:$0xff]  ;;  %vm4519_vm9 = vcmp.eq.f32.partialorder %v4518_v4, 8.507059e+37 }
 0x80a   :  { %v4517_v23 = vsel %vm4516_vm8, %v11757_v38, %v4513_v2  ;;  %v6425_v38 = vld [vmem:[#allocation3 + $0x368] sm:$0xff]  ;;  %v6439_v2 = vld [vmem:[#allocation3 + $0x720] sm:$0xff] }
 0x80b   :  { %5569 = vtanh.f32 %v11805_v28  ;;  %v4522_v56 = vsel %vm4519_vm9, %v4521_v26, %v4517_v23  ;;  %v6437_v43 = vld [vmem:[#allocation3 + $0x768] sm:$0xff]  ;;  %v6442_v54 = vld [vmem:[#allocation3 + $0x220] sm:$0xff] }
 0x80c   :  { %v5568_v31 = vpop.eup %5567  ;;  %v6443_v4 = vld [vmem:[#allocation3 + $0x6e0] sm:$0xff]  ;;  %v6444_v23 = vld [vmem:[#allocation3 + $0x228] sm:$0xff] }
 0x80d   :  { %v4529_v62 = vmul.f32 %v5568_v31, %v4446_v14  ;;  %v6431_v31 = vld [vmem:[#allocation3 + $0x7a0] sm:$0xff]  ;;  %v6445_v26 = vld [vmem:[#allocation3 + $0x6e8] sm:$0xff] }
 0x80e   :  { %v6434_v14 = vld [vmem:[#allocation3 + $0x2a0] sm:$0xff] }
 0x80f   :  { %v11819_v36 = vadd.f32 %v4529_v62, %v4527_v3  ;;  %v6435_v3 = vld [vmem:[#allocation3 + $0x760] sm:$0xff]  ;;  %v6436_v62 = vld [vmem:[#allocation3 + $0x2a8] sm:$0xff] }
 0x811   :  { %v5570_v63 = vpop.eup %5569  ;;  %5571 = vtanh.f32 %v11819_v36 }
 0x812   :  { %v11827_v49 = vmul.f32 %v5570_v63, %v4507_v11  ;;  %v6440_v63 = vld [vmem:[#allocation3 + $0x268] sm:$0xff] }
 0x813   :  { %v6441_v11 = vld [vmem:[#allocation3 + $0x728] sm:$0xff] }
 0x814   :  { %4563 = vmatmul.f32.vlgmr.msra.gmra.mxu0 %v11827_v49  ;;  %4603 = vmatmul.f32.vlgmr.msra.gmra.mxu2 %v11827_v49 }
 0x815   :  { %4711 = vmatpush.msra.mxu0 %v6420_v41  ;;  %4751 = vmatpush.msra.mxu2 %v6421_v45  ;;  %v6446_v41 = vld [vmem:[#allocation3 + $0x1e0] sm:$0xff] }
 0x816   :  { %v6447_v45 = vld [vmem:[#allocation3 + $0x6a0] sm:$0xff] }
 0x817   :  { %v5572_v55 = vpop.eup %5571  ;;  %4712 = vmatpush.msra.mxu0 %v6422_v21  ;;  %4752 = vmatpush.msra.mxu2 %v6423_v53  ;;  %v6450_v21 = vld [vmem:[#allocation3 + $0x1a0] sm:$0xff] }
 0x818   :  { %v11832_v24 = vmul.f32 %v5572_v55, %v4522_v56  ;;  %v6448_v55 = vld [vmem:[#allocation3 + $0x1e8] sm:$0xff]  ;;  %v6451_v53 = vld [vmem:[#allocation3 + $0x660] sm:$0xff] }
 0x819   :  { %4713 = vmatpush.msra.mxu0 %v6424_v6  ;;  %4753 = vmatpush.msra.mxu2 %v6425_v38  ;;  %v6449_v56 = vld [vmem:[#allocation3 + $0x6a8] sm:$0xff] }
 0x81a   :  { %4583 = vmatmul.f32.vlgmr.msra.gmra.mxu1 %v11832_v24  ;;  %4623 = vmatmul.f32.vlgmr.msra.gmra.mxu3 %v11832_v24  ;;  %v6452_v6 = vld [vmem:[#allocation3 + $0x1a8] sm:$0xff] }
 0x81b   :  { %4714 = vmatpush.msra.mxu0 %v6426_v20  ;;  %4731 = vmatpush.msra.mxu1 %v6427_v48  ;;  %v6453_v38 = vld [vmem:[#allocation3 + $0x668] sm:$0xff]  ;;  %v6454_v20 = vld [vmem:[#allocation3 + $0x160] sm:$0xff] }
 0x81c   :  { %4754 = vmatpush.msra.mxu2 %v6428_v17  ;;  %4771 = vmatpush.msra.mxu3 %v6429_v16  ;;  %v6455_v48 = vld [vmem:[#allocation3 + $0x620] sm:$0xff]  ;;  %v6456_v17 = vld [vmem:[#allocation3 + $0x168] sm:$0xff] }
 0x81d   :  { %4645 = vmatmul.f32.vlgmr.msrb.gmra.mxu0 %v11827_v49  ;;  %4685 = vmatmul.f32.vlgmr.msrb.gmra.mxu2 %v11827_v49  ;;  %v6457_v16 = vld [vmem:[#allocation3 + $0x628] sm:$0xff] }
 0x81e   :  { %4715 = vmatpush.msra.mxu0 %v6430_v60  ;;  %4732 = vmatpush.msra.mxu1 %v6431_v31  ;;  %v6458_v60 = vld [vmem:[#allocation3 + $0x120] sm:$0xff] }
 0x81f   :  { %4755 = vmatpush.msra.mxu2 %v6432_v13  ;;  %4772 = vmatpush.msra.mxu3 %v6433_v59  ;;  %v6459_v31 = vld [vmem:[#allocation3 + $0x5e0] sm:$0xff]  ;;  %v6460_v13 = vld [vmem:[#allocation3 + $0x128] sm:$0xff] }
 0x820   :  { %4716 = vmatpush.msra.mxu0 %v6434_v14  ;;  %4733 = vmatpush.msra.mxu1 %v6435_v3  ;;  %v6461_v59 = vld [vmem:[#allocation3 + $0x5e8] sm:$0xff]  ;;  %v6462_v14 = vld [vmem:[#allocation3 + $0xe0] sm:$0xff] }
 0x821   :  { %4756 = vmatpush.msra.mxu2 %v6436_v62  ;;  %4773 = vmatpush.msra.mxu3 %v6437_v43  ;;  %v6463_v3 = vld [vmem:[#allocation3 + $0x5a0] sm:$0xff]  ;;  %v6464_v62 = vld [vmem:[#allocation3 + $0x5a8] sm:$0xff] }
 0x822   :  { %4717 = vmatpush.msra.mxu0 %v6438_v0  ;;  %4734 = vmatpush.msra.mxu1 %v6439_v2  ;;  %v6465_v43 = vld [vmem:[#allocation3 + $0x560] sm:$0xff]  ;;  %v6466_v0 = vld [vmem:[#allocation3 + $0x568] sm:$0xff] }
 0x823   :  { %4757 = vmatpush.msra.mxu2 %v6440_v63  ;;  %4774 = vmatpush.msra.mxu3 %v6441_v11  ;;  %v6467_v2 = vld [vmem:[#allocation3 + $0x520] sm:$0xff]  ;;  %v6468_v63 = vld [vmem:[#allocation3 + $0x528] sm:$0xff] }
 0x824   :  { %4665 = vmatmul.f32.vlgmr.msrb.gmra.mxu1 %v11832_v24  ;;  %4705 = vmatmul.f32.vlgmr.msrb.gmra.mxu3 %v11832_v24  ;;  %v14453_v11 = vld [vmem:[#allocation226_spill] sm:$0xff] }
 0x825   :  { %4718 = vmatpush.msra.mxu0 %v6442_v54  ;;  %4735 = vmatpush.msra.mxu1 %v6443_v4  ;;  %v14454_v54 = vld [vmem:[#allocation227_spill] sm:$0xff] }
 0x826   :  { %4758 = vmatpush.msra.mxu2 %v6444_v23  ;;  %4775 = vmatpush.msra.mxu3 %v6445_v26  ;;  %v14455_v4 = vld [vmem:[#allocation107_spill] sm:$0xff]  ;;  %v14456_v23 = vld [vmem:[#allocation228_spill] sm:$0xff]  ;;  %v14457_v26 = vld [vmem:[#allocation109_spill] sm:$0xff] }
 0x827   :  { %4719 = vmatpush.msra.mxu0 %v6446_v41  ;;  %4736 = vmatpush.msra.mxu1 %v6447_v45  ;;  %v14458_v41 = vld [vmem:[#allocation114_spill] sm:$0xff]  ;;  %v14459_v45 = vld [vmem:[#allocation116_spill] sm:$0xff] }
 0x828   :  { %4759 = vmatpush.msra.mxu2 %v6448_v55  ;;  %4776 = vmatpush.msra.mxu3 %v6449_v56  ;;  %v14460_v55 = vld [vmem:[#allocation111_spill] sm:$0xff]  ;;  %v14461_v56 = vld [vmem:[#allocation28_spill] sm:$0xff] }
 0x829   :  { %4720 = vmatpush.msra.mxu0 %v6450_v21  ;;  %4737 = vmatpush.msra.mxu1 %v6451_v53  ;;  %v14462_v21 = vld [vmem:[#allocation26_spill] sm:$0xff]  ;;  %v14463_v53 = vld [vmem:[#allocation29_spill] sm:$0xff] }
 0x82a   :  { %4760 = vmatpush.msra.mxu2 %v6452_v6  ;;  %4777 = vmatpush.msra.mxu3 %v6453_v38  ;;  %v14464_v6 = vld [vmem:[#allocation27_spill] sm:$0xff]  ;;  %v14465_v38 = vld [vmem:[#allocation58_spill] sm:$0xff] }
 0x82b   :  { %4721 = vmatpush.msra.mxu0 %v6454_v20  ;;  %4738 = vmatpush.msra.mxu1 %v6455_v48  ;;  %v14466_v20 = vld [vmem:[#allocation59_spill] sm:$0xff]  ;;  %v14467_v48 = vld [vmem:[#allocation60_spill] sm:$0xff] }
 0x82c   :  { %4761 = vmatpush.msra.mxu2 %v6456_v17  ;;  %4778 = vmatpush.msra.mxu3 %v6457_v16 }
 0x82d   :  { %4722 = vmatpush.msra.mxu0 %v6458_v60  ;;  %4739 = vmatpush.msra.mxu1 %v6459_v31 }
 0x82e   :  { %4762 = vmatpush.msra.mxu2 %v6460_v13  ;;  %4779 = vmatpush.msra.mxu3 %v6461_v59  ;;  %v14468_v13 = vld [vmem:[#allocation42_spill] sm:$0xff] }
 0x82f   :  { %4723 = vmatpush.msra.mxu0 %v6462_v14  ;;  %4740 = vmatpush.msra.mxu1 %v6463_v3 }
 0x830   :  { %4763 = vmatpush.msra.mxu2 %v11371_v18  ;;  %4780 = vmatpush.msra.mxu3 %v6464_v62  ;;  %v6469_v18 = vld [vmem:[#allocation3 + $0x4e0] sm:$0xff] }
 0x831   :  { %4724 = vmatpush.msra.mxu0 %v11375_v46  ;;  %4741 = vmatpush.msra.mxu1 %v6465_v43  ;;  %v6470_v46 = vld [vmem:[#allocation3 + $0x4e8] sm:$0xff] }
 0x832   :  { %4764 = vmatpush.msra.mxu2 %v11379_v61  ;;  %4781 = vmatpush.msra.mxu3 %v6466_v0  ;;  %v6471_v61 = vld [vmem:[#allocation3 + $0x4a0] sm:$0xff] }
 0x833   :  { %4725 = vmatpush.msra.mxu0 %v11383_v9  ;;  %4742 = vmatpush.msra.mxu1 %v6467_v2  ;;  %v6472_v9 = vld [vmem:[#allocation3 + $0x4a8] sm:$0xff] }
 0x834   :  { %4765 = vmatpush.msra.mxu2 %v11387_v32  ;;  %4782 = vmatpush.msra.mxu3 %v6468_v63  ;;  %v6473_v32 = vld [vmem:[#allocation3 + $0x460] sm:$0xff] }
 0x835   :  { %4726 = vmatpush.msra.mxu0 %v11391_v8  ;;  %4743 = vmatpush.msra.mxu1 %v6469_v18  ;;  %v6474_v8 = vld [vmem:[#allocation3 + $0x468] sm:$0xff] }
 0x836   :  { %4766 = vmatpush.msra.mxu2 %v11395_v44  ;;  %4783 = vmatpush.msra.mxu3 %v6470_v46  ;;  %v6475_v44 = vld [vmem:[#allocation3 + $0x420] sm:$0xff]  ;;  %v14469_v46 = vld [vmem:[#allocation44_spill] sm:$0xff] }
 0x837   :  { %4727 = vmatmul.f32.vlgmr.msra.gmra.mxu0 %v11827_v49  ;;  %4767 = vmatmul.f32.vlgmr.msra.gmra.mxu2 %v11827_v49 }
 0x838   :  { %4793 = vmatpush.msrb.mxu0 %v11401_v1  ;;  %4833 = vmatpush.msrb.mxu2 %v11404_v39  ;;  %v6476_v1 = vld [vmem:[#allocation3 + $0x428] sm:$0xff]  ;;  %v6477_v39 = vld [vmem:[#allocation3 + $0x7f0] sm:$0xff] }
 0x839   :  { %4744 = vmatpush.msra.mxu1 %v6471_v61  ;;  %4784 = vmatpush.msra.mxu3 %v6472_v9  ;;  %v14470_v9 = vld [vmem:[#allocation43_spill] sm:$0xff] }
 0x83a   :  { %4794 = vmatpush.msrb.mxu0 %v11409_v25  ;;  %4834 = vmatpush.msrb.mxu2 %v11412_v34  ;;  %v14430_v25 = vld [vmem:[#allocation93_spill] sm:$0xff]  ;;  %v14431_v34 = vld [vmem:[#allocation98_spill] sm:$0xff] }
 0x83b   :  { %4745 = vmatpush.msra.mxu1 %v6473_v32  ;;  %4785 = vmatpush.msra.mxu3 %v6474_v8  ;;  %v14471_v32 = vld [vmem:[#allocation45_spill] sm:$0xff] }
 0x83c   :  { %4795 = vmatpush.msrb.mxu0 %v11417_v40  ;;  %4835 = vmatpush.msrb.mxu2 %v11420_v42  ;;  %v14432_v40 = vld [vmem:[#allocation100_spill] sm:$0xff]  ;;  %v14433_v42 = vld [vmem:[#allocation95_spill] sm:$0xff] }
 0x83d   :  { %4746 = vmatpush.msra.mxu1 %v6475_v44  ;;  %4786 = vmatpush.msra.mxu3 %v6476_v1 }
 0x83e   :  { %4747 = vmatmul.f32.vlgmr.msra.gmra.mxu1 %v11832_v24  ;;  %4787 = vmatmul.f32.vlgmr.msra.gmra.mxu3 %v11832_v24 }
 0x83f   :  { %4796 = vmatpush.msrb.mxu0 %v11427_v50  ;;  %4813 = vmatpush.msrb.mxu1 %v6477_v39  ;;  %v14434_v50 = vld [vmem:[#allocation97_spill] sm:$0xff] }
 0x840   :  { %4836 = vmatpush.msrb.mxu2 %v11431_v35  ;;  %4853 = vmatpush.msrb.mxu3 %v11434_v51  ;;  %v14435_v35 = vld [vmem:[#allocation102_spill] sm:$0xff]  ;;  %v14436_v51 = vld [vmem:[#allocation104_spill] sm:$0xff] }
 0x841   :  { %4797 = vmatpush.msrb.mxu0 %v11437_v33  ;;  %4814 = vmatpush.msrb.mxu1 %v11440_v27  ;;  %v14437_v33 = vld [vmem:[#allocation99_spill] sm:$0xff]  ;;  %v14438_v27 = vld [vmem:[#allocation101_spill] sm:$0xff] }
 0x842   :  { %4837 = vmatpush.msrb.mxu2 %v11443_v58  ;;  %4854 = vmatpush.msrb.mxu3 %v11446_v7  ;;  %v14439_v58 = vld [vmem:[#allocation106_spill] sm:$0xff]  ;;  %v14440_v7 = vld [vmem:[#allocation108_spill] sm:$0xff] }
 0x843   :  { %4798 = vmatpush.msrb.mxu0 %v11449_v47  ;;  %4815 = vmatpush.msrb.mxu1 %v11452_v30  ;;  %v14441_v47 = vld [vmem:[#allocation103_spill] sm:$0xff]  ;;  %v14442_v30 = vld [vmem:[#allocation105_spill] sm:$0xff] }
 0x844   :  { %4838 = vmatpush.msrb.mxu2 %v11455_v5  ;;  %4855 = vmatpush.msrb.mxu3 %v11458_v37  ;;  %v14443_v5 = vld [vmem:[#allocation110_spill] sm:$0xff]  ;;  %v14444_v37 = vld [vmem:[#allocation112_spill] sm:$0xff] }
 0x845   :  { %4799 = vmatpush.msrb.mxu0 %v11461_v52  ;;  %4816 = vmatpush.msrb.mxu1 %v11464_v57  ;;  %v14445_v52 = vld [vmem:[#allocation218_spill] sm:$0xff]  ;;  %v14446_v57 = vld [vmem:[#allocation219_spill] sm:$0xff] }
 0x846   :  { %4839 = vmatpush.msrb.mxu2 %v11467_v12  ;;  %4856 = vmatpush.msrb.mxu3 %v11470_v22  ;;  %v14447_v12 = vld [vmem:[#allocation220_spill] sm:$0xff]  ;;  %v14448_v22 = vld [vmem:[#allocation221_spill] sm:$0xff] }
 0x847   :  { %4800 = vmatpush.msrb.mxu0 %v11473_v15  ;;  %4817 = vmatpush.msrb.mxu1 %v11476_v19  ;;  %v14449_v15 = vld [vmem:[#allocation222_spill] sm:$0xff]  ;;  %v14450_v19 = vld [vmem:[#allocation223_spill] sm:$0xff] }
 0x848   :  { %4840 = vmatpush.msrb.mxu2 %v11479_v29  ;;  %4857 = vmatpush.msrb.mxu3 %v11482_v10  ;;  %v14451_v29 = vld [vmem:[#allocation224_spill] sm:$0xff]  ;;  %v14452_v10 = vld [vmem:[#allocation225_spill] sm:$0xff] }
 0x849   :  { %4801 = vmatpush.msrb.mxu0 %v14430_v25  ;;  %4818 = vmatpush.msrb.mxu1 %v14431_v34 }
 0x84a   :  { %4841 = vmatpush.msrb.mxu2 %v14432_v40  ;;  %4858 = vmatpush.msrb.mxu3 %v14433_v42  ;;  %v14472_v42 = vld [vmem:[#allocation78_spill] sm:$0xff] }
 0x84b   :  { %4802 = vmatpush.msrb.mxu0 %v14434_v50  ;;  %4819 = vmatpush.msrb.mxu1 %v14435_v35  ;;  %v5335_v50 = vmul.f32 -1.442695, %v14472_v42 }
 0x84c   :  { %4842 = vmatpush.msrb.mxu2 %v14436_v51  ;;  %4859 = vmatpush.msrb.mxu3 %v14437_v33  ;;  %v14473_v51 = vld [vmem:[#allocation79_spill] sm:$0xff] }
 0x84d   :  { %4803 = vmatpush.msrb.mxu0 %v14438_v27  ;;  %4820 = vmatpush.msrb.mxu1 %v14439_v58  ;;  %v5336_v33 = vmul.f32 -1.442695, %v14473_v51 }
 0x84e   :  { %4843 = vmatpush.msrb.mxu2 %v14440_v7  ;;  %4860 = vmatpush.msrb.mxu3 %v14441_v47 }
 0x84f   :  { %4804 = vmatpush.msrb.mxu0 %v14442_v30  ;;  %4821 = vmatpush.msrb.mxu1 %v14443_v5 }
 0x850   :  { %4844 = vmatpush.msrb.mxu2 %v14444_v37  ;;  %4861 = vmatpush.msrb.mxu3 %v14445_v52  ;;  %v14474_v52 = vld [vmem:[#allocation74_spill] sm:$0xff] }
 0x851   :  { %4805 = vmatpush.msrb.mxu0 %v14446_v57  ;;  %4822 = vmatpush.msrb.mxu1 %v14447_v12 }
 0x852   :  { %4845 = vmatpush.msrb.mxu2 %v14448_v22  ;;  %4862 = vmatpush.msrb.mxu3 %v14449_v15  ;;  %v14475_v15 = vld [vmem:[#allocation75_spill] sm:$0xff] }
 0x853   :  { %4806 = vmatpush.msrb.mxu0 %v14450_v19  ;;  %4823 = vmatpush.msrb.mxu1 %v14451_v29 }
 0x854   :  { %4846 = vmatpush.msrb.mxu2 %v14452_v10  ;;  %4863 = vmatpush.msrb.mxu3 %v14453_v11 }
 0x855   :  { %4807 = vmatpush.msrb.mxu0 %v14454_v54  ;;  %4824 = vmatpush.msrb.mxu1 %v14455_v4 }
 0x856   :  { %4847 = vmatpush.msrb.mxu2 %v14456_v23  ;;  %4864 = vmatpush.msrb.mxu3 %v14457_v26  ;;  %v14476_v23 = vld [vmem:[#allocation80_spill] sm:$0xff] }
 0x857   :  { %4808 = vmatpush.msrb.mxu0 %v14458_v41  ;;  %4825 = vmatpush.msrb.mxu1 %v14459_v45  ;;  %v5337_v26 = vmul.f32 -1.442695, %v14476_v23 }
 0x858   :  { %4848 = vmatpush.msrb.mxu2 %v14460_v55  ;;  %4865 = vmatpush.msrb.mxu3 %v14461_v56 }
 0x859   :  { %4809 = vmatmul.f32.vlgmr.msrb.gmra.mxu0 %v11827_v49  ;;  %4849 = vmatmul.f32.vlgmr.msrb.gmra.mxu2 %v11827_v49 }
 0x85a   :  { %4826 = vmatpush.msrb.mxu1 %v14462_v21  ;;  %4866 = vmatpush.msrb.mxu3 %v14463_v53  ;;  %v14477_v21 = vld [vmem:[#allocation81_spill] sm:$0xff] }
 0x85b   :  { %v5338_v53 = vmul.f32 -1.442695, %v14477_v21 }
 0x85c   :  { %4827 = vmatpush.msrb.mxu1 %v14464_v6  ;;  %4867 = vmatpush.msrb.mxu3 %v14465_v38 }
 0x85e   :  { %4828 = vmatpush.msrb.mxu1 %v14466_v20  ;;  %4868 = vmatpush.msrb.mxu3 %v14467_v48 }
 0x85f   :  { %4829 = vmatmul.f32.vlgmr.msrb.gmra.mxu1 %v11832_v24  ;;  %4869 = vmatmul.f32.vlgmr.msrb.gmra.mxu3 %v11832_v24 }
 0x891   :  { %v4564_v16 = vpop.f32.mrf.mxu0 }
 0x897   :  { %v4584_v17 = vpop.f32.mrf.mxu1  ;;  %v4604_v49 = vpop.f32.mrf.mxu2 }
 0x898   :  { %v4585_v31 = vadd.f32 %v4584_v17, %v4564_v16 }
 0x89a   :  { %v4627_v59 = vadd.f32 %v4585_v31, %v14468_v13  ;;  %v4646_v3 = vpop.f32.mrf.mxu0 }
 0x89c   :  { %v5329_v0 = vmul.f32 -1.442695, %v4627_v59 }
 0x89d   :  { %v4624_v60 = vpop.f32.mrf.mxu3 }
 0x89e   :  { %v4625_v2 = vadd.f32 %v4624_v60, %v4604_v49  ;;  %5573 = vpow2.f32 %v5329_v0 }
 0x8a0   :  { %v4686_v63 = vpop.f32.mrf.mxu2  ;;  %v4628_v24 = vadd.f32 %v4625_v2, %v14470_v9 }
 0x8a1   :  { %v4666_v14 = vpop.f32.mrf.mxu1 }
 0x8a2   :  { %v4667_v62 = vadd.f32 %v4666_v14, %v4646_v3  ;;  %v5330_v1 = vmul.f32 -1.442695, %v4628_v24 }
 0x8a4   :  { %v4709_v61 = vadd.f32 %v4667_v62, %v14469_v46  ;;  %v5574_v39 = vpop.eup %5573 }
 0x8a5   :  { %v11922_v34 = vadd.f32 1.0, %v5574_v39 }
 0x8a6   :  { %v5331_v44 = vmul.f32 -1.442695, %v4709_v61 }
 0x8a7   :  { %v4706_v43 = vpop.f32.mrf.mxu3  ;;  %v4892_v31 = vand.u32 2147483647, %v11922_v34  ;;  %v4894_v14 = vand.u32 2147483648, %v11922_v34  ;;  %vm4888_vm10 = vweird.f32 %v11922_v34 }
 0x8a8   :  { %v4707_v18 = vadd.f32 %v4706_v43, %v4686_v63  ;;  %5575 = vpow2.f32 %v5331_v44 }
 0x8a9   :  { %5577 = vpow2.f32 %v5330_v1  ;;  %vm11974_vm12 = vcmp.eq.f32.partialorder %v4892_v31, 8.507059e+37  ;;  %v4895_v24 = vor.u32 1.1754944e-38, %v4894_v14 }
 0x8aa   :  { %v4710_v8 = vadd.f32 %v4707_v18, %v14471_v32 }
 0x8ac   :  { %v5332_v25 = vmul.f32 -1.442695, %v4710_v8 }
 0x8ae   :  { %5579 = vpow2.f32 %v5332_v25  ;;  %v5576_v58 = vpop.eup %5575 }
 0x8af   :  { %5581 = vrcp.f32 %v11922_v34  ;;  %v5578_v7 = vpop.eup %5577  ;;  %v11927_v37 = vadd.f32 1.0, %v5576_v58 }
 0x8b0   :  { %5583 = vpow2.f32 %v5335_v50  ;;  %v11930_v22 = vadd.f32 1.0, %v5578_v7 }
 0x8b1   :  { %5585 = vpow2.f32 %v5336_v33  ;;  %v4932_v25 = vand.u32 2147483648, %v11927_v37  ;;  %vm4926_vm15 = vweird.f32 %v11927_v37 }
 0x8b2   :  { %5587 = vrcp.f32 %v11927_v37  ;;  %v4909_v61 = vand.u32 2147483648, %v11930_v22  ;;  %v4907_v50 = vand.u32 2147483647, %v11930_v22  ;;  %vm4903_vm0 = vweird.f32 %v11930_v22 }
 0x8b3   :  { %5589 = vrcp.f32 %v11930_v22 }
 0x8b4   :  { %v4728_v35 = vpop.f32.mrf.mxu0  ;;  %v5580_v5 = vpop.eup %5579  ;;  %v12004_v58 = vor.u32 1.1754944e-38, %v4909_v61 }
 0x8b5   :  { %v11933_v29 = vpop.eup %5581  ;;  %v11935_v10 = vadd.f32 1.0, %v5580_v5 }
 0x8b6   :  { %v5584_v11 = vpop.eup %5583  ;;  %v4884_v45 = vmul.f32 %v11933_v29, %v11922_v34  ;;  %vm4889_vm11 = vweird.f32 %v11933_v29 }
 0x8b7   :  { %v5586_v4 = vpop.eup %5585  ;;  %5591 = vrcp.f32 %v11935_v10  ;;  %v11943_v55 = vadd.f32 1.0, %v5584_v11  ;;  %vm11992_vm13 = vmor %vm4888_vm10, %vm4889_vm11  ;;  %v4947_v51 = vand.u32 2147483648, %v11935_v10  ;;  %vm4941_vm1 = vweird.f32 %v11935_v10 }
 0x8b8   :  { %v11945_v56 = vadd.f32 1.0, %v5586_v4  ;;  %v11948_v6 = vpop.eup %5587  ;;  %v4885_v38 = vsub.f32 1.0, %v4884_v45 }
 0x8b9   :  { %v11951_v20 = vpop.eup %5589  ;;  %v4922_v17 = vmul.f32 %v11948_v6, %v11927_v37  ;;  %vm4927_vm14 = vweird.f32 %v11948_v6  ;;  %vm5020_vm7 = vweird.f32 %v11943_v55 }
 0x8ba   :  { %v4768_v47 = vpop.f32.mrf.mxu2  ;;  %v4886_v49 = vmul.f32 %v11933_v29, %v4885_v38  ;;  %v4899_v59 = vmul.f32 %v11951_v20, %v11930_v22  ;;  %vm4904_vm3 = vweird.f32 %v11951_v20  ;;  %vm12026_vm4 = vmor %vm4926_vm15, %vm4927_vm14  ;;  %vm5035_vm9 = vweird.f32 %v11945_v56 }
 0x8bb   :  { %v4748_v40 = vpop.f32.mrf.mxu1  ;;  %v4923_v62 = vsub.f32 1.0, %v4922_v17  ;;  %vm12101_vm14 = vmor %vm4903_vm0, %vm4904_vm3 }
 0x8bc   :  { %v4749_v27 = vadd.f32 %v4748_v40, %v4728_v35  ;;  %v4887_v18 = vadd.f32 %v11933_v29, %v4886_v49  ;;  %v4900_v9 = vsub.f32 1.0, %v4899_v59 }
 0x8bd   :  { %v11954_v48 = vpop.eup %5591  ;;  %v4924_v44 = vmul.f32 %v11948_v6, %v4923_v62 }
 0x8be   :  { %v4791_v57 = vadd.f32 %v4749_v27, %v14474_v52  ;;  %v4937_v2 = vmul.f32 %v11954_v48, %v11935_v10  ;;  %v4891_v33 = vsel %vm11992_vm13, %v11933_v29, %v4887_v18  ;;  %v4930_v27 = vand.u32 2147483647, %v11927_v37 }
 0x8bf   :  { %v4901_v34 = vmul.f32 %v11951_v20, %v4900_v9  ;;  %v4933_v52 = vor.u32 1.1754944e-38, %v4932_v25  ;;  %v4896_v4 = vsel %vm11974_vm12, %v4895_v24, %v4891_v33  ;;  %vm4942_vm5 = vweird.f32 %v11954_v48  ;;  %v14493_v24 = vld [vmem:[#allocation82_spill] sm:$0xff]  ;;  %v14496_v25 = vld [vmem:[#allocation83_spill] sm:$0xff] }
 0x8c0   :  { %v5333_v54 = vmul.f32 -1.442695, %v4791_v57  ;;  %v4938_v40 = vsub.f32 1.0, %v4937_v2  ;;  %vm12019_vm2 = vcmp.eq.f32.partialorder %v4930_v27, 8.507059e+37  ;;  %vm12062_vm11 = vmor %vm4941_vm1, %vm4942_vm5  ;;  %v5041_v18 = vand.u32 2147483648, %v11945_v56 }
 0x8c1   :  { %v4788_v30 = vpop.f32.mrf.mxu3  ;;  %v4902_v23 = vadd.f32 %v11951_v20, %v4901_v34  ;;  %v5039_v9 = vand.u32 2147483647, %v11945_v56  ;;  %vm4908_vm1 = vcmp.eq.f32.partialorder %v4907_v50, 8.507059e+37 }
 0x8c2   :  { %v4789_v12 = vadd.f32 %v4788_v30, %v4768_v47  ;;  %5593 = vpow2.f32 %v5333_v54  ;;  %v4925_v47 = vadd.f32 %v11948_v6, %v4924_v44  ;;  %v4945_v30 = vand.u32 2147483647, %v11935_v10 }
 0x8c3   :  { %5595 = vpow2.f32 %v5337_v26  ;;  %v4939_v57 = vmul.f32 %v11954_v48, %v4938_v40  ;;  %v4948_v54 = vor.u32 1.1754944e-38, %v4947_v51  ;;  %v14497_v40 = vld [vmem:[#allocation77_spill] sm:$0xff]  ;;  %v4906_v27 = vsel %vm12101_vm14, %v11951_v20, %v4902_v23 }
 0x8c4   :  { %v4792_v19 = vadd.f32 %v4789_v12, %v14475_v15  ;;  %v4929_v21 = vsel %vm12026_vm4, %v11948_v6, %v4925_v47  ;;  %vm12039_vm6 = vcmp.eq.f32.partialorder %v4945_v30, 8.507059e+37  ;;  %v5026_v6 = vand.u32 2147483648, %v11943_v55 }
 0x8c5   :  { %v4934_v59 = vsel %vm12019_vm2, %v4933_v52, %v4929_v21  ;;  %vm5040_vm0 = vcmp.eq.f32.partialorder %v5039_v9, 8.507059e+37  ;;  %v4911_v23 = vsel %vm4908_vm1, %v12004_v58, %v4906_v27  ;;  %v5091_v9 = vld [vmem:[%s12202_s4] sm:$0x3] }
 0x8c6   :  { %v5334_v41 = vmul.f32 -1.442695, %v4792_v19  ;;  %v5027_v51 = vor.u32 1.1754944e-38, %v5026_v6  ;;  %v4991_v30 = vmul.f32 %v4934_v59, %v11805_v28 }
 0x8c8   :  { %5597 = vpow2.f32 %v5334_v41  ;;  %v5594_v16 = vpop.eup %5593  ;;  %v14486_v41 = vld [vmem:[#allocation76_spill] sm:$0xff] }
 0x8c9   :  { %5599 = vrcp.f32 %v11943_v55  ;;  %v5596_v60 = vpop.eup %5595  ;;  %v11965_v43 = vadd.f32 1.0, %v5594_v16  ;;  %v4940_v16 = vadd.f32 %v11954_v48, %v4939_v57 }
 0x8ca   :  { %5601 = vrcp.f32 %v11945_v56  ;;  %v11981_v8 = vadd.f32 1.0, %v5596_v60 }
 0x8cb   :  { %5603 = vpow2.f32 %v5338_v53  ;;  %vm4964_vm2 = vweird.f32 %v11965_v43 }
 0x8cc   :  { %5605 = vrcp.f32 %v11965_v43  ;;  %vm5058_vm5 = vweird.f32 %v11981_v8 }
 0x8cd   :  { %5607 = vrcp.f32 %v11981_v8 }
 0x8ce   :  { %v5598_v13 = vpop.eup %5597 }
 0x8cf   :  { %v11963_v3 = vpop.eup %5599  ;;  %v11985_v1 = vadd.f32 1.0, %v5598_v13 }
 0x8d0   :  { %v11967_v0 = vpop.eup %5601  ;;  %v5016_v32 = vmul.f32 %v11963_v3, %v11943_v55  ;;  %vm5021_vm8 = vweird.f32 %v11963_v3 }
 0x8d1   :  { %v5604_v63 = vpop.eup %5603  ;;  %v5031_v39 = vmul.f32 %v11967_v0, %v11945_v56  ;;  %5609 = vrcp.f32 %v11985_v1  ;;  %vm5036_vm10 = vweird.f32 %v11967_v0  ;;  %vm12075_vm12 = vmor %vm5020_vm7, %vm5021_vm8 }
 0x8d2   :  { %v11997_v35 = vadd.f32 1.0, %v5604_v63  ;;  %v5017_v7 = vsub.f32 1.0, %v5016_v32  ;;  %v12016_v19 = vpop.eup %5605  ;;  %v5024_v63 = vand.u32 2147483647, %v11943_v55  ;;  %v4944_v32 = vsel %vm12062_vm11, %v11954_v48, %v4940_v16  ;;  %vm12091_vm13 = vmor %vm5035_vm9, %vm5036_vm10 }
 0x8d3   :  { %v5032_v5 = vsub.f32 1.0, %v5031_v39  ;;  %v12044_v17 = vpop.eup %5607  ;;  %v4960_v60 = vmul.f32 %v12016_v19, %v11965_v43  ;;  %v4949_v57 = vsel %vm12039_vm6, %v4948_v54, %v4944_v32  ;;  %v4968_v54 = vand.u32 2147483647, %v11965_v43 }
 0x8d4   :  { %5611 = vrcp.f32 %v11997_v35  ;;  %v5018_v26 = vmul.f32 %v11963_v3, %v5017_v7  ;;  %v5054_v56 = vmul.f32 %v12044_v17, %v11981_v8  ;;  %vm5025_vm15 = vcmp.eq.f32.partialorder %v5024_v63, 8.507059e+37 }
 0x8d5   :  { %v5033_v38 = vmul.f32 %v11967_v0, %v5032_v5  ;;  %v4961_v44 = vsub.f32 1.0, %v4960_v60  ;;  %v5042_v7 = vor.u32 1.1754944e-38, %v5041_v18  ;;  %vm4965_vm3 = vweird.f32 %v12016_v19 }
 0x8d6   :  { %v4810_v12 = vpop.f32.mrf.mxu0  ;;  %v5019_v2 = vadd.f32 %v11963_v3, %v5018_v26  ;;  %v4970_v26 = vand.u32 2147483648, %v11965_v43  ;;  %vm5059_vm6 = vweird.f32 %v12044_v17  ;;  %v5064_v16 = vand.u32 2147483648, %v11981_v8  ;;  %vm12145_vm9 = vmor %vm4964_vm2, %vm4965_vm3 }
 0x8d7   :  { %v12051_v49 = vpop.eup %5609  ;;  %v5034_v61 = vadd.f32 %v11967_v0, %v5033_v38  ;;  %v4962_v20 = vmul.f32 %v12016_v19, %v4961_v44  ;;  %v5062_v38 = vand.u32 2147483647, %v11981_v8  ;;  %vm5073_vm7 = vweird.f32 %v11997_v35  ;;  %vm12152_vm10 = vmor %vm5058_vm5, %vm5059_vm6 }
 0x8d8   :  { %v4975_v39 = vmul.f32 %v12051_v49, %v11985_v1  ;;  %v5023_v34 = vsel %vm12075_vm12, %v11963_v3, %v5019_v2  ;;  %vm4980_vm4 = vweird.f32 %v12051_v49  ;;  %v5079_v59 = vand.u32 2147483648, %v11997_v35 }
 0x8d9   :  { %v5038_v5 = vsel %vm12091_vm13, %v11967_v0, %v5034_v61  ;;  %v5028_v3 = vsel %vm5025_vm15, %v5027_v51, %v5023_v34  ;;  %v5077_v2 = vand.u32 2147483647, %v11997_v35  ;;  %v4985_v43 = vand.u32 2147483648, %v11985_v1 }
 0x8da   :  { %v12056_v31 = vpop.eup %5611  ;;  %v5043_v0 = vsel %vm5040_vm0, %v5042_v7, %v5038_v5  ;;  %vm4969_vm12 = vcmp.eq.f32.partialorder %v4968_v54, 8.507059e+37  ;;  %vm4979_vm13 = vweird.f32 %v11985_v1  ;;  %v4971_v61 = vor.u32 1.1754944e-38, %v4970_v26 }
 0x8db   :  { %v5069_v33 = vmul.f32 %v12056_v31, %v11997_v35  ;;  %vm5074_vm8 = vweird.f32 %v12056_v31  ;;  %vm12170_vm14 = vmor %vm4979_vm13, %vm4980_vm4  ;;  %vm12177_vm15 = vcmp.eq.f32.partialorder %v5062_v38, 8.507059e+37  ;;  %v5080_v32 = vor.u32 1.1754944e-38, %v5079_v59 }
 0x8dc   :  { %v4830_v15 = vpop.f32.mrf.mxu1  ;;  %v4850_v14 = vpop.f32.mrf.mxu2  ;;  %vm12159_vm11 = vmor %vm5073_vm7, %vm5074_vm8  ;;  %vm5078_vm0 = vcmp.eq.f32.partialorder %v5077_v2, 8.507059e+37  ;;  %v5093_v51 = vperm.slane %v5091_v9, 0 }
 0x8dd   :  { %v4831_v29 = vadd.f32 %v4830_v15, %v4810_v12  ;;  %v4976_v12 = vsub.f32 1.0, %v4975_v39  ;;  %v5070_v28 = vsub.f32 1.0, %v5069_v33 }
 0x8df   :  { %v4873_v45 = vadd.f32 %v4831_v29, %v14486_v41  ;;  %v5055_v29 = vsub.f32 1.0, %v5054_v56  ;;  %v4963_v41 = vadd.f32 %v12016_v19, %v4962_v20  ;;  %v4977_v22 = vmul.f32 %v12051_v49, %v4976_v12 }
 0x8e0   :  { %v5094_v56 = vperm.slane %v5091_v9, 1 }
 0x8e1   :  { %5613 = vtanh.f32 %v4873_v45  ;;  %v5056_v58 = vmul.f32 %v12044_v17, %v5055_v29  ;;  %v4978_v13 = vadd.f32 %v12051_v49, %v4977_v22  ;;  %v4967_v18 = vsel %vm12145_vm9, %v12016_v19, %v4963_v41 }
 0x8e2   :  { %v4870_v62 = vpop.f32.mrf.mxu3  ;;  %5615 = vtanh.f32 %v14493_v24  ;;  %v5065_v19 = vor.u32 1.1754944e-38, %v5064_v16  ;;  %v6535_v29 = vmov 0  }
 0x8e3   :  { %v4871_v46 = vadd.f32 %v4870_v62, %v4850_v14  ;;  %5617 = vtanh.f32 %v14496_v25  ;;  %v5057_v8 = vadd.f32 %v12044_v17, %v5056_v58  ;;  %v4972_v25 = vsel %vm4969_vm12, %v4971_v61, %v4967_v18  ;;  %5346 = vset.pattern.permute.xlu1 %v6535_v29  ;;  %5347 = vset.pattern.permute.xlu0 %v6535_v29 }
 0x8e5   :  { %v4874_v42 = vadd.f32 %v4871_v46, %v14497_v40  ;;  %v4983_v46 = vand.u32 2147483647, %v11985_v1  ;;  %v4982_v1 = vsel %vm12170_vm14, %v12051_v49, %v4978_v13  ;;  %v5061_v44 = vsel %vm12152_vm10, %v12044_v17, %v5057_v8  ;;  %v5102_v49 = vld [vmem:[%s12203_s5] sm:$0x3] }
 0x8e6   :  { %v4986_v40 = vor.u32 1.1754944e-38, %v4985_v43  ;;  %v5066_v17 = vsel %vm12177_vm15, %v5065_v19, %v5061_v44  ;;  %v5104_v7 = vperm.slane %v5102_v49, 0 }
 0x8e7   :  { %v5614_v47 = vpop.eup %5613  ;;  %5619 = vtanh.f32 %v4874_v42  ;;  %vm4984_vm1 = vcmp.eq.f32.partialorder %v4983_v46, 8.507059e+37 }
 0x8e8   :  { %v4993_v52 = vmul.f32 %v5614_v47, %v4896_v4  ;;  %v5616_v15 = vpop.eup %5615  ;;  %v4992_v4 = vmul.f32 %v4949_v57, %v11819_v36  ;;  %v5071_v36 = vmul.f32 %v12056_v31, %v5070_v28  ;;  %v4987_v27 = vsel %vm4984_vm1, %v4986_v40, %v4982_v1 }
 0x8e9   :  { %v5618_v11 = vpop.eup %5617  ;;  %v5085_v50 = vmul.f32 %v5616_v15, %v5028_v3  ;;  %v5105_v47 = vperm.slane %v5102_v49, 1 }
 0x8ea   :  { %v4995_v37 = vadd.f32 %v4993_v52, %v4991_v30  ;;  %v5086_v21 = vmul.f32 %v5618_v11, %v5043_v0  ;;  %v5072_v62 = vadd.f32 %v12056_v31, %v5071_v36  ;;  %v5348_v11 = vld [vmem:[#allocation5] ss:$0 sm:$0xff] }
 0x8ec   :  { %5621 = vtanh.f32 %v4995_v37  ;;  %v5076_v39 = vsel %vm12159_vm11, %v12056_v31, %v5072_v62 }
 0x8ed   :  { %v5620_v45 = vpop.eup %5619  ;;  %5623 = vtanh.f32 %v5085_v50  ;;  %v5081_v34 = vsel %vm5078_vm0, %v5080_v32, %v5076_v39 }
 0x8ee   :  { %v4994_v53 = vmul.f32 %v5620_v45, %v4911_v23  ;;  %5625 = vtanh.f32 %v5086_v21 }
 0x8f0   :  { %v4996_v60 = vadd.f32 %v4994_v53, %v4992_v4 }
 0x8f2   :  { %5627 = vtanh.f32 %v4996_v60  ;;  %v5622_v10 = vpop.eup %5621 }
 0x8f3   :  { %v5624_v55 = vpop.eup %5623  ;;  %v4999_v48 = vmul.f32 %v5622_v10, %v4972_v25 }
 0x8f4   :  { %v5626_v42 = vpop.eup %5625  ;;  %v5089_v52 = vmul.f32 %v5624_v55, %v5066_v17 }
 0x8f5   :  { %v5097_v30 = vmul.f32 %v5093_v51, %v4999_v48  ;;  %v5090_v57 = vmul.f32 %v5626_v42, %v5081_v34 }
 0x8f6   :  { %v5108_v12 = vmul.f32 %v5104_v7, %v5089_v52 }
 0x8f7   :  { %v5109_v15 = vmul.f32 %v5105_v47, %v5090_v57 }
 0x8f8   :  { %v5628_v33 = vpop.eup %5627 }
 0x8f9   :  { %v5000_v31 = vmul.f32 %v5628_v33, %v4987_v27  ;;  %v5110_v3 = vadd.f32 %v5109_v15, %v5108_v12 }
 0x8fb   :  { %v5098_v5 = vmul.f32 %v5094_v56, %v5000_v31 }
 0x8fd   :  { %v5099_v20 = vadd.f32 %v5098_v5, %v5097_v30 }
 0x8ff   :  { %5100 = vadd.xlane.f32.xlu0 %v5099_v20 }
 0x907   :  { %5111 = vadd.xlane.f32.xlu0 %v5110_v3 }
 0x972   :  { %v5101_v28 = vpop.xlane.xlu0 %5100 }
 0x97a   :  { %v5112_v37 = vpop.xlane.xlu0 %5111 }
 0x97b   :  { %v5113_v23 = vadd.f32 %v5112_v37, %v5101_v28 }
 0x97d   :  { %v5118_v0 = vadd.f32 %v5348_v11, %v5113_v23 }
 0x97f   :  { %5121 = vperm.xlu1 %5346, %v5118_v0  }
 0x9f1   :  { %v5122_v4 = vpop.permute.xlu1 %5121 }
 0x9f2   :  { %5124 = vst [vmem:[%s12205_s7] sm:$0xff] %v5122_v4 }
 0x9f3   :  { %5129 = vsyncpa [#allocation7], 1 }
 0x9f4   :  { %5130 = vsyncmov [#allocation4] }
 0x9f7   :  { %s5131_s6 = vpop.sfrf %5130 }
 0x9f8   :  { %p5339_p0 = scmp.ne.s32.totalorder %s5131_s6, 0 }
 0x9fa   :  { %5135 = shalt.err (%p5339_p0)  }

</bundles_post_ra>
